<compile_context>
chip_gen: v5e
topology: v5e:2x2
jax: 0.10.0
libtpu: 0.0.40
codegen_flags: <defaults>
</compile_context>

<pallas_src>
import jax
import jax.numpy as jnp
from jax import lax
from jax.experimental import pallas as pl
from jax.experimental.pallas import tpu as pltpu


# ---------------------------------------------------------------------------
# Fused BasicBlock kernel: one image per grid step.
# ---------------------------------------------------------------------------
def _basic_block_kernel(x_ref, w1_ref, s1_ref, b1_ref, w2_ref, s2_ref, b2_ref,
                        o_ref, pad_ref):
    _, H, W, C = x_ref.shape  # channel dim already lane-padded to 128 multiple

    # Stage the spatially zero-padded bf16 input in VMEM (no HBM halo traffic).
    pad_ref[...] = jnp.zeros_like(pad_ref)
    pad_ref[1:H + 1, 1:W + 1, :] = x_ref[0].astype(pad_ref.dtype)

    # ---- conv1 (3x3, pad=1, no bias): shift-and-accumulate on the MXU ------
    acc = None
    for ky in range(3):
        for kx in range(3):
            xs = pad_ref[ky:ky + H, kx:kx + W, :].reshape(H * W, C)
            d = jnp.dot(xs, w1_ref[ky, kx], preferred_element_type=jnp.float32)
            acc = d if acc is None else acc + d
    # BN1 (folded running-stat affine) + ReLU, in f32
    h = jnp.maximum(acc * s1_ref[...] + b1_ref[...], 0.0)

    # Reuse the same scratch for the padded intermediate (border is still 0);
    # the intermediate never round-trips HBM.
    pad_ref[1:H + 1, 1:W + 1, :] = h.reshape(H, W, C).astype(pad_ref.dtype)

    # ---- conv2 (3x3, pad=1, no bias) + BN2 + residual add + ReLU -----------
    acc2 = None
    for ky in range(3):
        for kx in range(3):
            hs = pad_ref[ky:ky + H, kx:kx + W, :].reshape(H * W, C)
            d = jnp.dot(hs, w2_ref[ky, kx], preferred_element_type=jnp.float32)
            acc2 = d if acc2 is None else acc2 + d
    y = (acc2 * s2_ref[...] + b2_ref[...]).reshape(H, W, C)
    y = y + x_ref[0]                       # identity add in f32
    o_ref[0] = jnp.maximum(y, 0.0)


# ---------------------------------------------------------------------------
# Wrapper: NCHW public API, NHWC + channel padding internally.
# ---------------------------------------------------------------------------
def _round_up(x, m):
    return (x + m - 1) // m * m


def _prep_weight(w_oihw, cp_in, cp_out):
    """Torch (O, I, 3, 3) -> (3, 3, cp_in, cp_out) bf16, zero-padded channels."""
    o, i, _, _ = w_oihw.shape
    w = jnp.transpose(w_oihw, (2, 3, 1, 0))  # (ky, kx, I, O)
    w = jnp.pad(w, ((0, 0), (0, 0), (0, cp_in - i), (0, cp_out - o)))
    return w.astype(jnp.bfloat16)


def _fold_bn(gamma, beta, mean, var, cp, eps=1e-5):
    scale = gamma / jnp.sqrt(var + eps)
    shift = beta - mean * scale
    scale = jnp.pad(scale, (0, cp - scale.shape[0])).reshape(1, cp)
    shift = jnp.pad(shift, (0, cp - shift.shape[0])).reshape(1, cp)
    return scale.astype(jnp.float32), shift.astype(jnp.float32)


def basic_block_forward(x_nchw, params):
    N, Ci, H, W = x_nchw.shape
    Co = params["conv1_w"].shape[0]  # planes
    assert Ci == Co, "stride=1 / downsample=None path requires inplanes == planes"

    cp = _round_up(max(Ci, Co), 128)  # lane-pad channels

    x = jnp.transpose(x_nchw, (0, 2, 3, 1)).astype(jnp.float32)       # NHWC
    x_cp = jnp.pad(x, ((0, 0), (0, 0), (0, 0), (0, cp - Ci)))         # lane pad

    w1 = _prep_weight(params["conv1_w"], cp, cp)
    w2 = _prep_weight(params["conv2_w"], cp, cp)
    s1, b1 = _fold_bn(params["bn1_g"], params["bn1_b"],
                      params["bn1_m"], params["bn1_v"], cp)
    s2, b2 = _fold_bn(params["bn2_g"], params["bn2_b"],
                      params["bn2_m"], params["bn2_v"], cp)

    out = pl.pallas_call(
        _basic_block_kernel,
        out_shape=jax.ShapeDtypeStruct((N, H, W, cp), jnp.float32),
        grid=(N,),
        in_specs=[
            pl.BlockSpec((1, H, W, cp), lambda n: (n, 0, 0, 0)),
            pl.BlockSpec((3, 3, cp, cp), lambda n: (0, 0, 0, 0)),
            pl.BlockSpec((1, cp), lambda n: (0, 0)),
            pl.BlockSpec((1, cp), lambda n: (0, 0)),
            pl.BlockSpec((3, 3, cp, cp), lambda n: (0, 0, 0, 0)),
            pl.BlockSpec((1, cp), lambda n: (0, 0)),
            pl.BlockSpec((1, cp), lambda n: (0, 0)),
        ],
        out_specs=pl.BlockSpec((1, H, W, cp), lambda n: (n, 0, 0, 0)),
        scratch_shapes=[pltpu.VMEM((H + 2, W + 2, cp), jnp.bfloat16)],
        compiler_params=pltpu.CompilerParams(
            dimension_semantics=("parallel",)),
    )(x_cp, w1, s1, b1, w2, s2, b2)

    out = out[..., :Co]
    return jnp.transpose(out, (0, 3, 1, 2))  # back to NCHW


# ---------------------------------------------------------------------------
# Pure-JAX references (lax convolutions) for validation.
# ---------------------------------------------------------------------------
def basic_block_reference(x_nchw, params, *, bf16_match=False):
    """f32 reference; with bf16_match=True it mirrors the kernel's bf16
    quantization points (conv operands + intermediate) for a tight check."""
    dn = ("NHWC", "HWIO", "NHWC")
    x = jnp.transpose(x_nchw, (0, 2, 3, 1)).astype(jnp.float32)

    def q(a):
        return a.astype(jnp.bfloat16).astype(jnp.float32) if bf16_match else a

    def conv(h, w_oihw):
        w = jnp.transpose(w_oihw, (2, 3, 1, 0))  # HWIO
        return lax.conv_general_dilated(q(h), q(w), (1, 1), "SAME",
                                        dimension_numbers=dn,
                                        preferred_element_type=jnp.float32)

    def bn(h, g, b, m, v):
        return (h - m) / jnp.sqrt(v + 1e-5) * g + b

    h = jnp.maximum(bn(conv(x, params["conv1_w"]), params["bn1_g"],
                       params["bn1_b"], params["bn1_m"], params["bn1_v"]), 0.0)
    y = bn(conv(h, params["conv2_w"]), params["bn2_g"],
           params["bn2_b"], params["bn2_m"], params["bn2_v"])
    out = jnp.maximum(y + x, 0.0)
    return jnp.transpose(out, (0, 3, 1, 2))


# ---------------------------------------------------------------------------
# Deterministic parameters (shapes from BasicBlock.__init__).
# ---------------------------------------------------------------------------
def make_params(inplanes, planes, key):
    ks = jax.random.split(key, 6)
    return {
        "conv1_w": 0.1 * jax.random.normal(ks[0], (planes, inplanes, 3, 3), jnp.float32),
        "bn1_g": 1.0 + 0.1 * jax.random.normal(ks[1], (planes,), jnp.float32),
        "bn1_b": 0.05 * jax.random.normal(ks[2], (planes,), jnp.float32),
        "bn1_m": 0.02 * jnp.arange(planes, dtype=jnp.float32),
        "bn1_v": 1.0 + 0.1 * jnp.arange(planes, dtype=jnp.float32),
        "conv2_w": 0.1 * jax.random.normal(ks[3], (planes, planes, 3, 3), jnp.float32),
        "bn2_g": 1.0 + 0.1 * jax.random.normal(ks[4], (planes,), jnp.float32),
        "bn2_b": 0.05 * jax.random.normal(ks[5], (planes,), jnp.float32),
        "bn2_m": -0.02 * jnp.arange(planes, dtype=jnp.float32),
        "bn2_v": 0.5 + 0.1 * jnp.arange(planes, dtype=jnp.float32),
    }


if __name__ == "__main__":
    inplanes = planes = 4
    N, H, W = 2, 16, 16

    key = jax.random.PRNGKey(0)
    kx, kp = jax.random.split(key, 2)
    x = jax.random.normal(kx, (N, inplanes, H, W), jnp.float32)  # NCHW
    params = make_params(inplanes, planes, kp)

    out = jax.jit(basic_block_forward)(x, params)
    out = jax.block_until_ready(out)
    assert out.shape == (N, planes, H, W), out.shape

    # Tight check vs a reference that uses the same bf16 quantization points.
    ref_bf16 = jax.block_until_ready(basic_block_reference(x, params, bf16_match=True))
    assert jnp.allclose(out, ref_bf16, rtol=2e-3, atol=2e-3), \
        float(jnp.abs(out - ref_bf16).max())

    # Looser sanity check vs the full-f32 PyTorch-semantics reference.
    ref_f32 = jax.block_until_ready(basic_block_reference(x, params, bf16_match=False))
    assert jnp.allclose(out, ref_f32, rtol=5e-2, atol=5e-2), \
        float(jnp.abs(out - ref_f32).max())

    print("KERNEL_OK")
</pallas_src>

<mosaic_0001>
module attributes {stable_mosaic.version = 11 : i64} {
  func.func @_basic_block_kernel(%arg0: i32, %arg1: memref<1x16x16x128xf32, #tpu.memory_space<vmem>>, %arg2: memref<3x3x128x128xbf16, #tpu.memory_space<vmem>>, %arg3: memref<1x128xf32, #tpu.memory_space<vmem>>, %arg4: memref<1x128xf32, #tpu.memory_space<vmem>>, %arg5: memref<3x3x128x128xbf16, #tpu.memory_space<vmem>>, %arg6: memref<1x128xf32, #tpu.memory_space<vmem>>, %arg7: memref<1x128xf32, #tpu.memory_space<vmem>>, %arg8: memref<1x16x16x128xf32, #tpu.memory_space<vmem>>, %arg9: memref<18x18x128xbf16, #tpu.memory_space<vmem>>) attributes {dimension_semantics = [#tpu.dimension_semantics<parallel>], iteration_bounds = array<i64: 2>, scalar_prefetch = 0 : i64, scratch_operands = 1 : i64, tpu.core_type = #tpu.core_type<tc>, window_params = [{transform_indices = @transform_0, window_bounds = array<i64: 1, 16, 16, 128>}, {pipeline_mode = #tpu.pipeline_mode<synchronous>, transform_indices = @transform_1, window_bounds = array<i64: 3, 3, 128, 128>}, {pipeline_mode = #tpu.pipeline_mode<synchronous>, transform_indices = @transform_2, window_bounds = array<i64: 1, 128>}, {pipeline_mode = #tpu.pipeline_mode<synchronous>, transform_indices = @transform_3, window_bounds = array<i64: 1, 128>}, {pipeline_mode = #tpu.pipeline_mode<synchronous>, transform_indices = @transform_4, window_bounds = array<i64: 3, 3, 128, 128>}, {pipeline_mode = #tpu.pipeline_mode<synchronous>, transform_indices = @transform_5, window_bounds = array<i64: 1, 128>}, {pipeline_mode = #tpu.pipeline_mode<synchronous>, transform_indices = @transform_6, window_bounds = array<i64: 1, 128>}, {transform_indices = @transform_7, window_bounds = array<i64: 1, 16, 16, 128>}]} {
    %cst = arith.constant 0.000000e+00 : bf16
    %0 = vector.broadcast %cst : bf16 to vector<18x18x128xbf16>
    %c0 = arith.constant 0 : index
    %c0_0 = arith.constant 0 : index
    %c0_1 = arith.constant 0 : index
    %1 = vector.load %arg9[%c0, %c0_0, %c0_1] : memref<18x18x128xbf16, #tpu.memory_space<vmem>>, vector<18x18x128xbf16>
    tpu.vector_store %arg9[%c0, %c0_0, %c0_1], %0 {strides = array<i32>} : memref<18x18x128xbf16, #tpu.memory_space<vmem>>, vector<18x18x128xbf16>,
    %c0_2 = arith.constant 0 : index
    %c0_3 = arith.constant 0 : index
    %c0_4 = arith.constant 0 : index
    %c0_5 = arith.constant 0 : index
    %2 = vector.load %arg1[%c0_2, %c0_3, %c0_4, %c0_5] : memref<1x16x16x128xf32, #tpu.memory_space<vmem>>, vector<1x16x16x128xf32>
    %3 = vector.shape_cast %2 : vector<1x16x16x128xf32> to vector<16x16x128xf32>
    %4 = arith.truncf %3 : vector<16x16x128xf32> to vector<16x16x128xbf16>
    %c1 = arith.constant 1 : index
    %c1_6 = arith.constant 1 : index
    %c0_7 = arith.constant 0 : index
    %5 = vector.load %arg9[%c1, %c1_6, %c0_7] : memref<18x18x128xbf16, #tpu.memory_space<vmem>>, vector<16x16x128xbf16>
    tpu.vector_store %arg9[%c1, %c1_6, %c0_7], %4 {strides = array<i32>} : memref<18x18x128xbf16, #tpu.memory_space<vmem>>, vector<16x16x128xbf16>,
    %c0_8 = arith.constant 0 : index
    %c0_9 = arith.constant 0 : index
    %c0_10 = arith.constant 0 : index
    %6 = vector.load %arg9[%c0_8, %c0_9, %c0_10] : memref<18x18x128xbf16, #tpu.memory_space<vmem>>, vector<16x16x128xbf16>
    %7 = vector.shape_cast %6 : vector<16x16x128xbf16> to vector<256x128xbf16>
    %c0_11 = arith.constant 0 : index
    %c0_12 = arith.constant 0 : index
    %c0_13 = arith.constant 0 : index
    %c0_14 = arith.constant 0 : index
    %8 = vector.load %arg2[%c0_11, %c0_12, %c0_13, %c0_14] : memref<3x3x128x128xbf16, #tpu.memory_space<vmem>>, vector<1x1x128x128xbf16>
    %9 = vector.shape_cast %8 : vector<1x1x128x128xbf16> to vector<128x128xbf16>
    %cst_15 = arith.constant dense<0.000000e+00> : vector<256x128xf32>
    %10 = tpu.matmul %7, %9, %cst_15 {dimension_numbers = #tpu.dot_dimension_numbers<[1], [0], [0], [1], [0, 0, 1, 1], [], []>} : vector<256x128xbf16>, vector<128x128xbf16>, vector<256x128xf32> -> vector<256x128xf32>
    %c0_16 = arith.constant 0 : index
    %c1_17 = arith.constant 1 : index
    %c0_18 = arith.constant 0 : index
    %11 = vector.load %arg9[%c0_16, %c1_17, %c0_18] : memref<18x18x128xbf16, #tpu.memory_space<vmem>>, vector<16x16x128xbf16>
    %12 = vector.shape_cast %11 : vector<16x16x128xbf16> to vector<256x128xbf16>
    %c0_19 = arith.constant 0 : index
    %c1_20 = arith.constant 1 : index
    %c0_21 = arith.constant 0 : index
    %c0_22 = arith.constant 0 : index
    %13 = vector.load %arg2[%c0_19, %c1_20, %c0_21, %c0_22] : memref<3x3x128x128xbf16, #tpu.memory_space<vmem>>, vector<1x1x128x128xbf16>
    %14 = vector.shape_cast %13 : vector<1x1x128x128xbf16> to vector<128x128xbf16>
    %cst_23 = arith.constant dense<0.000000e+00> : vector<256x128xf32>
    %15 = tpu.matmul %12, %14, %cst_23 {dimension_numbers = #tpu.dot_dimension_numbers<[1], [0], [0], [1], [0, 0, 1, 1], [], []>} : vector<256x128xbf16>, vector<128x128xbf16>, vector<256x128xf32> -> vector<256x128xf32>
    %16 = arith.addf %10, %15 : vector<256x128xf32>
    %c0_24 = arith.constant 0 : index
    %c2 = arith.constant 2 : index
    %c0_25 = arith.constant 0 : index
    %17 = vector.load %arg9[%c0_24, %c2, %c0_25] : memref<18x18x128xbf16, #tpu.memory_space<vmem>>, vector<16x16x128xbf16>
    %18 = vector.shape_cast %17 : vector<16x16x128xbf16> to vector<256x128xbf16>
    %c0_26 = arith.constant 0 : index
    %c2_27 = arith.constant 2 : index
    %c0_28 = arith.constant 0 : index
    %c0_29 = arith.constant 0 : index
    %19 = vector.load %arg2[%c0_26, %c2_27, %c0_28, %c0_29] : memref<3x3x128x128xbf16, #tpu.memory_space<vmem>>, vector<1x1x128x128xbf16>
    %20 = vector.shape_cast %19 : vector<1x1x128x128xbf16> to vector<128x128xbf16>
    %cst_30 = arith.constant dense<0.000000e+00> : vector<256x128xf32>
    %21 = tpu.matmul %18, %20, %cst_30 {dimension_numbers = #tpu.dot_dimension_numbers<[1], [0], [0], [1], [0, 0, 1, 1], [], []>} : vector<256x128xbf16>, vector<128x128xbf16>, vector<256x128xf32> -> vector<256x128xf32>
    %22 = arith.addf %16, %21 : vector<256x128xf32>
    %c1_31 = arith.constant 1 : index
    %c0_32 = arith.constant 0 : index
    %c0_33 = arith.constant 0 : index
    %23 = vector.load %arg9[%c1_31, %c0_32, %c0_33] : memref<18x18x128xbf16, #tpu.memory_space<vmem>>, vector<16x16x128xbf16>
    %24 = vector.shape_cast %23 : vector<16x16x128xbf16> to vector<256x128xbf16>
    %c1_34 = arith.constant 1 : index
    %c0_35 = arith.constant 0 : index
    %c0_36 = arith.constant 0 : index
    %c0_37 = arith.constant 0 : index
    %25 = vector.load %arg2[%c1_34, %c0_35, %c0_36, %c0_37] : memref<3x3x128x128xbf16, #tpu.memory_space<vmem>>, vector<1x1x128x128xbf16>
    %26 = vector.shape_cast %25 : vector<1x1x128x128xbf16> to vector<128x128xbf16>
    %cst_38 = arith.constant dense<0.000000e+00> : vector<256x128xf32>
    %27 = tpu.matmul %24, %26, %cst_38 {dimension_numbers = #tpu.dot_dimension_numbers<[1], [0], [0], [1], [0, 0, 1, 1], [], []>} : vector<256x128xbf16>, vector<128x128xbf16>, vector<256x128xf32> -> vector<256x128xf32>
    %28 = arith.addf %22, %27 : vector<256x128xf32>
    %c1_39 = arith.constant 1 : index
    %c1_40 = arith.constant 1 : index
    %c0_41 = arith.constant 0 : index
    %29 = vector.load %arg9[%c1_39, %c1_40, %c0_41] : memref<18x18x128xbf16, #tpu.memory_space<vmem>>, vector<16x16x128xbf16>
    %30 = vector.shape_cast %29 : vector<16x16x128xbf16> to vector<256x128xbf16>
    %c1_42 = arith.constant 1 : index
    %c1_43 = arith.constant 1 : index
    %c0_44 = arith.constant 0 : index
    %c0_45 = arith.constant 0 : index
    %31 = vector.load %arg2[%c1_42, %c1_43, %c0_44, %c0_45] : memref<3x3x128x128xbf16, #tpu.memory_space<vmem>>, vector<1x1x128x128xbf16>
    %32 = vector.shape_cast %31 : vector<1x1x128x128xbf16> to vector<128x128xbf16>
    %cst_46 = arith.constant dense<0.000000e+00> : vector<256x128xf32>
    %33 = tpu.matmul %30, %32, %cst_46 {dimension_numbers = #tpu.dot_dimension_numbers<[1], [0], [0], [1], [0, 0, 1, 1], [], []>} : vector<256x128xbf16>, vector<128x128xbf16>, vector<256x128xf32> -> vector<256x128xf32>
    %34 = arith.addf %28, %33 : vector<256x128xf32>
    %c1_47 = arith.constant 1 : index
    %c2_48 = arith.constant 2 : index
    %c0_49 = arith.constant 0 : index
    %35 = vector.load %arg9[%c1_47, %c2_48, %c0_49] : memref<18x18x128xbf16, #tpu.memory_space<vmem>>, vector<16x16x128xbf16>
    %36 = vector.shape_cast %35 : vector<16x16x128xbf16> to vector<256x128xbf16>
    %c1_50 = arith.constant 1 : index
    %c2_51 = arith.constant 2 : index
    %c0_52 = arith.constant 0 : index
    %c0_53 = arith.constant 0 : index
    %37 = vector.load %arg2[%c1_50, %c2_51, %c0_52, %c0_53] : memref<3x3x128x128xbf16, #tpu.memory_space<vmem>>, vector<1x1x128x128xbf16>
    %38 = vector.shape_cast %37 : vector<1x1x128x128xbf16> to vector<128x128xbf16>
    %cst_54 = arith.constant dense<0.000000e+00> : vector<256x128xf32>
    %39 = tpu.matmul %36, %38, %cst_54 {dimension_numbers = #tpu.dot_dimension_numbers<[1], [0], [0], [1], [0, 0, 1, 1], [], []>} : vector<256x128xbf16>, vector<128x128xbf16>, vector<256x128xf32> -> vector<256x128xf32>
    %40 = arith.addf %34, %39 : vector<256x128xf32>
    %c2_55 = arith.constant 2 : index
    %c0_56 = arith.constant 0 : index
    %c0_57 = arith.constant 0 : index
    %41 = vector.load %arg9[%c2_55, %c0_56, %c0_57] : memref<18x18x128xbf16, #tpu.memory_space<vmem>>, vector<16x16x128xbf16>
    %42 = vector.shape_cast %41 : vector<16x16x128xbf16> to vector<256x128xbf16>
    %c2_58 = arith.constant 2 : index
    %c0_59 = arith.constant 0 : index
    %c0_60 = arith.constant 0 : index
    %c0_61 = arith.constant 0 : index
    %43 = vector.load %arg2[%c2_58, %c0_59, %c0_60, %c0_61] : memref<3x3x128x128xbf16, #tpu.memory_space<vmem>>, vector<1x1x128x128xbf16>
    %44 = vector.shape_cast %43 : vector<1x1x128x128xbf16> to vector<128x128xbf16>
    %cst_62 = arith.constant dense<0.000000e+00> : vector<256x128xf32>
    %45 = tpu.matmul %42, %44, %cst_62 {dimension_numbers = #tpu.dot_dimension_numbers<[1], [0], [0], [1], [0, 0, 1, 1], [], []>} : vector<256x128xbf16>, vector<128x128xbf16>, vector<256x128xf32> -> vector<256x128xf32>
    %46 = arith.addf %40, %45 : vector<256x128xf32>
    %c2_63 = arith.constant 2 : index
    %c1_64 = arith.constant 1 : index
    %c0_65 = arith.constant 0 : index
    %47 = vector.load %arg9[%c2_63, %c1_64, %c0_65] : memref<18x18x128xbf16, #tpu.memory_space<vmem>>, vector<16x16x128xbf16>
    %48 = vector.shape_cast %47 : vector<16x16x128xbf16> to vector<256x128xbf16>
    %c2_66 = arith.constant 2 : index
    %c1_67 = arith.constant 1 : index
    %c0_68 = arith.constant 0 : index
    %c0_69 = arith.constant 0 : index
    %49 = vector.load %arg2[%c2_66, %c1_67, %c0_68, %c0_69] : memref<3x3x128x128xbf16, #tpu.memory_space<vmem>>, vector<1x1x128x128xbf16>
    %50 = vector.shape_cast %49 : vector<1x1x128x128xbf16> to vector<128x128xbf16>
    %cst_70 = arith.constant dense<0.000000e+00> : vector<256x128xf32>
    %51 = tpu.matmul %48, %50, %cst_70 {dimension_numbers = #tpu.dot_dimension_numbers<[1], [0], [0], [1], [0, 0, 1, 1], [], []>} : vector<256x128xbf16>, vector<128x128xbf16>, vector<256x128xf32> -> vector<256x128xf32>
    %52 = arith.addf %46, %51 : vector<256x128xf32>
    %c2_71 = arith.constant 2 : index
    %c2_72 = arith.constant 2 : index
    %c0_73 = arith.constant 0 : index
    %53 = vector.load %arg9[%c2_71, %c2_72, %c0_73] : memref<18x18x128xbf16, #tpu.memory_space<vmem>>, vector<16x16x128xbf16>
    %54 = vector.shape_cast %53 : vector<16x16x128xbf16> to vector<256x128xbf16>
    %c2_74 = arith.constant 2 : index
    %c2_75 = arith.constant 2 : index
    %c0_76 = arith.constant 0 : index
    %c0_77 = arith.constant 0 : index
    %55 = vector.load %arg2[%c2_74, %c2_75, %c0_76, %c0_77] : memref<3x3x128x128xbf16, #tpu.memory_space<vmem>>, vector<1x1x128x128xbf16>
    %56 = vector.shape_cast %55 : vector<1x1x128x128xbf16> to vector<128x128xbf16>
    %cst_78 = arith.constant dense<0.000000e+00> : vector<256x128xf32>
    %57 = tpu.matmul %54, %56, %cst_78 {dimension_numbers = #tpu.dot_dimension_numbers<[1], [0], [0], [1], [0, 0, 1, 1], [], []>} : vector<256x128xbf16>, vector<128x128xbf16>, vector<256x128xf32> -> vector<256x128xf32>
    %58 = arith.addf %52, %57 : vector<256x128xf32>
    %c0_79 = arith.constant 0 : index
    %c0_80 = arith.constant 0 : index
    %59 = vector.load %arg3[%c0_79, %c0_80] : memref<1x128xf32, #tpu.memory_space<vmem>>, vector<1x128xf32>
    %60 = vector.broadcast %59 : vector<1x128xf32> to vector<256x128xf32>
    %61 = arith.mulf %58, %60 : vector<256x128xf32>
    %c0_81 = arith.constant 0 : index
    %c0_82 = arith.constant 0 : index
    %62 = vector.load %arg4[%c0_81, %c0_82] : memref<1x128xf32, #tpu.memory_space<vmem>>, vector<1x128xf32>
    %63 = vector.broadcast %62 : vector<1x128xf32> to vector<256x128xf32>
    %64 = arith.addf %61, %63 : vector<256x128xf32>
    %cst_83 = arith.constant 0.000000e+00 : f32
    %65 = vector.broadcast %cst_83 : f32 to vector<256x128xf32>
    %66 = arith.maximumf %64, %65 : vector<256x128xf32>
    %67 = vector.shape_cast %66 : vector<256x128xf32> to vector<16x16x128xf32>
    %68 = arith.truncf %67 : vector<16x16x128xf32> to vector<16x16x128xbf16>
    %c1_84 = arith.constant 1 : index
    %c1_85 = arith.constant 1 : index
    %c0_86 = arith.constant 0 : index
    %69 = vector.load %arg9[%c1_84, %c1_85, %c0_86] : memref<18x18x128xbf16, #tpu.memory_space<vmem>>, vector<16x16x128xbf16>
    tpu.vector_store %arg9[%c1_84, %c1_85, %c0_86], %68 {strides = array<i32>} : memref<18x18x128xbf16, #tpu.memory_space<vmem>>, vector<16x16x128xbf16>,
    %c0_87 = arith.constant 0 : index
    %c0_88 = arith.constant 0 : index
    %c0_89 = arith.constant 0 : index
    %70 = vector.load %arg9[%c0_87, %c0_88, %c0_89] : memref<18x18x128xbf16, #tpu.memory_space<vmem>>, vector<16x16x128xbf16>
    %71 = vector.shape_cast %70 : vector<16x16x128xbf16> to vector<256x128xbf16>
    %c0_90 = arith.constant 0 : index
    %c0_91 = arith.constant 0 : index
    %c0_92 = arith.constant 0 : index
    %c0_93 = arith.constant 0 : index
    %72 = vector.load %arg5[%c0_90, %c0_91, %c0_92, %c0_93] : memref<3x3x128x128xbf16, #tpu.memory_space<vmem>>, vector<1x1x128x128xbf16>
    %73 = vector.shape_cast %72 : vector<1x1x128x128xbf16> to vector<128x128xbf16>
    %cst_94 = arith.constant dense<0.000000e+00> : vector<256x128xf32>
    %74 = tpu.matmul %71, %73, %cst_94 {dimension_numbers = #tpu.dot_dimension_numbers<[1], [0], [0], [1], [0, 0, 1, 1], [], []>} : vector<256x128xbf16>, vector<128x128xbf16>, vector<256x128xf32> -> vector<256x128xf32>
    %c0_95 = arith.constant 0 : index
    %c1_96 = arith.constant 1 : index
    %c0_97 = arith.constant 0 : index
    %75 = vector.load %arg9[%c0_95, %c1_96, %c0_97] : memref<18x18x128xbf16, #tpu.memory_space<vmem>>, vector<16x16x128xbf16>
    %76 = vector.shape_cast %75 : vector<16x16x128xbf16> to vector<256x128xbf16>
    %c0_98 = arith.constant 0 : index
    %c1_99 = arith.constant 1 : index
    %c0_100 = arith.constant 0 : index
    %c0_101 = arith.constant 0 : index
    %77 = vector.load %arg5[%c0_98, %c1_99, %c0_100, %c0_101] : memref<3x3x128x128xbf16, #tpu.memory_space<vmem>>, vector<1x1x128x128xbf16>
    %78 = vector.shape_cast %77 : vector<1x1x128x128xbf16> to vector<128x128xbf16>
    %cst_102 = arith.constant dense<0.000000e+00> : vector<256x128xf32>
    %79 = tpu.matmul %76, %78, %cst_102 {dimension_numbers = #tpu.dot_dimension_numbers<[1], [0], [0], [1], [0, 0, 1, 1], [], []>} : vector<256x128xbf16>, vector<128x128xbf16>, vector<256x128xf32> -> vector<256x128xf32>
    %80 = arith.addf %74, %79 : vector<256x128xf32>
    %c0_103 = arith.constant 0 : index
    %c2_104 = arith.constant 2 : index
    %c0_105 = arith.constant 0 : index
    %81 = vector.load %arg9[%c0_103, %c2_104, %c0_105] : memref<18x18x128xbf16, #tpu.memory_space<vmem>>, vector<16x16x128xbf16>
    %82 = vector.shape_cast %81 : vector<16x16x128xbf16> to vector<256x128xbf16>
    %c0_106 = arith.constant 0 : index
    %c2_107 = arith.constant 2 : index
    %c0_108 = arith.constant 0 : index
    %c0_109 = arith.constant 0 : index
    %83 = vector.load %arg5[%c0_106, %c2_107, %c0_108, %c0_109] : memref<3x3x128x128xbf16, #tpu.memory_space<vmem>>, vector<1x1x128x128xbf16>
    %84 = vector.shape_cast %83 : vector<1x1x128x128xbf16> to vector<128x128xbf16>
    %cst_110 = arith.constant dense<0.000000e+00> : vector<256x128xf32>
    %85 = tpu.matmul %82, %84, %cst_110 {dimension_numbers = #tpu.dot_dimension_numbers<[1], [0], [0], [1], [0, 0, 1, 1], [], []>} : vector<256x128xbf16>, vector<128x128xbf16>, vector<256x128xf32> -> vector<256x128xf32>
    %86 = arith.addf %80, %85 : vector<256x128xf32>
    %c1_111 = arith.constant 1 : index
    %c0_112 = arith.constant 0 : index
    %c0_113 = arith.constant 0 : index
    %87 = vector.load %arg9[%c1_111, %c0_112, %c0_113] : memref<18x18x128xbf16, #tpu.memory_space<vmem>>, vector<16x16x128xbf16>
    %88 = vector.shape_cast %87 : vector<16x16x128xbf16> to vector<256x128xbf16>
    %c1_114 = arith.constant 1 : index
    %c0_115 = arith.constant 0 : index
    %c0_116 = arith.constant 0 : index
    %c0_117 = arith.constant 0 : index
    %89 = vector.load %arg5[%c1_114, %c0_115, %c0_116, %c0_117] : memref<3x3x128x128xbf16, #tpu.memory_space<vmem>>, vector<1x1x128x128xbf16>
    %90 = vector.shape_cast %89 : vector<1x1x128x128xbf16> to vector<128x128xbf16>
    %cst_118 = arith.constant dense<0.000000e+00> : vector<256x128xf32>
    %91 = tpu.matmul %88, %90, %cst_118 {dimension_numbers = #tpu.dot_dimension_numbers<[1], [0], [0], [1], [0, 0, 1, 1], [], []>} : vector<256x128xbf16>, vector<128x128xbf16>, vector<256x128xf32> -> vector<256x128xf32>
    %92 = arith.addf %86, %91 : vector<256x128xf32>
    %c1_119 = arith.constant 1 : index
    %c1_120 = arith.constant 1 : index
    %c0_121 = arith.constant 0 : index
    %93 = vector.load %arg9[%c1_119, %c1_120, %c0_121] : memref<18x18x128xbf16, #tpu.memory_space<vmem>>, vector<16x16x128xbf16>
    %94 = vector.shape_cast %93 : vector<16x16x128xbf16> to vector<256x128xbf16>
    %c1_122 = arith.constant 1 : index
    %c1_123 = arith.constant 1 : index
    %c0_124 = arith.constant 0 : index
    %c0_125 = arith.constant 0 : index
    %95 = vector.load %arg5[%c1_122, %c1_123, %c0_124, %c0_125] : memref<3x3x128x128xbf16, #tpu.memory_space<vmem>>, vector<1x1x128x128xbf16>
    %96 = vector.shape_cast %95 : vector<1x1x128x128xbf16> to vector<128x128xbf16>
    %cst_126 = arith.constant dense<0.000000e+00> : vector<256x128xf32>
    %97 = tpu.matmul %94, %96, %cst_126 {dimension_numbers = #tpu.dot_dimension_numbers<[1], [0], [0], [1], [0, 0, 1, 1], [], []>} : vector<256x128xbf16>, vector<128x128xbf16>, vector<256x128xf32> -> vector<256x128xf32>
    %98 = arith.addf %92, %97 : vector<256x128xf32>
    %c1_127 = arith.constant 1 : index
    %c2_128 = arith.constant 2 : index
    %c0_129 = arith.constant 0 : index
    %99 = vector.load %arg9[%c1_127, %c2_128, %c0_129] : memref<18x18x128xbf16, #tpu.memory_space<vmem>>, vector<16x16x128xbf16>
    %100 = vector.shape_cast %99 : vector<16x16x128xbf16> to vector<256x128xbf16>
    %c1_130 = arith.constant 1 : index
    %c2_131 = arith.constant 2 : index
    %c0_132 = arith.constant 0 : index
    %c0_133 = arith.constant 0 : index
    %101 = vector.load %arg5[%c1_130, %c2_131, %c0_132, %c0_133] : memref<3x3x128x128xbf16, #tpu.memory_space<vmem>>, vector<1x1x128x128xbf16>
    %102 = vector.shape_cast %101 : vector<1x1x128x128xbf16> to vector<128x128xbf16>
    %cst_134 = arith.constant dense<0.000000e+00> : vector<256x128xf32>
    %103 = tpu.matmul %100, %102, %cst_134 {dimension_numbers = #tpu.dot_dimension_numbers<[1], [0], [0], [1], [0, 0, 1, 1], [], []>} : vector<256x128xbf16>, vector<128x128xbf16>, vector<256x128xf32> -> vector<256x128xf32>
    %104 = arith.addf %98, %103 : vector<256x128xf32>
    %c2_135 = arith.constant 2 : index
    %c0_136 = arith.constant 0 : index
    %c0_137 = arith.constant 0 : index
    %105 = vector.load %arg9[%c2_135, %c0_136, %c0_137] : memref<18x18x128xbf16, #tpu.memory_space<vmem>>, vector<16x16x128xbf16>
    %106 = vector.shape_cast %105 : vector<16x16x128xbf16> to vector<256x128xbf16>
    %c2_138 = arith.constant 2 : index
    %c0_139 = arith.constant 0 : index
    %c0_140 = arith.constant 0 : index
    %c0_141 = arith.constant 0 : index
    %107 = vector.load %arg5[%c2_138, %c0_139, %c0_140, %c0_141] : memref<3x3x128x128xbf16, #tpu.memory_space<vmem>>, vector<1x1x128x128xbf16>
    %108 = vector.shape_cast %107 : vector<1x1x128x128xbf16> to vector<128x128xbf16>
    %cst_142 = arith.constant dense<0.000000e+00> : vector<256x128xf32>
    %109 = tpu.matmul %106, %108, %cst_142 {dimension_numbers = #tpu.dot_dimension_numbers<[1], [0], [0], [1], [0, 0, 1, 1], [], []>} : vector<256x128xbf16>, vector<128x128xbf16>, vector<256x128xf32> -> vector<256x128xf32>
    %110 = arith.addf %104, %109 : vector<256x128xf32>
    %c2_143 = arith.constant 2 : index
    %c1_144 = arith.constant 1 : index
    %c0_145 = arith.constant 0 : index
    %111 = vector.load %arg9[%c2_143, %c1_144, %c0_145] : memref<18x18x128xbf16, #tpu.memory_space<vmem>>, vector<16x16x128xbf16>
    %112 = vector.shape_cast %111 : vector<16x16x128xbf16> to vector<256x128xbf16>
    %c2_146 = arith.constant 2 : index
    %c1_147 = arith.constant 1 : index
    %c0_148 = arith.constant 0 : index
    %c0_149 = arith.constant 0 : index
    %113 = vector.load %arg5[%c2_146, %c1_147, %c0_148, %c0_149] : memref<3x3x128x128xbf16, #tpu.memory_space<vmem>>, vector<1x1x128x128xbf16>
    %114 = vector.shape_cast %113 : vector<1x1x128x128xbf16> to vector<128x128xbf16>
    %cst_150 = arith.constant dense<0.000000e+00> : vector<256x128xf32>
    %115 = tpu.matmul %112, %114, %cst_150 {dimension_numbers = #tpu.dot_dimension_numbers<[1], [0], [0], [1], [0, 0, 1, 1], [], []>} : vector<256x128xbf16>, vector<128x128xbf16>, vector<256x128xf32> -> vector<256x128xf32>
    %116 = arith.addf %110, %115 : vector<256x128xf32>
    %c2_151 = arith.constant 2 : index
    %c2_152 = arith.constant 2 : index
    %c0_153 = arith.constant 0 : index
    %117 = vector.load %arg9[%c2_151, %c2_152, %c0_153] : memref<18x18x128xbf16, #tpu.memory_space<vmem>>, vector<16x16x128xbf16>
    %118 = vector.shape_cast %117 : vector<16x16x128xbf16> to vector<256x128xbf16>
    %c2_154 = arith.constant 2 : index
    %c2_155 = arith.constant 2 : index
    %c0_156 = arith.constant 0 : index
    %c0_157 = arith.constant 0 : index
    %119 = vector.load %arg5[%c2_154, %c2_155, %c0_156, %c0_157] : memref<3x3x128x128xbf16, #tpu.memory_space<vmem>>, vector<1x1x128x128xbf16>
    %120 = vector.shape_cast %119 : vector<1x1x128x128xbf16> to vector<128x128xbf16>
    %cst_158 = arith.constant dense<0.000000e+00> : vector<256x128xf32>
    %121 = tpu.matmul %118, %120, %cst_158 {dimension_numbers = #tpu.dot_dimension_numbers<[1], [0], [0], [1], [0, 0, 1, 1], [], []>} : vector<256x128xbf16>, vector<128x128xbf16>, vector<256x128xf32> -> vector<256x128xf32>
    %122 = arith.addf %116, %121 : vector<256x128xf32>
    %c0_159 = arith.constant 0 : index
    %c0_160 = arith.constant 0 : index
    %123 = vector.load %arg6[%c0_159, %c0_160] : memref<1x128xf32, #tpu.memory_space<vmem>>, vector<1x128xf32>
    %124 = vector.broadcast %123 : vector<1x128xf32> to vector<256x128xf32>
    %125 = arith.mulf %122, %124 : vector<256x128xf32>
    %c0_161 = arith.constant 0 : index
    %c0_162 = arith.constant 0 : index
    %126 = vector.load %arg7[%c0_161, %c0_162] : memref<1x128xf32, #tpu.memory_space<vmem>>, vector<1x128xf32>
    %127 = vector.broadcast %126 : vector<1x128xf32> to vector<256x128xf32>
    %128 = arith.addf %125, %127 : vector<256x128xf32>
    %129 = vector.shape_cast %128 : vector<256x128xf32> to vector<16x16x128xf32>
    %c0_163 = arith.constant 0 : index
    %c0_164 = arith.constant 0 : index
    %c0_165 = arith.constant 0 : index
    %c0_166 = arith.constant 0 : index
    %130 = vector.load %arg1[%c0_163, %c0_164, %c0_165, %c0_166] : memref<1x16x16x128xf32, #tpu.memory_space<vmem>>, vector<1x16x16x128xf32>
    %131 = vector.shape_cast %130 : vector<1x16x16x128xf32> to vector<16x16x128xf32>
    %132 = arith.addf %129, %131 : vector<16x16x128xf32>
    %cst_167 = arith.constant 0.000000e+00 : f32
    %133 = vector.broadcast %cst_167 : f32 to vector<16x16x128xf32>
    %134 = arith.maximumf %132, %133 : vector<16x16x128xf32>
    %c0_168 = arith.constant 0 : index
    %c0_169 = arith.constant 0 : index
    %c0_170 = arith.constant 0 : index
    %c0_171 = arith.constant 0 : index
    %135 = vector.load %arg8[%c0_168, %c0_169, %c0_170, %c0_171] : memref<1x16x16x128xf32, #tpu.memory_space<vmem>>, vector<1x16x16x128xf32>
    %136 = vector.shape_cast %135 : vector<1x16x16x128xf32> to vector<16x16x128xf32>
    %137 = vector.shape_cast %134 : vector<16x16x128xf32> to vector<1x16x16x128xf32>
    tpu.vector_store %arg8[%c0_168, %c0_169, %c0_170, %c0_171], %137 {strides = array<i32>} : memref<1x16x16x128xf32, #tpu.memory_space<vmem>>, vector<1x16x16x128xf32>,
    return
  }
  func.func @transform_0(%arg0: i32) -> (i32, i32, i32, i32) {
    %c0_i32 = arith.constant 0 : i32
    %c0_i32_0 = arith.constant 0 : i32
    %c0_i32_1 = arith.constant 0 : i32
    %c0_i32_2 = arith.constant 0 : i32
    return %arg0, %c0_i32, %c0_i32_0, %c0_i32_1 : i32, i32, i32, i32
  }
  func.func @transform_1(%arg0: i32) -> (i32, i32, i32, i32) {
    %c0_i32 = arith.constant 0 : i32
    %c0_i32_0 = arith.constant 0 : i32
    %c0_i32_1 = arith.constant 0 : i32
    %c0_i32_2 = arith.constant 0 : i32
    %c0_i32_3 = arith.constant 0 : i32
    return %c0_i32, %c0_i32_0, %c0_i32_1, %c0_i32_2 : i32, i32, i32, i32
  }
  func.func @transform_2(%arg0: i32) -> (i32, i32) {
    %c0_i32 = arith.constant 0 : i32
    %c0_i32_0 = arith.constant 0 : i32
    %c0_i32_1 = arith.constant 0 : i32
    return %c0_i32, %c0_i32_0 : i32, i32
  }
  func.func @transform_3(%arg0: i32) -> (i32, i32) {
    %c0_i32 = arith.constant 0 : i32
    %c0_i32_0 = arith.constant 0 : i32
    %c0_i32_1 = arith.constant 0 : i32
    return %c0_i32, %c0_i32_0 : i32, i32
  }
  func.func @transform_4(%arg0: i32) -> (i32, i32, i32, i32) {
    %c0_i32 = arith.constant 0 : i32
    %c0_i32_0 = arith.constant 0 : i32
    %c0_i32_1 = arith.constant 0 : i32
    %c0_i32_2 = arith.constant 0 : i32
    %c0_i32_3 = arith.constant 0 : i32
    return %c0_i32, %c0_i32_0, %c0_i32_1, %c0_i32_2 : i32, i32, i32, i32
  }
  func.func @transform_5(%arg0: i32) -> (i32, i32) {
    %c0_i32 = arith.constant 0 : i32
    %c0_i32_0 = arith.constant 0 : i32
    %c0_i32_1 = arith.constant 0 : i32
    return %c0_i32, %c0_i32_0 : i32, i32
  }
  func.func @transform_6(%arg0: i32) -> (i32, i32) {
    %c0_i32 = arith.constant 0 : i32
    %c0_i32_0 = arith.constant 0 : i32
    %c0_i32_1 = arith.constant 0 : i32
    return %c0_i32, %c0_i32_0 : i32, i32
  }
  func.func @transform_7(%arg0: i32) -> (i32, i32, i32, i32) {
    %c0_i32 = arith.constant 0 : i32
    %c0_i32_0 = arith.constant 0 : i32
    %c0_i32_1 = arith.constant 0 : i32
    %c0_i32_2 = arith.constant 0 : i32
    return %arg0, %c0_i32, %c0_i32_0, %c0_i32_1 : i32, i32, i32, i32
  }
}

</mosaic_0001>

<bundles_post_ra>
// kernel: basic_block_forward.1
= control target key start
LH: loop header
LB: loop body
LE: loop exit
PB: predicated region body
PF: predicated region fallthrough
CT: control target
= control target key end

     0   :  { %s11656_s24 = smov 0   ;;  %s15763_s0 = inlined_call_operand.vmem [shape: f32[2,16,16,128], index: 0, kind: input, shape index: {}]   ;;  %s15764_s1 = inlined_call_operand.vmem [shape: bf16[3,3,128,128], index: 1, kind: input, shape index: {}]   ;;  %s15765_s2 = inlined_call_operand.vmem [shape: f32[1,128], index: 2, kind: input, shape index: {}]   ;;  %s15766_s3 = inlined_call_operand.vmem [shape: f32[1,128], index: 3, kind: input, shape index: {}]   ;;  %s15767_s4 = inlined_call_operand.vmem [shape: bf16[3,3,128,128], index: 4, kind: input, shape index: {}]   ;;  %s15768_s5 = inlined_call_operand.vmem [shape: f32[1,128], index: 5, kind: input, shape index: {}]   ;;  %s15769_s6 = inlined_call_operand.vmem [shape: f32[1,128], index: 6, kind: input, shape index: {}]   ;;  %s15770_s7 = inlined_call_operand.vmem [shape: f32[2,16,16,128], index: 7, kind: output, shape index: {}]  }
   0x1 LB: > { %s9974_s25 = sadd.s32 4294967295, %s11613_s24   ;;  %p9978_p0 = scmp.ge.s32.totalorder %s11613_s24, 1  ;;  %s11613_s24 = sphi %s11656_s24, %s17_s24  }
   0x2   : > { %p237_p1 = scmp.lt.s32.totalorder %s11613_s24, 3 }
   0x4   : > { %p238_p2 = pnand %p9978_p0, %p237_p1 }
   0x6   : > { %241 = sbr.rel (%p238_p2) target bundleno = 1539 (0x603), region = 48 }
   0xb   : > { %v11330_v0 = vld [vmem:[%s15764_s1 + $0x78] sm:$0xff]  ;;  %v11615_v2 = vmov 0   ;;  %v11329_v3 = vld [vmem:[%s15764_s1 + $0x70] sm:$0xff]  ;;  %v11328_v5 = vld [vmem:[%s15764_s1 + $0x68] sm:$0xff]  ;;  %vm903_vm0 = vsmask.f32 3328 }
   0xc   : > { %v11322_v1 = vld [vmem:[%s15764_s1 + $0x38] sm:$0xff]  ;;  %280 = vst [vmem:[#allocation2] sm:$0xf] %v11615_v2  ;;  %1419 = vmatpush.bf16.msra.mxu0 %v11330_v0  ;;  %v11321_v4 = vld [vmem:[%s15764_s1 + $0x30] sm:$0xff]  ;;  %11539 = vmatpush.bf16.msra.mxu2 %v11330_v0  ;;  %v11320_v6 = vld [vmem:[%s15764_s1 + $0x28] sm:$0xff]  ;;  %p11710_p3 = scmp.lt.s32.totalorder %s9974_s25, 1 }
   0xd   : > { %11547 = vmatpush.bf16.msra.mxu3 %v11322_v1  ;;  %281 = vst [vmem:[#allocation2 + $0x4] sm:$0xf] %v11615_v2  ;;  %1652 = vmatpush.bf16.msra.mxu1 %v11322_v1  ;;  %v11327_v11 = vld [vmem:[%s15764_s1 + $0x60] sm:$0xff]  ;;  %v11326_v20 = vld [vmem:[%s15764_s1 + $0x58] sm:$0xff]  ;;  %vm904_vm1 = vsmask.f32 7440 }
   0xe   : > { %282 = vst [vmem:[#allocation2 + $0x8] sm:$0x1] %v11615_v2  ;;  %v11319_v12 = vld [vmem:[%s15764_s1 + $0x20] sm:$0xff]  ;;  %v11318_v21 = vld [vmem:[%s15764_s1 + $0x18] sm:$0xff]  ;;  %v11325_v25 = vld [vmem:[%s15764_s1 + $0x50] sm:$0xff]  ;;  %s16021_s25 = smov (!%p11710_p3, %s9974_s25), 1 }
   0xf   : > { %283 = vst [vmem:[#allocation2 + $0xc] sm:$0xf] %v11615_v2  ;;  %v11317_v26 = vld [vmem:[%s15764_s1 + $0x10] sm:$0xff]  ;;  %vm11724_vm2 = vmor %vm903_vm0, %vm904_vm1  ;;  %v11324_v31 = vld [vmem:[%s15764_s1 + $0x48] sm:$0xff]  ;;  %s11297_s11 = sshll.u32 %s16021_s25, 8  ;;  %vm722_vm3 = vcmask 1043456  }
  0x10   : > { %1420 = vmatpush.bf16.msra.mxu0 %v11329_v3  ;;  %284 = vst [vmem:[#allocation2 + $0x10] sm:$0xf] %v11615_v2  ;;  %11540 = vmatpush.bf16.msra.mxu2 %v11329_v3  ;;  %v11316_v32 = vld [vmem:[%s15764_s1 + $0x8] sm:$0xff]  ;;  %v11323_v37 = vld [vmem:[%s15764_s1 + $0x40] sm:$0xff]  ;;  %s11765_s18 = scalar_lea.vmem %s15763_s0, %s11297_s11  ;;  %vm398_vm4 = vsmask.f32 256  ;;  %s15503_s29 = scalar_lea.vmem %s15770_s7, %s11297_s11 }
  0x11   : > { %11548 = vmatpush.bf16.msra.mxu3 %v11321_v4  ;;  %1653 = vmatpush.bf16.msra.mxu1 %v11321_v4  ;;  %285 = vst [vmem:[#allocation2 + $0x14] sm:$0x1] %v11615_v2  ;;  %v11315_v38 = vld [vmem:[%s15764_s1] sm:$0xff]  ;;  %v348_v40 = vld [vmem:[%s11765_s18 + $0x70] sm:$0xff]  ;;  %v349_v41 = vld [vmem:[%s11765_s18 + $0x78] sm:$0xff]  ;;  %vm729_vm7 = vcmask 1040384  }
  0x12   : > { %286 = vst [vmem:[#allocation2 + $0x18] sm:$0xf] %v11615_v2  ;;  %v380_v42 = vpack.c.bf16 %v348_v40, %v348_v40  ;;  %v334_v43 = vld [vmem:[%s11765_s18] sm:$0xff]  ;;  %v381_v44 = vpack.c.bf16 %v349_v41, %v349_v41  ;;  %v335_v46 = vld [vmem:[%s11765_s18 + $0x8] sm:$0xff]  ;;  %vm399_vm5 = vsmask.f32 4368  ;;  %vm11843_vm10 = vmand %vm729_vm7, %vm398_vm4 }
  0x13   : > { %v839_v7 = vld [vmem:[#allocation2] sm:$0xf]  ;;  %287 = vst [vmem:[#allocation2 + $0x1c] sm:$0xf] %v11615_v2  ;;  %v11781_v47 = vpack.c.bf16 %v334_v43, %v334_v43  ;;  %v11787_v50 = vpack.c.bf16 %v335_v46, %v335_v46  ;;  %v351_v53 = vld [vmem:[%s11765_s18 + $0x88] sm:$0xff]  ;;  %v336_v58 = vld [vmem:[%s11765_s18 + $0x10] sm:$0xff] }
  0x14   : > { %v840_v8 = vld [vmem:[#allocation2 + $0x4] sm:$0xf]  ;;  %v907_v9 = vshrl.u32 %v839_v7, 16  ;;  %v910_v10 = vshll.u32 %v839_v7, 16  ;;  %1421 = vmatpush.bf16.msra.mxu0 %v11328_v5  ;;  %288 = vst [vmem:[#allocation2 + $0x20] sm:$0x1] %v11615_v2  ;;  %11541 = vmatpush.bf16.msra.mxu2 %v11328_v5  ;;  %v11799_v60 = vpack.c.bf16 %v351_v53, %v351_v53  ;;  %vm11827_vm8 = vmor %vm398_vm4, %vm399_vm5 }
  0x15   : > { %11549 = vmatpush.bf16.msra.mxu3 %v11320_v6  ;;  %v916_v13 = vshll.u32 %v840_v8, 16  ;;  %v920_v14 = vshrl.u32 %v840_v8, 16  ;;  %1654 = vmatpush.bf16.msra.mxu1 %v11320_v6  ;;  %v887_v15 = vld [vmem:[#allocation2 + $0x8] sm:$0x1]  ;;  %289 = vst [vmem:[#allocation2 + $0x24] sm:$0xf] %v11615_v2  ;;  %v11814_v6 = vpack.c.bf16 %v336_v58, %v336_v58 }
  0x16   : > { %v909_v16 = vrot.slane %v907_v9, 4  ;;  %v912_v17 = vrot.slane %v910_v10, 5  ;;  %290 = vst [vmem:[#allocation2 + $0x28] sm:$0xf] %v11615_v2  ;;  %v926_v24 = vshll.u32 %v887_v15, 16  ;;  %v521_v45 = vshrl.u32 %v380_v42, 16 }
  0x17   : > { %v918_v18 = vrot.slane %v916_v13, 5  ;;  %v922_v19 = vrot.slane %v920_v14, 4  ;;  %291 = vst [vmem:[#allocation2 + $0x2c] sm:$0x1] %v11615_v2  ;;  %v529_v48 = vshrl.u32 %v381_v44, 16  ;;  %v350_v49 = vld [vmem:[%s11765_s18 + $0x80] sm:$0xff] }
  0x18   : > { %1422 = vmatpush.bf16.msra.mxu0 %v11327_v11  ;;  %v913_v22 = vor.u32 %v912_v17, %v909_v16  ;;  %292 = vst [vmem:[#allocation2 + $0x30] sm:$0xf] %v11615_v2  ;;  %11542 = vmatpush.bf16.msra.mxu2 %v11327_v11  ;;  %v928_v29 = vrot.slane %v926_v24, 5  ;;  %v523_v51 = vrot.slane %v521_v45, 7  ;;  %v402_v52 = vshrl.u32 %v11781_v47, 16  ;;  %v337_v61 = vld [vmem:[%s11765_s18 + $0x18] sm:$0xff] }
  0x19   : > { %11550 = vmatpush.bf16.msra.mxu3 %v11319_v12  ;;  %v923_v23 = vor.u32 %v922_v19, %v918_v18  ;;  %1655 = vmatpush.bf16.msra.mxu1 %v11319_v12  ;;  %293 = vst [vmem:[#allocation2 + $0x34] sm:$0xf] %v11615_v2  ;;  %v11793_v54 = vpack.c.bf16 %v350_v49, %v350_v49  ;;  %v524_v55 = vshll.u32 %v380_v42, 16  ;;  %v531_v56 = vrot.slane %v529_v48, 7  ;;  %v11338_v1 = vld [vmem:[%s15764_s1 + $0xb8] sm:$0xff]  ;;  %v11299_v3 = vld [vmem:[#allocation2] sm:$0xff] }
  0x1a   : > { %294 = vst [vmem:[#allocation2 + $0x38] sm:$0x1] %v11615_v2  ;;  %v914_v27 = vrot.slane %v913_v22, 4  ;;  %v532_v57 = vshll.u32 %v381_v44, 16  ;;  %vm723_vm6 = vsmask.f32 7938  ;;  %v11820_v11 = vpack.c.bf16 %v337_v61, %v337_v61 }
  0x1b   : > { %295 = vst [vmem:[#allocation2 + $0x3c] sm:$0xf] %v11615_v2  ;;  %v924_v28 = vrot.slane %v923_v23, 4  ;;  %v410_v59 = vshrl.u32 %v11787_v50, 16  ;;  %v527_v62 = vrot.slane %v523_v51, 4  ;;  %v11803_v63 = vrot.slane %v402_v52, 7  ;;  %vm11836_vm9 = vmand %vm722_vm3, %vm723_vm6 }
  0x1c   : > { %1423 = vmatpush.bf16.msra.mxu0 %v11326_v20  ;;  %296 = vst [vmem:[#allocation2 + $0x40] sm:$0xf] %v11615_v2  ;;  %11543 = vmatpush.bf16.msra.mxu2 %v11326_v20  ;;  %v919_v33 = vsel %vm11724_vm2, %v914_v27, %v918_v18  ;;  %v405_v0 = vshll.u32 %v11781_v47, 16  ;;  %v11362_v4 = vld [vmem:[%s15764_s1 + $0xf8] sm:$0xff]  ;;  %v538_v5 = vshrl.u32 %v11793_v54, 16  ;;  %v526_v7 = vor.u32 %v524_v55, %v523_v51  ;;  %v352_v12 = vld [vmem:[%s11765_s18 + $0x90] sm:$0xff] }
  0x1d   : > { %11551 = vmatpush.bf16.msra.mxu3 %v11318_v21  ;;  %1656 = vmatpush.bf16.msra.mxu1 %v11318_v21  ;;  %297 = vst [vmem:[#allocation2 + $0x44] sm:$0x1] %v11615_v2  ;;  %v929_v34 = vsel %vm11724_vm2, %v924_v28, %v928_v29  ;;  %v1307_v35 = vunpack.c.l.b16 %v919_v33  ;;  %v534_v8 = vor.u32 %v532_v57, %v531_v56  ;;  %v536_v9 = vrot.slane %v531_v56, 4  ;;  %v11370_v10 = vld [vmem:[%s15764_s1 + $0x138] sm:$0xff]  ;;  %v725_v29 = vld [vmem:[#allocation2 + $0xc] sm:$0xf] }
  0x1e   : > { %298 = vst [vmem:[#allocation2 + $0x48] sm:$0xf] %v11615_v2  ;;  %v1308_v36 = vunpack.c.l.b16 %v929_v34  ;;  %v353_v13 = vld [vmem:[%s11765_s18 + $0x98] sm:$0xff]  ;;  %v412_v15 = vrot.slane %v410_v59, 7  ;;  %v413_v16 = vshll.u32 %v11787_v50, 16  ;;  %v546_v17 = vshrl.u32 %v11799_v60, 16 }
  0x1f   : > { %299 = vst [vmem:[#allocation2 + $0x4c] sm:$0xf] %v11615_v2  ;;  %v384_v18 = vpack.c.bf16 %v352_v12, %v352_v12  ;;  %v385_v22 = vpack.c.bf16 %v353_v13, %v353_v13  ;;  %v407_v24 = vor.u32 %v405_v0, %v11803_v63  ;;  %v419_v27 = vshrl.u32 %v11814_v6, 16  ;;  %v731_v41 = vld [vmem:[#allocation2 + $0x14] sm:$0x1] }
  0x20   : > { %1424 = vmatpush.bf16.msra.mxu0 %v11325_v25  ;;  %300 = vst [vmem:[#allocation2 + $0x50] sm:$0x1] %v11615_v2  ;;  %11544 = vmatpush.bf16.msra.mxu2 %v11325_v25  ;;  %v1339_v39 = vpack.c.b16 %v1308_v36, %v1307_v35  ;;  %v540_v25 = vrot.slane %v538_v5, 7  ;;  %v535_v28 = vsel %vm11827_vm8, %v527_v62, %v534_v8  ;;  %v548_v34 = vrot.slane %v546_v17, 7  ;;  %v11876_v61 = vld [vmem:[#allocation2 + $0x18] sm:$0xf] }
  0x21   : > { %11552 = vmatpush.bf16.msra.mxu3 %v11317_v26  ;;  %1657 = vmatpush.bf16.msra.mxu1 %v11317_v26  ;;  %301 = vst [vmem:[#allocation2 + $0x54] sm:$0xf] %v11615_v2  ;;  %v541_v26 = vshll.u32 %v11793_v54, 16  ;;  %v549_v35 = vshll.u32 %v11799_v60, 16  ;;  %v563_v36 = vshrl.u32 %v385_v22, 16  ;;  %v417_v40 = vrot.slane %v412_v15, 4 }
  0x22   : > { %302 = vst [vmem:[#allocation2 + $0x58] sm:$0xf] %v11615_v2  ;;  %v726_v42 = vsel %vm11836_vm9, %v407_v24, %v725_v29  ;;  %v421_v45 = vrot.slane %v419_v27, 7  ;;  %v422_v46 = vshll.u32 %v11814_v6, 16  ;;  %v430_v48 = vshll.u32 %v11820_v11, 16  ;;  %v11369_v17 = vld [vmem:[%s15764_s1 + $0x130] sm:$0xff] }
  0x23   : > { %303 = vst [vmem:[#allocation2 + $0x5c] sm:$0x1] %v11615_v2  ;;  %v543_v43 = vor.u32 %v541_v26, %v540_v25  ;;  %v558_v50 = vshll.u32 %v384_v18, 16  ;;  %v544_v51 = vrot.slane %v540_v25, 4  ;;  %v551_v52 = vor.u32 %v549_v35, %v548_v34  ;;  %v738_v6 = vld [vmem:[#allocation2 + $0x20] sm:$0x1] }
  0x24   : > { %1425 = vmatpush.bf16.msra.mxu0 %v11324_v31  ;;  %304 = vst [vmem:[#allocation2 + $0x60] sm:$0xf] %v11615_v2  ;;  %11545 = vmatpush.bf16.msra.mxu2 %v11324_v31  ;;  %v427_v31 = vshrl.u32 %v11820_v11, 16  ;;  %v565_v53 = vrot.slane %v563_v36, 7  ;;  %v566_v54 = vshll.u32 %v385_v22, 16  ;;  %v732_v56 = vsel %vm11843_vm10, %v417_v40, %v731_v41  ;;  %v354_v27 = vld [vmem:[%s11765_s18 + $0xa0] sm:$0xff] }
  0x25   : > { %11553 = vmatpush.bf16.msra.mxu3 %v11316_v32  ;;  %1658 = vmatpush.bf16.msra.mxu1 %v11316_v32  ;;  %305 = vst [vmem:[#allocation2 + $0x64] sm:$0xf] %v11615_v2  ;;  %v555_v32 = vshrl.u32 %v384_v18, 16  ;;  %v553_v57 = vrot.slane %v548_v34, 4  ;;  %v11874_v59 = vor.u32 %v422_v46, %v421_v45  ;;  %v425_v60 = vrot.slane %v421_v45, 4 }
  0x26   : > { %306 = vst [vmem:[#allocation2 + $0x68] sm:$0x1] %v11615_v2  ;;  %v429_v47 = vrot.slane %v427_v31, 7  ;;  %v552_v5 = vsel %vm11827_vm8, %v544_v51, %v551_v52  ;;  %v570_v11 = vrot.slane %v565_v53, 4  ;;  %vm1789_vm11 = vcmask 1042432  }
  0x27   : > { %307 = vst [vmem:[#allocation2 + $0x6c] sm:$0xf] %v11615_v2  ;;  %v557_v49 = vrot.slane %v555_v32, 7  ;;  %v735_v18 = vsel %vm11836_vm9, %v11874_v59, %v11876_v61  ;;  %vm1790_vm12 = vcmask 1046532  }
  0x28   : > { %1426 = vmatpush.bf16.msra.mxu0 %v11323_v37  ;;  %308 = vst [vmem:[#allocation2 + $0x70] sm:$0xf] %v11615_v2  ;;  %11546 = vmatpush.bf16.msra.mxu2 %v11323_v37  ;;  %v432_v62 = vor.u32 %v430_v48, %v429_v47  ;;  %vm12239_vm13 = vmor %vm1789_vm11, %vm1790_vm12 }
  0x29   : > { %11554 = vmatpush.bf16.msra.mxu3 %v11315_v38  ;;  %309 = vst [vmem:[#allocation2 + $0x74] sm:$0x1] %v11615_v2  ;;  %1659 = vmatpush.bf16.msra.mxu1 %v11315_v38  ;;  %v408_v38 = vrot.slane %v11803_v63, 4  ;;  %v434_v63 = vrot.slane %v429_v47, 4  ;;  %v11878_v0 = vor.u32 %v558_v50, %v557_v49 }
  0x2a   : > { %310 = vst [vmem:[#allocation2 + $0x78] sm:$0xf] %v11615_v2  ;;  %v433_v22 = vsel %vm11827_vm8, %v425_v60, %v432_v62 }
  0x2b   : > { %1427 = vmatmul.bf16.vlgmr.msra.gmra.mxu0 %v1339_v39  ;;  %311 = vst [vmem:[#allocation2 + $0x7c] sm:$0xf] %v11615_v2  ;;  %v776_v20 = vld [vmem:[#allocation2 + $0x60] sm:$0xf]  ;;  %v415_v39 = vor.u32 %v413_v16, %v412_v15  ;;  %v11337_v15 = vld [vmem:[%s15764_s1 + $0xb0] sm:$0xff]  ;;  %v739_v24 = vsel %vm11843_vm10, %v434_v63, %v738_v6 }
  0x2c   : > { %312 = vst [vmem:[#allocation2 + $0x80] sm:$0x1] %v11615_v2  ;;  %2033 = vmatpush.bf16.msrb.mxu2 %v11338_v1  ;;  %1660 = vmatmul.bf16.vlgmr.msra.gmra.mxu1 %v11299_v3  ;;  %v777_v33 = vsel %vm11836_vm9, %v526_v7, %v776_v20  ;;  %v561_v1 = vrot.slane %v557_v49, 4  ;;  %v338_v3 = vld [vmem:[%s11765_s18 + $0x20] sm:$0xff]  ;;  %v568_v7 = vor.u32 %v566_v54, %v565_v53  ;;  %v11361_v16 = vld [vmem:[%s15764_s1 + $0xf0] sm:$0xff] }
  0x2d   : > { %313 = vst [vmem:[#allocation2 + $0x84] sm:$0xf] %v11615_v2  ;;  %v780_v21 = vld [vmem:[#allocation2 + $0x68] sm:$0x1]  ;;  %2347 = vmatpush.bf16.msrb.mxu3 %v11362_v4  ;;  %3029 = vmatpush.bf16.msrb.mxu0 %v11370_v10  ;;  %v416_v55 = vsel %vm11827_vm8, %v408_v38, %v415_v39  ;;  %v11919_v39 = vpack.c.bf16 %v354_v27, %v354_v27 }
  0x2e   : > { %314 = vst [vmem:[#allocation2 + $0x88] sm:$0xf] %v11615_v2  ;;  %v781_v37 = vsel %vm11843_vm10, %v536_v9, %v780_v21  ;;  %v783_v44 = vld [vmem:[#allocation2 + $0x6c] sm:$0xf]  ;;  %v370_v9 = vpack.c.bf16 %v338_v3, %v338_v3 }
  0x2f   : > { %315 = vst [vmem:[#allocation2 + $0x8c] sm:$0x1] %v11615_v2  ;;  %v784_v58 = vsel %vm11836_vm9, %v543_v43, %v783_v44  ;;  %v339_v4 = vld [vmem:[%s11765_s18 + $0x28] sm:$0xff] }
  0x30   : > { %316 = vst [vmem:[#allocation2 + $0x90] sm:$0xf] %v11615_v2  ;;  %v11886_v10 = vpack.c.bf16 %v339_v4, %v339_v4  ;;  %v436_v20 = vshrl.u32 %v370_v9, 16  ;;  %2034 = vmatpush.bf16.msrb.mxu2 %v11337_v15  ;;  %v439_v44 = vshll.u32 %v370_v9, 16 }
  0x31   : > { %317 = vst [vmem:[#allocation2 + $0x94] sm:$0xf] %v11615_v2  ;;  %v11884_v8 = vld [vmem:[#allocation2 + $0x78] sm:$0xf]  ;;  %2348 = vmatpush.bf16.msrb.mxu3 %v11361_v16  ;;  %3030 = vmatpush.bf16.msrb.mxu0 %v11369_v17 }
  0x32   : > { %318 = vst [vmem:[#allocation2 + $0x98] sm:$0x1] %v11615_v2  ;;  %v791_v25 = vsel %vm11836_vm9, %v11878_v0, %v11884_v8  ;;  %v444_v26 = vshrl.u32 %v11886_v10, 16  ;;  %v11915_v34 = vrot.slane %v436_v20, 7 }
  0x33   : > { %319 = vst [vmem:[#allocation2 + $0x9c] sm:$0xf] %v11615_v2  ;;  %v794_v12 = vld [vmem:[#allocation2 + $0x80] sm:$0x1] }
  0x34   : > { %320 = vst [vmem:[#allocation2 + $0xa0] sm:$0xf] %v11615_v2  ;;  %v795_v38 = vsel %vm11843_vm10, %v570_v11, %v794_v12 }
  0x35   : > { %321 = vst [vmem:[#allocation2 + $0xa4] sm:$0x1] %v11615_v2 }
  0x36   : > { %322 = vst [vmem:[#allocation2 + $0xa8] sm:$0xf] %v11615_v2 }
  0x37   : > { %323 = vst [vmem:[#allocation2 + $0xac] sm:$0xf] %v11615_v2 }
  0x38   : > { %324 = vst [vmem:[#allocation2 + $0xb0] sm:$0x1] %v11615_v2 }
  0x39   : > { %325 = vst [vmem:[#allocation2 + $0xb4] sm:$0xf] %v11615_v2 }
  0x3a   : > { %326 = vst [vmem:[#allocation2 + $0xb8] sm:$0xf] %v11615_v2 }
  0x3b   : > { %327 = vst [vmem:[#allocation2 + $0xbc] sm:$0x1] %v11615_v2 }
  0x3c   : > { %328 = vst [vmem:[#allocation2 + $0xc0] sm:$0xf] %v11615_v2 }
  0x3d   : > { %329 = vst [vmem:[#allocation2 + $0xc4] sm:$0xf] %v11615_v2 }
  0x3e   : > { %330 = vst [vmem:[#allocation2 + $0xc8] sm:$0x1] %v11615_v2 }
  0x3f   : > { %331 = vst [vmem:[#allocation2 + $0xcc] sm:$0xf] %v11615_v2 }
  0x40   : > { %332 = vst [vmem:[#allocation2 + $0xd0] sm:$0xf] %v11615_v2 }
  0x41   : > { %333 = vst [vmem:[#allocation2 + $0xd4] sm:$0x1] %v11615_v2  ;;  %v787_v2 = vld [vmem:[#allocation2 + $0x74] sm:$0x1] }
  0x42   : > { %778 = vst [vmem:[#allocation2 + $0x60] sm:$0xf] %v777_v33  ;;  %v788_v13 = vsel %vm11843_vm10, %v553_v57, %v787_v2  ;;  %v569_v33 = vsel %vm11827_vm8, %v561_v1, %v568_v7  ;;  %v441_v1 = vor.u32 %v439_v44, %v11915_v34 }
  0x43   : > { %779 = vst [vmem:[#allocation2 + $0x64] sm:$0xf] %v535_v28 }
  0x44   : > { %782 = vst [vmem:[#allocation2 + $0x68] sm:$0x1] %v781_v37 }
  0x45   : > { %727 = vst [vmem:[#allocation2 + $0xc] sm:$0xf] %v726_v42 }
  0x46   : > { %728 = vst [vmem:[#allocation2 + $0x10] sm:$0xf] %v416_v55 }
  0x47   : > { %733 = vst [vmem:[#allocation2 + $0x14] sm:$0x1] %v732_v56 }
  0x48   : > { %785 = vst [vmem:[#allocation2 + $0x6c] sm:$0xf] %v784_v58 }
  0x49   : > { %v855_v21 = vld [vmem:[#allocation2 + $0x60] sm:$0xf]  ;;  %786 = vst [vmem:[#allocation2 + $0x70] sm:$0xf] %v552_v5 }
  0x4a   : > { %v11307_v28 = vld [vmem:[#allocation2 + $0x60] sm:$0xff]  ;;  %v1099_v31 = vshrl.u32 %v855_v21, 16  ;;  %v1102_v32 = vshll.u32 %v855_v21, 16  ;;  %789 = vst [vmem:[#allocation2 + $0x74] sm:$0x1] %v788_v13 }
  0x4b   : > { %v856_v29 = vld [vmem:[#allocation2 + $0x64] sm:$0xf]  ;;  %v895_v35 = vld [vmem:[#allocation2 + $0x68] sm:$0x1]  ;;  %1700 = vmatmul.bf16.vlgmr.msra.gmra.mxu3 %v11307_v28  ;;  %736 = vst [vmem:[#allocation2 + $0x18] sm:$0xf] %v735_v18 }
  0x4c   : > { %v1108_v36 = vshll.u32 %v856_v29, 16  ;;  %v1112_v37 = vshrl.u32 %v856_v29, 16  ;;  %v1101_v40 = vrot.slane %v1099_v31, 4  ;;  %v1104_v41 = vrot.slane %v1102_v32, 5  ;;  %v841_v43 = vld [vmem:[#allocation2 + $0xc] sm:$0xf] }
  0x4d   : > { %v1118_v42 = vshll.u32 %v895_v35, 16  ;;  %v842_v47 = vld [vmem:[#allocation2 + $0x10] sm:$0xf]  ;;  %v931_v48 = vshrl.u32 %v841_v43, 16  ;;  %v934_v49 = vshll.u32 %v841_v43, 16  ;;  %v442_v35 = vrot.slane %v11915_v34, 4 }
  0x4e   : > { %v1110_v45 = vrot.slane %v1108_v36, 5  ;;  %v1114_v46 = vrot.slane %v1112_v37, 4  ;;  %v1105_v50 = vor.u32 %v1104_v41, %v1101_v40  ;;  %v888_v52 = vld [vmem:[#allocation2 + $0x14] sm:$0x1]  ;;  %v940_v53 = vshll.u32 %v842_v47, 16  ;;  %v11300_v55 = vld [vmem:[#allocation2 + $0xc] sm:$0xff] }
  0x4f   : > { %v1120_v51 = vrot.slane %v1118_v42, 5  ;;  %v944_v54 = vshrl.u32 %v842_v47, 16  ;;  %v933_v2 = vrot.slane %v931_v48, 4  ;;  %v936_v57 = vrot.slane %v934_v49, 5  ;;  %v857_v59 = vld [vmem:[#allocation2 + $0x6c] sm:$0xf]  ;;  %1665 = vmatmul.bf16.gmra.mxu1 %v11300_v55 }
  0x50   : > { %v1115_v56 = vor.u32 %v1114_v46, %v1110_v45  ;;  %v950_v58 = vshll.u32 %v888_v52, 16  ;;  %v1106_v60 = vrot.slane %v1105_v50, 4  ;;  %v942_v61 = vrot.slane %v940_v53, 5  ;;  %v858_v63 = vld [vmem:[#allocation2 + $0x70] sm:$0xf]  ;;  %v11336_v34 = vld [vmem:[%s15764_s1 + $0xa8] sm:$0xff] }
  0x51   : > { %v946_v62 = vrot.slane %v944_v54, 4  ;;  %v937_v4 = vor.u32 %v936_v57, %v933_v2  ;;  %v1123_v6 = vshrl.u32 %v857_v59, 16  ;;  %v896_v11 = vld [vmem:[#allocation2 + $0x74] sm:$0x1]  ;;  %v1126_v12 = vshll.u32 %v857_v59, 16  ;;  %v11308_v43 = vld [vmem:[#allocation2 + $0x6c] sm:$0xff]  ;;  %2035 = vmatpush.bf16.msrb.mxu2 %v11336_v34 }
  0x52   : > { %v1116_v3 = vrot.slane %v1115_v56, 4  ;;  %v952_v5 = vrot.slane %v950_v58, 5  ;;  %v1111_v7 = vsel %vm11724_vm2, %v1106_v60, %v1110_v45  ;;  %v1132_v13 = vshll.u32 %v858_v63, 16  ;;  %737 = vst [vmem:[#allocation2 + $0x1c] sm:$0xf] %v433_v22  ;;  %v11360_v45 = vld [vmem:[%s15764_s1 + $0xe8] sm:$0xff] }
  0x53   : > { %v947_v9 = vor.u32 %v946_v62, %v942_v61  ;;  %v1323_v16 = vunpack.c.l.b16 %v1111_v7  ;;  %v938_v17 = vrot.slane %v937_v4, 4  ;;  %v1125_v20 = vrot.slane %v1123_v6, 4  ;;  %740 = vst [vmem:[#allocation2 + $0x20] sm:$0x1] %v739_v24  ;;  %v741_v21 = vld [vmem:[#allocation2 + $0x24] sm:$0xf]  ;;  %2349 = vmatpush.bf16.msrb.mxu3 %v11360_v45 }
  0x54   : > { %v1121_v15 = vsel %vm11724_vm2, %v1116_v3, %v1120_v51  ;;  %v1128_v18 = vrot.slane %v1126_v12, 5  ;;  %v1134_v29 = vrot.slane %v1132_v13, 5  ;;  %792 = vst [vmem:[#allocation2 + $0x78] sm:$0xf] %v791_v25  ;;  %v1136_v31 = vshrl.u32 %v858_v63, 16  ;;  %v355_v24 = vld [vmem:[%s11765_s18 + $0xa8] sm:$0xff] }
  0x55   : > { %v1324_v27 = vunpack.c.l.b16 %v1121_v15  ;;  %v948_v28 = vrot.slane %v947_v9, 4  ;;  %v943_v22 = vsel %vm11724_vm2, %v938_v17, %v942_v61  ;;  %v1142_v32 = vshll.u32 %v896_v11, 16  ;;  %793 = vst [vmem:[#allocation2 + $0x7c] sm:$0xf] %v569_v33  ;;  %v843_v44 = vld [vmem:[#allocation2 + $0x18] sm:$0xf] }
  0x56   : > { %v1309_v40 = vunpack.c.l.b16 %v943_v22  ;;  %v1129_v41 = vor.u32 %v1128_v18, %v1125_v20  ;;  %796 = vst [vmem:[#allocation2 + $0x80] sm:$0x1] %v795_v38  ;;  %v1138_v0 = vrot.slane %v1136_v31, 4  ;;  %v11939_v25 = vrot.slane %v444_v26, 7  ;;  %v11368_v52 = vld [vmem:[%s15764_s1 + $0x128] sm:$0xff] }
  0x57   : > { %v1347_v36 = vpack.c.b16 %v1324_v27, %v1323_v16  ;;  %v953_v37 = vsel %vm11724_vm2, %v948_v28, %v952_v5  ;;  %v1144_v8 = vrot.slane %v1142_v32, 5  ;;  %v447_v38 = vshll.u32 %v11886_v10, 16  ;;  %3031 = vmatpush.bf16.msrb.mxu0 %v11368_v52  ;;  %v745_v31 = vld [vmem:[#allocation2 + $0x2c] sm:$0x1] }
  0x58   : > { %v1310_v42 = vunpack.c.l.b16 %v953_v37  ;;  %v1130_v33 = vrot.slane %v1129_v41, 4  ;;  %v742_v46 = vsel %vm11836_vm9, %v441_v1, %v741_v21  ;;  %v11950_v47 = vpack.c.bf16 %v355_v24, %v355_v24  ;;  %v341_v41 = vld [vmem:[%s11765_s18 + $0x38] sm:$0xff] }
  0x59   : > { %1467 = vmatmul.bf16.vlgmr.msra.gmra.mxu2 %v1347_v36  ;;  %v1139_v48 = vor.u32 %v1138_v0, %v1134_v29  ;;  %v844_v49 = vld [vmem:[#allocation2 + $0x1c] sm:$0xf]  ;;  %v955_v50 = vshrl.u32 %v843_v44, 16  ;;  %v958_v51 = vshll.u32 %v843_v44, 16  ;;  %v449_v56 = vor.u32 %v447_v38, %v11939_v25  ;;  %743 = vst [vmem:[#allocation2 + $0x24] sm:$0xf] %v742_v46 }
  0x5a   : > { %v1340_v26 = vpack.c.b16 %v1310_v42, %v1309_v40  ;;  %v1135_v53 = vsel %vm11724_vm2, %v1130_v33, %v1134_v29  ;;  %v889_v54 = vld [vmem:[#allocation2 + $0x20] sm:$0x1]  ;;  %v964_v55 = vshll.u32 %v844_v49, 16  ;;  %v968_v10 = vshrl.u32 %v844_v49, 16  ;;  %v11301_v3 = vld [vmem:[#allocation2 + $0x18] sm:$0xff]  ;;  %v340_v40 = vld [vmem:[%s11765_s18 + $0x30] sm:$0xff] }
  0x5b   : > { %v1140_v2 = vrot.slane %v1139_v48, 4  ;;  %v11958_v57 = vunpack.c.l.b16 %v1135_v53  ;;  %v957_v58 = vrot.slane %v955_v50, 4  ;;  %v960_v59 = vrot.slane %v958_v51, 5  ;;  %v859_v60 = vld [vmem:[#allocation2 + $0x78] sm:$0xf]  ;;  %1705 = vmatmul.bf16.gmra.mxu3 %v11308_v43 }
  0x5c   : > { %1432 = vmatmul.bf16.gmra.mxu0 %v1340_v26  ;;  %v966_v61 = vrot.slane %v964_v55, 5  ;;  %v970_v62 = vrot.slane %v968_v10, 4  ;;  %v974_v63 = vshll.u32 %v889_v54, 16  ;;  %v860_v1 = vld [vmem:[#allocation2 + $0x7c] sm:$0xf]  ;;  %v450_v4 = vsel %vm11827_vm8, %v442_v35, %v449_v56 }
  0x5d   : > { %v1145_v5 = vsel %vm11724_vm2, %v1140_v2, %v1144_v8  ;;  %v961_v6 = vor.u32 %v960_v59, %v957_v58  ;;  %v897_v7 = vld [vmem:[#allocation2 + $0x80] sm:$0x1]  ;;  %v1147_v9 = vshrl.u32 %v859_v60, 16  ;;  %v1150_v11 = vshll.u32 %v859_v60, 16  ;;  %744 = vst [vmem:[#allocation2 + $0x28] sm:$0xf] %v450_v4 }
  0x5e   : > { %v1326_v12 = vunpack.c.l.b16 %v1145_v5  ;;  %v971_v13 = vor.u32 %v970_v62, %v966_v61  ;;  %v976_v15 = vrot.slane %v974_v63, 5  ;;  %v1156_v16 = vshll.u32 %v860_v1, 16  ;;  %v797_v59 = vld [vmem:[#allocation2 + $0x84] sm:$0xf]  ;;  %v11309_v60 = vld [vmem:[#allocation2 + $0x78] sm:$0xff] }
  0x5f   : > { %v962_v17 = vrot.slane %v961_v6, 4  ;;  %v1149_v20 = vrot.slane %v1147_v9, 4  ;;  %v1152_v21 = vrot.slane %v1150_v11, 5  ;;  %v1160_v27 = vshrl.u32 %v860_v1, 16  ;;  %1670 = vmatmul.bf16.gmra.mxu1 %v11301_v3  ;;  %v11335_v3 = vld [vmem:[%s15764_s1 + $0xa0] sm:$0xff] }
  0x60   : > { %v1348_v28 = vpack.c.b16 %v1326_v12, %v11958_v57  ;;  %v972_v18 = vrot.slane %v971_v13, 4  ;;  %v1158_v29 = vrot.slane %v1156_v16, 5  ;;  %v1166_v22 = vshll.u32 %v897_v7, 16  ;;  %v845_v37 = vld [vmem:[#allocation2 + $0x24] sm:$0xf]  ;;  %2036 = vmatpush.bf16.msrb.mxu2 %v11335_v3 }
  0x61   : > { %v967_v32 = vsel %vm11724_vm2, %v962_v17, %v966_v61  ;;  %v1153_v35 = vor.u32 %v1152_v21, %v1149_v20  ;;  %v1162_v24 = vrot.slane %v1160_v27, 4  ;;  %v451_v36 = vrot.slane %v11939_v25, 4  ;;  %v11359_v4 = vld [vmem:[%s15764_s1 + $0xe0] sm:$0xff]  ;;  %v801_v16 = vld [vmem:[#allocation2 + $0x8c] sm:$0x1] }
  0x62   : > { %v977_v42 = vsel %vm11724_vm2, %v972_v18, %v976_v15  ;;  %v1311_v43 = vunpack.c.l.b16 %v967_v32  ;;  %v1168_v0 = vrot.slane %v1166_v22, 5  ;;  %v979_v8 = vshrl.u32 %v845_v37, 16  ;;  %v11367_v6 = vld [vmem:[%s15764_s1 + $0x120] sm:$0xff]  ;;  %2350 = vmatpush.bf16.msrb.mxu3 %v11359_v4  ;;  %v748_v17 = vld [vmem:[#allocation2 + $0x30] sm:$0xf] }
  0x63   : > { %v1312_v33 = vunpack.c.l.b16 %v977_v42  ;;  %v1154_v44 = vrot.slane %v1153_v35, 4  ;;  %v1163_v34 = vor.u32 %v1162_v24, %v1158_v29  ;;  %v746_v45 = vsel %vm11843_vm10, %v451_v36, %v745_v31  ;;  %v356_v18 = vld [vmem:[%s11765_s18 + $0xb0] sm:$0xff]  ;;  %3032 = vmatpush.bf16.msrb.mxu0 %v11367_v6  ;;  %v357_v24 = vld [vmem:[%s11765_s18 + $0xb8] sm:$0xff]  ;;  %v342_v36 = vld [vmem:[%s11765_s18 + $0x40] sm:$0xff] }
  0x64   : > { %747 = vst [vmem:[#allocation2 + $0x2c] sm:$0x1] %v746_v45  ;;  %v846_v38 = vld [vmem:[#allocation2 + $0x28] sm:$0xf]  ;;  %v981_v46 = vrot.slane %v979_v8, 4  ;;  %v982_v26 = vshll.u32 %v845_v37, 16  ;;  %v372_v25 = vpack.c.bf16 %v340_v40, %v340_v40  ;;  %v11974_v48 = vpack.c.bf16 %v341_v41, %v341_v41 }
  0x65   : > { %v1341_v49 = vpack.c.b16 %v1312_v33, %v1311_v43  ;;  %v1159_v50 = vsel %vm11724_vm2, %v1154_v44, %v1158_v29  ;;  %v1164_v51 = vrot.slane %v1163_v34, 4  ;;  %v988_v52 = vshll.u32 %v846_v38, 16  ;;  %v11302_v35 = vld [vmem:[#allocation2 + $0x24] sm:$0xff] }
  0x66   : > { %v11978_v53 = vunpack.c.l.b16 %v1159_v50  ;;  %v984_v54 = vrot.slane %v982_v26, 5  ;;  %v992_v55 = vshrl.u32 %v846_v38, 16  ;;  %v572_v10 = vshrl.u32 %v11919_v39, 16  ;;  %v343_v43 = vld [vmem:[%s11765_s18 + $0x48] sm:$0xff] }
  0x67   : > { %v1169_v56 = vsel %vm11724_vm2, %v1164_v51, %v1168_v0  ;;  %v990_v2 = vrot.slane %v988_v52, 5  ;;  %v575_v57 = vshll.u32 %v11919_v39, 16  ;;  %v580_v58 = vshrl.u32 %v11950_v47, 16  ;;  %v358_v0 = vld [vmem:[%s11765_s18 + $0xc0] sm:$0xff] }
  0x68   : > { %v11985_v61 = vunpack.c.l.b16 %v1169_v56  ;;  %v985_v62 = vor.u32 %v984_v54, %v981_v46  ;;  %v994_v63 = vrot.slane %v992_v55, 4  ;;  %v574_v1 = vrot.slane %v572_v10, 7  ;;  %v752_v54 = vld [vmem:[#allocation2 + $0x38] sm:$0x1] }
  0x69   : > { %1472 = vmatmul.bf16.gmra.mxu2 %v1348_v28  ;;  %v582_v5 = vrot.slane %v580_v58, 7  ;;  %v583_v39 = vshll.u32 %v11950_v47, 16  ;;  %v453_v7 = vshrl.u32 %v372_v25, 16  ;;  %v456_v9 = vshll.u32 %v372_v25, 16 }
  0x6a   : > { %v1349_v11 = vpack.c.b16 %v11985_v61, %v11978_v53  ;;  %v986_v12 = vrot.slane %v985_v62, 4  ;;  %v995_v13 = vor.u32 %v994_v63, %v990_v2  ;;  %v577_v15 = vor.u32 %v575_v57, %v574_v1 }
  0x6b   : > { %v890_v47 = vld [vmem:[#allocation2 + $0x2c] sm:$0x1]  ;;  %v578_v20 = vrot.slane %v574_v1, 4  ;;  %v585_v21 = vor.u32 %v583_v39, %v582_v5  ;;  %v587_v27 = vrot.slane %v582_v5, 4  ;;  %v455_v28 = vrot.slane %v453_v7, 7  ;;  %1710 = vmatmul.bf16.gmra.mxu3 %v11309_v60 }
  0x6c   : > { %1437 = vmatmul.bf16.gmra.mxu0 %v1341_v49  ;;  %v991_v29 = vsel %vm11724_vm2, %v986_v12, %v990_v2  ;;  %v996_v22 = vrot.slane %v995_v13, 4  ;;  %v998_v31 = vshll.u32 %v890_v47, 16  ;;  %v798_v32 = vsel %vm11836_vm9, %v577_v15, %v797_v59  ;;  %v804_v5 = vld [vmem:[#allocation2 + $0x90] sm:$0xf] }
  0x6d   : > { %v12006_v37 = vunpack.c.l.b16 %v991_v29  ;;  %v586_v40 = vsel %vm11827_vm8, %v578_v20, %v585_v21  ;;  %799 = vst [vmem:[#allocation2 + $0x84] sm:$0xf] %v798_v32  ;;  %v802_v41 = vsel %vm11843_vm10, %v587_v27, %v801_v16  ;;  %v458_v42 = vor.u32 %v456_v9, %v455_v28  ;;  %v808_v16 = vld [vmem:[#allocation2 + $0x98] sm:$0x1]  ;;  %v755_v32 = vld [vmem:[#allocation2 + $0x3c] sm:$0xf] }
  0x6e   : > { %v1000_v8 = vrot.slane %v998_v31, 5  ;;  %800 = vst [vmem:[#allocation2 + $0x88] sm:$0xf] %v586_v40  ;;  %v459_v33 = vrot.slane %v455_v28, 4  ;;  %v461_v44 = vshrl.u32 %v11974_v48, 16  ;;  %v464_v34 = vshll.u32 %v11974_v48, 16 }
  0x6f   : > { %803 = vst [vmem:[#allocation2 + $0x8c] sm:$0x1] %v802_v41  ;;  %v749_v45 = vsel %vm11836_vm9, %v458_v42, %v748_v17  ;;  %v388_v38 = vpack.c.bf16 %v356_v18, %v356_v18  ;;  %v389_v46 = vpack.c.bf16 %v357_v24, %v357_v24  ;;  %v374_v26 = vpack.c.bf16 %v342_v36, %v342_v36  ;;  %v11334_v41 = vld [vmem:[%s15764_s1 + $0x98] sm:$0xff] }
  0x70   : > { %v1001_v25 = vsel %vm11724_vm2, %v996_v22, %v1000_v8  ;;  %1675 = vmatmul.bf16.gmra.mxu1 %v11302_v35  ;;  %v463_v49 = vrot.slane %v461_v44, 7  ;;  %750 = vst [vmem:[#allocation2 + $0x30] sm:$0xf] %v749_v45  ;;  %v12020_v50 = vpack.c.bf16 %v343_v43, %v343_v43  ;;  %v12022_v51 = vpack.c.bf16 %v358_v0, %v358_v0  ;;  %v11358_v42 = vld [vmem:[%s15764_s1 + $0xd8] sm:$0xff] }
  0x71   : > { %v1314_v52 = vunpack.c.l.b16 %v1001_v25  ;;  %v589_v48 = vshrl.u32 %v388_v38, 16  ;;  %v592_v55 = vshll.u32 %v388_v38, 16  ;;  %v597_v10 = vshrl.u32 %v389_v46, 16  ;;  %v11366_v0 = vld [vmem:[%s15764_s1 + $0x118] sm:$0xff]  ;;  %2037 = vmatpush.bf16.msrb.mxu2 %v11334_v41  ;;  %2351 = vmatpush.bf16.msrb.mxu3 %v11358_v42 }
  0x72   : > { %v466_v56 = vor.u32 %v464_v34, %v463_v49  ;;  %v468_v2 = vrot.slane %v463_v49, 4  ;;  %v600_v57 = vshll.u32 %v389_v46, 16  ;;  %v470_v58 = vshrl.u32 %v374_v26, 16  ;;  %3033 = vmatpush.bf16.msrb.mxu0 %v11366_v0 }
  0x73   : > { %v1342_v59 = vpack.c.b16 %v1314_v52, %v12006_v37  ;;  %v591_v60 = vrot.slane %v589_v48, 7  ;;  %v599_v62 = vrot.slane %v597_v10, 7  ;;  %v473_v63 = vshll.u32 %v374_v26, 16 }
  0x74   : > { %v861_v1 = vld [vmem:[#allocation2 + $0x84] sm:$0xf]  ;;  %v467_v3 = vsel %vm11827_vm8, %v459_v33, %v466_v56  ;;  %v753_v4 = vsel %vm11843_vm10, %v468_v2, %v752_v54  ;;  %v12029_v39 = vrot.slane %v470_v58, 7  ;;  %v478_v6 = vshrl.u32 %v12020_v50, 16 }
  0x75   : > { %v862_v7 = vld [vmem:[#allocation2 + $0x88] sm:$0xf]  ;;  %v1171_v9 = vshrl.u32 %v861_v1, 16  ;;  %v1174_v12 = vshll.u32 %v861_v1, 16  ;;  %v594_v13 = vor.u32 %v592_v55, %v591_v60  ;;  %v595_v15 = vrot.slane %v591_v60, 4 }
  0x76   : > { %v11310_v17 = vld [vmem:[#allocation2 + $0x84] sm:$0xff]  ;;  %v898_v47 = vld [vmem:[#allocation2 + $0x8c] sm:$0x1]  ;;  %v1180_v20 = vshll.u32 %v862_v7, 16  ;;  %v1184_v21 = vshrl.u32 %v862_v7, 16  ;;  %v602_v27 = vor.u32 %v600_v57, %v599_v62  ;;  %v475_v28 = vor.u32 %v473_v63, %v12029_v39 }
  0x77   : > { %751 = vst [vmem:[#allocation2 + $0x34] sm:$0xf] %v467_v3  ;;  %v1173_v18 = vrot.slane %v1171_v9, 4  ;;  %v1176_v29 = vrot.slane %v1174_v12, 5  ;;  %v1190_v22 = vshll.u32 %v898_v47, 16  ;;  %v604_v31 = vrot.slane %v599_v62, 4 }
  0x78   : > { %754 = vst [vmem:[#allocation2 + $0x38] sm:$0x1] %v753_v4  ;;  %v1182_v35 = vrot.slane %v1180_v20, 5  ;;  %v1186_v24 = vrot.slane %v1184_v21, 4  ;;  %v847_v36 = vld [vmem:[#allocation2 + $0x30] sm:$0xf]  ;;  %v603_v37 = vsel %vm11827_vm8, %v595_v15, %v602_v27  ;;  %v805_v40 = vsel %vm11836_vm9, %v594_v13, %v804_v5 }
  0x79   : > { %1477 = vmatmul.bf16.gmra.mxu2 %v1349_v11  ;;  %v1177_v43 = vor.u32 %v1176_v29, %v1173_v18  ;;  %v1192_v53 = vrot.slane %v1190_v22, 5  ;;  %v1003_v61 = vshrl.u32 %v847_v36, 16  ;;  %v1006_v11 = vshll.u32 %v847_v36, 16  ;;  %806 = vst [vmem:[#allocation2 + $0x90] sm:$0xf] %v805_v40  ;;  %v359_v63 = vld [vmem:[%s11765_s18 + $0xc8] sm:$0xff] }
  0x7a   : > { %v1187_v8 = vor.u32 %v1186_v24, %v1182_v35  ;;  %807 = vst [vmem:[#allocation2 + $0x94] sm:$0xf] %v603_v37  ;;  %v809_v33 = vsel %vm11843_vm10, %v604_v31, %v808_v16  ;;  %v476_v44 = vrot.slane %v12029_v39, 4  ;;  %v480_v34 = vrot.slane %v478_v6, 7  ;;  %v759_v54 = vld [vmem:[#allocation2 + $0x44] sm:$0x1] }
  0x7b   : > { %v1178_v45 = vrot.slane %v1177_v43, 4  ;;  %v1005_v38 = vrot.slane %v1003_v61, 4  ;;  %v1008_v46 = vrot.slane %v1006_v11, 5  ;;  %810 = vst [vmem:[#allocation2 + $0x98] sm:$0x1] %v809_v33  ;;  %v481_v26 = vshll.u32 %v12020_v50, 16  ;;  %1715 = vmatmul.bf16.gmra.mxu3 %v11310_v17 }
  0x7c   : > { %1442 = vmatmul.bf16.gmra.mxu0 %v1342_v59  ;;  %v1188_v25 = vrot.slane %v1187_v8, 4  ;;  %v485_v49 = vrot.slane %v480_v34, 4  ;;  %v756_v52 = vsel %vm11836_vm9, %v475_v28, %v755_v32  ;;  %v606_v57 = vshrl.u32 %v12022_v51, 16  ;;  %v344_v8 = vld [vmem:[%s11765_s18 + $0x50] sm:$0xff] }
  0x7d   : > { %v1183_v48 = vsel %vm11724_vm2, %v1178_v45, %v1182_v35  ;;  %v1009_v10 = vor.u32 %v1008_v46, %v1005_v38  ;;  %v483_v2 = vor.u32 %v481_v26, %v480_v34  ;;  %757 = vst [vmem:[#allocation2 + $0x3c] sm:$0xf] %v756_v52  ;;  %v12065_v17 = vpack.c.bf16 %v359_v63, %v359_v63  ;;  %v811_v46 = vld [vmem:[#allocation2 + $0x9c] sm:$0xf] }
  0x7e   : > { %v848_v55 = vld [vmem:[#allocation2 + $0x34] sm:$0xf]  ;;  %v1193_v50 = vsel %vm11724_vm2, %v1188_v25, %v1192_v53  ;;  %v1329_v58 = vunpack.c.l.b16 %v1183_v48  ;;  %v760_v9 = vsel %vm11843_vm10, %v485_v49, %v759_v54  ;;  %v12069_v37 = vrot.slane %v606_v57, 7 }
  0x7f   : > { %v11303_v56 = vld [vmem:[#allocation2 + $0x30] sm:$0xff]  ;;  %v891_v59 = vld [vmem:[#allocation2 + $0x38] sm:$0x1]  ;;  %v1012_v60 = vshll.u32 %v848_v55, 16  ;;  %v1016_v62 = vshrl.u32 %v848_v55, 16  ;;  %v1330_v1 = vunpack.c.l.b16 %v1193_v50  ;;  %v1010_v3 = vrot.slane %v1009_v10, 4 }
  0x80   : > { %v1022_v4 = vshll.u32 %v891_v59, 16  ;;  %v484_v5 = vsel %vm11827_vm8, %v476_v44, %v483_v2  ;;  %v863_v7 = vld [vmem:[#allocation2 + $0x90] sm:$0xf]  ;;  %1680 = vmatmul.bf16.gmra.mxu1 %v11303_v56  ;;  %761 = vst [vmem:[#allocation2 + $0x44] sm:$0x1] %v760_v9  ;;  %v609_v0 = vshll.u32 %v12022_v51, 16 }
  0x81   : > { %v1014_v39 = vrot.slane %v1012_v60, 5  ;;  %v1018_v6 = vrot.slane %v1016_v62, 4  ;;  %758 = vst [vmem:[#allocation2 + $0x40] sm:$0xf] %v484_v5  ;;  %v864_v13 = vld [vmem:[#allocation2 + $0x94] sm:$0xf]  ;;  %v1350_v18 = vpack.c.b16 %v1330_v1, %v1329_v58  ;;  %v376_v58 = vpack.c.bf16 %v344_v8, %v344_v8 }
  0x82   : > { %v1024_v12 = vrot.slane %v1022_v4, 5  ;;  %v1195_v15 = vshrl.u32 %v863_v7, 16  ;;  %v1198_v16 = vshll.u32 %v863_v7, 16  ;;  %v899_v21 = vld [vmem:[#allocation2 + $0x98] sm:$0x1]  ;;  %v1204_v27 = vshll.u32 %v864_v13, 16 }
  0x83   : > { %v1015_v47 = vsel %vm11724_vm2, %v1010_v3, %v1014_v39  ;;  %v1019_v20 = vor.u32 %v1018_v6, %v1014_v39  ;;  %v1208_v28 = vshrl.u32 %v864_v13, 16  ;;  %v1214_v31 = vshll.u32 %v899_v21, 16  ;;  %v11311_v26 = vld [vmem:[#allocation2 + $0x90] sm:$0xff]  ;;  %v345_v50 = vld [vmem:[%s11765_s18 + $0x58] sm:$0xff]  ;;  %v815_v9 = vld [vmem:[#allocation2 + $0xa4] sm:$0x1] }
  0x84   : > { %v1197_v29 = vrot.slane %v1195_v15, 4  ;;  %v1200_v22 = vrot.slane %v1198_v16, 5  ;;  %v1206_v35 = vrot.slane %v1204_v27, 5  ;;  %v849_v36 = vld [vmem:[#allocation2 + $0x3c] sm:$0xf]  ;;  %v1315_v40 = vunpack.c.l.b16 %v1015_v47  ;;  %v11333_v48 = vld [vmem:[%s15764_s1 + $0x90] sm:$0xff] }
  0x85   : > { %v1020_v32 = vrot.slane %v1019_v20, 4  ;;  %v1210_v24 = vrot.slane %v1208_v28, 4  ;;  %v1027_v42 = vshrl.u32 %v849_v36, 16  ;;  %v1030_v43 = vshll.u32 %v849_v36, 16  ;;  %v11357_v51 = vld [vmem:[%s15764_s1 + $0xd0] sm:$0xff]  ;;  %2038 = vmatpush.bf16.msrb.mxu2 %v11333_v48 }
  0x86   : > { %v1201_v41 = vor.u32 %v1200_v22, %v1197_v29  ;;  %v1216_v11 = vrot.slane %v1214_v31, 5  ;;  %v611_v54 = vor.u32 %v609_v0, %v12069_v37  ;;  %v614_v2 = vshrl.u32 %v12065_v17, 16  ;;  %v11365_v57 = vld [vmem:[%s15764_s1 + $0x110] sm:$0xff]  ;;  %2352 = vmatpush.bf16.msrb.mxu3 %v11357_v51  ;;  %v361_v29 = vld [vmem:[%s11765_s18 + $0xd8] sm:$0xff]  ;;  %v346_v22 = vld [vmem:[%s11765_s18 + $0x60] sm:$0xff] }
  0x87   : > { %v1025_v53 = vsel %vm11724_vm2, %v1020_v32, %v1024_v12  ;;  %v1211_v61 = vor.u32 %v1210_v24, %v1206_v35  ;;  %v1029_v45 = vrot.slane %v1027_v42, 4  ;;  %v1032_v38 = vrot.slane %v1030_v43, 5  ;;  %v892_v10 = vld [vmem:[#allocation2 + $0x44] sm:$0x1]  ;;  %3034 = vmatpush.bf16.msrb.mxu0 %v11365_v57  ;;  %v360_v21 = vld [vmem:[%s11765_s18 + $0xd0] sm:$0xff] }
  0x88   : > { %v1316_v33 = vunpack.c.l.b16 %v1025_v53  ;;  %v1202_v44 = vrot.slane %v1201_v41, 4  ;;  %v850_v34 = vld [vmem:[#allocation2 + $0x40] sm:$0xf]  ;;  %v1046_v3 = vshll.u32 %v892_v10, 16  ;;  %v612_v4 = vrot.slane %v12069_v37, 4 }
  0x89   : > { %1482 = vmatmul.bf16.gmra.mxu2 %v1350_v18  ;;  %v1212_v25 = vrot.slane %v1211_v61, 4  ;;  %v1036_v49 = vshll.u32 %v850_v34, 16  ;;  %v1040_v52 = vshrl.u32 %v850_v34, 16  ;;  %v1033_v56 = vor.u32 %v1032_v38, %v1029_v45  ;;  %v11304_v12 = vld [vmem:[#allocation2 + $0x3c] sm:$0xff]  ;;  %v762_v53 = vld [vmem:[#allocation2 + $0x48] sm:$0xf] }
  0x8a   : > { %v1343_v55 = vpack.c.b16 %v1316_v33, %v1315_v40  ;;  %v1207_v59 = vsel %vm11724_vm2, %v1202_v44, %v1206_v35  ;;  %v616_v5 = vrot.slane %v614_v2, 7  ;;  %v617_v6 = vshll.u32 %v12065_v17, 16  ;;  %v766_v33 = vld [vmem:[#allocation2 + $0x50] sm:$0x1] }
  0x8b   : > { %v1217_v60 = vsel %vm11724_vm2, %v1212_v25, %v1216_v11  ;;  %v1038_v62 = vrot.slane %v1036_v49, 5  ;;  %v1042_v63 = vrot.slane %v1040_v52, 4  ;;  %v1034_v1 = vrot.slane %v1033_v56, 4  ;;  %1720 = vmatmul.bf16.gmra.mxu3 %v11311_v26  ;;  %v818_v25 = vld [vmem:[#allocation2 + $0xa8] sm:$0xf] }
  0x8c   : > { %1447 = vmatmul.bf16.gmra.mxu0 %v1343_v55  ;;  %v812_v7 = vsel %vm11836_vm9, %v611_v54, %v811_v46  ;;  %v377_v13 = vpack.c.bf16 %v345_v50, %v345_v50  ;;  %v12095_v15 = vunpack.c.l.b16 %v1207_v59  ;;  %v1332_v16 = vunpack.c.l.b16 %v1217_v60  ;;  %v347_v55 = vld [vmem:[%s11765_s18 + $0x68] sm:$0xff]  ;;  %v822_v50 = vld [vmem:[#allocation2 + $0xb0] sm:$0x1] }
  0x8d   : > { %v1043_v39 = vor.u32 %v1042_v63, %v1038_v62  ;;  %v1048_v47 = vrot.slane %v1046_v3, 5  ;;  %v621_v20 = vrot.slane %v616_v5, 4  ;;  %813 = vst [vmem:[#allocation2 + $0x9c] sm:$0xf] %v812_v7  ;;  %v1039_v27 = vsel %vm11724_vm2, %v1034_v1, %v1038_v62 }
  0x8e   : > { %v619_v28 = vor.u32 %v617_v6, %v616_v5  ;;  %v487_v18 = vshrl.u32 %v376_v58, 16  ;;  %v490_v32 = vshll.u32 %v376_v58, 16  ;;  %v495_v35 = vshrl.u32 %v377_v13, 16  ;;  %v363_v6 = vld [vmem:[%s11765_s18 + $0xe8] sm:$0xff] }
  0x8f   : > { %v1044_v17 = vrot.slane %v1043_v39, 4  ;;  %v816_v31 = vsel %vm11843_vm10, %v621_v20, %v815_v9  ;;  %v498_v24 = vshll.u32 %v377_v13, 16  ;;  %v392_v41 = vpack.c.bf16 %v360_v21, %v360_v21  ;;  %v362_v39 = vld [vmem:[%s11765_s18 + $0xe0] sm:$0xff] }
  0x90   : > { %v620_v37 = vsel %vm11827_vm8, %v612_v4, %v619_v28  ;;  %817 = vst [vmem:[#allocation2 + $0xa4] sm:$0x1] %v816_v31  ;;  %1685 = vmatmul.bf16.gmra.mxu1 %v11304_v12  ;;  %v489_v40 = vrot.slane %v487_v18, 7  ;;  %v1317_v42 = vunpack.c.l.b16 %v1039_v27  ;;  %v497_v43 = vrot.slane %v495_v35, 7  ;;  %v11364_v28 = vld [vmem:[%s15764_s1 + $0x108] sm:$0xff] }
  0x91   : > { %v1049_v36 = vsel %vm11724_vm2, %v1044_v17, %v1048_v47  ;;  %814 = vst [vmem:[#allocation2 + $0xa0] sm:$0xf] %v620_v37  ;;  %v393_v61 = vpack.c.bf16 %v361_v29, %v361_v29  ;;  %v12108_v11 = vpack.c.bf16 %v346_v22, %v346_v22  ;;  %v623_v44 = vshrl.u32 %v392_v41, 16  ;;  %v11332_v47 = vld [vmem:[%s15764_s1 + $0x88] sm:$0xff]  ;;  %3035 = vmatpush.bf16.msrb.mxu0 %v11364_v28 }
  0x92   : > { %v492_v0 = vor.u32 %v490_v32, %v489_v40  ;;  %v493_v8 = vrot.slane %v489_v40, 4  ;;  %v626_v34 = vshll.u32 %v392_v41, 16  ;;  %v1318_v45 = vunpack.c.l.b16 %v1049_v36  ;;  %v11356_v17 = vld [vmem:[%s15764_s1 + $0xc8] sm:$0xff]  ;;  %2039 = vmatpush.bf16.msrb.mxu2 %v11332_v47 }
  0x93   : > { %v500_v38 = vor.u32 %v498_v24, %v497_v43  ;;  %v502_v46 = vrot.slane %v497_v43, 4  ;;  %v631_v26 = vshrl.u32 %v393_v61, 16  ;;  %v1351_v49 = vpack.c.b16 %v1332_v16, %v12095_v15  ;;  %2353 = vmatpush.bf16.msrb.mxu3 %v11356_v17 }
  0x94   : > { %v865_v52 = vld [vmem:[#allocation2 + $0x9c] sm:$0xf]  ;;  %v763_v54 = vsel %vm11836_vm9, %v492_v0, %v762_v53  ;;  %v625_v48 = vrot.slane %v623_v44, 7  ;;  %v634_v51 = vshll.u32 %v393_v61, 16  ;;  %v504_v62 = vshrl.u32 %v12108_v11, 16 }
  0x95   : > { %v1219_v10 = vshrl.u32 %v865_v52, 16  ;;  %v1222_v56 = vshll.u32 %v865_v52, 16  ;;  %v501_v2 = vsel %vm11827_vm8, %v493_v8, %v500_v38  ;;  %764 = vst [vmem:[#allocation2 + $0x48] sm:$0xf] %v763_v54  ;;  %v767_v57 = vsel %vm11843_vm10, %v502_v46, %v766_v33  ;;  %v11378_v44 = vld [vmem:[%s15764_s1 + $0x178] sm:$0xff] }
  0x96   : > { %765 = vst [vmem:[#allocation2 + $0x4c] sm:$0xf] %v501_v2  ;;  %v628_v58 = vor.u32 %v626_v34, %v625_v48  ;;  %v629_v59 = vrot.slane %v625_v48, 4  ;;  %v633_v60 = vrot.slane %v631_v26, 7  ;;  %v1344_v63 = vpack.c.b16 %v1318_v45, %v1317_v42  ;;  %3455 = vmatpush.bf16.msrb.mxu1 %v11378_v44  ;;  %v11331_v44 = vld [vmem:[%s15764_s1 + $0x80] sm:$0xff] }
  0x97   : > { %v900_v1 = vld [vmem:[#allocation2 + $0xa4] sm:$0x1]  ;;  %v1221_v3 = vrot.slane %v1219_v10, 4  ;;  %v1224_v4 = vrot.slane %v1222_v56, 5  ;;  %768 = vst [vmem:[#allocation2 + $0x50] sm:$0x1] %v767_v57  ;;  %v12119_v5 = vpack.c.bf16 %v347_v55, %v347_v55  ;;  %v12143_v42 = vpack.c.bf16 %v362_v39, %v362_v39  ;;  %2040 = vmatpush.bf16.msrb.mxu2 %v11331_v44 }
  0x98   : > { %v11312_v7 = vld [vmem:[#allocation2 + $0x9c] sm:$0xff]  ;;  %v1238_v12 = vshll.u32 %v900_v1, 16  ;;  %v636_v13 = vor.u32 %v634_v51, %v633_v60  ;;  %v638_v15 = vrot.slane %v633_v60, 4  ;;  %v819_v16 = vsel %vm11836_vm9, %v628_v58, %v818_v25 }
  0x99   : > { %1487 = vmatmul.bf16.gmra.mxu2 %v1351_v49  ;;  %v866_v9 = vld [vmem:[#allocation2 + $0xa0] sm:$0xf]  ;;  %v1225_v20 = vor.u32 %v1224_v4, %v1221_v3  ;;  %820 = vst [vmem:[#allocation2 + $0xa8] sm:$0xf] %v819_v16  ;;  %v12138_v31 = vrot.slane %v504_v62, 7  ;;  %v507_v36 = vshll.u32 %v12108_v11, 16  ;;  %v12145_v43 = vpack.c.bf16 %v363_v6, %v363_v6 }
  0x9a   : > { %v1228_v21 = vshll.u32 %v866_v9, 16  ;;  %v1232_v27 = vshrl.u32 %v866_v9, 16  ;;  %v1240_v18 = vrot.slane %v1238_v12, 5  ;;  %v637_v29 = vsel %vm11827_vm8, %v629_v59, %v636_v13 }
  0x9b   : > { %v823_v22 = vsel %vm11843_vm10, %v638_v15, %v822_v50  ;;  %v1226_v32 = vrot.slane %v1225_v20, 4  ;;  %821 = vst [vmem:[#allocation2 + $0xac] sm:$0xf] %v637_v29  ;;  %1725 = vmatmul.bf16.gmra.mxu3 %v11312_v7  ;;  %v510_v40 = vrot.slane %v12138_v31, 4  ;;  %v512_v41 = vshrl.u32 %v12119_v5, 16 }
  0x9c   : > { %1452 = vmatmul.bf16.gmra.mxu0 %v1344_v63  ;;  %v1230_v35 = vrot.slane %v1228_v21, 5  ;;  %v1234_v24 = vrot.slane %v1232_v27, 4  ;;  %v851_v37 = vld [vmem:[#allocation2 + $0x48] sm:$0xf]  ;;  %824 = vst [vmem:[#allocation2 + $0xb0] sm:$0x1] %v823_v22  ;;  %v509_v26 = vor.u32 %v507_v36, %v12138_v31 }
  0x9d   : > { %v852_v0 = vld [vmem:[#allocation2 + $0x4c] sm:$0xf]  ;;  %v1051_v8 = vshrl.u32 %v851_v37, 16  ;;  %v1054_v33 = vshll.u32 %v851_v37, 16  ;;  %v514_v10 = vrot.slane %v512_v41, 7  ;;  %v515_v56 = vshll.u32 %v12119_v5, 16 }
  0x9e   : > { %v1231_v53 = vsel %vm11724_vm2, %v1226_v32, %v1230_v35  ;;  %v1235_v61 = vor.u32 %v1234_v24, %v1230_v35  ;;  %v11305_v11 = vld [vmem:[#allocation2 + $0x48] sm:$0xff]  ;;  %v893_v45 = vld [vmem:[#allocation2 + $0x50] sm:$0x1]  ;;  %v1060_v38 = vshll.u32 %v852_v0, 16  ;;  %v1064_v46 = vshrl.u32 %v852_v0, 16 }
  0x9f   : > { %v1333_v34 = vunpack.c.l.b16 %v1231_v53  ;;  %v1053_v49 = vrot.slane %v1051_v8, 4  ;;  %v1056_v52 = vrot.slane %v1054_v33, 5  ;;  %v1070_v54 = vshll.u32 %v893_v45, 16  ;;  %v769_v15 = vld [vmem:[#allocation2 + $0x54] sm:$0xf] }
  0xa0   : > { %v1236_v25 = vrot.slane %v1235_v61, 4  ;;  %v1062_v48 = vrot.slane %v1060_v38, 5  ;;  %v1066_v51 = vrot.slane %v1064_v46, 4  ;;  %v867_v55 = vld [vmem:[#allocation2 + $0xa8] sm:$0xf]  ;;  %1690 = vmatmul.bf16.gmra.mxu1 %v11305_v11  ;;  %v517_v1 = vor.u32 %v515_v56, %v514_v10  ;;  %v11377_v36 = vld [vmem:[%s15764_s1 + $0x170] sm:$0xff] }
  0xa1   : > { %v1057_v57 = vor.u32 %v1056_v52, %v1053_v49  ;;  %v1072_v50 = vrot.slane %v1070_v54, 5  ;;  %v1243_v58 = vshrl.u32 %v867_v55, 16  ;;  %v1246_v63 = vshll.u32 %v867_v55, 16  ;;  %v773_v29 = vld [vmem:[#allocation2 + $0x5c] sm:$0x1]  ;;  %3456 = vmatpush.bf16.msrb.mxu1 %v11377_v36 }
  0xa2   : > { %v1241_v2 = vsel %vm11724_vm2, %v1236_v25, %v1240_v18  ;;  %v1067_v60 = vor.u32 %v1066_v51, %v1062_v48  ;;  %v868_v62 = vld [vmem:[#allocation2 + $0xac] sm:$0xf]  ;;  %v518_v21 = vsel %vm11827_vm8, %v510_v40, %v517_v1  ;;  %v519_v35 = vrot.slane %v514_v10, 4  ;;  %v829_v51 = vld [vmem:[#allocation2 + $0xbc] sm:$0x1] }
  0xa3   : > { %v1334_v59 = vunpack.c.l.b16 %v1241_v2  ;;  %v1058_v3 = vrot.slane %v1057_v57, 4  ;;  %v901_v4 = vld [vmem:[#allocation2 + $0xb0] sm:$0x1]  ;;  %v1245_v39 = vrot.slane %v1243_v58, 4  ;;  %v1252_v6 = vshll.u32 %v868_v62, 16  ;;  %v11313_v31 = vld [vmem:[#allocation2 + $0xa8] sm:$0xff] }
  0xa4   : > { %v1256_v7 = vshrl.u32 %v868_v62, 16  ;;  %v1068_v12 = vrot.slane %v1067_v60, 4  ;;  %v1248_v13 = vrot.slane %v1246_v63, 5  ;;  %v1262_v5 = vshll.u32 %v901_v4, 16  ;;  %772 = vst [vmem:[#allocation2 + $0x58] sm:$0xf] %v518_v21 }
  0xa5   : > { %v1352_v9 = vpack.c.b16 %v1334_v59, %v1333_v34  ;;  %v1063_v16 = vsel %vm11724_vm2, %v1058_v3, %v1062_v48  ;;  %v1254_v47 = vrot.slane %v1252_v6, 5  ;;  %v770_v24 = vsel %vm11836_vm9, %v509_v26, %v769_v15  ;;  %v2468_v37 = vld [vmem:[#allocation2 + $0xc] sm:$0xf]  ;;  %v11355_v34 = vld [vmem:[%s15764_s1 + $0xc0] sm:$0xff]  ;;  %v825_v26 = vld [vmem:[#allocation2 + $0xb4] sm:$0xf] }
  0xa6   : > { %v1258_v20 = vrot.slane %v1256_v7, 4  ;;  %v1073_v27 = vsel %vm11724_vm2, %v1068_v12, %v1072_v50  ;;  %v1319_v17 = vunpack.c.l.b16 %v1063_v16  ;;  %v1249_v28 = vor.u32 %v1248_v13, %v1245_v39  ;;  %771 = vst [vmem:[#allocation2 + $0x54] sm:$0xf] %v770_v24  ;;  %v12189_v55 = vld [vmem:[#allocation2 + $0x10] sm:$0xf]  ;;  %2354 = vmatpush.bf16.msrb.mxu3 %v11355_v34  ;;  %v11375_v60 = vld [vmem:[%s15764_s1 + $0x160] sm:$0xff] }
  0xa7   : > { %v1264_v18 = vrot.slane %v1262_v5, 5  ;;  %v1320_v22 = vunpack.c.l.b16 %v1073_v27  ;;  %v640_v41 = vshrl.u32 %v12143_v42, 16  ;;  %v643_v53 = vshll.u32 %v12143_v42, 16  ;;  %v11376_v42 = vld [vmem:[%s15764_s1 + $0x168] sm:$0xff] }
  0xa8   : > { %v1259_v32 = vor.u32 %v1258_v20, %v1254_v47  ;;  %v1250_v40 = vrot.slane %v1249_v28, 4  ;;  %v648_v61 = vshrl.u32 %v12145_v43, 16  ;;  %v774_v33 = vsel %vm11843_vm10, %v519_v35, %v773_v29  ;;  %3457 = vmatpush.bf16.msrb.mxu1 %v11376_v42  ;;  %v12207_v28 = vld [vmem:[#allocation2 + $0x14] sm:$0x1] }
  0xa9   : > { %1492 = vmatmul.bf16.gmra.mxu2 %v1352_v9  ;;  %v1345_v0 = vpack.c.b16 %v1320_v22, %v1319_v17  ;;  %v651_v11 = vshll.u32 %v12145_v43, 16  ;;  %775 = vst [vmem:[#allocation2 + $0x5c] sm:$0x1] %v774_v33  ;;  %v642_v38 = vrot.slane %v640_v41, 7  ;;  %v11363_v43 = vld [vmem:[%s15764_s1 + $0x100] sm:$0xff]  ;;  %v2517_v25 = vshrl.u32 %v2468_v37, 16  ;;  %v1661_v34 = vpop.f32.mrf.mxu1 }
  0xaa   : > { %v1260_v8 = vrot.slane %v1259_v32, 4  ;;  %v1255_v45 = vsel %vm11724_vm2, %v1250_v40, %v1254_v47  ;;  %v650_v46 = vrot.slane %v648_v61, 7  ;;  %3036 = vmatpush.bf16.msrb.mxu0 %v11363_v43  ;;  %v2520_v57 = vshll.u32 %v2468_v37, 16  ;;  %v11374_v17 = vld [vmem:[%s15764_s1 + $0x158] sm:$0xff] }
  0xab   : > { %1730 = vmatmul.bf16.gmra.mxu3 %v11313_v31  ;;  %v645_v52 = vor.u32 %v643_v53, %v642_v38  ;;  %v646_v54 = vrot.slane %v642_v38, 4  ;;  %v1335_v10 = vunpack.c.l.b16 %v1255_v45  ;;  %v854_v56 = vld [vmem:[#allocation2 + $0x58] sm:$0xf]  ;;  %v12196_v62 = vrot.slane %v2517_v25, 4  ;;  %v11373_v25 = vld [vmem:[%s15764_s1 + $0x150] sm:$0xff] }
  0xac   : > { %1457 = vmatmul.bf16.gmra.mxu0 %v1345_v0  ;;  %v1265_v49 = vsel %vm11724_vm2, %v1260_v8, %v1264_v18  ;;  %v653_v48 = vor.u32 %v651_v11, %v650_v46  ;;  %v655_v2 = vrot.slane %v650_v46, 4  ;;  %v1084_v50 = vshll.u32 %v854_v56, 16  ;;  %3458 = vmatpush.bf16.msrb.mxu1 %v11375_v60  ;;  %v1428_v11 = vpop.f32.mrf.mxu0 }
  0xad   : > { %v1088_v58 = vshrl.u32 %v854_v56, 16  ;;  %v1336_v63 = vunpack.c.l.b16 %v1265_v49  ;;  %v853_v1 = vld [vmem:[#allocation2 + $0x54] sm:$0xf]  ;;  %v826_v3 = vsel %vm11836_vm9, %v645_v52, %v825_v26  ;;  %v2526_v6 = vshll.u32 %v12189_v55, 16  ;;  %v11402_v26 = vld [vmem:[%s15764_s1 + $0x1b8] sm:$0xff] }
  0xae   : > { %v654_v59 = vsel %vm11827_vm8, %v646_v54, %v653_v48  ;;  %v830_v4 = vsel %vm11843_vm10, %v655_v2, %v829_v51  ;;  %v11306_v39 = vld [vmem:[#allocation2 + $0x54] sm:$0xff]  ;;  %v1075_v7 = vshrl.u32 %v853_v1, 16  ;;  %v1078_v9 = vshll.u32 %v853_v1, 16  ;;  %827 = vst [vmem:[#allocation2 + $0xb4] sm:$0xf] %v826_v3  ;;  %3770 = vmatpush.bf16.msra.mxu2 %v11402_v26 }
  0xaf   : > { %828 = vst [vmem:[#allocation2 + $0xb8] sm:$0xf] %v654_v59  ;;  %v1086_v12 = vrot.slane %v1084_v50, 5  ;;  %v1090_v13 = vrot.slane %v1088_v58, 4  ;;  %v2522_v15 = vrot.slane %v2520_v57, 5  ;;  %v2530_v16 = vshrl.u32 %v12189_v55, 16 }
  0xb0   : > { %v894_v5 = vld [vmem:[#allocation2 + $0x5c] sm:$0x1]  ;;  %831 = vst [vmem:[#allocation2 + $0xbc] sm:$0x1] %v830_v4  ;;  %1695 = vmatmul.bf16.gmra.mxu1 %v11306_v39  ;;  %v1077_v47 = vrot.slane %v1075_v7, 4  ;;  %v1080_v20 = vrot.slane %v1078_v9, 5  ;;  %v1353_v22 = vpack.c.b16 %v1336_v63, %v1335_v10  ;;  %v12218_v43 = vadd.f32 %v1661_v34, %v1428_v11 }
  0xb1   : > { %v1091_v21 = vor.u32 %v1090_v13, %v1086_v12  ;;  %v1094_v27 = vshll.u32 %v894_v5, 16  ;;  %v12209_v18 = vrot.slane %v2526_v6, 5  ;;  %v2532_v29 = vrot.slane %v2530_v16, 4  ;;  %3459 = vmatpush.bf16.msrb.mxu1 %v11374_v17  ;;  %v11410_v51 = vld [vmem:[%s15764_s1 + $0x1f8] sm:$0xff]  ;;  %v11372_v58 = vld [vmem:[%s15764_s1 + $0x148] sm:$0xff]  ;;  %v11371_v13 = vld [vmem:[%s15764_s1 + $0x140] sm:$0xff] }
  0xb2   : > { %v1081_v31 = vor.u32 %v1080_v20, %v1077_v47  ;;  %v2523_v40 = vor.u32 %v2522_v15, %v12196_v62  ;;  %v2536_v41 = vshll.u32 %v12207_v28, 16  ;;  %4452 = vmatpush.bf16.msra.mxu3 %v11410_v51  ;;  %v11418_v63 = vld [vmem:[%s15764_s1 + $0x238] sm:$0xff]  ;;  %v3150_v1 = vld [vmem:[#allocation2 + $0xc] sm:$0xe]  ;;  %v3216_v3 = vrot.slane %v12189_v55, 5 }
  0xb3   : > { %v1092_v32 = vrot.slane %v1091_v21, 4  ;;  %v1096_v35 = vrot.slane %v1094_v27, 5  ;;  %v2533_v44 = vor.u32 %v2532_v29, %v12209_v18  ;;  %v10351_v6 = vrot.slane %v3150_v1, 9  ;;  %4878 = vmatpush.bf16.msra.mxu0 %v11418_v63  ;;  %v2471_v16 = vld [vmem:[#allocation2 + $0x18] sm:$0xf] }
  0xb4   : > { %v1082_v24 = vrot.slane %v1081_v31, 4  ;;  %v2524_v60 = vrot.slane %v2523_v40, 4  ;;  %v2538_v62 = vrot.slane %v2536_v41, 5  ;;  %v3219_v7 = vrot.slane %v12207_v28, 5  ;;  %v2472_v47 = vld [vmem:[#allocation2 + $0x1c] sm:$0xf] }
  0xb5   : > { %v1097_v36 = vsel %vm11724_vm2, %v1092_v32, %v1096_v35  ;;  %v869_v0 = vld [vmem:[#allocation2 + $0xb4] sm:$0xf]  ;;  %3460 = vmatpush.bf16.msrb.mxu1 %v11373_v25  ;;  %v2534_v39 = vrot.slane %v2533_v44, 4  ;;  %v3218_v55 = vrot.slane %v3216_v3, 4  ;;  %v3217_v15 = vsel %vm12239_vm13, %v10351_v6, %v3216_v3  ;;  %v1741_v32 = vld [vmem:[#allocation2] sm:$0xe]  ;;  %v12267_v3 = vpop.f32.mrf.mxu0 }
  0xb6   : > { %v870_v37 = vld [vmem:[#allocation2 + $0xb8] sm:$0xf]  ;;  %v1322_v53 = vunpack.c.l.b16 %v1097_v36  ;;  %v1087_v42 = vsel %vm11724_vm2, %v1082_v24, %v1086_v12  ;;  %v1267_v38 = vshrl.u32 %v869_v0, 16  ;;  %v1270_v46 = vshll.u32 %v869_v0, 16  ;;  %v11568_v40 = vld [vmem:[#allocation2 + $0x4] sm:$0xf] }
  0xb7   : > { %v11314_v61 = vld [vmem:[#allocation2 + $0xb4] sm:$0xff]  ;;  %v1276_v8 = vshll.u32 %v870_v37, 16  ;;  %v1280_v33 = vshrl.u32 %v870_v37, 16  ;;  %v902_v45 = vld [vmem:[#allocation2 + $0xbc] sm:$0x1]  ;;  %v1321_v49 = vunpack.c.l.b16 %v1087_v42  ;;  %v2529_v27 = vsel %vm11724_vm2, %v2524_v60, %v12209_v18  ;;  %v11339_v25 = vld [vmem:[#allocation2 + $0xc] sm:$0xff] }
  0xb8   : > { %v1286_v48 = vshll.u32 %v902_v45, 16  ;;  %v1269_v10 = vrot.slane %v1267_v38, 4  ;;  %v1272_v56 = vrot.slane %v1270_v46, 5  ;;  %v3220_v17 = vsel %vm12239_vm13, %v3218_v55, %v3219_v7  ;;  %v11569_v38 = vld [vmem:[#allocation2 + $0x8] sm:$0x1] }
  0xb9   : > { %1497 = vmatmul.bf16.gmra.mxu2 %v1353_v22  ;;  %v1278_v52 = vrot.slane %v1276_v8, 5  ;;  %v1282_v54 = vrot.slane %v1280_v33, 4  ;;  %v1346_v2 = vpack.c.b16 %v1322_v53, %v1321_v49  ;;  %3461 = vmatpush.bf16.msrb.mxu1 %v11372_v58  ;;  %v2539_v29 = vsel %vm11724_vm2, %v2534_v39, %v2538_v62  ;;  %v12259_v53 = vpop.f32.mrf.mxu1  ;;  %v2473_v26 = vld [vmem:[#allocation2 + $0x20] sm:$0x1]  ;;  %v12265_v63 = vld [vmem:[#allocation2 + $0x28] sm:$0xf] }
  0xba   : > { %v1288_v50 = vrot.slane %v1286_v48, 5  ;;  %v1273_v59 = vor.u32 %v1272_v56, %v1269_v10  ;;  %v3343_v22 = vunpack.c.l.b16 %v3217_v15  ;;  %v3344_v31 = vunpack.c.l.b16 %v3220_v17 }
  0xbb   : > { %v1283_v57 = vor.u32 %v1282_v54, %v1278_v52  ;;  %1735 = vmatmul.bf16.gmra.mxu3 %v11314_v61  ;;  %v2541_v35 = vshrl.u32 %v2471_v16, 16  ;;  %v2544_v24 = vshll.u32 %v2471_v16, 16  ;;  %v2550_v36 = vshll.u32 %v2472_v47, 16 }
  0xbc   : > { %1462 = vmatmul.bf16.gmra.mxu0 %v1346_v2  ;;  %v1274_v9 = vrot.slane %v1273_v59, 4  ;;  %v2554_v37 = vshrl.u32 %v2472_v47, 16  ;;  %v1794_v41 = vrot.slane %v11568_v40, 5  ;;  %v3375_v18 = vpack.c.b16 %v3344_v31, %v3343_v22  ;;  %v3151_v2 = vld [vmem:[#allocation2 + $0x18] sm:$0xe] }
  0xbd   : > { %v1284_v4 = vrot.slane %v1283_v57, 4  ;;  %3462 = vmatpush.bf16.msrb.mxu1 %v11371_v13  ;;  %v2917_v0 = vunpack.c.l.b16 %v2529_v27  ;;  %v2918_v8 = vunpack.c.l.b16 %v2539_v29  ;;  %v10127_v33 = vrot.slane %v1741_v32, 9  ;;  %v2474_v57 = vld [vmem:[#allocation2 + $0x24] sm:$0xf]  ;;  %v11570_v29 = vld [vmem:[#allocation2 + $0x10] sm:$0xf] }
  0xbe   : > { %v1279_v20 = vsel %vm11724_vm2, %v1274_v9, %v1278_v52  ;;  %v2543_v11 = vrot.slane %v2541_v35, 4  ;;  %v2546_v44 = vrot.slane %v2544_v24, 5  ;;  %v2552_v34 = vrot.slane %v2550_v36, 5  ;;  %v1742_v31 = vld [vmem:[#allocation2 + $0xc] sm:$0xe] }
  0xbf   : > { %v1289_v5 = vsel %vm11724_vm2, %v1284_v4, %v1288_v50  ;;  %v1337_v28 = vunpack.c.l.b16 %v1279_v20  ;;  %v2556_v42 = vrot.slane %v2554_v37, 4  ;;  %v1796_v45 = vrot.slane %v1794_v41, 4 }
  0xc0   : > { %v1338_v21 = vunpack.c.l.b16 %v1289_v5  ;;  %3463 = vmatmul.bf16.vlgmr.msrb.gmra.mxu1 %v3375_v18  ;;  %v1797_v46 = vrot.slane %v11569_v38, 5  ;;  %v2949_v49 = vpack.c.b16 %v2918_v8, %v2917_v0  ;;  %v1795_v52 = vsel %vm12239_vm13, %v10127_v33, %v1794_v41  ;;  %v2476_v18 = vld [vmem:[#allocation2 + $0x2c] sm:$0x1]  ;;  %v11340_v33 = vld [vmem:[#allocation2 + $0x18] sm:$0xff]  ;;  %v11401_v38 = vld [vmem:[%s15764_s1 + $0x1b0] sm:$0xff] }
  0xc1   : > { %v2547_v54 = vor.u32 %v2546_v44, %v2543_v11  ;;  %v2557_v48 = vor.u32 %v2556_v42, %v2552_v34  ;;  %v2560_v51 = vshll.u32 %v2473_v26, 16  ;;  %v3223_v56 = vrot.slane %v2472_v47, 5  ;;  %v11571_v44 = vld [vmem:[#allocation2 + $0x14] sm:$0x1]  ;;  %3771 = vmatpush.bf16.msra.mxu2 %v11401_v38  ;;  %v2479_v38 = vld [vmem:[#allocation2 + $0x38] sm:$0x1] }
  0xc2   : > { %v1354_v61 = vpack.c.b16 %v1338_v21, %v1337_v28  ;;  %v1798_v10 = vsel %vm12239_vm13, %v1796_v45, %v1797_v46  ;;  %v1921_v50 = vunpack.c.l.b16 %v1795_v52  ;;  %v10352_v59 = vrot.slane %v3151_v2, 9  ;;  %v11409_v46 = vld [vmem:[%s15764_s1 + $0x1f0] sm:$0xff] }
  0xc3   : > { %v3225_v60 = vrot.slane %v3223_v56, 4  ;;  %v3226_v62 = vrot.slane %v2473_v26, 5  ;;  %v1922_v1 = vunpack.c.l.b16 %v1798_v10  ;;  %v2548_v4 = vrot.slane %v2547_v54, 4  ;;  %4453 = vmatpush.bf16.msra.mxu3 %v11409_v46 }
  0xc4   : > { %v2558_v39 = vrot.slane %v2557_v48, 4  ;;  %v2562_v6 = vrot.slane %v2560_v51, 5  ;;  %v3224_v9 = vsel %vm12239_vm13, %v10352_v59, %v3223_v56  ;;  %v2565_v55 = vshrl.u32 %v2474_v57, 16 }
  0xc5   : > { %v3227_v13 = vsel %vm12239_vm13, %v3225_v60, %v3226_v62  ;;  %v2568_v5 = vshll.u32 %v2474_v57, 16  ;;  %v3345_v15 = vunpack.c.l.b16 %v3224_v9  ;;  %v2574_v47 = vshll.u32 %v12265_v63, 16  ;;  %v11417_v57 = vld [vmem:[%s15764_s1 + $0x230] sm:$0xff] }
  0xc6   : > { %v3346_v16 = vunpack.c.l.b16 %v3227_v13  ;;  %v2578_v20 = vshrl.u32 %v12265_v63, 16  ;;  %v2553_v21 = vsel %vm11724_vm2, %v2548_v4, %v2552_v34  ;;  %v2563_v27 = vsel %vm11724_vm2, %v2558_v39, %v2562_v6  ;;  %4879 = vmatpush.bf16.msra.mxu0 %v11417_v57 }
  0xc7   : > { %v1953_v28 = vpack.c.b16 %v1922_v1, %v1921_v50  ;;  %v1801_v22 = vrot.slane %v11570_v29, 5  ;;  %v2567_v32 = vrot.slane %v2565_v55, 4  ;;  %v2570_v35 = vrot.slane %v2568_v5, 5  ;;  %v3152_v50 = vld [vmem:[#allocation2 + $0x24] sm:$0xe] }
  0xc8   : > { %v3376_v17 = vpack.c.b16 %v3346_v16, %v3345_v15  ;;  %v12279_v24 = vrot.slane %v2574_v47, 5  ;;  %v2580_v36 = vrot.slane %v2578_v20, 4  ;;  %v2919_v37 = vunpack.c.l.b16 %v2553_v21 }
  0xc9   : > { %1502 = vmatmul.bf16.gmra.mxu2 %v1354_v61  ;;  %v2920_v40 = vunpack.c.l.b16 %v2563_v27  ;;  %v10128_v0 = vrot.slane %v1742_v31, 9  ;;  %v1803_v11 = vrot.slane %v1801_v22, 4  ;;  %v1804_v34 = vrot.slane %v11571_v44, 5  ;;  %v1743_v27 = vld [vmem:[#allocation2 + $0x18] sm:$0xe] }
  0xca   : > { %v2571_v42 = vor.u32 %v2570_v35, %v2567_v32  ;;  %v2581_v45 = vor.u32 %v2580_v36, %v12279_v24  ;;  %v3230_v48 = vrot.slane %v12265_v63, 5  ;;  %v10353_v60 = vrot.slane %v3152_v50, 9  ;;  %v2477_v63 = vld [vmem:[#allocation2 + $0x30] sm:$0xf]  ;;  %v11572_v32 = vld [vmem:[#allocation2 + $0x1c] sm:$0xf] }
  0xcb   : > { %2355 = vmatmul.bf16.vlgmr.msrb.gmra.mxu3 %v11339_v25  ;;  %v2950_v26 = vpack.c.b16 %v2920_v40, %v2919_v37  ;;  %v1802_v54 = vsel %vm12239_vm13, %v10128_v0, %v1801_v22  ;;  %v1805_v10 = vsel %vm12239_vm13, %v1803_v11, %v1804_v34  ;;  %v3233_v1 = vrot.slane %v2476_v18, 5 }
  0xcc   : > { %3037 = vmatmul.bf16.vlgmr.msrb.gmra.mxu0 %v2949_v49  ;;  %v1666_v58 = vpop.f32.mrf.mxu1  ;;  %v2584_v49 = vshll.u32 %v2476_v18, 16  ;;  %v2572_v56 = vrot.slane %v2571_v42, 4  ;;  %v2582_v2 = vrot.slane %v2581_v45, 4  ;;  %v3232_v62 = vrot.slane %v3230_v48, 4  ;;  %v11573_v42 = vld [vmem:[#allocation2 + $0x20] sm:$0x1] }
  0xcd   : > { %v3231_v39 = vsel %vm12239_vm13, %v10353_v60, %v3230_v48  ;;  %v1923_v9 = vunpack.c.l.b16 %v1802_v54  ;;  %v1924_v13 = vunpack.c.l.b16 %v1805_v10  ;;  %v2589_v21 = vshrl.u32 %v2477_v63, 16  ;;  %v2480_v60 = vld [vmem:[#allocation2 + $0x3c] sm:$0xf] }
  0xce   : > { %v1701_v7 = vpop.f32.mrf.mxu3  ;;  %v3234_v6 = vsel %vm12239_vm13, %v3232_v62, %v3233_v1  ;;  %v3347_v5 = vunpack.c.l.b16 %v3231_v39  ;;  %v2577_v47 = vsel %vm11724_vm2, %v2572_v56, %v12279_v24  ;;  %v1808_v35 = vrot.slane %v11572_v32, 5 }
  0xcf   : > { %v3348_v15 = vunpack.c.l.b16 %v3234_v6  ;;  %v1954_v37 = vpack.c.b16 %v1924_v13, %v1923_v9  ;;  %v2921_v40 = vunpack.c.l.b16 %v2577_v47  ;;  %v10129_v24 = vrot.slane %v1743_v27, 9  ;;  %v12326_v6 = vld [vmem:[#allocation2 + $0x40] sm:$0xf] }
  0xd0   : > { %3468 = vmatmul.bf16.gmra.mxu1 %v3376_v17  ;;  %v2591_v0 = vrot.slane %v2589_v21, 4  ;;  %v1810_v34 = vrot.slane %v1808_v35, 4  ;;  %v1811_v45 = vrot.slane %v11573_v42, 5  ;;  %v2608_v10 = vshll.u32 %v2479_v38, 16 }
  0xd1   : > { %v3377_v17 = vpack.c.b16 %v3348_v15, %v3347_v5  ;;  %v3240_v39 = vrot.slane %v2479_v38, 5  ;;  %v2613_v47 = vshrl.u32 %v2480_v60, 16 }
  0xd2   : > { %v2610_v5 = vrot.slane %v2608_v10, 5  ;;  %v11575_v10 = vld [vmem:[#allocation2 + $0x2c] sm:$0x1] }
  0xd4   : > { %v1668_v41 = vpop.f32.mrf.mxu1 }
  0xd6   : > { %v1703_v61 = vpop.f32.mrf.mxu3 }
  0xd9   : > { %2041 = vmatmul.bf16.vlgmr.msrb.gmra.mxu2 %v1953_v28  ;;  %v1433_v8 = vpop.f32.mrf.mxu0  ;;  %v2592_v28 = vshll.u32 %v2477_v63, 16 }
  0xda   : > { %v12288_v25 = vadd.f32 %v1666_v58, %v1433_v8  ;;  %v2586_v58 = vrot.slane %v2584_v49, 5 }
  0xdb   : > { %2360 = vmatmul.bf16.gmra.mxu3 %v11340_v33  ;;  %v2594_v8 = vrot.slane %v2592_v28, 5  ;;  %v2622_v28 = vshll.u32 %v12326_v6, 16 }
  0xdc   : > { %v1468_v52 = vpop.f32.mrf.mxu2  ;;  %3042 = vmatmul.bf16.gmra.mxu0 %v2950_v26  ;;  %v1671_v59 = vpop.f32.mrf.mxu1  ;;  %v2587_v20 = vsel %vm11724_vm2, %v2582_v2, %v2586_v58  ;;  %v11341_v26 = vld [vmem:[#allocation2 + $0x24] sm:$0xff]  ;;  %v1812_v2 = vsel %vm12239_vm13, %v1810_v34, %v1811_v45  ;;  %v3153_v58 = vld [vmem:[#allocation2 + $0x30] sm:$0xe] }
  0xdd   : > { %v12293_v51 = vadd.f32 %v1701_v7, %v1468_v52  ;;  %v12304_v7 = vld [vmem:[#allocation2 + $0x34] sm:$0xf]  ;;  %v1809_v52 = vsel %vm12239_vm13, %v10129_v24, %v1808_v35  ;;  %v2595_v54 = vor.u32 %v2594_v8, %v2591_v0  ;;  %v10354_v1 = vrot.slane %v3153_v58, 9  ;;  %v11408_v58 = vld [vmem:[%s15764_s1 + $0x1e8] sm:$0xff] }
  0xde   : > { %v1706_v4 = vpop.f32.mrf.mxu3  ;;  %v2598_v29 = vshll.u32 %v12304_v7, 16  ;;  %v2602_v22 = vshrl.u32 %v12304_v7, 16  ;;  %v3237_v57 = vrot.slane %v12304_v7, 5  ;;  %v1926_v9 = vunpack.c.l.b16 %v1812_v2  ;;  %4454 = vmatpush.bf16.msra.mxu3 %v11408_v58 }
  0xdf   : > { %v2596_v13 = vrot.slane %v2595_v54, 4  ;;  %v2615_v0 = vrot.slane %v2613_v47, 4  ;;  %v12342_v42 = vrot.slane %v2622_v28, 5  ;;  %v11342_v54 = vld [vmem:[#allocation2 + $0x30] sm:$0xff] }
  0xe0   : > { %3473 = vmatmul.bf16.gmra.mxu1 %v3377_v17  ;;  %v2600_v33 = vrot.slane %v2598_v29, 5  ;;  %v2604_v11 = vrot.slane %v2602_v22, 4  ;;  %v3239_v63 = vrot.slane %v3237_v57, 4  ;;  %v2626_v29 = vshrl.u32 %v12326_v6, 16 }
  0xe1   : > { %v1435_v55 = vpop.f32.mrf.mxu0 }
  0xe2   : > { %v12306_v16 = vadd.f32 %v1668_v41, %v1435_v55  ;;  %v2922_v41 = vunpack.c.l.b16 %v2587_v20  ;;  %v2605_v48 = vor.u32 %v2604_v11, %v2600_v33  ;;  %v3241_v7 = vsel %vm12239_vm13, %v3239_v63, %v3240_v39  ;;  %v1744_v11 = vld [vmem:[#allocation2 + $0x24] sm:$0xe] }
  0xe3   : > { %v2616_v20 = vshll.u32 %v2480_v60, 16  ;;  %v3350_v17 = vunpack.c.l.b16 %v3241_v7  ;;  %v3154_v7 = vld [vmem:[#allocation2 + $0x3c] sm:$0xe] }
  0xe4   : > { %v1470_v31 = vpop.f32.mrf.mxu2  ;;  %v1673_v18 = vpop.f32.mrf.mxu1  ;;  %v2606_v55 = vrot.slane %v2605_v48, 4 }
  0xe5   : > { %v12315_v36 = vadd.f32 %v1703_v61, %v1470_v31  ;;  %v2951_v61 = vpack.c.b16 %v2922_v41, %v2921_v40  ;;  %v2601_v31 = vsel %vm11724_vm2, %v2596_v13, %v2600_v33  ;;  %v11574_v41 = vld [vmem:[#allocation2 + $0x28] sm:$0xf]  ;;  %v2618_v34 = vrot.slane %v2616_v20, 5  ;;  %v2482_v33 = vld [vmem:[#allocation2 + $0x44] sm:$0x1] }
  0xe6   : > { %v1708_v44 = vpop.f32.mrf.mxu3  ;;  %v2611_v32 = vsel %vm11724_vm2, %v2606_v55, %v2610_v5  ;;  %v1815_v24 = vrot.slane %v11574_v41, 5  ;;  %v2923_v45 = vunpack.c.l.b16 %v2601_v31  ;;  %v12367_v31 = vld [vmem:[#allocation2 + $0x4c] sm:$0xf] }
  0xe7   : > { %v2924_v38 = vunpack.c.l.b16 %v2611_v32 }
  0xe8   : > { %v1817_v48 = vrot.slane %v1815_v24, 4 }
  0xe9   : > { %2046 = vmatmul.bf16.gmra.mxu2 %v1954_v37  ;;  %v1438_v46 = vpop.f32.mrf.mxu0  ;;  %v2952_v60 = vpack.c.b16 %v2924_v38, %v2923_v45 }
  0xea   : > { %v12317_v49 = vadd.f32 %v1671_v59, %v1438_v46  ;;  %v1925_v59 = vunpack.c.l.b16 %v1809_v52 }
  0xeb   : > { %2365 = vmatmul.bf16.gmra.mxu3 %v11341_v26 }
  0xec   : > { %v1473_v56 = vpop.f32.mrf.mxu2  ;;  %3047 = vmatmul.bf16.gmra.mxu0 %v2951_v61  ;;  %v1955_v40 = vpack.c.b16 %v1926_v9, %v1925_v59  ;;  %v10130_v61 = vrot.slane %v1744_v11, 9  ;;  %v3244_v9 = vrot.slane %v12326_v6, 5  ;;  %v2483_v6 = vld [vmem:[#allocation2 + $0x48] sm:$0xf] }
  0xed   : > { %v12324_v50 = vadd.f32 %v1706_v4, %v1473_v56  ;;  %v1676_v62 = vpop.f32.mrf.mxu1  ;;  %v3238_v4 = vsel %vm12239_vm13, %v10354_v1, %v3237_v57  ;;  %v1818_v56 = vrot.slane %v11575_v10, 5  ;;  %v11400_v57 = vld [vmem:[%s15764_s1 + $0x1a8] sm:$0xff]  ;;  %v2632_v1 = vshll.u32 %v2482_v33, 16 }
  0xee   : > { %v1711_v15 = vpop.f32.mrf.mxu3  ;;  %v3349_v27 = vunpack.c.l.b16 %v3238_v4  ;;  %3772 = vmatpush.bf16.msra.mxu2 %v11400_v57  ;;  %v1816_v39 = vsel %vm12239_vm13, %v10130_v61, %v1815_v24  ;;  %v2640_v38 = vshll.u32 %v2483_v6, 16  ;;  %v2650_v61 = vshrl.u32 %v12367_v31, 16 }
  0xef   : > { %v1819_v55 = vsel %vm12239_vm13, %v1817_v48, %v1818_v56  ;;  %v2634_v47 = vrot.slane %v2632_v1, 5  ;;  %v1927_v32 = vunpack.c.l.b16 %v1816_v39 }
  0xf0   : > { %v3378_v35 = vpack.c.b16 %v3350_v17, %v3349_v27  ;;  %v3246_v27 = vrot.slane %v3244_v9, 4  ;;  %v3247_v17 = vrot.slane %v2482_v33, 5  ;;  %v2646_v33 = vshll.u32 %v12367_v31, 16 }
  0xf1   : > { %v1440_v21 = vpop.f32.mrf.mxu0  ;;  %v2642_v58 = vrot.slane %v2640_v38, 5  ;;  %v2652_v1 = vrot.slane %v2650_v61, 4 }
  0xf2   : > { %v12334_v22 = vadd.f32 %v1673_v18, %v1440_v21  ;;  %v2628_v18 = vrot.slane %v2626_v29, 4  ;;  %3478 = vmatmul.bf16.gmra.mxu1 %v3378_v35  ;;  %v10355_v21 = vrot.slane %v3154_v7, 9  ;;  %v3248_v29 = vsel %vm12239_vm13, %v3246_v27, %v3247_v17 }
  0xf3   : > { %v1928_v35 = vunpack.c.l.b16 %v1819_v55  ;;  %v3352_v41 = vunpack.c.l.b16 %v3248_v29  ;;  %v3251_v29 = vrot.slane %v12367_v31, 5 }
  0xf4   : > { %v1475_v37 = vpop.f32.mrf.mxu2  ;;  %v2629_v2 = vor.u32 %v2628_v18, %v12342_v42  ;;  %v3245_v28 = vsel %vm12239_vm13, %v10355_v21, %v3244_v9  ;;  %v1745_v18 = vld [vmem:[#allocation2 + $0x30] sm:$0xe]  ;;  %v11577_v9 = vld [vmem:[#allocation2 + $0x38] sm:$0x1] }
  0xf5   : > { %v12340_v8 = vadd.f32 %v1708_v44, %v1475_v37  ;;  %v1678_v46 = vpop.f32.mrf.mxu1  ;;  %v2619_v44 = vor.u32 %v2618_v34, %v2615_v0  ;;  %v2637_v34 = vshrl.u32 %v2483_v6, 16  ;;  %v1956_v10 = vpack.c.b16 %v1928_v35, %v1927_v32  ;;  %v3155_v35 = vld [vmem:[#allocation2 + $0x48] sm:$0xe] }
  0xf6   : > { %v1713_v26 = vpop.f32.mrf.mxu3  ;;  %v2630_v4 = vrot.slane %v2629_v2, 4  ;;  %v1825_v55 = vrot.slane %v11577_v9, 5 }
  0xf7   : > { %v2620_v5 = vrot.slane %v2619_v44, 4  ;;  %v2639_v57 = vrot.slane %v2637_v34, 4  ;;  %v12389_v34 = vld [vmem:[#allocation2 + $0x58] sm:$0xf] }
  0xf8   : > { %v2635_v11 = vsel %vm11724_vm2, %v2630_v4, %v2634_v47 }
  0xf9   : > { %2051 = vmatmul.bf16.gmra.mxu2 %v1955_v40  ;;  %v1443_v52 = vpop.f32.mrf.mxu0  ;;  %v3351_v40 = vunpack.c.l.b16 %v3245_v28  ;;  %v2625_v0 = vsel %vm11724_vm2, %v2620_v5, %v12342_v42  ;;  %v2926_v44 = vunpack.c.l.b16 %v2635_v11  ;;  %v10131_v42 = vrot.slane %v1745_v18, 9  ;;  %v2485_v5 = vld [vmem:[#allocation2 + $0x50] sm:$0x1] }
  0xfa   : > { %v12351_v59 = vadd.f32 %v1676_v62, %v1443_v52  ;;  %v11416_v62 = vld [vmem:[%s15764_s1 + $0x228] sm:$0xff]  ;;  %v2925_v56 = vunpack.c.l.b16 %v2625_v0  ;;  %v2643_v21 = vor.u32 %v2642_v58, %v2639_v57  ;;  %v2656_v17 = vshll.u32 %v2485_v5, 16 }
  0xfb   : > { %2370 = vmatmul.bf16.gmra.mxu3 %v11342_v54  ;;  %4880 = vmatpush.bf16.msra.mxu0 %v11416_v62  ;;  %v3379_v45 = vpack.c.b16 %v3352_v41, %v3351_v40  ;;  %v11576_v54 = vld [vmem:[#allocation2 + $0x34] sm:$0xf]  ;;  %v11343_v62 = vld [vmem:[#allocation2 + $0x3c] sm:$0xff]  ;;  %v10356_v41 = vrot.slane %v3155_v35, 9  ;;  %v3253_v0 = vrot.slane %v3251_v29, 4  ;;  %v3254_v11 = vrot.slane %v2485_v5, 5 }
  0xfc   : > { %v1478_v63 = vpop.f32.mrf.mxu2  ;;  %3052 = vmatmul.bf16.gmra.mxu0 %v2952_v60  ;;  %v1822_v48 = vrot.slane %v11576_v54, 5  ;;  %v2648_v60 = vrot.slane %v2646_v33, 5  ;;  %v2658_v33 = vrot.slane %v2656_v17, 5  ;;  %v11578_v5 = vld [vmem:[#allocation2 + $0x40] sm:$0xf] }
  0xfd   : > { %v12356_v13 = vadd.f32 %v1711_v15, %v1478_v63  ;;  %v1681_v20 = vpop.f32.mrf.mxu1  ;;  %v3255_v31 = vsel %vm12239_vm13, %v3253_v0, %v3254_v11  ;;  %v11579_v0 = vld [vmem:[#allocation2 + $0x44] sm:$0x1] }
  0xfe   : > { %v1716_v15 = vpop.f32.mrf.mxu3  ;;  %v1824_v39 = vrot.slane %v1822_v48, 4  ;;  %v1823_v47 = vsel %vm12239_vm13, %v10131_v42, %v1822_v48  ;;  %v2653_v27 = vor.u32 %v2652_v1, %v2648_v60  ;;  %v2674_v42 = vshrl.u32 %v12389_v34, 16 }
  0xff   : > { %v1832_v11 = vrot.slane %v11579_v0, 5  ;;  %v1747_v0 = vld [vmem:[#allocation2 + $0x48] sm:$0xe] }
 0x100   : > { %v1826_v28 = vsel %vm12239_vm13, %v1824_v39, %v1825_v55  ;;  %v2654_v38 = vrot.slane %v2653_v27, 4 }
 0x101   : > { %v1445_v37 = vpop.f32.mrf.mxu0  ;;  %v1930_v18 = vunpack.c.l.b16 %v1826_v28 }
 0x102   : > { %v12369_v24 = vadd.f32 %v1678_v46, %v1445_v37  ;;  %3483 = vmatmul.bf16.gmra.mxu1 %v3379_v45  ;;  %v2486_v37 = vld [vmem:[#allocation2 + $0x54] sm:$0xf]  ;;  %v2644_v45 = vrot.slane %v2643_v21, 4  ;;  %v2659_v1 = vsel %vm11724_vm2, %v2654_v38, %v2658_v33  ;;  %v11407_v38 = vld [vmem:[%s15764_s1 + $0x1e0] sm:$0xff] }
 0x103   : > { %v2664_v54 = vshll.u32 %v2486_v37, 16  ;;  %4455 = vmatpush.bf16.msra.mxu3 %v11407_v38 }
 0x104   : > { %v1480_v52 = vpop.f32.mrf.mxu2  ;;  %v2649_v58 = vsel %vm11724_vm2, %v2644_v45, %v2648_v60  ;;  %v2488_v60 = vld [vmem:[#allocation2 + $0x5c] sm:$0x1]  ;;  %v11399_v45 = vld [vmem:[%s15764_s1 + $0x1a0] sm:$0xff] }
 0x105   : > { %v12378_v46 = vadd.f32 %v1713_v26, %v1480_v52  ;;  %v1683_v2 = vpop.f32.mrf.mxu1  ;;  %v2953_v26 = vpack.c.b16 %v2926_v44, %v2925_v56  ;;  %v2661_v52 = vshrl.u32 %v2486_v37, 16  ;;  %v3354_v56 = vunpack.c.l.b16 %v3255_v31  ;;  %3773 = vmatpush.bf16.msra.mxu2 %v11399_v45 }
 0x106   : > { %v1718_v63 = vpop.f32.mrf.mxu3  ;;  %v2670_v44 = vshll.u32 %v12389_v34, 16  ;;  %v2666_v21 = vrot.slane %v2664_v54, 5  ;;  %v2927_v17 = vunpack.c.l.b16 %v2649_v58  ;;  %v2680_v31 = vshll.u32 %v2488_v60, 16  ;;  %v3156_v58 = vld [vmem:[#allocation2 + $0x54] sm:$0xe] }
 0x108   : > { %v12405_v27 = vrot.slane %v2670_v44, 5 }
 0x109   : > { %2056 = vmatmul.bf16.gmra.mxu2 %v1956_v10  ;;  %v1448_v4 = vpop.f32.mrf.mxu0 }
 0x10a   : > { %v12380_v7 = vadd.f32 %v1681_v20, %v1448_v4  ;;  %v1929_v20 = vunpack.c.l.b16 %v1823_v47  ;;  %v1829_v4 = vrot.slane %v11578_v5, 5  ;;  %v1746_v47 = vld [vmem:[#allocation2 + $0x3c] sm:$0xe]  ;;  %v3261_v5 = vrot.slane %v2488_v60, 5 }
 0x10b   : > { %2375 = vmatmul.bf16.gmra.mxu3 %v11343_v62  ;;  %v2663_v62 = vrot.slane %v2661_v52, 4  ;;  %v10132_v35 = vrot.slane %v1746_v47, 9  ;;  %v12430_v47 = vld [vmem:[#allocation2 + $0x64] sm:$0xf] }
 0x10c   : > { %v1483_v6 = vpop.f32.mrf.mxu2  ;;  %3057 = vmatmul.bf16.gmra.mxu0 %v2953_v26  ;;  %v1957_v55 = vpack.c.b16 %v1930_v18, %v1929_v20  ;;  %v11344_v20 = vld [vmem:[#allocation2 + $0x48] sm:$0xff]  ;;  %v2698_v45 = vshrl.u32 %v12430_v47, 16 }
 0x10d   : > { %v12387_v32 = vadd.f32 %v1716_v15, %v1483_v6  ;;  %v1686_v40 = vpop.f32.mrf.mxu1  ;;  %v3252_v15 = vsel %vm12239_vm13, %v10356_v41, %v3251_v29  ;;  %v2928_v6 = vunpack.c.l.b16 %v2659_v1  ;;  %v1831_v41 = vrot.slane %v1829_v4, 4 }
 0x10e   : > { %v1721_v61 = vpop.f32.mrf.mxu3  ;;  %v3353_v10 = vunpack.c.l.b16 %v3252_v15  ;;  %v1830_v54 = vsel %vm12239_vm13, %v10132_v35, %v1829_v4  ;;  %v2682_v1 = vrot.slane %v2680_v31, 5 }
 0x10f   : > { %15783 = vst [vmem:[#allocation3_spill] sm:$0xff] %v12387_v32  ;;  %v2954_v33 = vpack.c.b16 %v2928_v6, %v2927_v17 }
 0x110   : > { %v3380_v39 = vpack.c.b16 %v3354_v56, %v3353_v10  ;;  %v1833_v56 = vsel %vm12239_vm13, %v1831_v41, %v1832_v11 }
 0x111   : > { %v1450_v48 = vpop.f32.mrf.mxu0 }
 0x112   : > { %v12397_v57 = vadd.f32 %v1683_v2, %v1450_v48  ;;  %v2676_v2 = vrot.slane %v2674_v42, 4  ;;  %3488 = vmatmul.bf16.gmra.mxu1 %v3380_v39  ;;  %v3258_v48 = vrot.slane %v12389_v34, 5  ;;  %v2489_v34 = vld [vmem:[#allocation2 + $0x60] sm:$0xf] }
 0x113   : > { %v2685_v41 = vshrl.u32 %v2489_v34, 16 }
 0x114   : > { %v1485_v9 = vpop.f32.mrf.mxu2  ;;  %v2677_v18 = vor.u32 %v2676_v2, %v12405_v27  ;;  %v1932_v2 = vunpack.c.l.b16 %v1833_v56 }
 0x115   : > { %v12403_v26 = vadd.f32 %v1718_v63, %v1485_v9  ;;  %v1688_v28 = vpop.f32.mrf.mxu1  ;;  %v2667_v63 = vor.u32 %v2666_v21, %v2663_v62  ;;  %v10357_v9 = vrot.slane %v3156_v58, 9  ;;  %v1931_v21 = vunpack.c.l.b16 %v1830_v54 }
 0x116   : > { %v1723_v29 = vpop.f32.mrf.mxu3  ;;  %v2678_v42 = vrot.slane %v2677_v18, 4  ;;  %v2694_v18 = vshll.u32 %v12430_v47, 16  ;;  %v2700_v58 = vrot.slane %v2698_v45, 4 }
 0x117   : > { %15784 = vst [vmem:[#allocation4_spill] sm:$0xff] %v12403_v26  ;;  %v2668_v44 = vrot.slane %v2667_v63, 4  ;;  %v3259_v4 = vsel %vm12239_vm13, %v10357_v9, %v3258_v48  ;;  %v2688_v63 = vshll.u32 %v2489_v34, 16  ;;  %v2491_v34 = vld [vmem:[#allocation2 + $0x68] sm:$0x1] }
 0x118   : > { %v3355_v6 = vunpack.c.l.b16 %v3259_v4 }
 0x119   : > { %2061 = vmatmul.bf16.gmra.mxu2 %v1957_v55  ;;  %v1453_v37 = vpop.f32.mrf.mxu0  ;;  %v3260_v55 = vrot.slane %v3258_v48, 4  ;;  %v2673_v60 = vsel %vm11724_vm2, %v2668_v44, %v12405_v27  ;;  %v10133_v27 = vrot.slane %v1747_v0, 9  ;;  %v2687_v44 = vrot.slane %v2685_v41, 4 }
 0x11a   : > { %v12414_v15 = vadd.f32 %v1686_v40, %v1453_v37  ;;  %v11415_v40 = vld [vmem:[%s15764_s1 + $0x220] sm:$0xff]  ;;  %v2929_v54 = vunpack.c.l.b16 %v2673_v60  ;;  %v3265_v41 = vrot.slane %v12430_v47, 5 }
 0x11b   : > { %2380 = vmatmul.bf16.gmra.mxu3 %v11344_v20  ;;  %4881 = vmatpush.bf16.msra.mxu0 %v11415_v40  ;;  %v3262_v62 = vsel %vm12239_vm13, %v3260_v55, %v3261_v5  ;;  %v2683_v20 = vsel %vm11724_vm2, %v2678_v42, %v2682_v1  ;;  %v2690_v42 = vrot.slane %v2688_v63, 5  ;;  %v2696_v40 = vrot.slane %v2694_v18, 5  ;;  %v11581_v55 = vld [vmem:[#allocation2 + $0x50] sm:$0x1]  ;;  %v2492_v63 = vld [vmem:[#allocation2 + $0x6c] sm:$0xf] }
 0x11c   : > { %v1488_v52 = vpop.f32.mrf.mxu2  ;;  %3062 = vmatmul.bf16.gmra.mxu0 %v2954_v33  ;;  %v3356_v35 = vunpack.c.l.b16 %v3262_v62  ;;  %v11580_v33 = vld [vmem:[#allocation2 + $0x4c] sm:$0xf]  ;;  %v2930_v48 = vunpack.c.l.b16 %v2683_v20  ;;  %v1839_v5 = vrot.slane %v11581_v55, 5  ;;  %v11345_v62 = vld [vmem:[#allocation2 + $0x54] sm:$0xff]  ;;  %v3267_v45 = vrot.slane %v3265_v41, 4 }
 0x11d   : > { %v12419_v10 = vadd.f32 %v1721_v61, %v1488_v52  ;;  %v1691_v39 = vpop.f32.mrf.mxu1  ;;  %v1836_v31 = vrot.slane %v11580_v33, 5  ;;  %v1958_v52 = vpack.c.b16 %v1932_v2, %v1931_v21  ;;  %v2691_v2 = vor.u32 %v2690_v42, %v2687_v44  ;;  %v12452_v33 = vld [vmem:[#allocation2 + $0x70] sm:$0xf] }
 0x11e   : > { %v1726_v61 = vpop.f32.mrf.mxu3  ;;  %v3381_v11 = vpack.c.b16 %v3356_v35, %v3355_v6  ;;  %v2701_v6 = vor.u32 %v2700_v58, %v2696_v40  ;;  %v2704_v35 = vshll.u32 %v2491_v34, 16  ;;  %v2709_v44 = vshrl.u32 %v2492_v63, 16 }
 0x11f   : > { %15785 = vst [vmem:[#allocation5_spill] sm:$0xff] %v12419_v10  ;;  %v1838_v9 = vrot.slane %v1836_v31, 4  ;;  %v1837_v21 = vsel %vm12239_vm13, %v10133_v27, %v1836_v31  ;;  %v2712_v42 = vshll.u32 %v2492_v63, 16  ;;  %v1748_v63 = vld [vmem:[#allocation2 + $0x54] sm:$0xe] }
 0x121   : > { %v1455_v17 = vpop.f32.mrf.mxu0  ;;  %v1840_v20 = vsel %vm12239_vm13, %v1838_v9, %v1839_v5 }
 0x122   : > { %v12432_v37 = vadd.f32 %v1688_v28, %v1455_v17  ;;  %3493 = vmatmul.bf16.gmra.mxu1 %v3381_v11  ;;  %v3157_v11 = vld [vmem:[#allocation2 + $0x60] sm:$0xe]  ;;  %v1934_v31 = vunpack.c.l.b16 %v1840_v20 }
 0x123   : > { %v10358_v18 = vrot.slane %v3157_v11, 9 }
 0x124   : > { %v1490_v38 = vpop.f32.mrf.mxu2 }
 0x125   : > { %v12441_v28 = vadd.f32 %v1723_v29, %v1490_v38  ;;  %v1693_v56 = vpop.f32.mrf.mxu1  ;;  %v2955_v29 = vpack.c.b16 %v2930_v48, %v2929_v54  ;;  %v3268_v38 = vrot.slane %v2491_v34, 5  ;;  %v2702_v54 = vrot.slane %v2701_v6, 4 }
 0x126   : > { %v1728_v1 = vpop.f32.mrf.mxu3  ;;  %v2706_v48 = vrot.slane %v2704_v35, 5  ;;  %v3266_v47 = vsel %vm12239_vm13, %v10358_v18, %v3265_v41  ;;  %v2718_v34 = vshll.u32 %v12452_v33, 16  ;;  %v2711_v41 = vrot.slane %v2709_v44, 4  ;;  %v11398_v44 = vld [vmem:[%s15764_s1 + $0x198] sm:$0xff] }
 0x127   : > { %15786 = vst [vmem:[#allocation6_spill] sm:$0xff] %v12441_v28  ;;  %v3357_v55 = vunpack.c.l.b16 %v3266_v47  ;;  %v2714_v18 = vrot.slane %v2712_v42, 5  ;;  %v11406_v42 = vld [vmem:[%s15764_s1 + $0x1d8] sm:$0xff]  ;;  %3774 = vmatpush.bf16.msra.mxu2 %v11398_v44 }
 0x128   : > { %4456 = vmatpush.bf16.msra.mxu3 %v11406_v42 }
 0x129   : > { %2066 = vmatmul.bf16.gmra.mxu2 %v1958_v52  ;;  %v1458_v4 = vpop.f32.mrf.mxu0  ;;  %v2692_v52 = vrot.slane %v2691_v2, 4 }
 0x12a   : > { %v12443_v17 = vadd.f32 %v1691_v39, %v1458_v4  ;;  %v1933_v39 = vunpack.c.l.b16 %v1837_v21  ;;  %v2722_v4 = vshrl.u32 %v12452_v33, 16  ;;  %v2707_v21 = vsel %vm11724_vm2, %v2702_v54, %v2706_v48  ;;  %v11346_v54 = vld [vmem:[#allocation2 + $0x60] sm:$0xff] }
 0x12b   : > { %2385 = vmatmul.bf16.gmra.mxu3 %v11345_v62  ;;  %v2932_v47 = vunpack.c.l.b16 %v2707_v21 }
 0x12c   : > { %v1493_v60 = vpop.f32.mrf.mxu2  ;;  %3067 = vmatmul.bf16.gmra.mxu0 %v2955_v29  ;;  %v2697_v29 = vsel %vm11724_vm2, %v2692_v52, %v2696_v40  ;;  %v1959_v35 = vpack.c.b16 %v1934_v31, %v1933_v39  ;;  %v2494_v40 = vld [vmem:[#allocation2 + $0x74] sm:$0x1]  ;;  %v11583_v39 = vld [vmem:[#allocation2 + $0x5c] sm:$0x1] }
 0x12d   : > { %v12450_v0 = vadd.f32 %v1726_v61, %v1493_v60  ;;  %v3269_v61 = vsel %vm12239_vm13, %v3267_v45, %v3268_v38  ;;  %v1696_v9 = vpop.f32.mrf.mxu1  ;;  %v11582_v60 = vld [vmem:[#allocation2 + $0x58] sm:$0xf]  ;;  %v12468_v45 = vrot.slane %v2718_v34, 5  ;;  %v2931_v38 = vunpack.c.l.b16 %v2697_v29 }
 0x12e   : > { %v1731_v27 = vpop.f32.mrf.mxu3  ;;  %v3358_v5 = vunpack.c.l.b16 %v3269_v61  ;;  %v1843_v20 = vrot.slane %v11582_v60, 5  ;;  %v10134_v61 = vrot.slane %v1748_v63, 9  ;;  %v1846_v31 = vrot.slane %v11583_v39, 5  ;;  %v2495_v39 = vld [vmem:[#allocation2 + $0x78] sm:$0xf] }
 0x12f   : > { %15787 = vst [vmem:[#allocation7_spill] sm:$0xff] %v12450_v0  ;;  %v11585_v0 = vld [vmem:[#allocation2 + $0x68] sm:$0x1] }
 0x130   : > { %v3382_v2 = vpack.c.b16 %v3358_v5, %v3357_v55  ;;  %v1845_v48 = vrot.slane %v1843_v20, 4  ;;  %v2956_v55 = vpack.c.b16 %v2932_v47, %v2931_v38  ;;  %v2728_v5 = vshll.u32 %v2494_v40, 16 }
 0x131   : > { %v1460_v58 = vpop.f32.mrf.mxu0  ;;  %v1853_v28 = vrot.slane %v11585_v0, 5 }
 0x132   : > { %v12460_v62 = vadd.f32 %v1693_v56, %v1460_v58  ;;  %v2724_v56 = vrot.slane %v2722_v4, 4  ;;  %3498 = vmatmul.bf16.gmra.mxu1 %v3382_v2  ;;  %v2715_v58 = vor.u32 %v2714_v18, %v2711_v41  ;;  %v1844_v2 = vsel %vm12239_vm13, %v10134_v61, %v1843_v20  ;;  %v3158_v18 = vld [vmem:[#allocation2 + $0x6c] sm:$0xe] }
 0x133   : > { %v1847_v60 = vsel %vm12239_vm13, %v1845_v48, %v1846_v31  ;;  %v10359_v38 = vrot.slane %v3158_v18, 9  ;;  %v1935_v61 = vunpack.c.l.b16 %v1844_v2  ;;  %v2736_v2 = vshll.u32 %v2495_v39, 16 }
 0x134   : > { %v1495_v6 = vpop.f32.mrf.mxu2  ;;  %v2716_v41 = vrot.slane %v2715_v58, 4 }
 0x135   : > { %v12466_v11 = vadd.f32 %v1728_v1, %v1495_v6  ;;  %v2725_v1 = vor.u32 %v2724_v56, %v12468_v45  ;;  %v1698_v4 = vpop.f32.mrf.mxu1  ;;  %v3272_v6 = vrot.slane %v12452_v33, 5  ;;  %v2730_v56 = vrot.slane %v2728_v5, 5 }
 0x136   : > { %v1733_v52 = vpop.f32.mrf.mxu3  ;;  %v2721_v58 = vsel %vm11724_vm2, %v2716_v41, %v12468_v45  ;;  %v11584_v41 = vld [vmem:[#allocation2 + $0x64] sm:$0xf] }
 0x137   : > { %15788 = vst [vmem:[#allocation8_spill] sm:$0xff] %v12466_v11  ;;  %v2726_v63 = vrot.slane %v2725_v1, 4  ;;  %v3274_v47 = vrot.slane %v3272_v6, 4  ;;  %v3273_v20 = vsel %vm12239_vm13, %v10359_v38, %v3272_v6  ;;  %v2733_v1 = vshrl.u32 %v2495_v39, 16 }
 0x138   : > { %v3359_v48 = vunpack.c.l.b16 %v3273_v20 }
 0x139   : > { %2071 = vmatmul.bf16.gmra.mxu2 %v1959_v35  ;;  %v1463_v34 = vpop.f32.mrf.mxu0 }
 0x13a   : > { %v12477_v21 = vadd.f32 %v1696_v9, %v1463_v34  ;;  %v3275_v9 = vrot.slane %v2494_v40, 5  ;;  %v2731_v40 = vsel %vm11724_vm2, %v2726_v63, %v2730_v56  ;;  %v11414_v34 = vld [vmem:[%s15764_s1 + $0x218] sm:$0xff]  ;;  %v1850_v63 = vrot.slane %v11584_v41, 5 }
 0x13b   : > { %2390 = vmatmul.bf16.gmra.mxu3 %v11346_v54  ;;  %v1936_v54 = vunpack.c.l.b16 %v1847_v60  ;;  %4882 = vmatpush.bf16.msra.mxu0 %v11414_v34 }
 0x13c   : > { %v1498_v29 = vpop.f32.mrf.mxu2  ;;  %3072 = vmatmul.bf16.gmra.mxu0 %v2956_v55  ;;  %v3276_v33 = vsel %vm12239_vm13, %v3274_v47, %v3275_v9  ;;  %v1749_v55 = vld [vmem:[#allocation2 + $0x60] sm:$0xe]  ;;  %v2933_v47 = vunpack.c.l.b16 %v2721_v58  ;;  %v2934_v9 = vunpack.c.l.b16 %v2731_v40  ;;  %v1852_v11 = vrot.slane %v1850_v63, 4 }
 0x13d   : > { %v12482_v35 = vadd.f32 %v1731_v27, %v1498_v29  ;;  %v12490_v27 = vld [vmem:[#allocation2 + $0x7c] sm:$0xf]  ;;  %v3360_v31 = vunpack.c.l.b16 %v3276_v33  ;;  %v12497_v5 = vpop.f32.mrf.mxu1  ;;  %v1960_v38 = vpack.c.b16 %v1936_v54, %v1935_v61  ;;  %v10135_v20 = vrot.slane %v1749_v55, 9 }
 0x13e   : > { %v1736_v44 = vpop.f32.mrf.mxu3  ;;  %v2742_v6 = vshll.u32 %v12490_v27, 16  ;;  %v2746_v60 = vshrl.u32 %v12490_v27, 16  ;;  %v2735_v33 = vrot.slane %v2733_v1, 4  ;;  %v2957_v41 = vpack.c.b16 %v2934_v9, %v2933_v47  ;;  %v12519_v47 = vld [vmem:[#allocation2 + $0x88] sm:$0xf] }
 0x13f   : > { %15789 = vst [vmem:[#allocation9_spill] sm:$0xff] %v12482_v35  ;;  %v3383_v29 = vpack.c.b16 %v3360_v31, %v3359_v48  ;;  %v2738_v48 = vrot.slane %v2736_v2, 5  ;;  %v1851_v61 = vsel %vm12239_vm13, %v10135_v20, %v1850_v63  ;;  %v1854_v34 = vsel %vm12239_vm13, %v1852_v11, %v1853_v28  ;;  %v3159_v2 = vld [vmem:[#allocation2 + $0x78] sm:$0xe] }
 0x140   : > { %v2744_v39 = vrot.slane %v2742_v6, 5  ;;  %v2748_v31 = vrot.slane %v2746_v60, 4  ;;  %v3279_v0 = vrot.slane %v12490_v27, 5  ;;  %v2498_v6 = vld [vmem:[#allocation2 + $0x84] sm:$0xf]  ;;  %v1937_v60 = vunpack.c.l.b16 %v1851_v61 }
 0x141   : > { %v1465_v42 = vpop.f32.mrf.mxu0  ;;  %v2739_v54 = vor.u32 %v2738_v48, %v2735_v33  ;;  %v1938_v9 = vunpack.c.l.b16 %v1854_v34  ;;  %v2760_v27 = vshll.u32 %v2498_v6, 16  ;;  %v2766_v61 = vshll.u32 %v12519_v47, 16 }
 0x142   : > { %v12504_v45 = vadd.f32 %v1698_v4, %v1465_v42  ;;  %3503 = vmatmul.bf16.gmra.mxu1 %v3383_v29  ;;  %v2497_v4 = vld [vmem:[#allocation2 + $0x80] sm:$0x1]  ;;  %v11347_v42 = vld [vmem:[#allocation2 + $0x6c] sm:$0xff]  ;;  %v2749_v58 = vor.u32 %v2748_v31, %v2744_v39  ;;  %v3281_v63 = vrot.slane %v3279_v0, 4 }
 0x143   : > { %v2752_v40 = vshll.u32 %v2497_v4, 16  ;;  %v2740_v20 = vrot.slane %v2739_v54, 4 }
 0x144   : > { %v1500_v18 = vpop.f32.mrf.mxu2  ;;  %v2750_v33 = vrot.slane %v2749_v58, 4 }
 0x145   : > { %v12506_v56 = vadd.f32 %v1733_v52, %v1500_v18  ;;  %v12512_v1 = vpop.f32.mrf.mxu1  ;;  %v10360_v18 = vrot.slane %v3159_v2, 9  ;;  %v2754_v48 = vrot.slane %v2752_v40, 5  ;;  %v2745_v54 = vsel %vm11724_vm2, %v2740_v20, %v2744_v39  ;;  %v2500_v20 = vld [vmem:[#allocation2 + $0x8c] sm:$0x1] }
 0x146   : > { %v1738_v35 = vpop.f32.mrf.mxu3  ;;  %v1961_v2 = vpack.c.b16 %v1938_v9, %v1937_v60  ;;  %v2935_v10 = vunpack.c.l.b16 %v2745_v54  ;;  %v11587_v9 = vld [vmem:[#allocation2 + $0x74] sm:$0x1] }
 0x147   : > { %15790 = vst [vmem:[#allocation10_spill] sm:$0xff] %v12506_v56  ;;  %v3280_v28 = vsel %vm12239_vm13, %v10360_v18, %v3279_v0  ;;  %v2755_v58 = vsel %vm11724_vm2, %v2750_v33, %v2754_v48 }
 0x148   : > { %v2936_v39 = vunpack.c.l.b16 %v2755_v58 }
 0x149   : > { %2076 = vmatmul.bf16.gmra.mxu2 %v1960_v38  ;;  %v12508_v52 = vpop.f32.mrf.mxu0  ;;  %v3282_v38 = vrot.slane %v2497_v4, 5  ;;  %v2770_v4 = vshrl.u32 %v12519_v47, 16 }
 0x14b   : > { %2395 = vmatmul.bf16.gmra.mxu3 %v11347_v42  ;;  %v3283_v11 = vsel %vm12239_vm13, %v3281_v63, %v3282_v38  ;;  %v3361_v42 = vunpack.c.l.b16 %v3280_v28  ;;  %v1750_v28 = vld [vmem:[#allocation2 + $0x6c] sm:$0xe]  ;;  %v2772_v56 = vrot.slane %v2770_v4, 4  ;;  %v2776_v4 = vshll.u32 %v2500_v20, 16 }
 0x14c   : > { %v1503_v55 = vpop.f32.mrf.mxu2  ;;  %3077 = vmatmul.bf16.gmra.mxu0 %v2957_v41  ;;  %v3362_v41 = vunpack.c.l.b16 %v3283_v11  ;;  %v2762_v11 = vrot.slane %v2760_v27, 5  ;;  %v10136_v48 = vrot.slane %v1750_v28, 9  ;;  %v11397_v27 = vld [vmem:[%s15764_s1 + $0x190] sm:$0xff] }
 0x14d   : > { %v12517_v29 = vadd.f32 %v1736_v44, %v1503_v55  ;;  %v2757_v44 = vshrl.u32 %v2498_v6, 16  ;;  %v12533_v40 = vpop.f32.mrf.mxu1  ;;  %v11586_v6 = vld [vmem:[#allocation2 + $0x70] sm:$0xf]  ;;  %3775 = vmatpush.bf16.msra.mxu2 %v11397_v27  ;;  %v2778_v27 = vrot.slane %v2776_v4, 5 }
 0x14e   : > { %v2356_v31 = vpop.f32.mrf.mxu3  ;;  %v3384_v34 = vpack.c.b16 %v3362_v41, %v3361_v42  ;;  %v1857_v18 = vrot.slane %v11586_v6, 5  ;;  %v11348_v42 = vld [vmem:[#allocation2 + $0x78] sm:$0xff]  ;;  %v1860_v41 = vrot.slane %v11587_v9, 5  ;;  %v2501_v6 = vld [vmem:[#allocation2 + $0x90] sm:$0xf] }
 0x14f   : > { %15791 = vst [vmem:[#allocation11_spill] sm:$0xff] %v12517_v29  ;;  %v2759_v63 = vrot.slane %v2757_v44, 4  ;;  %v12537_v29 = vrot.slane %v2766_v61, 5  ;;  %v2958_v61 = vpack.c.b16 %v2936_v39, %v2935_v10  ;;  %v3160_v39 = vld [vmem:[#allocation2 + $0x84] sm:$0xe] }
 0x150   : > { %v1859_v60 = vrot.slane %v1857_v18, 4  ;;  %v12558_v9 = vld [vmem:[#allocation2 + $0x94] sm:$0xf] }
 0x151   : > { %v12527_v55 = vpop.f32.mrf.mxu0  ;;  %v2763_v44 = vor.u32 %v2762_v11, %v2759_v63 }
 0x152   : > { %3508 = vmatmul.bf16.gmra.mxu1 %v3384_v34  ;;  %v11405_v34 = vld [vmem:[%s15764_s1 + $0x1d0] sm:$0xff]  ;;  %v1861_v10 = vsel %vm12239_vm13, %v1859_v60, %v1860_v41 }
 0x153   : > { %v2764_v28 = vrot.slane %v2763_v44, 4  ;;  %4457 = vmatpush.bf16.msra.mxu3 %v11405_v34 }
 0x154   : > { %v1505_v0 = vpop.f32.mrf.mxu2 }
 0x155   : > { %v12535_v38 = vadd.f32 %v1738_v35, %v1505_v0  ;;  %v2773_v35 = vor.u32 %v2772_v56, %v12537_v29  ;;  %v12547_v58 = vpop.f32.mrf.mxu1  ;;  %v3286_v56 = vrot.slane %v12519_v47, 5 }
 0x156   : > { %v12539_v33 = vpop.f32.mrf.mxu3 }
 0x157   : > { %15792 = vst [vmem:[#allocation12_spill] sm:$0xff] %v12535_v38  ;;  %v2774_v11 = vrot.slane %v2773_v35, 4  ;;  %v10361_v38 = vrot.slane %v3160_v39, 9  ;;  %v3288_v26 = vrot.slane %v3286_v56, 4  ;;  %v2790_v35 = vshll.u32 %v12558_v9, 16 }
 0x159   : > { %2081 = vmatmul.bf16.gmra.mxu2 %v1961_v2  ;;  %v12545_v54 = vpop.f32.mrf.mxu0  ;;  %v1858_v2 = vsel %vm12239_vm13, %v10136_v48, %v1857_v18  ;;  %v3289_v18 = vrot.slane %v2500_v20, 5  ;;  %v3287_v41 = vsel %vm12239_vm13, %v10361_v38, %v3286_v56  ;;  %v2794_v20 = vshrl.u32 %v12558_v9, 16 }
 0x15a   : > { %v1939_v47 = vunpack.c.l.b16 %v1858_v2  ;;  %v3363_v4 = vunpack.c.l.b16 %v3287_v41  ;;  %v1664_v2 = vadd.f32 %v12259_v53, %v12267_v3  ;;  %v2769_v38 = vsel %vm11724_vm2, %v2764_v28, %v12537_v29  ;;  %v11588_v29 = vld [vmem:[#allocation2 + $0x7c] sm:$0xf] }
 0x15b   : > { %2400 = vmatmul.bf16.gmra.mxu3 %v11348_v42  ;;  %v2781_v42 = vshrl.u32 %v2501_v6, 16  ;;  %v3290_v44 = vsel %vm12239_vm13, %v3288_v26, %v3289_v18  ;;  %v2779_v26 = vsel %vm11724_vm2, %v2774_v11, %v2778_v27  ;;  %v1751_v18 = vld [vmem:[#allocation2 + $0x78] sm:$0xe]  ;;  %v1864_v28 = vrot.slane %v11588_v29, 5 }
 0x15c   : > { %v2042_v0 = vpop.f32.mrf.mxu2  ;;  %3082 = vmatmul.bf16.gmra.mxu0 %v2958_v61  ;;  %v1940_v61 = vunpack.c.l.b16 %v1861_v10  ;;  %v3364_v34 = vunpack.c.l.b16 %v3290_v44  ;;  %v2796_v11 = vrot.slane %v2794_v20, 4  ;;  %v2937_v41 = vunpack.c.l.b16 %v2769_v38  ;;  %v11349_v20 = vld [vmem:[#allocation2 + $0x84] sm:$0xff] }
 0x15d   : > { %v2122_v63 = vadd.f32 %v2042_v0, %v12218_v43  ;;  %v11450_v43 = vld [vmem:[%s15767_s4 + $0x78] sm:$0xff]  ;;  %v2784_v0 = vshll.u32 %v2501_v6, 16  ;;  %v2783_v53 = vrot.slane %v2781_v42, 4  ;;  %v2938_v44 = vunpack.c.l.b16 %v2779_v26 }
 0x15e   : > { %v12563_v60 = vpop.f32.mrf.mxu3  ;;  %6143 = vmatpush.bf16.msra.mxu1 %v11450_v43  ;;  %v3385_v10 = vpack.c.b16 %v3364_v34, %v3363_v4  ;;  %v1962_v27 = vpack.c.b16 %v1940_v61, %v1939_v47  ;;  %v2503_v43 = vld [vmem:[#allocation2 + $0x98] sm:$0x1]  ;;  %v11589_v34 = vld [vmem:[#allocation2 + $0x80] sm:$0x1] }
 0x15f   : > { %v2436_v48 = vadd.f32 %v2356_v31, %v2122_v63  ;;  %v11413_v63 = vld [vmem:[%s15764_s1 + $0x210] sm:$0xff]  ;;  %v2786_v3 = vrot.slane %v2784_v0, 5  ;;  %v1866_v0 = vrot.slane %v1864_v28, 4  ;;  %v1867_v32 = vrot.slane %v11589_v34, 5 }
 0x160   : > { %4883 = vmatpush.bf16.msra.mxu0 %v11413_v63  ;;  %v2800_v29 = vshll.u32 %v2503_v43, 16  ;;  %v2959_v61 = vpack.c.b16 %v2938_v44, %v2937_v41 }
 0x161   : > { %v3118_v31 = vadd.f32 %v12508_v52, %v2436_v48  ;;  %v12582_v6 = vpop.f32.mrf.mxu0  ;;  %v12584_v52 = vpop.f32.mrf.mxu1  ;;  %v12589_v48 = vrot.slane %v2790_v35, 5  ;;  %v2787_v4 = vor.u32 %v2786_v3, %v2783_v53  ;;  %v1868_v53 = vsel %vm12239_vm13, %v1866_v0, %v1867_v32 }
 0x162   : > { %3513 = vmatmul.bf16.gmra.mxu1 %v3385_v10  ;;  %v1942_v44 = vunpack.c.l.b16 %v1868_v53 }
 0x163   : > { %v12580_v56 = vadd.f32 %v12497_v5, %v3118_v31  ;;  %v2797_v35 = vor.u32 %v2796_v11, %v12589_v48  ;;  %v2788_v26 = vrot.slane %v2787_v4, 4  ;;  %v2504_v11 = vld [vmem:[#allocation2 + $0x9c] sm:$0xf] }
 0x164   : > { %v2044_v39 = vpop.f32.mrf.mxu2 }
 0x165   : > { %15793 = vst [vmem:[#allocation13_spill] sm:$0xff] %v12580_v56  ;;  %v2123_v5 = vadd.f32 %v2044_v39, %v1664_v2  ;;  %v10137_v56 = vrot.slane %v1751_v18, 9  ;;  %v2798_v3 = vrot.slane %v2797_v35, 4  ;;  %v2802_v39 = vrot.slane %v2800_v29, 5 }
 0x166   : > { %v12592_v42 = vpop.f32.mrf.mxu3  ;;  %v2793_v32 = vsel %vm11724_vm2, %v2788_v26, %v12589_v48  ;;  %v2808_v29 = vshll.u32 %v2504_v11, 16  ;;  %v1752_v48 = vld [vmem:[#allocation2 + $0x84] sm:$0xe] }
 0x167   : > { %v2437_v31 = vadd.f32 %v12539_v33, %v2123_v5  ;;  %v1865_v33 = vsel %vm12239_vm13, %v10137_v56, %v1864_v28  ;;  %v3296_v56 = vrot.slane %v2503_v43, 5 }
 0x168   : > { %v1941_v41 = vunpack.c.l.b16 %v1865_v33 }
 0x169   : > { %2086 = vmatmul.bf16.gmra.mxu2 %v1962_v27  ;;  %v3119_v47 = vadd.f32 %v12527_v55, %v2437_v31  ;;  %v12599_v38 = vpop.f32.mrf.mxu0  ;;  %v12603_v63 = vpop.f32.mrf.mxu1  ;;  %v3293_v55 = vrot.slane %v12558_v9, 5  ;;  %v12613_v31 = vld [vmem:[#allocation2 + $0xa0] sm:$0xf] }
 0x16a   : > { %v2818_v33 = vshrl.u32 %v12613_v31, 16 }
 0x16b   : > { %v12597_v2 = vadd.f32 %v12512_v1, %v3119_v47  ;;  %2405 = vmatmul.bf16.gmra.mxu3 %v11349_v20  ;;  %v3161_v1 = vld [vmem:[#allocation2 + $0x90] sm:$0xe]  ;;  %v3295_v27 = vrot.slane %v3293_v55, 4  ;;  %v11590_v47 = vld [vmem:[#allocation2 + $0x88] sm:$0xf] }
 0x16c   : > { %v2047_v10 = vpop.f32.mrf.mxu2  ;;  %3087 = vmatmul.bf16.gmra.mxu0 %v2959_v61  ;;  %v10362_v5 = vrot.slane %v3161_v1, 9  ;;  %v1871_v20 = vrot.slane %v11590_v47, 5  ;;  %v2814_v61 = vshll.u32 %v12613_v31, 16 }
 0x16d   : > { %v2124_v18 = vadd.f32 %v2047_v10, %v12288_v25  ;;  %v2803_v25 = vsel %vm11724_vm2, %v2798_v3, %v2802_v39  ;;  %v3297_v43 = vsel %vm12239_vm13, %v3295_v27, %v3296_v56  ;;  %v2810_v27 = vrot.slane %v2808_v29, 5 }
 0x16e   : > { %v12615_v9 = vpop.f32.mrf.mxu3  ;;  %v3294_v4 = vsel %vm12239_vm13, %v10362_v5, %v3293_v55  ;;  %v3366_v35 = vunpack.c.l.b16 %v3297_v43  ;;  %v2939_v55 = vunpack.c.l.b16 %v2793_v32  ;;  %v1873_v56 = vrot.slane %v1871_v20, 4  ;;  %v11396_v32 = vld [vmem:[%s15764_s1 + $0x188] sm:$0xff] }
 0x16f   : > { %v2438_v28 = vadd.f32 %v12563_v60, %v2124_v18  ;;  %v2805_v60 = vshrl.u32 %v2504_v11, 16  ;;  %v3365_v34 = vunpack.c.l.b16 %v3294_v4  ;;  %v2940_v18 = vunpack.c.l.b16 %v2803_v25  ;;  %3776 = vmatpush.bf16.msra.mxu2 %v11396_v32 }
 0x170   : > { %v10138_v11 = vrot.slane %v1752_v48, 9  ;;  %v2820_v43 = vrot.slane %v2818_v33, 4  ;;  %v11404_v33 = vld [vmem:[%s15764_s1 + $0x1c8] sm:$0xff] }
 0x171   : > { %v3120_v0 = vadd.f32 %v12545_v54, %v2438_v28  ;;  %v12629_v10 = vpop.f32.mrf.mxu0  ;;  %v12631_v53 = vpop.f32.mrf.mxu1  ;;  %v3386_v3 = vpack.c.b16 %v3366_v35, %v3365_v34  ;;  %v1963_v54 = vpack.c.b16 %v1942_v44, %v1941_v41  ;;  %v2807_v5 = vrot.slane %v2805_v60, 4  ;;  %v11591_v28 = vld [vmem:[#allocation2 + $0x8c] sm:$0x1]  ;;  %v2506_v34 = vld [vmem:[#allocation2 + $0xa4] sm:$0x1]  ;;  %v11350_v44 = vld [vmem:[#allocation2 + $0x90] sm:$0xff]  ;;  %4458 = vmatpush.bf16.msra.mxu3 %v11404_v33 }
 0x172   : > { %v1874_v4 = vrot.slane %v11591_v28, 5  ;;  %v2960_v25 = vpack.c.b16 %v2940_v18, %v2939_v55  ;;  %v1872_v60 = vsel %vm12239_vm13, %v10138_v11, %v1871_v20  ;;  %v3300_v20 = vrot.slane %v12613_v31, 5  ;;  %v12660_v11 = vld [vmem:[#allocation2 + $0xac] sm:$0xf]  ;;  %v11592_v31 = vld [vmem:[#allocation2 + $0x94] sm:$0xf] }
 0x173   : > { %v12627_v26 = vadd.f32 %v12533_v40, %v3120_v0  ;;  %3518 = vmatmul.bf16.gmra.mxu1 %v3386_v3  ;;  %v12634_v40 = vrot.slane %v2814_v61, 5  ;;  %v1943_v55 = vunpack.c.l.b16 %v1872_v60  ;;  %v3303_v28 = vrot.slane %v2506_v34, 5 }
 0x174   : > { %v2049_v39 = vpop.f32.mrf.mxu2  ;;  %v1875_v35 = vsel %vm12239_vm13, %v1873_v56, %v1874_v4  ;;  %v3302_v56 = vrot.slane %v3300_v20, 4 }
 0x175   : > { %v2125_v1 = vadd.f32 %v2049_v39, %v12306_v16  ;;  %v2811_v16 = vor.u32 %v2810_v27, %v2807_v5  ;;  %v2507_v39 = vld [vmem:[#allocation2 + $0xa8] sm:$0xf] }
 0x176   : > { %v12637_v47 = vpop.f32.mrf.mxu3 }
 0x177   : > { %v2439_v0 = vadd.f32 %v12592_v42, %v2125_v1  ;;  %v2821_v42 = vor.u32 %v2820_v43, %v12634_v40  ;;  %v2812_v18 = vrot.slane %v2811_v16, 4  ;;  %v3162_v1 = vld [vmem:[#allocation2 + $0x9c] sm:$0xe]  ;;  %v1753_v16 = vld [vmem:[#allocation2 + $0x90] sm:$0xe] }
 0x178   : > { %v10363_v27 = vrot.slane %v3162_v1, 9 }
 0x179   : > { %2091 = vmatmul.bf16.gmra.mxu2 %v1963_v54  ;;  %v3121_v41 = vadd.f32 %v12582_v6, %v2439_v0  ;;  %v12651_v48 = vpop.f32.mrf.mxu0  ;;  %v2824_v6 = vshll.u32 %v2506_v34, 16  ;;  %v12653_v61 = vpop.f32.mrf.mxu1  ;;  %v2822_v5 = vrot.slane %v2821_v42, 4  ;;  %v1878_v0 = vrot.slane %v11592_v31, 5 }
 0x17a   : > { %v3301_v32 = vsel %vm12239_vm13, %v10363_v27, %v3300_v20  ;;  %v2832_v34 = vshll.u32 %v2507_v39, 16  ;;  %v2817_v33 = vsel %vm11724_vm2, %v2812_v18, %v12634_v40  ;;  %v11593_v18 = vld [vmem:[#allocation2 + $0x98] sm:$0x1] }
 0x17b   : > { %v12649_v29 = vadd.f32 %v12547_v58, %v3121_v41  ;;  %2410 = vmatmul.bf16.gmra.mxu3 %v11350_v44  ;;  %v1944_v58 = vunpack.c.l.b16 %v1875_v35  ;;  %v2826_v43 = vrot.slane %v2824_v6, 5  ;;  %v2829_v41 = vshrl.u32 %v2507_v39, 16 }
 0x17c   : > { %v2052_v3 = vpop.f32.mrf.mxu2  ;;  %3092 = vmatmul.bf16.gmra.mxu0 %v2960_v25  ;;  %v3304_v25 = vsel %vm12239_vm13, %v3302_v56, %v3303_v28  ;;  %v3367_v35 = vunpack.c.l.b16 %v3301_v32  ;;  %v2842_v6 = vshrl.u32 %v12660_v11, 16  ;;  %v1880_v40 = vrot.slane %v1878_v0, 4 }
 0x17d   : > { %15794 = vst [vmem:[#allocation14_spill] sm:$0xff] %v12649_v29  ;;  %v2126_v54 = vadd.f32 %v2052_v3, %v12317_v49  ;;  %v11449_v49 = vld [vmem:[%s15767_s4 + $0x70] sm:$0xff]  ;;  %v3368_v42 = vunpack.c.l.b16 %v3304_v25  ;;  %v2827_v39 = vsel %vm11724_vm2, %v2822_v5, %v2826_v43  ;;  %v2831_v28 = vrot.slane %v2829_v41, 4 }
 0x17e   : > { %v12666_v44 = vpop.f32.mrf.mxu3  ;;  %6144 = vmatpush.bf16.msra.mxu1 %v11449_v49  ;;  %v1964_v49 = vpack.c.b16 %v1944_v58, %v1943_v55  ;;  %v2844_v43 = vrot.slane %v2842_v6, 4  ;;  %v2942_v32 = vunpack.c.l.b16 %v2827_v39  ;;  %v2509_v25 = vld [vmem:[#allocation2 + $0xb0] sm:$0x1]  ;;  %v2510_v39 = vld [vmem:[#allocation2 + $0xb4] sm:$0xf] }
 0x17f   : > { %v2440_v4 = vadd.f32 %v12615_v9, %v2126_v54  ;;  %v2838_v9 = vshll.u32 %v12660_v11, 16  ;;  %v10139_v54 = vrot.slane %v1753_v16, 9  ;;  %v3387_v27 = vpack.c.b16 %v3368_v42, %v3367_v35  ;;  %v365_v35 = vld [vmem:[%s11765_s18 + $0xf8] sm:$0xff] }
 0x180   : > { %v2941_v16 = vunpack.c.l.b16 %v2817_v33  ;;  %v397_v29 = vpack.c.bf16 %v365_v35, %v365_v35  ;;  %v2848_v6 = vshll.u32 %v2509_v25, 16 }
 0x181   : > { %v3122_v60 = vadd.f32 %v12599_v38, %v2440_v4  ;;  %v12681_v20 = vpop.f32.mrf.mxu0  ;;  %v12685_v1 = vpop.f32.mrf.mxu1  ;;  %v11412_v38 = vld [vmem:[%s15764_s1 + $0x208] sm:$0xff]  ;;  %v2834_v4 = vrot.slane %v2832_v34, 5  ;;  %v12691_v5 = vrot.slane %v2838_v9, 5  ;;  %v11351_v34 = vld [vmem:[#allocation2 + $0x9c] sm:$0xff] }
 0x182   : > { %4884 = vmatpush.bf16.msra.mxu0 %v11412_v38 }
 0x183   : > { %v12679_v3 = vadd.f32 %v12584_v52, %v3122_v60  ;;  %v1881_v52 = vrot.slane %v11593_v18, 5  ;;  %3523 = vmatmul.bf16.gmra.mxu1 %v3387_v27  ;;  %v364_v60 = vld [vmem:[%s11765_s18 + $0xf0] sm:$0xff]  ;;  %v2835_v58 = vor.u32 %v2834_v4, %v2831_v28  ;;  %v2845_v9 = vor.u32 %v2844_v43, %v12691_v5  ;;  %v12712_v4 = vld [vmem:[#allocation2 + $0xb8] sm:$0xf] }
 0x184   : > { %v2054_v56 = vpop.f32.mrf.mxu2 }
 0x185   : > { %15795 = vst [vmem:[#allocation15_spill] sm:$0xff] %v12679_v3  ;;  %v2127_v31 = vadd.f32 %v2054_v56, %v12334_v22  ;;  %v396_v3 = vpack.c.bf16 %v364_v60, %v364_v60  ;;  %v1879_v22 = vsel %vm12239_vm13, %v10139_v54, %v1878_v0  ;;  %v1882_v55 = vsel %vm12239_vm13, %v1880_v40, %v1881_v52 }
 0x186   : > { %v12696_v18 = vpop.f32.mrf.mxu3  ;;  %v1945_v0 = vunpack.c.l.b16 %v1879_v22  ;;  %v1946_v54 = vunpack.c.l.b16 %v1882_v55  ;;  %v665_v40 = vshrl.u32 %v397_v29, 16  ;;  %v2836_v28 = vrot.slane %v2835_v58, 4 }
 0x187   : > { %v2441_v42 = vadd.f32 %v12637_v47, %v2127_v31  ;;  %v657_v33 = vshrl.u32 %v396_v3, 16  ;;  %v2961_v47 = vpack.c.b16 %v2942_v32, %v2941_v16  ;;  %v2850_v16 = vrot.slane %v2848_v6, 5  ;;  %v3163_v32 = vld [vmem:[#allocation2 + $0xa8] sm:$0xe] }
 0x188   : > { %v2853_v60 = vshrl.u32 %v2510_v39, 16  ;;  %v10364_v35 = vrot.slane %v3163_v32, 9  ;;  %v3310_v22 = vrot.slane %v2509_v25, 5  ;;  %v2856_v55 = vshll.u32 %v2510_v39, 16  ;;  %v832_v39 = vld [vmem:[#allocation2 + $0xc0] sm:$0xf] }
 0x189   : > { %2096 = vmatmul.bf16.gmra.mxu2 %v1964_v49  ;;  %v3123_v41 = vadd.f32 %v12629_v10, %v2441_v42  ;;  %v12707_v27 = vpop.f32.mrf.mxu0  ;;  %v12709_v56 = vpop.f32.mrf.mxu1  ;;  %v3307_v10 = vrot.slane %v12660_v11, 5  ;;  %v659_v31 = vrot.slane %v657_v33, 7  ;;  %v660_v49 = vshll.u32 %v396_v3, 16 }
 0x18a   : > { %15796 = vst [vmem:[#allocation16_spill] sm:$0xff] %v12709_v56  ;;  %v2862_v11 = vshll.u32 %v12712_v4, 16  ;;  %v668_v56 = vshll.u32 %v397_v29, 16  ;;  %v2841_v29 = vsel %vm11724_vm2, %v2836_v28, %v12691_v5  ;;  %v1754_v28 = vld [vmem:[#allocation2 + $0x9c] sm:$0xe] }
 0x18b   : > { %v12705_v38 = vadd.f32 %v12603_v63, %v3123_v41  ;;  %2415 = vmatmul.bf16.gmra.mxu3 %v11351_v34  ;;  %v2846_v63 = vrot.slane %v2845_v9, 4  ;;  %v3309_v42 = vrot.slane %v3307_v10, 4  ;;  %v667_v41 = vrot.slane %v665_v40, 7  ;;  %v11594_v40 = vld [vmem:[#allocation2 + $0xa0] sm:$0xf] }
 0x18c   : > { %v2057_v52 = vpop.f32.mrf.mxu2  ;;  %3097 = vmatmul.bf16.gmra.mxu0 %v2961_v47  ;;  %v2866_v34 = vshrl.u32 %v12712_v4, 16  ;;  %v662_v9 = vor.u32 %v660_v49, %v659_v31 }
 0x18d   : > { %v2128_v43 = vadd.f32 %v2057_v52, %v12351_v59  ;;  %v3308_v59 = vsel %vm12239_vm13, %v10364_v35, %v3307_v10  ;;  %v3311_v3 = vsel %vm12239_vm13, %v3309_v42, %v3310_v22  ;;  %v1965_v52 = vpack.c.b16 %v1946_v54, %v1945_v0  ;;  %v836_v42 = vld [vmem:[#allocation2 + $0xc8] sm:$0x1] }
 0x18e   : > { %v12717_v33 = vpop.f32.mrf.mxu3  ;;  %v3369_v6 = vunpack.c.l.b16 %v3308_v59  ;;  %v3370_v47 = vunpack.c.l.b16 %v3311_v3  ;;  %v2851_v49 = vsel %vm11724_vm2, %v2846_v63, %v2850_v16  ;;  %v2855_v54 = vrot.slane %v2853_v60, 4 }
 0x18f   : > { %v2442_v58 = vadd.f32 %v12666_v44, %v2128_v43  ;;  %v663_v44 = vrot.slane %v659_v31, 4  ;;  %v1885_v43 = vrot.slane %v11594_v40, 5  ;;  %v670_v31 = vor.u32 %v668_v56, %v667_v41 }
 0x190   : > { %v3388_v35 = vpack.c.b16 %v3370_v47, %v3369_v6  ;;  %v2858_v22 = vrot.slane %v2856_v55, 5  ;;  %v833_v5 = vsel %vm11836_vm9, %v662_v9, %v832_v39  ;;  %v12740_v59 = vrot.slane %v2862_v11, 5  ;;  %v11595_v6 = vld [vmem:[#allocation2 + $0xa4] sm:$0x1] }
 0x191   : > { %v3124_v25 = vadd.f32 %v12651_v48, %v2442_v58  ;;  %v12731_v32 = vpop.f32.mrf.mxu0  ;;  %v12735_v48 = vpop.f32.mrf.mxu1  ;;  %v672_v58 = vrot.slane %v667_v41, 4  ;;  %v2868_v3 = vrot.slane %v2866_v34, 4  ;;  %v671_v63 = vsel %vm11827_vm8, %v663_v44, %v670_v31  ;;  %834 = vst [vmem:[#allocation2 + $0xc0] sm:$0xf] %v833_v5  ;;  %v2512_v41 = vld [vmem:[#allocation2 + $0xbc] sm:$0x1] }
 0x192   : > { %v2943_v16 = vunpack.c.l.b16 %v2841_v29  ;;  %v2944_v56 = vunpack.c.l.b16 %v2851_v49  ;;  %835 = vst [vmem:[#allocation2 + $0xc4] sm:$0xf] %v671_v63  ;;  %v10140_v11 = vrot.slane %v1754_v28, 9  ;;  %v1887_v9 = vrot.slane %v1885_v43, 4  ;;  %v11395_v29 = vld [vmem:[%s15764_s1 + $0x180] sm:$0xff] }
 0x193   : > { %v12729_v10 = vadd.f32 %v12631_v53, %v3124_v25  ;;  %3528 = vmatmul.bf16.gmra.mxu1 %v3388_v35  ;;  %v837_v60 = vsel %vm11843_vm10, %v672_v58, %v836_v42  ;;  %v11352_v25 = vld [vmem:[#allocation2 + $0xa8] sm:$0xff]  ;;  %v1888_v47 = vrot.slane %v11595_v6, 5  ;;  %v2859_v44 = vor.u32 %v2858_v22, %v2855_v54  ;;  %3777 = vmatpush.bf16.msra.mxu2 %v11395_v29  ;;  %v3164_v5 = vld [vmem:[#allocation2 + $0xb4] sm:$0xe] }
 0x194   : > { %v2059_v0 = vpop.f32.mrf.mxu2  ;;  %838 = vst [vmem:[#allocation2 + $0xc8] sm:$0x1] %v837_v60  ;;  %v2869_v39 = vor.u32 %v2868_v3, %v12740_v59  ;;  %v2872_v40 = vshll.u32 %v2512_v41, 16  ;;  %v1886_v42 = vsel %vm12239_vm13, %v10140_v11, %v1885_v43  ;;  %v10365_v28 = vrot.slane %v3164_v5, 9 }
 0x195   : > { %v2129_v53 = vadd.f32 %v2059_v0, %v12369_v24  ;;  %v3314_v0 = vrot.slane %v12712_v4, 5  ;;  %v2860_v22 = vrot.slane %v2859_v44, 4  ;;  %v3317_v63 = vrot.slane %v2512_v41, 5  ;;  %v11448_v4 = vld [vmem:[%s15767_s4 + $0x68] sm:$0xff] }
 0x196   : > { %v12747_v24 = vpop.f32.mrf.mxu3  ;;  %v2870_v58 = vrot.slane %v2869_v39, 4  ;;  %v1947_v43 = vunpack.c.l.b16 %v1886_v42  ;;  %6145 = vmatpush.bf16.msra.mxu1 %v11448_v4 }
 0x197   : > { %v2443_v55 = vadd.f32 %v12696_v18, %v2129_v53  ;;  %v2962_v18 = vpack.c.b16 %v2944_v56, %v2943_v16  ;;  %v2874_v53 = vrot.slane %v2872_v40, 5  ;;  %v3316_v3 = vrot.slane %v3314_v0, 4  ;;  %v11411_v40 = vld [vmem:[%s15764_s1 + $0x200] sm:$0xff] }
 0x198   : > { %v3315_v60 = vsel %vm12239_vm13, %v10365_v28, %v3314_v0  ;;  %4885 = vmatpush.bf16.msra.mxu0 %v11411_v40 }
 0x199   : > { %2101 = vmatmul.bf16.gmra.mxu2 %v1965_v52  ;;  %v3125_v34 = vadd.f32 %v12681_v20, %v2443_v55  ;;  %v12757_v35 = vpop.f32.mrf.mxu0  ;;  %v12759_v52 = vpop.f32.mrf.mxu1  ;;  %v11403_v20 = vld [vmem:[%s15764_s1 + $0x1c0] sm:$0xff]  ;;  %v3318_v55 = vsel %vm12239_vm13, %v3316_v3, %v3317_v63  ;;  %v2875_v6 = vsel %vm11724_vm2, %v2870_v58, %v2874_v53 }
 0x19a   : > { %4459 = vmatpush.bf16.msra.mxu3 %v11403_v20  ;;  %v12780_v11 = vld [vmem:[#allocation2 + $0xc4] sm:$0xf]  ;;  %v2946_v58 = vunpack.c.l.b16 %v2875_v6 }
 0x19b   : > { %v12755_v49 = vadd.f32 %v12653_v61, %v3125_v34  ;;  %2420 = vmatmul.bf16.gmra.mxu3 %v11352_v25  ;;  %v1889_v61 = vsel %vm12239_vm13, %v1887_v9, %v1888_v47  ;;  %v3372_v34 = vunpack.c.l.b16 %v3318_v55  ;;  %v2865_v25 = vsel %vm11724_vm2, %v2860_v22, %v12740_v59  ;;  %v11597_v55 = vld [vmem:[#allocation2 + $0xb0] sm:$0x1] }
 0x19c   : > { %v2062_v31 = vpop.f32.mrf.mxu2  ;;  %3102 = vmatmul.bf16.gmra.mxu0 %v2962_v18  ;;  %v1948_v9 = vunpack.c.l.b16 %v1889_v61  ;;  %v1755_v18 = vld [vmem:[#allocation2 + $0xa8] sm:$0xe]  ;;  %v2886_v59 = vshll.u32 %v12780_v11, 16  ;;  %v2945_v22 = vunpack.c.l.b16 %v2865_v25 }
 0x19d   : > { %v2130_v54 = vadd.f32 %v2062_v31, %v12380_v7  ;;  %v2513_v7 = vld [vmem:[#allocation2 + $0xc0] sm:$0xf]  ;;  %v2890_v31 = vshrl.u32 %v12780_v11, 16  ;;  %v10141_v5 = vrot.slane %v1755_v18, 9  ;;  %v3321_v18 = vrot.slane %v12780_v11, 5 }
 0x19e   : > { %v12774_v56 = vpop.f32.mrf.mxu3  ;;  %v2877_v47 = vshrl.u32 %v2513_v7, 16  ;;  %v2880_v44 = vshll.u32 %v2513_v7, 16  ;;  %v2888_v63 = vrot.slane %v2886_v59, 5  ;;  %v2515_v7 = vld [vmem:[#allocation2 + $0xc8] sm:$0x1] }
 0x19f   : > { %v2444_v16 = vadd.f32 %v12717_v33, %v2130_v54  ;;  %v3371_v33 = vunpack.c.l.b16 %v3315_v60  ;;  %v1966_v54 = vpack.c.b16 %v1948_v9, %v1947_v43  ;;  %v2963_v9 = vpack.c.b16 %v2946_v58, %v2945_v22  ;;  %v3891_v59 = vld [vmem:[#allocation2 + $0x18] sm:$0xf] }
 0x1a0   : > { %v2879_v53 = vrot.slane %v2877_v47, 4  ;;  %v2882_v3 = vrot.slane %v2880_v44, 5  ;;  %v2896_v6 = vshll.u32 %v2515_v7, 16 }
 0x1a1   : > { %v3126_v41 = vadd.f32 %v12707_v27, %v2444_v16  ;;  %v12791_v29 = vpop.f32.mrf.mxu0  ;;  %v12793_v27 = vpop.f32.mrf.mxu1  ;;  %v3389_v20 = vpack.c.b16 %v3372_v34, %v3371_v33  ;;  %v2892_v16 = vrot.slane %v2890_v31, 4 }
 0x1a2   : > { %v2898_v58 = vrot.slane %v2896_v6, 5 }
 0x1a3   : > { %v12789_v39 = vadd.f32 %v12685_v1, %v3126_v41  ;;  %v11596_v1 = vld [vmem:[#allocation2 + $0xac] sm:$0xf]  ;;  %3533 = vmatmul.bf16.gmra.mxu1 %v3389_v20  ;;  %v1895_v41 = vrot.slane %v11597_v55, 5  ;;  %v2893_v25 = vor.u32 %v2892_v16, %v2888_v63  ;;  %v3165_v20 = vld [vmem:[#allocation2 + $0xc0] sm:$0xe] }
 0x1a4   : > { %v2064_v42 = vpop.f32.mrf.mxu2  ;;  %v1892_v61 = vrot.slane %v11596_v1, 5 }
 0x1a5   : > { %v2131_v0 = vadd.f32 %v2064_v42, %v12397_v57  ;;  %v11353_v57 = vld [vmem:[#allocation2 + $0xb4] sm:$0xff]  ;;  %v10366_v42 = vrot.slane %v3165_v20, 9  ;;  %v2894_v22 = vrot.slane %v2893_v25, 4 }
 0x1a6   : > { %v2383_v4 = vpop.f32.mrf.mxu3  ;;  %v1894_v43 = vrot.slane %v1892_v61, 4  ;;  %v1893_v34 = vsel %vm12239_vm13, %v10141_v5, %v1892_v61  ;;  %v12816_v5 = vld [vmem:[#allocation2 + $0x1c] sm:$0xf] }
 0x1a7   : > { %v2445_v28 = vadd.f32 %v12747_v24, %v2131_v0  ;;  %v2883_v24 = vor.u32 %v2882_v3, %v2879_v53  ;;  %v1949_v31 = vunpack.c.l.b16 %v1893_v34  ;;  %v3323_v0 = vrot.slane %v3321_v18, 4 }
 0x1a8   : > { %v1896_v40 = vsel %vm12239_vm13, %v1894_v43, %v1895_v41  ;;  %v3322_v53 = vsel %vm12239_vm13, %v10366_v42, %v3321_v18  ;;  %v3940_v3 = vshrl.u32 %v3891_v59, 16  ;;  %v3943_v43 = vshll.u32 %v3891_v59, 16 }
 0x1a9   : > { %2106 = vmatmul.bf16.gmra.mxu2 %v1966_v54  ;;  %v12803_v60 = vadd.f32 %v12731_v32, %v2445_v28  ;;  %v12805_v33 = vpop.f32.mrf.mxu0  ;;  %v12809_v47 = vpop.f32.mrf.mxu1  ;;  %v3324_v54 = vrot.slane %v2515_v7, 5  ;;  %v2884_v61 = vrot.slane %v2883_v24, 4  ;;  %v1950_v11 = vunpack.c.l.b16 %v1896_v40  ;;  %v11598_v40 = vld [vmem:[#allocation2 + $0xb8] sm:$0xf] }
 0x1aa   : > { %v3953_v55 = vshrl.u32 %v12816_v5, 16  ;;  %v2899_v24 = vsel %vm11724_vm2, %v2894_v22, %v2898_v58  ;;  %v1899_v20 = vrot.slane %v11598_v40, 5  ;;  %v3945_v59 = vrot.slane %v3943_v43, 5 }
 0x1ab   : > { %2425 = vmatmul.bf16.gmra.mxu3 %v11353_v57  ;;  %v3325_v28 = vsel %vm12239_vm13, %v3323_v0, %v3324_v54  ;;  %v3373_v57 = vunpack.c.l.b16 %v3322_v53  ;;  %v2889_v34 = vsel %vm11724_vm2, %v2884_v61, %v2888_v63  ;;  %v2948_v0 = vunpack.c.l.b16 %v2899_v24  ;;  %v3893_v61 = vld [vmem:[#allocation2 + $0x20] sm:$0x1] }
 0x1ac   : > { %v2067_v44 = vpop.f32.mrf.mxu2  ;;  %3107 = vmatmul.bf16.gmra.mxu0 %v2963_v9  ;;  %v3374_v7 = vunpack.c.l.b16 %v3325_v28  ;;  %v2947_v42 = vunpack.c.l.b16 %v2889_v34  ;;  %v3955_v63 = vrot.slane %v3953_v55, 4  ;;  %v4573_v34 = vld [vmem:[#allocation2 + $0x18] sm:$0xe] }
 0x1ad   : > { %v2132_v32 = vadd.f32 %v2067_v44, %v12414_v15  ;;  %v1967_v44 = vpack.c.b16 %v1950_v11, %v1949_v31  ;;  %v11354_v31 = vld [vmem:[#allocation2 + $0xc0] sm:$0xff]  ;;  %v11599_v11 = vld [vmem:[#allocation2 + $0xbc] sm:$0x1] }
 0x1ae   : > { %v2386_v15 = vpop.f32.mrf.mxu3  ;;  %v1902_v28 = vrot.slane %v11599_v11, 5 }
 0x1af   : > { %v2446_v1 = vadd.f32 %v12774_v56, %v2132_v32  ;;  %v3949_v56 = vshll.u32 %v12816_v5, 16  ;;  %v1756_v32 = vld [vmem:[#allocation2 + $0xb4] sm:$0xe] }
 0x1b0   : > { %v10142_v58 = vrot.slane %v1756_v32, 9  ;;  %v3894_v32 = vld [vmem:[#allocation2 + $0x24] sm:$0xf] }
 0x1b1   : > { %v3128_v16 = vadd.f32 %v12757_v35, %v2446_v1  ;;  %v12828_v9 = vpop.f32.mrf.mxu0  ;;  %v12834_v25 = vpop.f32.mrf.mxu1  ;;  %v3390_v35 = vpack.c.b16 %v3374_v7, %v3373_v57  ;;  %v3951_v54 = vrot.slane %v3949_v56, 5  ;;  %v3959_v7 = vshll.u32 %v3893_v61, 16 }
 0x1b2   : > { %v4639_v56 = vrot.slane %v12816_v5, 5  ;;  %v10575_v5 = vrot.slane %v4573_v34, 9 }
 0x1b3   : > { %v12826_v41 = vadd.f32 %v12735_v48, %v3128_v16  ;;  %v3942_v48 = vrot.slane %v3940_v3, 4  ;;  %3538 = vmatmul.bf16.gmra.mxu1 %v3390_v35  ;;  %v2964_v3 = vpack.c.b16 %v2948_v0, %v2947_v42  ;;  %v3956_v57 = vor.u32 %v3955_v63, %v3951_v54  ;;  %v12853_v42 = vld [vmem:[#allocation2 + $0x28] sm:$0xf] }
 0x1b4   : > { %v2069_v6 = vpop.f32.mrf.mxu2  ;;  %v3977_v11 = vshrl.u32 %v12853_v42, 16 }
 0x1b5   : > { %v2133_v18 = vadd.f32 %v2069_v6, %v12432_v37  ;;  %v1901_v37 = vrot.slane %v1899_v20, 4  ;;  %v3946_v16 = vor.u32 %v3945_v59, %v3942_v48  ;;  %v4641_v48 = vrot.slane %v4639_v56, 4 }
 0x1b6   : > { %v2388_v22 = vpop.f32.mrf.mxu3  ;;  %v4642_v59 = vrot.slane %v3893_v61, 5 }
 0x1b7   : > { %v2447_v1 = vadd.f32 %v2383_v4, %v2133_v18  ;;  %v1903_v35 = vsel %vm12239_vm13, %v1901_v37, %v1902_v28  ;;  %v3947_v6 = vrot.slane %v3946_v16, 4  ;;  %v3961_v18 = vrot.slane %v3959_v7, 5 }
 0x1b8   : > { %v3973_v37 = vshll.u32 %v12853_v42, 16 }
 0x1b9   : > { %2111 = vmatmul.bf16.gmra.mxu2 %v1967_v44  ;;  %v12838_v53 = vadd.f32 %v12791_v29, %v2447_v1  ;;  %v12840_v43 = vpop.f32.mrf.mxu0  ;;  %v12843_v4 = vpop.f32.mrf.mxu1  ;;  %v1900_v29 = vsel %vm12239_vm13, %v10142_v58, %v1899_v20  ;;  %v3957_v44 = vrot.slane %v3956_v57, 4  ;;  %v1952_v20 = vunpack.c.l.b16 %v1903_v35 }
 0x1ba   : > { %v1951_v0 = vunpack.c.l.b16 %v1900_v29  ;;  %v3952_v58 = vsel %vm11724_vm2, %v3947_v6, %v3951_v54  ;;  %v4643_v54 = vsel %vm12239_vm13, %v4641_v48, %v4642_v59 }
 0x1bb   : > { %2430 = vmatmul.bf16.gmra.mxu3 %v11354_v31  ;;  %v3964_v31 = vshrl.u32 %v3894_v32, 16  ;;  %v3962_v61 = vsel %vm11724_vm2, %v3957_v44, %v3961_v18  ;;  %v4340_v7 = vunpack.c.l.b16 %v3952_v58  ;;  %v4767_v6 = vunpack.c.l.b16 %v4643_v54 }
 0x1bc   : > { %v2072_v55 = vpop.f32.mrf.mxu2  ;;  %3112 = vmatmul.bf16.gmra.mxu0 %v2964_v3  ;;  %v1968_v57 = vpack.c.b16 %v1952_v20, %v1951_v0  ;;  %v3975_v44 = vrot.slane %v3973_v37, 5  ;;  %v3979_v18 = vrot.slane %v3977_v11, 4  ;;  %v3897_v11 = vld [vmem:[#allocation2 + $0x30] sm:$0xf] }
 0x1bd   : > { %v2134_v24 = vadd.f32 %v2072_v55, %v12443_v17  ;;  %v11447_v17 = vld [vmem:[%s15767_s4 + $0x60] sm:$0xff]  ;;  %v3966_v29 = vrot.slane %v3964_v31, 4 }
 0x1be   : > { %v2391_v63 = vpop.f32.mrf.mxu3  ;;  %6146 = vmatpush.bf16.msra.mxu1 %v11447_v17  ;;  %v3980_v0 = vor.u32 %v3979_v18, %v3975_v44  ;;  %v4574_v31 = vld [vmem:[#allocation2 + $0x24] sm:$0xe] }
 0x1bf   : > { %v2448_v40 = vadd.f32 %v2386_v15, %v2134_v24  ;;  %v3967_v15 = vshll.u32 %v3894_v32, 16  ;;  %v4341_v24 = vunpack.c.l.b16 %v3962_v61  ;;  %v10576_v54 = vrot.slane %v4574_v31, 9 }
 0x1c0   : > { %v3981_v61 = vrot.slane %v3980_v0, 4 }
 0x1c1   : > { %v3130_v1 = vadd.f32 %v12805_v33, %v2448_v40  ;;  %v12865_v16 = vpop.f32.mrf.mxu0  ;;  %v4640_v33 = vsel %vm12239_vm13, %v10575_v5, %v4639_v56  ;;  %v12871_v55 = vpop.f32.mrf.mxu1  ;;  %v3969_v35 = vrot.slane %v3967_v15, 5  ;;  %v3896_v40 = vld [vmem:[#allocation2 + $0x2c] sm:$0x1]  ;;  %v4372_v48 = vpack.c.b16 %v4341_v24, %v4340_v7  ;;  %v12883_v7 = vld [vmem:[#allocation2 + $0x34] sm:$0xf] }
 0x1c2   : > { %v3983_v20 = vshll.u32 %v3896_v40, 16  ;;  %v3988_v24 = vshrl.u32 %v3897_v11, 16 }
 0x1c3   : > { %v12863_v28 = vadd.f32 %v12793_v27, %v3130_v1  ;;  %v4766_v27 = vunpack.c.l.b16 %v4640_v33  ;;  %v3970_v59 = vor.u32 %v3969_v35, %v3966_v29  ;;  %v4646_v1 = vrot.slane %v12853_v42, 5 }
 0x1c4   : > { %v2074_v3 = vpop.f32.mrf.mxu2  ;;  %v3985_v37 = vrot.slane %v3983_v20, 5  ;;  %v3991_v29 = vshll.u32 %v3897_v11, 16  ;;  %v3990_v0 = vrot.slane %v3988_v24, 4 }
 0x1c5   : > { %v2135_v34 = vadd.f32 %v2074_v3, %v12460_v62  ;;  %v4798_v17 = vpack.c.b16 %v4767_v6, %v4766_v27  ;;  %v4648_v3 = vrot.slane %v4646_v1, 4  ;;  %v3997_v27 = vshll.u32 %v12883_v7, 16 }
 0x1c6   : > { %v2393_v56 = vpop.f32.mrf.mxu3  ;;  %v3986_v35 = vsel %vm11724_vm2, %v3981_v61, %v3985_v37  ;;  %v3993_v20 = vrot.slane %v3991_v29, 5  ;;  %v3899_v61 = vld [vmem:[#allocation2 + $0x38] sm:$0x1]  ;;  %v4575_v29 = vld [vmem:[#allocation2 + $0x30] sm:$0xe] }
 0x1c7   : > { %v2449_v32 = vadd.f32 %v2388_v22, %v2135_v34  ;;  %v3971_v22 = vrot.slane %v3970_v59, 4  ;;  %v11379_v59 = vld [vmem:[#allocation2 + $0x18] sm:$0xff] }
 0x1c9   : > { %2116 = vmatmul.bf16.gmra.mxu2 %v1968_v57  ;;  %v12875_v5 = vadd.f32 %v12828_v9, %v2449_v32  ;;  %v12877_v62 = vpop.f32.mrf.mxu0  ;;  %v12881_v9 = vpop.f32.mrf.mxu1  ;;  %v4649_v57 = vrot.slane %v3896_v40, 5 }
 0x1cb   : > { %4460 = vmatmul.bf16.vlgmr.msra.gmra.mxu3 %v4372_v48 }
 0x1cc   : > { %v2077_v58 = vpop.f32.mrf.mxu2  ;;  %4886 = vmatmul.bf16.vlgmr.msra.gmra.mxu0 %v4798_v17  ;;  %v4343_v17 = vunpack.c.l.b16 %v3986_v35 }
 0x1cd   : > { %v2136_v15 = vadd.f32 %v2077_v58, %v12477_v21  ;;  %v3976_v21 = vsel %vm11724_vm2, %v3971_v22, %v3975_v44  ;;  %v4650_v44 = vsel %vm12239_vm13, %v4648_v3, %v4649_v57  ;;  %v4007_v57 = vshll.u32 %v3899_v61, 16 }
 0x1ce   : > { %v2396_v34 = vpop.f32.mrf.mxu3  ;;  %v4342_v40 = vunpack.c.l.b16 %v3976_v21  ;;  %v4769_v31 = vunpack.c.l.b16 %v4650_v44  ;;  %v4653_v21 = vrot.slane %v12883_v7, 5  ;;  %v10577_v44 = vrot.slane %v4575_v29, 9 }
 0x1cf   : > { %v2450_v33 = vadd.f32 %v2391_v63, %v2136_v15  ;;  %v4001_v63 = vshrl.u32 %v12883_v7, 16 }
 0x1d1   : > { %v3132_v42 = vadd.f32 %v12840_v43, %v2450_v33  ;;  %v12895_v18 = vpop.f32.mrf.mxu0  ;;  %v4647_v43 = vsel %vm12239_vm13, %v10576_v54, %v4646_v1  ;;  %v4003_v15 = vrot.slane %v4001_v63, 4  ;;  %v12902_v11 = vpop.f32.mrf.mxu1  ;;  %v4373_v33 = vpack.c.b16 %v4343_v17, %v4342_v40 }
 0x1d2   : > { %v4768_v58 = vunpack.c.l.b16 %v4647_v43  ;;  %v3994_v54 = vor.u32 %v3993_v20, %v3990_v0  ;;  %v4009_v63 = vrot.slane %v4007_v57, 5  ;;  %v4656_v40 = vrot.slane %v3899_v61, 5 }
 0x1d3   : > { %v12893_v6 = vadd.f32 %v12834_v25, %v3132_v42  ;;  %v3999_v25 = vrot.slane %v3997_v27, 5 }
 0x1d4   : > { %v2079_v32 = vpop.f32.mrf.mxu2  ;;  %v3995_v35 = vrot.slane %v3994_v54, 4 }
 0x1d5   : > { %v2137_v48 = vadd.f32 %v2079_v32, %v12504_v45  ;;  %v4799_v45 = vpack.c.b16 %v4769_v31, %v4768_v58  ;;  %v4004_v3 = vor.u32 %v4003_v15, %v3999_v25  ;;  %v4655_v32 = vrot.slane %v4653_v21, 4 }
 0x1d6   : > { %v2398_v37 = vpop.f32.mrf.mxu3 }
 0x1d7   : > { %v2451_v22 = vadd.f32 %v2393_v56, %v2137_v48  ;;  %v4005_v27 = vrot.slane %v4004_v3, 4  ;;  %v11446_v48 = vld [vmem:[%s15767_s4 + $0x58] sm:$0xff]  ;;  %v11380_v3 = vld [vmem:[#allocation2 + $0x24] sm:$0xff] }
 0x1d8   : > { %6147 = vmatpush.bf16.msra.mxu1 %v11446_v48 }
 0x1d9   : > { %3778 = vmatmul.bf16.vlgmr.msra.gmra.mxu2 %v11379_v59  ;;  %v12905_v1 = vadd.f32 %v12865_v16, %v2451_v22  ;;  %v12907_v42 = vpop.f32.mrf.mxu0  ;;  %v3900_v16 = vld [vmem:[#allocation2 + $0x3c] sm:$0xf]  ;;  %v12914_v59 = vld [vmem:[#allocation2 + $0x40] sm:$0xf]  ;;  %v12921_v58 = vpop.f32.mrf.mxu1 }
 0x1da   : > { %v4012_v0 = vshrl.u32 %v3900_v16, 16  ;;  %v4015_v20 = vshll.u32 %v3900_v16, 16  ;;  %15797 = vst [vmem:[#allocation17_spill] sm:$0xff] %v12921_v58  ;;  %v4021_v31 = vshll.u32 %v12914_v59, 16  ;;  %v4025_v15 = vshrl.u32 %v12914_v59, 16 }
 0x1db   : > { %4465 = vmatmul.bf16.gmra.mxu3 %v4373_v33  ;;  %v3902_v16 = vld [vmem:[#allocation2 + $0x44] sm:$0x1] }
 0x1dc   : > { %v2082_v24 = vpop.f32.mrf.mxu2  ;;  %4891 = vmatmul.bf16.gmra.mxu0 %v4799_v45  ;;  %v4017_v29 = vrot.slane %v4015_v20, 5 }
 0x1dd   : > { %v2138_v56 = vadd.f32 %v2082_v24, %v12293_v51  ;;  %v4000_v51 = vsel %vm11724_vm2, %v3995_v35, %v3999_v25  ;;  %v4657_v25 = vsel %vm12239_vm13, %v4655_v32, %v4656_v40  ;;  %v4014_v24 = vrot.slane %v4012_v0, 4 }
 0x1de   : > { %v2401_v7 = vpop.f32.mrf.mxu3  ;;  %v4344_v54 = vunpack.c.l.b16 %v4000_v51  ;;  %v4771_v35 = vunpack.c.l.b16 %v4657_v25  ;;  %v4660_v51 = vrot.slane %v12914_v59, 5 }
 0x1df   : > { %v2452_v43 = vadd.f32 %v2396_v34, %v2138_v56  ;;  %v4010_v34 = vsel %vm11724_vm2, %v4005_v27, %v4009_v63  ;;  %v4027_v27 = vrot.slane %v4025_v15, 4  ;;  %v4018_v32 = vor.u32 %v4017_v29, %v4014_v24 }
 0x1e0   : > { %v4345_v57 = vunpack.c.l.b16 %v4010_v34  ;;  %v4576_v34 = vld [vmem:[#allocation2 + $0x3c] sm:$0xe] }
 0x1e1   : > { %v3134_v17 = vadd.f32 %v12877_v62, %v2452_v43  ;;  %v12928_v61 = vpop.f32.mrf.mxu0  ;;  %v4654_v62 = vsel %vm12239_vm13, %v10577_v44, %v4653_v21  ;;  %v12941_v20 = vpop.f32.mrf.mxu1 }
 0x1e2   : > { %v4770_v56 = vunpack.c.l.b16 %v4654_v62  ;;  %v4374_v44 = vpack.c.b16 %v4345_v57, %v4344_v54  ;;  %v3903_v62 = vld [vmem:[#allocation2 + $0x48] sm:$0xf]  ;;  %v4662_v54 = vrot.slane %v4660_v51, 4 }
 0x1e3   : > { %v12926_v22 = vadd.f32 %v12871_v55, %v3134_v17  ;;  %v4023_v55 = vrot.slane %v4021_v31, 5  ;;  %v4019_v31 = vrot.slane %v4018_v32, 4  ;;  %v4036_v29 = vshrl.u32 %v3903_v62, 16 }
 0x1e4   : > { %v2084_v33 = vpop.f32.mrf.mxu2  ;;  %v4800_v40 = vpack.c.b16 %v4771_v35, %v4770_v56 }
 0x1e5   : > { %v2139_v45 = vadd.f32 %v2084_v33, %v12315_v36  ;;  %v4028_v48 = vor.u32 %v4027_v27, %v4023_v55  ;;  %v4031_v36 = vshll.u32 %v3902_v16, 16  ;;  %v10578_v33 = vrot.slane %v4576_v34, 9 }
 0x1e6   : > { %v2403_v43 = vpop.f32.mrf.mxu3  ;;  %v4024_v24 = vsel %vm11724_vm2, %v4019_v31, %v4023_v55 }
 0x1e7   : > { %v2453_v63 = vadd.f32 %v2398_v37, %v2139_v45  ;;  %v4033_v15 = vrot.slane %v4031_v36, 5  ;;  %v4663_v45 = vrot.slane %v3902_v16, 5  ;;  %v4038_v36 = vrot.slane %v4036_v29, 4 }
 0x1e9   : > { %3783 = vmatmul.bf16.gmra.mxu2 %v11380_v3  ;;  %v12936_v21 = vadd.f32 %v12895_v18, %v2453_v63  ;;  %v12938_v17 = vpop.f32.mrf.mxu0  ;;  %v4029_v18 = vrot.slane %v4028_v48, 4  ;;  %v12944_v3 = vld [vmem:[#allocation2 + $0x4c] sm:$0xf]  ;;  %v4664_v55 = vsel %vm12239_vm13, %v4662_v54, %v4663_v45 }
 0x1ea   : > { %v4045_v35 = vshll.u32 %v12944_v3, 16  ;;  %v4667_v29 = vrot.slane %v12944_v3, 5 }
 0x1eb   : > { %4470 = vmatmul.bf16.gmra.mxu3 %v4374_v44  ;;  %v4034_v56 = vsel %vm11724_vm2, %v4029_v18, %v4033_v15  ;;  %v4346_v44 = vunpack.c.l.b16 %v4024_v24 }
 0x1ec   : > { %v2087_v0 = vpop.f32.mrf.mxu2  ;;  %4896 = vmatmul.bf16.gmra.mxu0 %v4800_v40  ;;  %v11381_v40 = vld [vmem:[#allocation2 + $0x30] sm:$0xff]  ;;  %v4347_v48 = vunpack.c.l.b16 %v4034_v56  ;;  %v4047_v31 = vrot.slane %v4045_v35, 5  ;;  %v4577_v56 = vld [vmem:[#allocation2 + $0x48] sm:$0xe] }
 0x1ed   : > { %v2140_v37 = vadd.f32 %v2087_v0, %v12324_v50  ;;  %v4039_v50 = vshll.u32 %v3903_v62, 16  ;;  %v3905_v62 = vld [vmem:[#allocation2 + $0x50] sm:$0x1] }
 0x1ee   : > { %v2406_v57 = vpop.f32.mrf.mxu3 }
 0x1ef   : > { %v2454_v25 = vadd.f32 %v2401_v7, %v2140_v37  ;;  %v4049_v7 = vshrl.u32 %v12944_v3, 16  ;;  %v4041_v0 = vrot.slane %v4039_v50, 5  ;;  %v4773_v37 = vunpack.c.l.b16 %v4664_v55 }
 0x1f1   : > { %v3136_v59 = vadd.f32 %v12907_v42, %v2454_v25  ;;  %v12956_v63 = vpop.f32.mrf.mxu0  ;;  %v4661_v42 = vsel %vm12239_vm13, %v10578_v33, %v4660_v51  ;;  %v4051_v18 = vrot.slane %v4049_v7, 4  ;;  %v4375_v33 = vpack.c.b16 %v4347_v48, %v4346_v44  ;;  %v12975_v48 = vld [vmem:[#allocation2 + $0x58] sm:$0xf] }
 0x1f2   : > { %v4772_v34 = vunpack.c.l.b16 %v4661_v42  ;;  %v4042_v54 = vor.u32 %v4041_v0, %v4038_v36  ;;  %v4669_v44 = vrot.slane %v4667_v29, 4 }
 0x1f3   : > { %v12954_v27 = vadd.f32 %v12902_v11, %v3136_v59  ;;  %v12963_v11 = vpop.f32.mrf.mxu1  ;;  %v4052_v45 = vor.u32 %v4051_v18, %v4047_v31  ;;  %v4055_v59 = vshll.u32 %v3905_v62, 16  ;;  %v4069_v18 = vshll.u32 %v12975_v48, 16 }
 0x1f4   : > { %v2089_v16 = vpop.f32.mrf.mxu2  ;;  %15799 = vst [vmem:[#allocation19_spill] sm:$0xff] %v12963_v11 }
 0x1f5   : > { %15798 = vst [vmem:[#allocation18_spill] sm:$0xff] %v12954_v27  ;;  %v2141_v32 = vadd.f32 %v2089_v16, %v12340_v8  ;;  %v4801_v8 = vpack.c.b16 %v4773_v37, %v4772_v34  ;;  %v4053_v7 = vrot.slane %v4052_v45, 4  ;;  %v4057_v42 = vrot.slane %v4055_v59, 5  ;;  %v11382_v59 = vld [vmem:[#allocation2 + $0x3c] sm:$0xff] }
 0x1f6   : > { %v2408_v51 = vpop.f32.mrf.mxu3  ;;  %v10579_v16 = vrot.slane %v4577_v56, 9 }
 0x1f7   : > { %v2455_v15 = vadd.f32 %v2403_v43, %v2141_v32  ;;  %v4043_v43 = vrot.slane %v4042_v54, 4  ;;  %v4670_v32 = vrot.slane %v3905_v62, 5 }
 0x1f9   : > { %3788 = vmatmul.bf16.gmra.mxu2 %v11381_v40  ;;  %v12966_v25 = vadd.f32 %v12928_v61, %v2455_v15  ;;  %v12968_v24 = vpop.f32.mrf.mxu0  ;;  %v3906_v61 = vld [vmem:[#allocation2 + $0x54] sm:$0xf]  ;;  %v4048_v0 = vsel %vm11724_vm2, %v4043_v43, %v4047_v31  ;;  %v4073_v15 = vshrl.u32 %v12975_v48, 16  ;;  %v4671_v31 = vsel %vm12239_vm13, %v4669_v44, %v4670_v32 }
 0x1fa   : > { %v11445_v40 = vld [vmem:[%s15767_s4 + $0x50] sm:$0xff]  ;;  %v4060_v34 = vshrl.u32 %v3906_v61, 16  ;;  %v4063_v37 = vshll.u32 %v3906_v61, 16 }
 0x1fb   : > { %15800 = vst [vmem:[#allocation20_spill] sm:$0xff] %v12966_v25  ;;  %4475 = vmatmul.bf16.gmra.mxu3 %v4375_v33  ;;  %v3519_v36 = vpop.f32.mrf.mxu1  ;;  %6148 = vmatpush.bf16.msra.mxu1 %v11445_v40 }
 0x1fc   : > { %v2092_v50 = vpop.f32.mrf.mxu2  ;;  %4901 = vmatmul.bf16.gmra.mxu0 %v4801_v8  ;;  %v4348_v8 = vunpack.c.l.b16 %v4048_v0  ;;  %v4062_v56 = vrot.slane %v4060_v34, 4 }
 0x1fd   : > { %v2142_v35 = vadd.f32 %v2092_v50, %v12356_v13 }
 0x1fe   : > { %v2411_v3 = vpop.f32.mrf.mxu3 }
 0x1ff   : > { %v2456_v55 = vadd.f32 %v2406_v57, %v2142_v35  ;;  %v4058_v57 = vsel %vm11724_vm2, %v4053_v7, %v4057_v42  ;;  %v4065_v35 = vrot.slane %v4063_v37, 5  ;;  %v4775_v7 = vunpack.c.l.b16 %v4671_v31 }
 0x200   : > { %v4349_v50 = vunpack.c.l.b16 %v4058_v57  ;;  %v4075_v42 = vrot.slane %v4073_v15, 4  ;;  %v4674_v37 = vrot.slane %v12975_v48, 5 }
 0x201   : > { %v3138_v13 = vadd.f32 %v12938_v17, %v2456_v55  ;;  %v12987_v33 = vpop.f32.mrf.mxu0  ;;  %v4668_v17 = vsel %vm12239_vm13, %v10579_v16, %v4667_v29  ;;  %v3908_v55 = vld [vmem:[#allocation2 + $0x5c] sm:$0x1]  ;;  %v4066_v44 = vor.u32 %v4065_v35, %v4062_v56  ;;  %v13003_v56 = vld [vmem:[#allocation2 + $0x64] sm:$0xf] }
 0x202   : > { %v4774_v43 = vunpack.c.l.b16 %v4668_v17  ;;  %v4376_v16 = vpack.c.b16 %v4349_v50, %v4348_v8  ;;  %v4079_v0 = vshll.u32 %v3908_v55, 16  ;;  %v4677_v50 = vrot.slane %v3908_v55, 5 }
 0x203   : > { %v12985_v62 = vadd.f32 %v12941_v20, %v3138_v13  ;;  %v4071_v20 = vrot.slane %v4069_v18, 5  ;;  %v12997_v13 = vpop.f32.mrf.mxu1  ;;  %v4578_v18 = vld [vmem:[#allocation2 + $0x54] sm:$0xe]  ;;  %v4067_v17 = vrot.slane %v4066_v44, 4 }
 0x204   : > { %v2094_v54 = vpop.f32.mrf.mxu2  ;;  %v4802_v32 = vpack.c.b16 %v4775_v7, %v4774_v43  ;;  %15803 = vst [vmem:[#allocation23_spill] sm:$0xff] %v12997_v13  ;;  %v4081_v31 = vrot.slane %v4079_v0, 5  ;;  %v3911_v13 = vld [vmem:[#allocation2 + $0x68] sm:$0x1] }
 0x205   : > { %15801 = vst [vmem:[#allocation21_spill] sm:$0xff] %v12985_v62  ;;  %v2143_v45 = vadd.f32 %v2094_v54, %v12378_v46  ;;  %v4076_v46 = vor.u32 %v4075_v42, %v4071_v20  ;;  %v3909_v54 = vld [vmem:[#allocation2 + $0x60] sm:$0xf]  ;;  %v4072_v48 = vsel %vm11724_vm2, %v4067_v17, %v4071_v20  ;;  %v11387_v62 = vld [vmem:[#allocation2 + $0x78] sm:$0xff] }
 0x206   : > { %v2413_v40 = vpop.f32.mrf.mxu3  ;;  %v4084_v7 = vshrl.u32 %v3909_v54, 16  ;;  %v4087_v42 = vshll.u32 %v3909_v54, 16  ;;  %v4350_v0 = vunpack.c.l.b16 %v4072_v48 }
 0x207   : > { %v2457_v61 = vadd.f32 %v2408_v51, %v2143_v45  ;;  %v15804_v51 = vld [vmem:[#allocation3_spill] sm:$0xff]  ;;  %v10580_v45 = vrot.slane %v4578_v18, 9 }
 0x208   : > { %v4086_v17 = vrot.slane %v4084_v7, 4  ;;  %v4681_v7 = vrot.slane %v13003_v56, 5 }
 0x209   : > { %3793 = vmatmul.bf16.gmra.mxu2 %v11382_v59  ;;  %v12995_v29 = vadd.f32 %v12956_v63, %v2457_v61  ;;  %v12999_v34 = vpop.f32.mrf.mxu0  ;;  %v4077_v63 = vrot.slane %v4076_v46, 4  ;;  %v4676_v59 = vrot.slane %v4674_v37, 4 }
 0x20b   : > { %15802 = vst [vmem:[#allocation22_spill] sm:$0xff] %v12995_v29  ;;  %4480 = vmatmul.bf16.gmra.mxu3 %v4376_v16  ;;  %v4082_v61 = vsel %vm11724_vm2, %v4077_v63, %v4081_v31  ;;  %v4093_v16 = vshll.u32 %v13003_v56, 16  ;;  %v3524_v46 = vpop.f32.mrf.mxu1  ;;  %v4089_v63 = vrot.slane %v4087_v42, 5 }
 0x20c   : > { %v2097_v57 = vpop.f32.mrf.mxu2  ;;  %4906 = vmatmul.bf16.gmra.mxu0 %v4802_v32  ;;  %v4675_v32 = vsel %vm12239_vm13, %v10580_v45, %v4674_v37 }
 0x20d   : > { %v2144_v15 = vadd.f32 %v2097_v57, %v15804_v51  ;;  %v15806_v57 = vld [vmem:[#allocation4_spill] sm:$0xff]  ;;  %v11383_v51 = vld [vmem:[#allocation2 + $0x48] sm:$0xff]  ;;  %v4776_v31 = vunpack.c.l.b16 %v4675_v32  ;;  %v4095_v54 = vrot.slane %v4093_v16, 5 }
 0x20e   : > { %v2416_v35 = vpop.f32.mrf.mxu3  ;;  %v15808_v16 = vld [vmem:[#allocation5_spill] sm:$0xff] }
 0x20f   : > { %v2458_v8 = vadd.f32 %v2411_v3, %v2144_v15  ;;  %v4097_v3 = vshrl.u32 %v13003_v56, 16  ;;  %v4351_v15 = vunpack.c.l.b16 %v4082_v61  ;;  %v4579_v61 = vld [vmem:[#allocation2 + $0x60] sm:$0xe]  ;;  %v11444_v56 = vld [vmem:[%s15767_s4 + $0x48] sm:$0xff] }
 0x210   : > { %6149 = vmatpush.bf16.msra.mxu1 %v11444_v56 }
 0x211   : > { %v3140_v43 = vadd.f32 %v12968_v24, %v2458_v8  ;;  %v13014_v55 = vpop.f32.mrf.mxu0  ;;  %v4678_v24 = vsel %vm12239_vm13, %v4676_v59, %v4677_v50  ;;  %v4099_v8 = vrot.slane %v4097_v3, 4  ;;  %v4377_v45 = vpack.c.b16 %v4351_v15, %v4350_v0  ;;  %v3912_v0 = vld [vmem:[#allocation2 + $0x6c] sm:$0xf] }
 0x212   : > { %v4090_v59 = vor.u32 %v4089_v63, %v4086_v17  ;;  %v4683_v15 = vrot.slane %v4681_v7, 4  ;;  %v4684_v17 = vrot.slane %v3911_v13, 5  ;;  %v13033_v63 = vld [vmem:[#allocation2 + $0x70] sm:$0xf] }
 0x213   : > { %v13012_v44 = vadd.f32 %v3519_v36, %v3140_v43  ;;  %v4777_v36 = vunpack.c.l.b16 %v4678_v24  ;;  %v4100_v48 = vor.u32 %v4099_v8, %v4095_v54  ;;  %v13028_v32 = vpop.f32.mrf.mxu1 }
 0x214   : > { %v2099_v20 = vpop.f32.mrf.mxu2  ;;  %15809 = vst [vmem:[#allocation5_spill] sm:$0xff] %v13028_v32  ;;  %v3914_v32 = vld [vmem:[#allocation2 + $0x74] sm:$0x1] }
 0x215   : > { %15805 = vst [vmem:[#allocation3_spill] sm:$0xff] %v13012_v44  ;;  %v2145_v18 = vadd.f32 %v2099_v20, %v15806_v57  ;;  %v4803_v50 = vpack.c.b16 %v4777_v36, %v4776_v31  ;;  %v4103_v20 = vshll.u32 %v3911_v13, 16  ;;  %v4117_v13 = vshll.u32 %v13033_v63, 16 }
 0x216   : > { %v2418_v44 = vpop.f32.mrf.mxu3 }
 0x217   : > { %v2459_v43 = vadd.f32 %v2413_v40, %v2145_v18  ;;  %v4091_v40 = vrot.slane %v4090_v59, 4  ;;  %v4105_v24 = vrot.slane %v4103_v20, 5  ;;  %v4121_v59 = vshrl.u32 %v13033_v63, 16 }
 0x219   : > { %3798 = vmatmul.bf16.gmra.mxu2 %v11383_v51  ;;  %v13022_v37 = vadd.f32 %v12987_v33, %v2459_v43  ;;  %v13024_v57 = vpop.f32.mrf.mxu0  ;;  %v4101_v33 = vrot.slane %v4100_v48, 4  ;;  %v10581_v51 = vrot.slane %v4579_v61, 9  ;;  %v4096_v8 = vsel %vm11724_vm2, %v4091_v40, %v4095_v54  ;;  %v15811_v61 = vld [vmem:[#allocation6_spill] sm:$0xff] }
 0x21a   : > { %v4108_v43 = vshrl.u32 %v3912_v0, 16  ;;  %v4685_v54 = vsel %vm12239_vm13, %v4683_v15, %v4684_v17  ;;  %v4123_v56 = vrot.slane %v4121_v59, 4  ;;  %v15813_v59 = vld [vmem:[#allocation7_spill] sm:$0xff] }
 0x21b   : > { %15807 = vst [vmem:[#allocation4_spill] sm:$0xff] %v13022_v37  ;;  %4485 = vmatmul.bf16.gmra.mxu3 %v4377_v45  ;;  %v4111_v45 = vshll.u32 %v3912_v0, 16  ;;  %v3529_v37 = vpop.f32.mrf.mxu1 }
 0x21c   : > { %v2102_v42 = vpop.f32.mrf.mxu2  ;;  %4911 = vmatmul.bf16.gmra.mxu0 %v4803_v50 }
 0x21d   : > { %v2146_v3 = vadd.f32 %v2102_v42, %v15808_v16  ;;  %v4352_v42 = vunpack.c.l.b16 %v4096_v8 }
 0x21e   : > { %v2421_v31 = vpop.f32.mrf.mxu3 }
 0x21f   : > { %v2460_v18 = vadd.f32 %v2416_v35, %v2146_v3  ;;  %v4106_v35 = vsel %vm11724_vm2, %v4101_v33, %v4105_v24  ;;  %v11384_v3 = vld [vmem:[#allocation2 + $0x54] sm:$0xff]  ;;  %v4110_v33 = vrot.slane %v4108_v43, 4  ;;  %v4113_v24 = vrot.slane %v4111_v45, 5 }
 0x220   : > { %v4353_v40 = vunpack.c.l.b16 %v4106_v35  ;;  %v4688_v43 = vrot.slane %v13033_v63, 5 }
 0x221   : > { %v3142_v36 = vadd.f32 %v12999_v34, %v2460_v18  ;;  %v13044_v48 = vpop.f32.mrf.mxu0  ;;  %v4682_v34 = vsel %vm12239_vm13, %v10581_v51, %v4681_v7  ;;  %v4779_v18 = vunpack.c.l.b16 %v4685_v54  ;;  %v4114_v15 = vor.u32 %v4113_v24, %v4110_v33  ;;  %v13058_v33 = vld [vmem:[#allocation2 + $0x7c] sm:$0xf] }
 0x222   : > { %v4778_v0 = vunpack.c.l.b16 %v4682_v34  ;;  %v4378_v51 = vpack.c.b16 %v4353_v40, %v4352_v42  ;;  %v4691_v40 = vrot.slane %v3914_v32, 5 }
 0x223   : > { %v13042_v50 = vadd.f32 %v3524_v46, %v3142_v36  ;;  %v4119_v46 = vrot.slane %v4117_v13, 5  ;;  %v4580_v13 = vld [vmem:[#allocation2 + $0x6c] sm:$0xe]  ;;  %v4115_v34 = vrot.slane %v4114_v15, 4  ;;  %v4145_v15 = vshrl.u32 %v13058_v33, 16 }
 0x224   : > { %v2104_v20 = vpop.f32.mrf.mxu2  ;;  %v4804_v17 = vpack.c.b16 %v4779_v18, %v4778_v0  ;;  %v10582_v42 = vrot.slane %v4580_v13, 9 }
 0x225   : > { %15810 = vst [vmem:[#allocation24_spill] sm:$0xff] %v13042_v50  ;;  %v2147_v16 = vadd.f32 %v2104_v20, %v15811_v61  ;;  %v4124_v8 = vor.u32 %v4123_v56, %v4119_v46  ;;  %v4127_v20 = vshll.u32 %v3914_v32, 16  ;;  %v4120_v63 = vsel %vm11724_vm2, %v4115_v34, %v4119_v46 }
 0x226   : > { %v2423_v50 = vpop.f32.mrf.mxu3 }
 0x227   : > { %v2461_v36 = vadd.f32 %v2418_v44, %v2147_v16  ;;  %v4125_v54 = vrot.slane %v4124_v8, 4  ;;  %v4129_v61 = vrot.slane %v4127_v20, 5  ;;  %v4354_v20 = vunpack.c.l.b16 %v4120_v63 }
 0x229   : > { %3803 = vmatmul.bf16.gmra.mxu2 %v11384_v3  ;;  %v13052_v7 = vadd.f32 %v13014_v55, %v2461_v36  ;;  %v13054_v35 = vpop.f32.mrf.mxu0  ;;  %v3915_v55 = vld [vmem:[#allocation2 + $0x78] sm:$0xf]  ;;  %v4690_v3 = vrot.slane %v4688_v43, 4  ;;  %v13063_v36 = vpop.f32.mrf.mxu1 }
 0x22a   : > { %v4132_v18 = vshrl.u32 %v3915_v55, 16  ;;  %v4135_v56 = vshll.u32 %v3915_v55, 16  ;;  %15814 = vst [vmem:[#allocation7_spill] sm:$0xff] %v13063_v36  ;;  %v3917_v36 = vld [vmem:[#allocation2 + $0x80] sm:$0x1] }
 0x22b   : > { %15812 = vst [vmem:[#allocation6_spill] sm:$0xff] %v13052_v7  ;;  %4490 = vmatmul.bf16.gmra.mxu3 %v4378_v51  ;;  %v4130_v51 = vsel %vm11724_vm2, %v4125_v54, %v4129_v61  ;;  %v4692_v46 = vsel %vm12239_vm13, %v4690_v3, %v4691_v40 }
 0x22c   : > { %v2107_v45 = vpop.f32.mrf.mxu2  ;;  %4916 = vmatmul.bf16.gmra.mxu0 %v4804_v17  ;;  %v4134_v34 = vrot.slane %v4132_v18, 4  ;;  %v4137_v54 = vrot.slane %v4135_v56, 5  ;;  %v4781_v55 = vunpack.c.l.b16 %v4692_v46  ;;  %v4695_v18 = vrot.slane %v13058_v33, 5  ;;  %v3918_v46 = vld [vmem:[#allocation2 + $0x84] sm:$0xf] }
 0x22d   : > { %v2148_v44 = vadd.f32 %v2107_v45, %v15813_v59  ;;  %v15816_v45 = vld [vmem:[#allocation8_spill] sm:$0xff] }
 0x22e   : > { %v2426_v24 = vpop.f32.mrf.mxu3  ;;  %v11385_v59 = vld [vmem:[#allocation2 + $0x60] sm:$0xff]  ;;  %v4138_v3 = vor.u32 %v4137_v54, %v4134_v34  ;;  %v4697_v34 = vrot.slane %v4695_v18, 4  ;;  %v4698_v54 = vrot.slane %v3917_v36, 5 }
 0x22f   : > { %v2462_v16 = vadd.f32 %v2421_v31, %v2148_v44  ;;  %v4141_v31 = vshll.u32 %v13058_v33, 16  ;;  %v4355_v44 = vunpack.c.l.b16 %v4130_v51  ;;  %v4159_v33 = vshll.u32 %v3918_v46, 16 }
 0x231   : > { %v3144_v0 = vadd.f32 %v13024_v57, %v2462_v16  ;;  %v13071_v17 = vpop.f32.mrf.mxu0  ;;  %v4689_v57 = vsel %vm12239_vm13, %v10582_v42, %v4688_v43  ;;  %v4147_v16 = vrot.slane %v4145_v15, 4  ;;  %v4379_v42 = vpack.c.b16 %v4355_v44, %v4354_v20  ;;  %v3534_v51 = vpop.f32.mrf.mxu1  ;;  %v15818_v15 = vld [vmem:[#allocation9_spill] sm:$0xff] }
 0x232   : > { %v4780_v61 = vunpack.c.l.b16 %v4689_v57  ;;  %v4139_v57 = vrot.slane %v4138_v3, 4  ;;  %v13085_v20 = vld [vmem:[#allocation2 + $0x88] sm:$0xf] }
 0x233   : > { %v13069_v32 = vadd.f32 %v3529_v37, %v3144_v0  ;;  %v4143_v37 = vrot.slane %v4141_v31, 5  ;;  %v4581_v31 = vld [vmem:[#allocation2 + $0x78] sm:$0xe]  ;;  %v4169_v3 = vshrl.u32 %v13085_v20, 16 }
 0x234   : > { %v2109_v8 = vpop.f32.mrf.mxu2  ;;  %v4805_v40 = vpack.c.b16 %v4781_v55, %v4780_v61  ;;  %v10583_v44 = vrot.slane %v4581_v31, 9  ;;  %v4156_v55 = vshrl.u32 %v3918_v46, 16  ;;  %v4161_v31 = vrot.slane %v4159_v33, 5 }
 0x235   : > { %15815 = vst [vmem:[#allocation25_spill] sm:$0xff] %v13069_v32  ;;  %v2149_v13 = vadd.f32 %v2109_v8, %v15816_v45  ;;  %v4148_v63 = vor.u32 %v4147_v16, %v4143_v37  ;;  %v4151_v8 = vshll.u32 %v3917_v36, 16 }
 0x236   : > { %v2428_v32 = vpop.f32.mrf.mxu3  ;;  %v4696_v36 = vsel %vm12239_vm13, %v10583_v44, %v4695_v18 }
 0x237   : > { %v2463_v0 = vadd.f32 %v2423_v50, %v2149_v13  ;;  %v4153_v13 = vrot.slane %v4151_v8, 5 }
 0x239   : > { %3808 = vmatmul.bf16.gmra.mxu2 %v11385_v59  ;;  %v13079_v43 = vadd.f32 %v13044_v48, %v2463_v0  ;;  %v13081_v45 = vpop.f32.mrf.mxu0  ;;  %v4149_v48 = vrot.slane %v4148_v63, 4  ;;  %v4144_v0 = vsel %vm11724_vm2, %v4139_v57, %v4143_v37  ;;  %v4158_v37 = vrot.slane %v4156_v55, 4  ;;  %v11386_v57 = vld [vmem:[#allocation2 + $0x6c] sm:$0xff] }
 0x23b   : > { %15817 = vst [vmem:[#allocation8_spill] sm:$0xff] %v13079_v43  ;;  %4495 = vmatmul.bf16.gmra.mxu3 %v4379_v42  ;;  %v4165_v42 = vshll.u32 %v13085_v20, 16 }
 0x23c   : > { %v2112_v56 = vpop.f32.mrf.mxu2  ;;  %4921 = vmatmul.bf16.gmra.mxu0 %v4805_v40  ;;  %v4154_v40 = vsel %vm11724_vm2, %v4149_v48, %v4153_v13  ;;  %v13105_v13 = vpop.f32.mrf.mxu1 }
 0x23d   : > { %v2150_v50 = vadd.f32 %v2112_v56, %v15818_v15  ;;  %v4356_v56 = vunpack.c.l.b16 %v4144_v0  ;;  %v15820_v15 = vld [vmem:[#allocation10_spill] sm:$0xff]  ;;  %v4357_v46 = vunpack.c.l.b16 %v4154_v40  ;;  %v13103_v48 = vrot.slane %v4165_v42, 5 }
 0x23e   : > { %v2431_v61 = vpop.f32.mrf.mxu3  ;;  %15821 = vst [vmem:[#allocation10_spill] sm:$0xff] %v13105_v13  ;;  %v4702_v42 = vrot.slane %v13085_v20, 5  ;;  %v5567_v20 = vld [vmem:[#allocation2 + $0x4] sm:$0xf] }
 0x23f   : > { %v2464_v59 = vadd.f32 %v2426_v24, %v2150_v50  ;;  %v4380_v33 = vpack.c.b16 %v4357_v46, %v4356_v56 }
 0x241   : > { %v3146_v16 = vadd.f32 %v13054_v35, %v2464_v59  ;;  %v13096_v24 = vpop.f32.mrf.mxu0  ;;  %v4699_v35 = vsel %vm12239_vm13, %v4697_v34, %v4698_v54  ;;  %v3920_v59 = vld [vmem:[#allocation2 + $0x8c] sm:$0x1]  ;;  %v4162_v34 = vor.u32 %v4161_v31, %v4158_v37  ;;  %v13116_v37 = vld [vmem:[#allocation2 + $0x94] sm:$0xf] }
 0x242   : > { %v4175_v54 = vshll.u32 %v3920_v59, 16 }
 0x243   : > { %v13094_v63 = vadd.f32 %v3534_v51, %v3146_v16  ;;  %v4171_v51 = vrot.slane %v4169_v3, 4  ;;  %v4782_v16 = vunpack.c.l.b16 %v4696_v36  ;;  %v4582_v3 = vld [vmem:[#allocation2 + $0x84] sm:$0xe]  ;;  %v3921_v36 = vld [vmem:[#allocation2 + $0x90] sm:$0xf] }
 0x244   : > { %v2114_v8 = vpop.f32.mrf.mxu2  ;;  %v10584_v46 = vrot.slane %v4582_v3, 9  ;;  %v4183_v7 = vshll.u32 %v3921_v36, 16  ;;  %v3539_v11 = vpop.f32.mrf.mxu1 }
 0x245   : > { %15819 = vst [vmem:[#allocation9_spill] sm:$0xff] %v13094_v63  ;;  %v2151_v50 = vadd.f32 %v2114_v8, %v15820_v15  ;;  %v4783_v63 = vunpack.c.l.b16 %v4699_v35  ;;  %v4172_v0 = vor.u32 %v4171_v51, %v13103_v48  ;;  %v5566_v8 = vld [vmem:[#allocation2] sm:$0xf]  ;;  %v4163_v35 = vrot.slane %v4162_v34, 4 }
 0x246   : > { %v13107_v44 = vpop.f32.mrf.mxu3  ;;  %v5631_v31 = vshrl.u32 %v5566_v8, 16  ;;  %v4704_v51 = vrot.slane %v4702_v42, 4  ;;  %v4189_v34 = vshll.u32 %v13116_v37, 16 }
 0x247   : > { %v2465_v18 = vadd.f32 %v2428_v32, %v2151_v50  ;;  %v4806_v40 = vpack.c.b16 %v4783_v63, %v4782_v16  ;;  %v4177_v50 = vrot.slane %v4175_v54, 5  ;;  %v4173_v56 = vrot.slane %v4172_v0, 4 }
 0x248   : > { %v4705_v63 = vrot.slane %v3920_v59, 5  ;;  %v4180_v16 = vshrl.u32 %v3921_v36, 16  ;;  %v5633_v13 = vrot.slane %v5631_v31, 4  ;;  %v4193_v54 = vshrl.u32 %v13116_v37, 16 }
 0x249   : > { %3813 = vmatmul.bf16.gmra.mxu2 %v11386_v57  ;;  %v13110_v55 = vadd.f32 %v13071_v17, %v2465_v18  ;;  %v13114_v15 = vpop.f32.mrf.mxu0  ;;  %v5634_v57 = vshll.u32 %v5566_v8, 16  ;;  %v15823_v17 = vld [vmem:[#allocation11_spill] sm:$0xff]  ;;  %v4168_v59 = vsel %vm11724_vm2, %v4163_v35, %v13103_v48  ;;  %v4178_v3 = vsel %vm11724_vm2, %v4173_v56, %v4177_v50 }
 0x24a   : > { %v4703_v36 = vsel %vm12239_vm13, %v10584_v46, %v4702_v42  ;;  %v4185_v48 = vrot.slane %v4183_v7, 5  ;;  %v13140_v35 = vrot.slane %v4189_v34, 5  ;;  %v4195_v31 = vrot.slane %v4193_v54, 4  ;;  %v15825_v42 = vld [vmem:[#allocation12_spill] sm:$0xff] }
 0x24b   : > { %15822 = vst [vmem:[#allocation26_spill] sm:$0xff] %v13110_v55  ;;  %4500 = vmatmul.bf16.gmra.mxu3 %v4380_v33  ;;  %v5636_v55 = vrot.slane %v5634_v57, 5  ;;  %v5640_v33 = vshll.u32 %v5567_v20, 16  ;;  %v5644_v56 = vshrl.u32 %v5567_v20, 16 }
 0x24c   : > { %v2117_v32 = vpop.f32.mrf.mxu2  ;;  %4926 = vmatmul.bf16.gmra.mxu0 %v4806_v40  ;;  %v5614_v40 = vld [vmem:[#allocation2 + $0x8] sm:$0x1] }
 0x24d   : > { %v2152_v18 = vadd.f32 %v2117_v32, %v15823_v17  ;;  %v5637_v32 = vor.u32 %v5636_v55, %v5633_v13  ;;  %v4706_v13 = vsel %vm12239_vm13, %v4704_v51, %v4705_v63  ;;  %v4182_v55 = vrot.slane %v4180_v16, 4  ;;  %v3923_v17 = vld [vmem:[#allocation2 + $0x98] sm:$0x1] }
 0x24e   : > { %v13121_v8 = vpop.f32.mrf.mxu3  ;;  %v5642_v50 = vrot.slane %v5640_v33, 5  ;;  %v5650_v29 = vshll.u32 %v5614_v40, 16  ;;  %v4358_v51 = vunpack.c.l.b16 %v4168_v59  ;;  %v4359_v63 = vunpack.c.l.b16 %v4178_v3 }
 0x24f   : > { %v2466_v43 = vadd.f32 %v2431_v61, %v2152_v18  ;;  %v11443_v61 = vld [vmem:[%s15767_s4 + $0x40] sm:$0xff]  ;;  %v5638_v18 = vrot.slane %v5637_v32, 4  ;;  %v4785_v16 = vunpack.c.l.b16 %v4706_v13  ;;  %v4186_v34 = vor.u32 %v4185_v48, %v4182_v55  ;;  %v4583_v32 = vld [vmem:[#allocation2 + $0x90] sm:$0xe] }
 0x250   : > { %6150 = vmatpush.bf16.msra.mxu1 %v11443_v61  ;;  %v4196_v61 = vor.u32 %v4195_v31, %v13140_v35  ;;  %v5652_v40 = vrot.slane %v5650_v29, 5  ;;  %v4381_v3 = vpack.c.b16 %v4359_v63, %v4358_v51  ;;  %v15827_v51 = vld [vmem:[#allocation13_spill] sm:$0xff] }
 0x251   : > { %v3148_v0 = vadd.f32 %v13081_v45, %v2466_v43  ;;  %v13138_v45 = vpop.f32.mrf.mxu0  ;;  %v5643_v20 = vsel %vm11724_vm2, %v5638_v18, %v5642_v50 }
 0x252   : > { %v4197_v29 = vrot.slane %v4196_v61, 4 }
 0x253   : > { %v13136_v43 = vadd.f32 %v3539_v11, %v3148_v0  ;;  %v4784_v11 = vunpack.c.l.b16 %v4703_v36  ;;  %v5646_v0 = vrot.slane %v5644_v56, 4  ;;  %v4709_v36 = vrot.slane %v13116_v37, 5 }
 0x254   : > { %v2119_v57 = vpop.f32.mrf.mxu2  ;;  %v10585_v56 = vrot.slane %v4583_v32, 9 }
 0x255   : > { %15824 = vst [vmem:[#allocation11_spill] sm:$0xff] %v13136_v43  ;;  %v2153_v46 = vadd.f32 %v2119_v57, %v15825_v42  ;;  %v4199_v43 = vshll.u32 %v3923_v17, 16  ;;  %v5647_v33 = vor.u32 %v5646_v0, %v5642_v50  ;;  %v4807_v13 = vpack.c.b16 %v4785_v16, %v4784_v11 }
 0x256   : > { %v13144_v54 = vpop.f32.mrf.mxu3  ;;  %v4187_v57 = vrot.slane %v4186_v34, 4  ;;  %v6031_v42 = vunpack.c.l.b16 %v5643_v20  ;;  %v4711_v63 = vrot.slane %v4709_v36, 4  ;;  %v4712_v11 = vrot.slane %v3923_v17, 5  ;;  %v13166_v34 = vld [vmem:[%s15765_s2] ss:$0 sm:$0xff] }
 0x257   : > { %v2467_v7 = vadd.f32 %v13107_v44, %v2153_v46  ;;  %v3924_v44 = vld [vmem:[#allocation2 + $0x9c] sm:$0xf]  ;;  %v5648_v55 = vrot.slane %v5647_v33, 4  ;;  %v4201_v31 = vrot.slane %v4199_v43, 5  ;;  %v13155_v46 = vld [vmem:[#allocation2 + $0xa0] sm:$0xf]  ;;  %v4710_v20 = vsel %vm12239_vm13, %v10585_v56, %v4709_v36 }
 0x258   : > { %v4207_v50 = vshll.u32 %v3924_v44, 16  ;;  %v4213_v43 = vshll.u32 %v13155_v46, 16  ;;  %v4217_v0 = vshrl.u32 %v13155_v46, 16  ;;  %v4192_v17 = vsel %vm11724_vm2, %v4187_v57, %v13140_v35  ;;  %v13185_v35 = vld [vmem:[#allocation2 + $0xa4] sm:$0x1]  ;;  %v11442_v36 = vld [vmem:[%s15767_s4 + $0x38] sm:$0xff] }
 0x259   : > { %3818 = vmatmul.bf16.gmra.mxu2 %v11387_v62  ;;  %v13150_v59 = vadd.f32 %v13096_v24, %v2467_v7  ;;  %v13153_v48 = vpop.f32.mrf.mxu0  ;;  %v5653_v62 = vsel %vm11724_vm2, %v5648_v55, %v5652_v40  ;;  %v4204_v24 = vshrl.u32 %v3924_v44, 16  ;;  %v4202_v44 = vsel %vm11724_vm2, %v4197_v29, %v4201_v31 }
 0x25a   : > { %v6032_v16 = vunpack.c.l.b16 %v5653_v62  ;;  %v4209_v40 = vrot.slane %v4207_v50, 5  ;;  %v13190_v55 = vrot.slane %v4213_v43, 5  ;;  %6376 = vmatpush.bf16.msrb.mxu2 %v11442_v36  ;;  %v4361_v29 = vunpack.c.l.b16 %v4202_v44  ;;  %v13203_v44 = vld [vmem:[#allocation2 + $0xac] sm:$0xf] }
 0x25b   : > { %15826 = vst [vmem:[#allocation12_spill] sm:$0xff] %v13150_v59  ;;  %4505 = vmatmul.bf16.gmra.mxu3 %v4381_v3  ;;  %v4206_v33 = vrot.slane %v4204_v24, 4  ;;  %v4223_v50 = vshll.u32 %v13185_v35, 16 }
 0x25c   : > { %v3779_v18 = vpop.f32.mrf.mxu2  ;;  %4931 = vmatmul.bf16.gmra.mxu0 %v4807_v13  ;;  %v6063_v61 = vpack.c.b16 %v6032_v16, %v6031_v42  ;;  %v4713_v13 = vsel %vm12239_vm13, %v4711_v63, %v4712_v11  ;;  %v4360_v42 = vunpack.c.l.b16 %v4192_v17  ;;  %v11388_v63 = vld [vmem:[#allocation2 + $0x84] sm:$0xff] }
 0x25d   : > { %v3859_v37 = vadd.f32 %v3779_v18, %v15827_v51  ;;  %v4786_v18 = vunpack.c.l.b16 %v4710_v20  ;;  %v4787_v62 = vunpack.c.l.b16 %v4713_v13  ;;  %v4210_v24 = vor.u32 %v4209_v40, %v4206_v33 }
 0x25e   : > { %v13168_v32 = vpop.f32.mrf.mxu3  ;;  %6151 = vmatmul.bf16.vlgmr.msra.gmra.mxu1 %v6063_v61  ;;  %v4382_v17 = vpack.c.b16 %v4361_v29, %v4360_v42  ;;  %v4225_v40 = vrot.slane %v4223_v50, 5  ;;  %v11458_v29 = vld [vmem:[%s15767_s4 + $0xb8] sm:$0xff]  ;;  %v4719_v50 = vrot.slane %v13185_v35, 5 }
 0x25f   : > { %v4541_v7 = vadd.f32 %v13121_v8, %v3859_v37  ;;  %v13179_v8 = vld [vmem:[%s15766_s3] ss:$0 sm:$0xff]  ;;  %v4808_v20 = vpack.c.b16 %v4787_v62, %v4786_v18  ;;  %v4211_v33 = vrot.slane %v4210_v24, 4  ;;  %6754 = vmatpush.bf16.msrb.mxu3 %v11458_v29 }
 0x261   : > { %v4967_v3 = vadd.f32 %v13114_v15, %v4541_v7  ;;  %v4219_v15 = vrot.slane %v4217_v0, 4  ;;  %v13193_v56 = vpop.f32.mrf.mxu0  ;;  %v4584_v0 = vld [vmem:[#allocation2 + $0x9c] sm:$0xe]  ;;  %v4716_v7 = vrot.slane %v13155_v46, 5  ;;  %v4241_v46 = vshrl.u32 %v13203_v44, 16 }
 0x263   : > { %v5003_v57 = vmul.f32 %v13166_v34, %v4967_v3  ;;  %v4220_v11 = vor.u32 %v4219_v15, %v13190_v55  ;;  %v3927_v3 = vld [vmem:[#allocation2 + $0xa8] sm:$0xf]  ;;  %v4718_v62 = vrot.slane %v4716_v7, 4 }
 0x264   : > { %v3781_v31 = vpop.f32.mrf.mxu2  ;;  %v4228_v36 = vshrl.u32 %v3927_v3, 16  ;;  %v4231_v15 = vshll.u32 %v3927_v3, 16 }
 0x265   : > { %v5039_v51 = vadd.f32 %v13179_v8, %v5003_v57  ;;  %v3860_v37 = vadd.f32 %v3781_v31, %v12597_v2  ;;  %v4221_v57 = vrot.slane %v4220_v11, 4  ;;  %v4237_v31 = vshll.u32 %v13203_v44, 16 }
 0x266   : > { %v13201_v61 = vpop.f32.mrf.mxu3 }
 0x267   : > { %v5071_v16 = vmax.f32 %v5039_v51, 0.0  ;;  %v4542_v43 = vadd.f32 %v13144_v54, %v3860_v37  ;;  %v10586_v54 = vrot.slane %v4584_v0, 9  ;;  %v13215_v37 = vld [vmem:[#allocation2 + $0xb0] sm:$0x1]  ;;  %v4239_v11 = vrot.slane %v4237_v31, 5 }
 0x268   : > { %v4247_v58 = vshll.u32 %v13215_v37, 16 }
 0x269   : > { %v5103_v13 = vpack.c.bf16 %v5071_v16, %v5071_v16  ;;  %v4968_v2 = vadd.f32 %v13138_v45, %v4542_v43  ;;  %3823 = vmatmul.bf16.gmra.mxu2 %v11388_v63  ;;  %v13209_v18 = vpop.f32.mrf.mxu0  ;;  %v4230_v45 = vrot.slane %v4228_v36, 4  ;;  %v4233_v63 = vrot.slane %v4231_v15, 5 }
 0x26a   : > { %v4243_v16 = vrot.slane %v4241_v46, 4 }
 0x26b   : > { %v5136_v51 = vshrl.u32 %v5103_v13, 16  ;;  %v5004_v42 = vmul.f32 %v13166_v34, %v4968_v2  ;;  %v5139_v0 = vshll.u32 %v5103_v13, 16  ;;  %4510 = vmatmul.bf16.gmra.mxu3 %v4382_v17  ;;  %v4234_v59 = vor.u32 %v4233_v63, %v4230_v45 }
 0x26c   : > { %v3784_v24 = vpop.f32.mrf.mxu2  ;;  %4936 = vmatmul.bf16.gmra.mxu0 %v4808_v20  ;;  %v4244_v36 = vor.u32 %v4243_v16, %v4239_v11  ;;  %v4216_v13 = vsel %vm11724_vm2, %v4211_v33, %v13190_v55  ;;  %v4717_v17 = vsel %vm12239_vm13, %v10586_v54, %v4716_v7  ;;  %v4720_v20 = vsel %vm12239_vm13, %v4718_v62, %v4719_v50  ;;  %v4585_v55 = vld [vmem:[#allocation2 + $0xa8] sm:$0xe]  ;;  %v11490_v7 = vld [vmem:[%s15767_s4 + $0x138] sm:$0xff] }
 0x26d   : > { %v13217_v43 = vrot.slane %v5136_v51, 7  ;;  %v5040_v3 = vadd.f32 %v13179_v8, %v5004_v42  ;;  %v3861_v2 = vadd.f32 %v3784_v24, %v12627_v26  ;;  %v4226_v26 = vsel %vm11724_vm2, %v4221_v57, %v4225_v40  ;;  %v11600_v51 = vld [vmem:[#allocation2 + $0xc] sm:$0xf]  ;;  %v11482_v40 = vld [vmem:[%s15767_s4 + $0xf8] sm:$0xff]  ;;  %7750 = vmatpush.bf16.msrb.mxu1 %v11490_v7 }
 0x26e   : > { %v13227_v31 = vpop.f32.mrf.mxu3  ;;  %v4235_v46 = vrot.slane %v4234_v59, 4  ;;  %v4723_v33 = vrot.slane %v13203_v44, 5  ;;  %v4245_v59 = vrot.slane %v4244_v36, 4  ;;  %v4249_v57 = vrot.slane %v4247_v58, 5  ;;  %7068 = vmatpush.bf16.msrb.mxu0 %v11482_v40 }
 0x26f   : > { %v5141_v35 = vor.u32 %v5139_v0, %v13217_v43  ;;  %v5072_v25 = vmax.f32 %v5040_v3, 0.0  ;;  %v4543_v15 = vadd.f32 %v13168_v32, %v3861_v2  ;;  %v4363_v45 = vunpack.c.l.b16 %v4226_v26  ;;  %v15828_v2 = vld [vmem:[#allocation14_spill] sm:$0xff] }
 0x270   : > { %v4788_v44 = vunpack.c.l.b16 %v4717_v17  ;;  %v4789_v50 = vunpack.c.l.b16 %v4720_v20  ;;  %v4240_v63 = vsel %vm11724_vm2, %v4235_v46, %v4239_v11  ;;  %v10587_v16 = vrot.slane %v4585_v55, 9 }
 0x271   : > { %v5455_v32 = vsel %vm11836_vm9, %v5141_v35, %v11600_v51  ;;  %v5104_v42 = vpack.c.bf16 %v5072_v25, %v5072_v25  ;;  %v4969_v29 = vadd.f32 %v13153_v48, %v4543_v15  ;;  %v13246_v25 = vpop.f32.mrf.mxu0  ;;  %v4362_v48 = vunpack.c.l.b16 %v4216_v13  ;;  %v11389_v35 = vld [vmem:[#allocation2 + $0x90] sm:$0xff] }
 0x272   : > { %5456 = vst [vmem:[#allocation2 + $0xc] sm:$0xf] %v5455_v32  ;;  %v5142_v15 = vrot.slane %v13217_v43, 4  ;;  %v5458_v13 = vld [vmem:[#allocation2 + $0x14] sm:$0x1]  ;;  %v4250_v26 = vsel %vm11724_vm2, %v4245_v59, %v4249_v57  ;;  %v4725_v51 = vrot.slane %v4723_v33, 4  ;;  %v4809_v55 = vpack.c.b16 %v4789_v50, %v4788_v44 }
 0x273   : > { %v5144_v54 = vshrl.u32 %v5104_v42, 16  ;;  %v5005_v62 = vmul.f32 %v13166_v34, %v4969_v29  ;;  %v5147_v3 = vshll.u32 %v5104_v42, 16  ;;  %v4726_v17 = vrot.slane %v13215_v37, 5 }
 0x274   : > { %v3786_v24 = vpop.f32.mrf.mxu2  ;;  %v4383_v29 = vpack.c.b16 %v4363_v45, %v4362_v48  ;;  %v13259_v40 = vunpack.c.l.b16 %v4240_v63  ;;  %v4724_v43 = vsel %vm12239_vm13, %v10587_v16, %v4723_v33  ;;  %v13268_v48 = vunpack.c.l.b16 %v4250_v26  ;;  %v3930_v33 = vld [vmem:[#allocation2 + $0xb4] sm:$0xf]  ;;  %v15829_v26 = vld [vmem:[#allocation15_spill] sm:$0xff] }
 0x275   : > { %v5146_v0 = vrot.slane %v5144_v54, 7  ;;  %v5041_v58 = vadd.f32 %v13179_v8, %v5005_v62  ;;  %v3862_v36 = vadd.f32 %v3786_v24, %v15828_v2  ;;  %v4727_v45 = vsel %vm12239_vm13, %v4725_v51, %v4726_v17 }
 0x276   : > { %v13257_v42 = vpop.f32.mrf.mxu3  ;;  %v4790_v16 = vunpack.c.l.b16 %v4724_v43  ;;  %v4252_v2 = vshrl.u32 %v3930_v33, 16 }
 0x277   : > { %v5149_v20 = vor.u32 %v5147_v3, %v5146_v0  ;;  %v5151_v32 = vrot.slane %v5146_v0, 4  ;;  %v5073_v11 = vmax.f32 %v5041_v58, 0.0  ;;  %v4544_v46 = vadd.f32 %v13201_v61, %v3862_v36 }
 0x278   : > { %v4255_v36 = vshll.u32 %v3930_v33, 16 }
 0x279   : > { %v5150_v7 = vsel %vm11827_vm8, %v5142_v15, %v5149_v20  ;;  %v5459_v37 = vsel %vm11843_vm10, %v5151_v32, %v5458_v13  ;;  %v5105_v59 = vpack.c.bf16 %v5073_v11, %v5073_v11  ;;  %v4970_v57 = vadd.f32 %v13193_v56, %v4544_v46  ;;  %3828 = vmatmul.bf16.gmra.mxu2 %v11389_v35  ;;  %v5568_v61 = vld [vmem:[#allocation2 + $0xc] sm:$0xf]  ;;  %v13273_v63 = vpop.f32.mrf.mxu0  ;;  %v13275_v56 = vld [vmem:[#allocation2 + $0xb8] sm:$0xf]  ;;  %v13282_v32 = vld [vmem:[#allocation2 + $0xbc] sm:$0x1] }
 0x27a   : > { %5457 = vst [vmem:[#allocation2 + $0x10] sm:$0xf] %v5150_v7  ;;  %v5655_v54 = vshrl.u32 %v5568_v61, 16  ;;  %v5658_v62 = vshll.u32 %v5568_v61, 16  ;;  %v5461_v15 = vld [vmem:[#allocation2 + $0x18] sm:$0xf]  ;;  %v4791_v20 = vunpack.c.l.b16 %v4727_v45 }
 0x27b   : > { %5460 = vst [vmem:[#allocation2 + $0x14] sm:$0x1] %v5459_v37  ;;  %v5153_v24 = vshrl.u32 %v5105_v59, 16  ;;  %v5156_v44 = vshll.u32 %v5105_v59, 16  ;;  %v5006_v50 = vmul.f32 %v13166_v34, %v4970_v57  ;;  %v4261_v17 = vshll.u32 %v13275_v56, 16  ;;  %4515 = vmatmul.bf16.gmra.mxu3 %v4383_v29 }
 0x27c   : > { %v3789_v0 = vpop.f32.mrf.mxu2  ;;  %v5657_v3 = vrot.slane %v5655_v54, 4  ;;  %v5660_v58 = vrot.slane %v5658_v62, 5  ;;  %4941 = vmatmul.bf16.gmra.mxu0 %v4809_v55  ;;  %v4254_v11 = vrot.slane %v4252_v2, 4  ;;  %v4257_v46 = vrot.slane %v4255_v36, 5 }
 0x27d   : > { %v13277_v35 = vrot.slane %v5153_v24, 7  ;;  %v5042_v13 = vadd.f32 %v13179_v8, %v5006_v50  ;;  %v3863_v51 = vadd.f32 %v3789_v0, %v15829_v26  ;;  %v4265_v43 = vshrl.u32 %v13275_v56, 16 }
 0x27e   : > { %v5661_v57 = vor.u32 %v5660_v58, %v5657_v3  ;;  %v13287_v61 = vpop.f32.mrf.mxu3  ;;  %v4258_v29 = vor.u32 %v4257_v46, %v4254_v11  ;;  %v4263_v55 = vrot.slane %v4261_v17, 5  ;;  %v13301_v58 = vpack.c.b16 %v4791_v20, %v4790_v16 }
 0x27f   : > { %v5158_v7 = vor.u32 %v5156_v44, %v13277_v35  ;;  %v5074_v37 = vmax.f32 %v5042_v13, 0.0  ;;  %v4545_v59 = vadd.f32 %v13227_v31, %v3863_v51  ;;  %v4267_v62 = vrot.slane %v4265_v43, 4  ;;  %v11441_v51 = vld [vmem:[%s15767_s4 + $0x30] sm:$0xff] }
 0x280   : > { %v4271_v44 = vshll.u32 %v13282_v32, 16  ;;  %v4259_v43 = vrot.slane %v4258_v29, 4  ;;  %6377 = vmatpush.bf16.msrb.mxu2 %v11441_v51 }
 0x281   : > { %v5462_v45 = vsel %vm11836_vm9, %v5158_v7, %v5461_v15  ;;  %v5106_v33 = vpack.c.bf16 %v5074_v37, %v5074_v37  ;;  %v4971_v24 = vadd.f32 %v13209_v18, %v4545_v59  ;;  %v13294_v50 = vld [vmem:[#allocation2 + $0x10] sm:$0xf]  ;;  %v4268_v2 = vor.u32 %v4267_v62, %v4263_v55  ;;  %v13304_v13 = vpop.f32.mrf.mxu0  ;;  %v11390_v62 = vld [vmem:[#allocation2 + $0x9c] sm:$0xff] }
 0x282   : > { %5463 = vst [vmem:[#allocation2 + $0x18] sm:$0xf] %v5462_v45  ;;  %v13297_v31 = vld [vmem:[#allocation2 + $0x14] sm:$0x1]  ;;  %v5664_v0 = vshll.u32 %v13294_v50, 16  ;;  %v5668_v3 = vshrl.u32 %v13294_v50, 16 }
 0x283   : > { %v5161_v36 = vshrl.u32 %v5106_v33, 16  ;;  %v5007_v15 = vmul.f32 %v13166_v34, %v4971_v24  ;;  %v5662_v18 = vrot.slane %v5661_v57, 4  ;;  %v5674_v26 = vshll.u32 %v13297_v31, 16  ;;  %v5465_v45 = vld [vmem:[#allocation2 + $0x20] sm:$0x1] }
 0x284   : > { %v3791_v17 = vpop.f32.mrf.mxu2  ;;  %v5666_v11 = vrot.slane %v5664_v0, 5  ;;  %v5670_v46 = vrot.slane %v5668_v3, 4  ;;  %v4269_v7 = vrot.slane %v4268_v2, 4  ;;  %v5164_v20 = vshll.u32 %v5106_v33, 16 }
 0x285   : > { %v5163_v16 = vrot.slane %v5161_v36, 7  ;;  %v5043_v37 = vadd.f32 %v13179_v8, %v5007_v15  ;;  %v3864_v59 = vadd.f32 %v3791_v17, %v12705_v38  ;;  %v5159_v57 = vrot.slane %v13277_v35, 4 }
 0x286   : > { %v5667_v24 = vsel %vm11724_vm2, %v5662_v18, %v5666_v11  ;;  %v5671_v54 = vor.u32 %v5670_v46, %v5666_v11  ;;  %v4273_v27 = vrot.slane %v4271_v44, 5  ;;  %v5676_v36 = vrot.slane %v5674_v26, 5  ;;  %v13316_v15 = vpop.f32.mrf.mxu3 }
 0x287   : > { %v5166_v0 = vor.u32 %v5164_v20, %v5163_v16  ;;  %v5168_v3 = vrot.slane %v5163_v16, 4  ;;  %v5075_v29 = vmax.f32 %v5043_v37, 0.0  ;;  %v4546_v2 = vadd.f32 %v13257_v42, %v3864_v59  ;;  %v4586_v20 = vld [vmem:[#allocation2 + $0xb4] sm:$0xe] }
 0x288   : > { %v5672_v33 = vrot.slane %v5671_v54, 4  ;;  %v4264_v38 = vsel %vm11724_vm2, %v4259_v43, %v4263_v55  ;;  %v4274_v35 = vsel %vm11724_vm2, %v4269_v7, %v4273_v27  ;;  %v6033_v26 = vunpack.c.l.b16 %v5667_v24 }
 0x289   : > { %v5167_v18 = vsel %vm11827_vm8, %v5159_v57, %v5166_v0  ;;  %v5466_v44 = vsel %vm11843_vm10, %v5168_v3, %v5465_v45  ;;  %v5107_v51 = vpack.c.bf16 %v5075_v29, %v5075_v29  ;;  %v4972_v17 = vadd.f32 %v13246_v25, %v4546_v2  ;;  %3833 = vmatmul.bf16.gmra.mxu2 %v11390_v62  ;;  %v5570_v42 = vld [vmem:[#allocation2 + $0x18] sm:$0xf]  ;;  %v13330_v7 = vpop.f32.mrf.mxu0  ;;  %v11457_v25 = vld [vmem:[%s15767_s4 + $0xb0] sm:$0xff]  ;;  %v3933_v2 = vld [vmem:[#allocation2 + $0xc0] sm:$0xf] }
 0x28a   : > { %5464 = vst [vmem:[#allocation2 + $0x1c] sm:$0xf] %v5167_v18  ;;  %v5677_v54 = vsel %vm11724_vm2, %v5672_v33, %v5676_v36  ;;  %v5679_v55 = vshrl.u32 %v5570_v42, 16  ;;  %v5682_v11 = vshll.u32 %v5570_v42, 16  ;;  %v13335_v16 = vunpack.c.l.b16 %v4264_v38  ;;  %6755 = vmatpush.bf16.msrb.mxu3 %v11457_v25  ;;  %v5468_v33 = vld [vmem:[#allocation2 + $0x24] sm:$0xf] }
 0x28b   : > { %5467 = vst [vmem:[#allocation2 + $0x20] sm:$0x1] %v5466_v44  ;;  %v5170_v27 = vshrl.u32 %v5107_v51, 16  ;;  %v5008_v46 = vmul.f32 %v13166_v34, %v4972_v17  ;;  %v6034_v43 = vunpack.c.l.b16 %v5677_v54  ;;  %v5173_v37 = vshll.u32 %v5107_v51, 16  ;;  %v15831_v42 = vld [vmem:[#allocation16_spill] sm:$0xff] }
 0x28c   : > { %v3794_v59 = vpop.f32.mrf.mxu2  ;;  %v5681_v62 = vrot.slane %v5679_v55, 4  ;;  %v5684_v57 = vrot.slane %v5682_v11, 5  ;;  %v13337_v45 = vunpack.c.l.b16 %v4274_v35  ;;  %v15830_v36 = vpack.c.b16 %v13268_v48, %v13259_v40  ;;  %4946 = vmatmul.bf16.gmra.mxu0 %v13301_v58 }
 0x28d   : > { %v13339_v24 = vrot.slane %v5170_v27, 7  ;;  %v5044_v0 = vadd.f32 %v13179_v8, %v5008_v46  ;;  %v3865_v3 = vadd.f32 %v3794_v59, %v12729_v10  ;;  %v6064_v29 = vpack.c.b16 %v6034_v43, %v6033_v26 }
 0x28e   : > { %4520 = vmatmul.bf16.gmra.mxu3 %v15830_v36  ;;  %v5685_v38 = vor.u32 %v5684_v57, %v5681_v62  ;;  %v10588_v18 = vrot.slane %v4586_v20, 9  ;;  %v4730_v35 = vrot.slane %v13275_v56, 5  ;;  %v4733_v10 = vrot.slane %v13282_v32, 5  ;;  %v13355_v40 = vpop.f32.mrf.mxu3  ;;  %v11489_v62 = vld [vmem:[%s15767_s4 + $0x130] sm:$0xff] }
 0x28f   : > { %v5175_v44 = vor.u32 %v5173_v37, %v13339_v24  ;;  %v5076_v51 = vmax.f32 %v5044_v0, 0.0  ;;  %v4547_v17 = vadd.f32 %v13287_v61, %v3865_v3  ;;  %6156 = vmatmul.bf16.gmra.mxu1 %v6064_v29  ;;  %v13353_v54 = vadd.f32 %v15831_v42, %v12803_v60  ;;  %v11481_v60 = vld [vmem:[%s15767_s4 + $0xf0] sm:$0xff] }
 0x290   : > { %v4732_v48 = vrot.slane %v4730_v35, 4  ;;  %v4276_v58 = vshrl.u32 %v3933_v2, 16  ;;  %v4385_v61 = vpack.c.b16 %v13337_v45, %v13335_v16  ;;  %v5176_v32 = vrot.slane %v13339_v24, 4  ;;  %7069 = vmatpush.bf16.msrb.mxu0 %v11481_v60  ;;  %7751 = vmatpush.bf16.msrb.mxu1 %v11489_v62  ;;  %v11480_v16 = vld [vmem:[%s15767_s4 + $0xe8] sm:$0xff] }
 0x291   : > { %v5469_v26 = vsel %vm11836_vm9, %v5175_v44, %v5468_v33  ;;  %v5108_v56 = vpack.c.bf16 %v5076_v51, %v5076_v51  ;;  %v4973_v55 = vadd.f32 %v13273_v63, %v4547_v17  ;;  %v13360_v11 = vld [vmem:[#allocation2 + $0x1c] sm:$0xf]  ;;  %v13368_v27 = vrot.slane %v5685_v38, 4  ;;  %v13374_v20 = vpop.f32.mrf.mxu0  ;;  %v13386_v51 = vld [vmem:[#allocation2 + $0xc4] sm:$0xf] }
 0x292   : > { %5470 = vst [vmem:[#allocation2 + $0x24] sm:$0xf] %v5469_v26  ;;  %v5688_v46 = vshll.u32 %v13360_v11, 16  ;;  %v4731_v43 = vsel %vm12239_vm13, %v10588_v18, %v4730_v35  ;;  %v13376_v37 = vld [vmem:[#allocation2 + $0x20] sm:$0x1]  ;;  %v5692_v59 = vshrl.u32 %v13360_v11, 16  ;;  %v4734_v57 = vsel %vm12239_vm13, %v4732_v48, %v4733_v10 }
 0x293   : > { %v5178_v63 = vshrl.u32 %v5108_v56, 16  ;;  %v5009_v25 = vmul.f32 %v13166_v34, %v4973_v55  ;;  %v5181_v24 = vshll.u32 %v5108_v56, 16  ;;  %v4278_v29 = vrot.slane %v4276_v58, 4  ;;  %v11391_v35 = vld [vmem:[#allocation2 + $0xa8] sm:$0xff] }
 0x294   : > { %v3796_v0 = vpop.f32.mrf.mxu2  ;;  %v5690_v3 = vrot.slane %v5688_v46, 5  ;;  %v4279_v33 = vshll.u32 %v3933_v2, 16  ;;  %v5694_v44 = vrot.slane %v5692_v59, 4  ;;  %v5472_v17 = vld [vmem:[#allocation2 + $0x2c] sm:$0x1]  ;;  %v5698_v42 = vshll.u32 %v13376_v37, 16  ;;  %7070 = vmatpush.bf16.msrb.mxu0 %v11480_v16 }
 0x295   : > { %v5180_v36 = vrot.slane %v5178_v63, 7  ;;  %v5045_v38 = vadd.f32 %v13179_v8, %v5009_v25  ;;  %v3866_v18 = vadd.f32 %v3796_v0, %v12755_v49  ;;  %v4792_v10 = vunpack.c.l.b16 %v4731_v43  ;;  %v5479_v16 = vld [vmem:[#allocation2 + $0x38] sm:$0x1] }
 0x296   : > { %v4793_v48 = vunpack.c.l.b16 %v4734_v57  ;;  %v4281_v26 = vrot.slane %v4279_v33, 5  ;;  %v5691_v49 = vsel %vm11724_vm2, %v13368_v27, %v5690_v3  ;;  %v5695_v60 = vor.u32 %v5694_v44, %v5690_v3  ;;  %v13393_v46 = vpop.f32.mrf.mxu3 }
 0x297   : > { %v5183_v56 = vor.u32 %v5181_v24, %v5180_v36  ;;  %v5185_v55 = vrot.slane %v5180_v36, 4  ;;  %v5077_v58 = vmax.f32 %v5045_v38, 0.0  ;;  %v4548_v2 = vadd.f32 %v13316_v15, %v3866_v18  ;;  %v13401_v24 = vld [vmem:[#allocation2 + $0xc8] sm:$0x1] }
 0x298   : > { %v4282_v63 = vor.u32 %v4281_v26, %v4278_v29  ;;  %v4285_v25 = vshll.u32 %v13386_v51, 16  ;;  %v5696_v27 = vrot.slane %v5695_v60, 4  ;;  %v5700_v0 = vrot.slane %v5698_v42, 5 }
 0x299   : > { %v5184_v43 = vsel %vm11827_vm8, %v5176_v32, %v5183_v56  ;;  %v5473_v59 = vsel %vm11843_vm10, %v5185_v55, %v5472_v17  ;;  %v5109_v62 = vpack.c.bf16 %v5077_v58, %v5077_v58  ;;  %v4974_v57 = vadd.f32 %v13304_v13, %v4548_v2  ;;  %3838 = vmatmul.bf16.gmra.mxu2 %v11391_v35  ;;  %v5572_v15 = vld [vmem:[#allocation2 + $0x24] sm:$0xf]  ;;  %v13404_v38 = vpop.f32.mrf.mxu0  ;;  %v5475_v55 = vld [vmem:[#allocation2 + $0x30] sm:$0xf] }
 0x29a   : > { %5471 = vst [vmem:[#allocation2 + $0x28] sm:$0xf] %v5184_v43  ;;  %v4811_v3 = vpack.c.b16 %v4793_v48, %v4792_v10  ;;  %v5703_v29 = vshrl.u32 %v5572_v15, 16  ;;  %v5706_v18 = vshll.u32 %v5572_v15, 16  ;;  %v5701_v13 = vsel %vm11724_vm2, %v5696_v27, %v5700_v0 }
 0x29b   : > { %5474 = vst [vmem:[#allocation2 + $0x2c] sm:$0x1] %v5473_v59  ;;  %v5187_v33 = vshrl.u32 %v5109_v62, 16  ;;  %v5190_v36 = vshll.u32 %v5109_v62, 16  ;;  %v5010_v32 = vmul.f32 %v13166_v34, %v4974_v57  ;;  %v4283_v17 = vrot.slane %v4282_v63, 4 }
 0x29c   : > { %v3799_v44 = vpop.f32.mrf.mxu2  ;;  %v5705_v35 = vrot.slane %v5703_v29, 4  ;;  %v4287_v26 = vrot.slane %v4285_v25, 5  ;;  %v6036_v48 = vunpack.c.l.b16 %v5701_v13  ;;  %v6035_v58 = vunpack.c.l.b16 %v5691_v49  ;;  %4951 = vmatmul.bf16.gmra.mxu0 %v4811_v3 }
 0x29d   : > { %v13408_v56 = vrot.slane %v5187_v33, 7  ;;  %v5046_v42 = vadd.f32 %v13179_v8, %v5010_v32  ;;  %v3867_v10 = vadd.f32 %v3799_v44, %v12789_v39  ;;  %v5708_v2 = vrot.slane %v5706_v18, 5  ;;  %v11456_v39 = vld [vmem:[%s15767_s4 + $0xa8] sm:$0xff]  ;;  %v4587_v33 = vld [vmem:[#allocation2 + $0xc0] sm:$0xe] }
 0x29e   : > { %4525 = vmatmul.bf16.gmra.mxu3 %v4385_v61  ;;  %v4289_v60 = vshrl.u32 %v13386_v51, 16  ;;  %v4295_v63 = vshll.u32 %v13401_v24, 16  ;;  %v4288_v49 = vsel %vm11724_vm2, %v4283_v17, %v4287_v26  ;;  %v6065_v61 = vpack.c.b16 %v6036_v48, %v6035_v58  ;;  %v13428_v62 = vpop.f32.mrf.mxu3  ;;  %v11455_v48 = vld [vmem:[%s15767_s4 + $0xa0] sm:$0xff] }
 0x29f   : > { %v5192_v25 = vor.u32 %v5190_v36, %v13408_v56  ;;  %v5078_v43 = vmax.f32 %v5046_v42, 0.0  ;;  %v4549_v59 = vadd.f32 %v13355_v40, %v3867_v10  ;;  %v5193_v45 = vrot.slane %v13408_v56, 4  ;;  %6756 = vmatpush.bf16.msrb.mxu3 %v11456_v39  ;;  %v11440_v10 = vld [vmem:[%s15767_s4 + $0x28] sm:$0xff]  ;;  %v11392_v39 = vld [vmem:[#allocation2 + $0xb4] sm:$0xff] }
 0x2a0   : > { %v5709_v57 = vor.u32 %v5708_v2, %v5705_v35  ;;  %v4291_v15 = vrot.slane %v4289_v60, 4  ;;  %v4297_v29 = vrot.slane %v4295_v63, 5  ;;  %6161 = vmatmul.bf16.gmra.mxu1 %v6065_v61  ;;  %v13438_v13 = vunpack.c.l.b16 %v4288_v49  ;;  %6378 = vmatpush.bf16.msrb.mxu2 %v11440_v10 }
 0x2a1   : > { %v5476_v40 = vsel %vm11836_vm9, %v5192_v25, %v5475_v55  ;;  %v5110_v27 = vpack.c.bf16 %v5078_v43, %v5078_v43  ;;  %v4975_v0 = vadd.f32 %v13330_v7, %v4549_v59  ;;  %v13433_v3 = vld [vmem:[#allocation2 + $0x28] sm:$0xf]  ;;  %v13441_v56 = vpop.f32.mrf.mxu0  ;;  %v10589_v63 = vrot.slane %v4587_v33, 9 }
 0x2a2   : > { %5477 = vst [vmem:[#allocation2 + $0x30] sm:$0xf] %v5476_v40  ;;  %v13435_v36 = vld [vmem:[#allocation2 + $0x2c] sm:$0x1]  ;;  %v5710_v32 = vrot.slane %v5709_v57, 4  ;;  %v5712_v18 = vshll.u32 %v13433_v3, 16  ;;  %v4292_v44 = vor.u32 %v4291_v15, %v4287_v26 }
 0x2a3   : > { %v5195_v35 = vshrl.u32 %v5110_v27, 16  ;;  %v5198_v17 = vshll.u32 %v5110_v27, 16  ;;  %v5011_v7 = vmul.f32 %v13166_v34, %v4975_v0  ;;  %v5716_v42 = vshrl.u32 %v13433_v3, 16  ;;  %v11479_v26 = vld [vmem:[%s15767_s4 + $0xe0] sm:$0xff]  ;;  %6757 = vmatpush.bf16.msrb.mxu3 %v11455_v48 }
 0x2a4   : > { %v3801_v55 = vpop.f32.mrf.mxu2  ;;  %v5714_v58 = vrot.slane %v5712_v18, 5  ;;  %v5722_v2 = vshll.u32 %v13435_v36, 16  ;;  %v4293_v60 = vrot.slane %v4292_v44, 4  ;;  %v4737_v40 = vrot.slane %v13386_v51, 5  ;;  %7071 = vmatpush.bf16.msrb.mxu0 %v11479_v26  ;;  %v11439_v18 = vld [vmem:[%s15767_s4 + $0x20] sm:$0xff] }
 0x2a5   : > { %v5197_v25 = vrot.slane %v5195_v35, 7  ;;  %v5047_v43 = vadd.f32 %v13179_v8, %v5011_v7  ;;  %v3868_v59 = vadd.f32 %v3801_v55, %v13353_v54  ;;  %v5718_v49 = vrot.slane %v5716_v42, 4  ;;  %v13484_v55 = vld [vmem:[#allocation2 + $0xcc] sm:$0xf]  ;;  %6379 = vmatpush.bf16.msrb.mxu2 %v11439_v18 }
 0x2a6   : > { %v5715_v61 = vsel %vm11724_vm2, %v5710_v32, %v5714_v58  ;;  %v5724_v57 = vrot.slane %v5722_v2, 5  ;;  %v4298_v15 = vsel %vm11724_vm2, %v4293_v60, %v4297_v29  ;;  %v11454_v32 = vld [vmem:[%s15767_s4 + $0x98] sm:$0xff]  ;;  %v13473_v35 = vpop.f32.mrf.mxu3  ;;  %v4739_v60 = vrot.slane %v4737_v40, 4 }
 0x2a7   : > { %v5200_v27 = vor.u32 %v5198_v17, %v5197_v25  ;;  %v5202_v0 = vrot.slane %v5197_v25, 4  ;;  %v5079_v33 = vmax.f32 %v5047_v43, 0.0  ;;  %v4550_v54 = vadd.f32 %v13393_v46, %v3868_v59  ;;  %v11478_v29 = vld [vmem:[%s15767_s4 + $0xd8] sm:$0xff]  ;;  %6758 = vmatpush.bf16.msrb.mxu3 %v11454_v32 }
 0x2a8   : > { %v5719_v44 = vor.u32 %v5718_v49, %v5714_v58  ;;  %v13471_v51 = vunpack.c.l.b16 %v5715_v61  ;;  %v4369_v17 = vunpack.c.l.b16 %v4298_v15  ;;  %v13477_v46 = vsel %vm12239_vm13, %v10589_v63, %v4737_v40  ;;  %7072 = vmatpush.bf16.msrb.mxu0 %v11478_v29  ;;  %v11438_v15 = vld [vmem:[%s15767_s4 + $0x18] sm:$0xff]  ;;  %v11453_v40 = vld [vmem:[%s15767_s4 + $0x90] sm:$0xff] }
 0x2a9   : > { %v5201_v7 = vsel %vm11827_vm8, %v5193_v45, %v5200_v27  ;;  %v5480_v42 = vsel %vm11843_vm10, %v5202_v0, %v5479_v16  ;;  %v5111_v10 = vpack.c.bf16 %v5079_v33, %v5079_v33  ;;  %v4976_v48 = vadd.f32 %v13374_v20, %v4550_v54  ;;  %3843 = vmatmul.bf16.gmra.mxu2 %v11392_v39  ;;  %v5574_v26 = vld [vmem:[#allocation2 + $0x30] sm:$0xf]  ;;  %v13489_v59 = vpop.f32.mrf.mxu0  ;;  %v5482_v0 = vld [vmem:[#allocation2 + $0x3c] sm:$0xf] }
 0x2aa   : > { %5478 = vst [vmem:[#allocation2 + $0x34] sm:$0xf] %v5201_v7  ;;  %v5720_v58 = vrot.slane %v5719_v44, 4  ;;  %v4386_v2 = vpack.c.b16 %v4369_v17, %v13438_v13  ;;  %v4794_v63 = vunpack.c.l.b16 %v13477_v46  ;;  %v4740_v20 = vrot.slane %v13401_v24, 5  ;;  %v11477_v24 = vld [vmem:[%s15767_s4 + $0xd0] sm:$0xff]  ;;  %6380 = vmatpush.bf16.msrb.mxu2 %v11438_v15 }
 0x2ab   : > { %5481 = vst [vmem:[#allocation2 + $0x38] sm:$0x1] %v5480_v42  ;;  %v5204_v45 = vshrl.u32 %v5111_v10, 16  ;;  %v5207_v25 = vshll.u32 %v5111_v10, 16  ;;  %v5012_v43 = vmul.f32 %v13166_v34, %v4976_v48  ;;  %v5727_v13 = vshrl.u32 %v5574_v26, 16  ;;  %6759 = vmatpush.bf16.msrb.mxu3 %v11453_v40 }
 0x2ac   : > { %v3804_v39 = vpop.f32.mrf.mxu2  ;;  %v5725_v49 = vsel %vm11724_vm2, %v5720_v58, %v5724_v57  ;;  %v5730_v16 = vshll.u32 %v5574_v26, 16  ;;  %v4300_v61 = vshrl.u32 %v13484_v55, 16  ;;  %v4741_v18 = vsel %vm12239_vm13, %v4739_v60, %v4740_v20  ;;  %v13510_v44 = vld [vmem:[#allocation2 + $0xd0] sm:$0xf]  ;;  %7073 = vmatpush.bf16.msrb.mxu0 %v11477_v24 }
 0x2ad   : > { %v13504_v27 = vrot.slane %v5204_v45, 7  ;;  %v5048_v57 = vadd.f32 %v13179_v8, %v5012_v43  ;;  %v3869_v33 = vadd.f32 %v3804_v39, %v12826_v41  ;;  %v6038_v54 = vunpack.c.l.b16 %v5725_v49  ;;  %v11437_v41 = vld [vmem:[%s15767_s4 + $0x10] sm:$0xff] }
 0x2ae   : > { %4530 = vmatmul.bf16.gmra.mxu3 %v4386_v2  ;;  %v5729_v32 = vrot.slane %v5727_v13, 4  ;;  %v5732_v29 = vrot.slane %v5730_v16, 5  ;;  %v4302_v17 = vrot.slane %v4300_v61, 4  ;;  %v4795_v26 = vunpack.c.l.b16 %v4741_v18  ;;  %v13519_v58 = vpop.f32.mrf.mxu3  ;;  %6381 = vmatpush.bf16.msrb.mxu2 %v11437_v41 }
 0x2af   : > { %v5209_v46 = vor.u32 %v5207_v25, %v13504_v27  ;;  %v5210_v7 = vrot.slane %v13504_v27, 4  ;;  %v5080_v42 = vmax.f32 %v5048_v57, 0.0  ;;  %v4551_v10 = vadd.f32 %v13428_v62, %v3869_v33  ;;  %v11452_v33 = vld [vmem:[%s15767_s4 + $0x88] sm:$0xff] }
 0x2b0   : > { %v6066_v48 = vpack.c.b16 %v6038_v54, %v13471_v51  ;;  %v5733_v2 = vor.u32 %v5732_v29, %v5729_v32  ;;  %v4303_v60 = vshll.u32 %v13484_v55, 16  ;;  %v4309_v20 = vshll.u32 %v13510_v44, 16  ;;  %v11393_v29 = vld [vmem:[#allocation2 + $0xc0] sm:$0xff]  ;;  %6760 = vmatpush.bf16.msrb.mxu3 %v11452_v33 }
 0x2b1   : > { %v5483_v45 = vsel %vm11836_vm9, %v5209_v46, %v5482_v0  ;;  %v5112_v25 = vpack.c.bf16 %v5080_v42, %v5080_v42  ;;  %v4977_v62 = vadd.f32 %v13404_v38, %v4551_v10  ;;  %v13525_v43 = vld [vmem:[#allocation2 + $0x34] sm:$0xf]  ;;  %v3555_v39 = vadd.f32 %v12759_v52, %v12838_v53  ;;  %v13534_v15 = vpop.f32.mrf.mxu0  ;;  %v11488_v52 = vld [vmem:[%s15767_s4 + $0x128] sm:$0xff]  ;;  %v5486_v42 = vld [vmem:[#allocation2 + $0x44] sm:$0x1] }
 0x2b2   : > { %5484 = vst [vmem:[#allocation2 + $0x3c] sm:$0xf] %v5483_v45  ;;  %6166 = vmatmul.bf16.gmra.mxu1 %v6066_v48  ;;  %v4812_v51 = vpack.c.b16 %v4795_v26, %v4794_v63  ;;  %v13530_v49 = vld [vmem:[#allocation2 + $0x38] sm:$0x1]  ;;  %v5734_v13 = vrot.slane %v5733_v2, 4  ;;  %v5736_v55 = vshll.u32 %v13525_v43, 16 }
 0x2b3   : > { %v5212_v16 = vshrl.u32 %v5112_v25, 16  ;;  %v5215_v61 = vshll.u32 %v5112_v25, 16  ;;  %v5013_v38 = vmul.f32 %v13166_v34, %v4977_v62  ;;  %v5740_v40 = vshrl.u32 %v13525_v43, 16  ;;  %v11476_v34 = vld [vmem:[%s15767_s4 + $0xc8] sm:$0xff]  ;;  %7752 = vmatpush.bf16.msrb.mxu1 %v11488_v52  ;;  %v13578_v33 = vld [vmem:[%s15765_s2] ss:$0 sm:$0xff] }
 0x2b4   : > { %v3806_v53 = vpop.f32.mrf.mxu2  ;;  %4956 = vmatmul.bf16.gmra.mxu0 %v4812_v51  ;;  %v5738_v63 = vrot.slane %v5736_v55, 5  ;;  %v5746_v24 = vshll.u32 %v13530_v49, 16  ;;  %v4305_v0 = vrot.slane %v4303_v60, 5  ;;  %v4311_v57 = vrot.slane %v4309_v20, 5  ;;  %v4588_v52 = vld [vmem:[#allocation2 + $0xcc] sm:$0xe] }
 0x2b5   : > { %v5214_v54 = vrot.slane %v5212_v16, 7  ;;  %v5049_v18 = vadd.f32 %v13179_v8, %v5013_v38  ;;  %v3870_v32 = vadd.f32 %v3806_v53, %v3555_v39  ;;  %v5742_v46 = vrot.slane %v5740_v40, 4  ;;  %7074 = vmatpush.bf16.msrb.mxu0 %v11476_v34  ;;  %v13552_v8 = vld [vmem:[#allocation2 + $0xd4] sm:$0x1] }
 0x2b6   : > { %v5739_v10 = vsel %vm11724_vm2, %v5734_v13, %v5738_v63  ;;  %v5748_v41 = vrot.slane %v5746_v24, 5  ;;  %v4306_v48 = vor.u32 %v4305_v0, %v4302_v17  ;;  %v4313_v26 = vshrl.u32 %v13510_v44, 16  ;;  %v13554_v39 = vpop.f32.mrf.mxu3  ;;  %v11436_v17 = vld [vmem:[%s15767_s4 + $0x8] sm:$0xff]  ;;  %v11451_v13 = vld [vmem:[%s15767_s4 + $0x80] sm:$0xff] }
 0x2b7   : > { %v5217_v2 = vor.u32 %v5215_v61, %v5214_v54  ;;  %v5219_v60 = vrot.slane %v5214_v54, 4  ;;  %v5081_v45 = vmax.f32 %v5049_v18, 0.0  ;;  %v4552_v25 = vadd.f32 %v13473_v35, %v3870_v32  ;;  %v11475_v35 = vld [vmem:[%s15767_s4 + $0xc0] sm:$0xff]  ;;  %6382 = vmatpush.bf16.msrb.mxu2 %v11436_v17  ;;  %6761 = vmatpush.bf16.msrb.mxu3 %v11451_v13 }
 0x2b8   : > { %v5743_v62 = vor.u32 %v5742_v46, %v5738_v63  ;;  %v6039_v20 = vunpack.c.l.b16 %v5739_v10  ;;  %v4307_v51 = vrot.slane %v4306_v48, 4  ;;  %v4315_v55 = vrot.slane %v4313_v26, 4  ;;  %v11435_v10 = vld [vmem:[%s15767_s4] sm:$0xff] }
 0x2b9   : > { %v5218_v16 = vsel %vm11827_vm8, %v5210_v7, %v5217_v2  ;;  %v5487_v61 = vsel %vm11843_vm10, %v5219_v60, %v5486_v42  ;;  %v5113_v38 = vpack.c.bf16 %v5081_v45, %v5081_v45  ;;  %v4978_v40 = vadd.f32 %v13441_v56, %v4552_v25  ;;  %3848 = vmatmul.bf16.gmra.mxu2 %v11393_v29  ;;  %v13581_v34 = vpop.f32.mrf.mxu0  ;;  %v5576_v18 = vld [vmem:[#allocation2 + $0x3c] sm:$0xf]  ;;  %v13593_v26 = vld [vmem:[%s15766_s3] ss:$0 sm:$0xff] }
 0x2ba   : > { %5485 = vst [vmem:[#allocation2 + $0x40] sm:$0xf] %v5218_v16  ;;  %v5744_v53 = vrot.slane %v5743_v62, 4  ;;  %v4312_v63 = vsel %vm11724_vm2, %v4307_v51, %v4311_v57  ;;  %v4316_v24 = vor.u32 %v4315_v55, %v4311_v57  ;;  %v4319_v0 = vshll.u32 %v13552_v8, 16  ;;  %7075 = vmatpush.bf16.msrb.mxu0 %v11475_v35 }
 0x2bb   : > { %5488 = vst [vmem:[#allocation2 + $0x44] sm:$0x1] %v5487_v61  ;;  %v5221_v27 = vshrl.u32 %v5113_v38, 16  ;;  %v5224_v7 = vshll.u32 %v5113_v38, 16  ;;  %v5014_v56 = vmul.f32 %v13578_v33, %v4978_v40  ;;  %v4370_v54 = vunpack.c.l.b16 %v4312_v63  ;;  %6383 = vmatpush.bf16.msrb.mxu2 %v11435_v10 }
 0x2bc   : > { %v3809_v57 = vpop.f32.mrf.mxu2  ;;  %v5749_v32 = vsel %vm11724_vm2, %v5744_v53, %v5748_v41  ;;  %v4317_v29 = vrot.slane %v4316_v24, 4  ;;  %v4321_v46 = vrot.slane %v4319_v0, 5  ;;  %v10590_v42 = vrot.slane %v4588_v52, 9  ;;  %v5489_v41 = vld [vmem:[#allocation2 + $0x48] sm:$0xf] }
 0x2bd   : > { %v13588_v48 = vrot.slane %v5221_v27, 7  ;;  %v5050_v2 = vadd.f32 %v13593_v26, %v5014_v56  ;;  %v3871_v60 = vadd.f32 %v3809_v57, %v12863_v28  ;;  %v6040_v45 = vunpack.c.l.b16 %v5749_v32 }
 0x2be   : > { %v4322_v25 = vsel %vm11724_vm2, %v4317_v29, %v4321_v46  ;;  %v4744_v62 = vrot.slane %v13510_v44, 5  ;;  %v4747_v51 = vrot.slane %v13552_v8, 5  ;;  %v5751_v55 = vshrl.u32 %v5576_v18, 16  ;;  %v13607_v52 = vpop.f32.mrf.mxu3 }
 0x2bf   : > { %v3557_v17 = vadd.f32 %v12809_v47, %v12875_v5  ;;  %v5226_v13 = vor.u32 %v5224_v7, %v13588_v48  ;;  %v5082_v35 = vmax.f32 %v5050_v2, 0.0  ;;  %v4553_v16 = vadd.f32 %v13519_v58, %v3871_v60  ;;  %v11394_v60 = vld [vmem:[#allocation2 + $0xcc] sm:$0xff] }
 0x2c0   : > { %v6067_v28 = vpack.c.b16 %v6040_v45, %v6039_v20  ;;  %v4371_v61 = vunpack.c.l.b16 %v4322_v25  ;;  %v4745_v38 = vsel %vm12239_vm13, %v10590_v42, %v4744_v62  ;;  %v4746_v40 = vrot.slane %v4744_v62, 4  ;;  %v6465_v45 = vld [vmem:[#allocation2] sm:$0xe] }
 0x2c1   : > { %v5490_v44 = vsel %vm11836_vm9, %v5226_v13, %v5489_v41  ;;  %v5114_v8 = vpack.c.bf16 %v5082_v35, %v5082_v35  ;;  %v4979_v53 = vadd.f32 %v13489_v59, %v4553_v16  ;;  %v4796_v47 = vunpack.c.l.b16 %v4745_v38  ;;  %v13612_v5 = vld [vmem:[#allocation2 + $0x40] sm:$0xf]  ;;  %v13618_v57 = vpop.f32.mrf.mxu0  ;;  %v5493_v41 = vld [vmem:[#allocation2 + $0x50] sm:$0x1] }
 0x2c2   : > { %5491 = vst [vmem:[#allocation2 + $0x48] sm:$0xf] %v5490_v44  ;;  %6171 = vmatmul.bf16.gmra.mxu1 %v6067_v28  ;;  %v4387_v58 = vpack.c.b16 %v4371_v61, %v4370_v54  ;;  %v4748_v20 = vsel %vm12239_vm13, %v4746_v40, %v4747_v51  ;;  %v5753_v63 = vrot.slane %v5751_v55, 4  ;;  %v5754_v24 = vshll.u32 %v5576_v18, 16  ;;  %v13620_v59 = vld [vmem:[#allocation2 + $0x44] sm:$0x1] }
 0x2c3   : > { %v5227_v0 = vrot.slane %v13588_v48, 4  ;;  %v5229_v27 = vshrl.u32 %v5114_v8, 16  ;;  %v5015_v7 = vmul.f32 %v13578_v33, %v4979_v53  ;;  %v4797_v56 = vunpack.c.l.b16 %v4748_v20  ;;  %v11603_v44 = vld [vmem:[#allocation2 + $0x4] sm:$0xf] }
 0x2c4   : > { %v5232_v32 = vshll.u32 %v5114_v8, 16  ;;  %v3811_v29 = vpop.f32.mrf.mxu2  ;;  %4535 = vmatmul.bf16.gmra.mxu3 %v4387_v58  ;;  %v5756_v46 = vrot.slane %v5754_v24, 5  ;;  %v5760_v54 = vshll.u32 %v13612_v5, 16  ;;  %v5764_v42 = vshrl.u32 %v13612_v5, 16 }
 0x2c5   : > { %v5231_v10 = vrot.slane %v5229_v27, 7  ;;  %v5051_v18 = vadd.f32 %v13593_v26, %v5015_v7  ;;  %v3872_v48 = vadd.f32 %v3811_v29, %v3557_v17  ;;  %v4813_v2 = vpack.c.b16 %v4797_v56, %v4796_v47 }
 0x2c6   : > { %v5757_v25 = vor.u32 %v5756_v46, %v5753_v63  ;;  %v5762_v62 = vrot.slane %v5760_v54, 5  ;;  %v5766_v51 = vrot.slane %v5764_v42, 4  ;;  %v5770_v55 = vshll.u32 %v13620_v59, 16  ;;  %v13627_v40 = vpop.f32.mrf.mxu3 }
 0x2c7   : > { %v5234_v13 = vor.u32 %v5232_v32, %v5231_v10  ;;  %v5236_v35 = vrot.slane %v5231_v10, 4  ;;  %v5083_v16 = vmax.f32 %v5051_v18, 0.0  ;;  %v4554_v28 = vadd.f32 %v13554_v39, %v3872_v48  ;;  %4961 = vmatmul.bf16.gmra.mxu0 %v4813_v2  ;;  %v11604_v10 = vld [vmem:[#allocation2 + $0x8] sm:$0x1] }
 0x2c8   : > { %v5758_v61 = vrot.slane %v5757_v25, 4  ;;  %v5767_v38 = vor.u32 %v5766_v51, %v5762_v62  ;;  %v10783_v17 = vrot.slane %v6465_v45, 9  ;;  %v6515_v8 = vrot.slane %v11603_v44, 5  ;;  %v5496_v25 = vld [vmem:[#allocation2 + $0x54] sm:$0xf] }
 0x2c9   : > { %v5235_v53 = vsel %vm11827_vm8, %v5227_v0, %v5234_v13  ;;  %v5494_v47 = vsel %vm11843_vm10, %v5236_v35, %v5493_v41  ;;  %v5115_v58 = vpack.c.bf16 %v5083_v16, %v5083_v16  ;;  %v4980_v20 = vadd.f32 %v13534_v15, %v4554_v28  ;;  %3853 = vmatmul.bf16.gmra.mxu2 %v11394_v60  ;;  %v5578_v63 = vld [vmem:[#allocation2 + $0x48] sm:$0xf]  ;;  %v13637_v29 = vpop.f32.mrf.mxu0 }
 0x2ca   : > { %5492 = vst [vmem:[#allocation2 + $0x4c] sm:$0xf] %v5235_v53  ;;  %v5763_v39 = vsel %vm11724_vm2, %v5758_v61, %v5762_v62  ;;  %v5768_v24 = vrot.slane %v5767_v38, 4  ;;  %v5772_v27 = vrot.slane %v5770_v55, 5  ;;  %v6517_v7 = vrot.slane %v6515_v8, 4 }
 0x2cb   : > { %5495 = vst [vmem:[#allocation2 + $0x50] sm:$0x1] %v5494_v47  ;;  %v5238_v56 = vshrl.u32 %v5115_v58, 16  ;;  %v5241_v32 = vshll.u32 %v5115_v58, 16  ;;  %v5016_v0 = vmul.f32 %v13578_v33, %v4980_v20  ;;  %v6516_v46 = vsel %vm12239_vm13, %v10783_v17, %v6515_v8  ;;  %v6466_v8 = vld [vmem:[#allocation2 + $0xc] sm:$0xe] }
 0x2cc   : > { %v3814_v15 = vpop.f32.mrf.mxu2  ;;  %v5773_v54 = vsel %vm11724_vm2, %v5768_v24, %v5772_v27  ;;  %v6041_v42 = vunpack.c.l.b16 %v5763_v39  ;;  %v6518_v18 = vrot.slane %v11604_v10, 5  ;;  %v5775_v48 = vshrl.u32 %v5578_v63, 16 }
 0x2cd   : > { %v13643_v2 = vrot.slane %v5238_v56, 7  ;;  %v5052_v60 = vadd.f32 %v13593_v26, %v5016_v0  ;;  %v3873_v45 = vadd.f32 %v3814_v15, %v12893_v6  ;;  %v6042_v41 = vunpack.c.l.b16 %v5773_v54 }
 0x2ce   : > { %v6519_v62 = vsel %vm12239_vm13, %v6517_v7, %v6518_v18  ;;  %v6642_v51 = vunpack.c.l.b16 %v6516_v46  ;;  %v5777_v55 = vrot.slane %v5775_v48, 4  ;;  %v5778_v13 = vshll.u32 %v5578_v63, 16  ;;  %v13653_v44 = vpop.f32.mrf.mxu3 }
 0x2cf   : > { %v5243_v35 = vor.u32 %v5241_v32, %v13643_v2  ;;  %v5084_v16 = vmax.f32 %v5052_v60, 0.0  ;;  %v4555_v28 = vadd.f32 %v13607_v52, %v3873_v45  ;;  %v3559_v61 = vadd.f32 %v12843_v4, %v12905_v1  ;;  %v11459_v60 = vld [vmem:[#allocation2 + $0xc] sm:$0xff]  ;;  %v11419_v45 = vld [vmem:[#allocation2] sm:$0xff] }
 0x2d0   : > { %v6068_v38 = vpack.c.b16 %v6042_v41, %v6041_v42  ;;  %v6643_v17 = vunpack.c.l.b16 %v6519_v62  ;;  %v5780_v6 = vrot.slane %v5778_v13, 5  ;;  %v6522_v63 = vrot.slane %v13294_v50, 5  ;;  %v11487_v50 = vld [vmem:[%s15767_s4 + $0x120] sm:$0xff]  ;;  %v5500_v41 = vld [vmem:[#allocation2 + $0x5c] sm:$0x1] }
 0x2d1   : > { %v5497_v53 = vsel %vm11836_vm9, %v5243_v35, %v5496_v25  ;;  %v5116_v47 = vpack.c.bf16 %v5084_v16, %v5084_v16  ;;  %v4981_v58 = vadd.f32 %v13581_v34, %v4555_v28  ;;  %v13658_v20 = vld [vmem:[#allocation2 + $0x4c] sm:$0xf]  ;;  %v5244_v27 = vrot.slane %v13643_v2, 4  ;;  %v13667_v34 = vpop.f32.mrf.mxu0  ;;  %7753 = vmatpush.bf16.msrb.mxu1 %v11487_v50 }
 0x2d2   : > { %5498 = vst [vmem:[#allocation2 + $0x54] sm:$0xf] %v5497_v53  ;;  %6176 = vmatmul.bf16.gmra.mxu1 %v6068_v38  ;;  %v6674_v52 = vpack.c.b16 %v6643_v17, %v6642_v51  ;;  %v13661_v4 = vld [vmem:[#allocation2 + $0x50] sm:$0x1]  ;;  %v5781_v1 = vor.u32 %v5780_v6, %v5777_v55  ;;  %v5784_v39 = vshll.u32 %v13658_v20, 16  ;;  %v5788_v24 = vshrl.u32 %v13658_v20, 16 }
 0x2d3   : > { %v5246_v7 = vshrl.u32 %v5116_v47, 16  ;;  %v5017_v56 = vmul.f32 %v13578_v33, %v4981_v58  ;;  %v10784_v32 = vrot.slane %v6466_v8, 9  ;;  %v5794_v54 = vshll.u32 %v13661_v4, 16  ;;  %v6467_v58 = vld [vmem:[#allocation2 + $0x18] sm:$0xe] }
 0x2d4   : > { %v3816_v0 = vpop.f32.mrf.mxu2  ;;  %6762 = vmatmul.bf16.vlgmr.msrb.gmra.mxu3 %v6674_v52  ;;  %v5786_v46 = vrot.slane %v5784_v39, 5  ;;  %v5790_v15 = vrot.slane %v5788_v24, 4  ;;  %v6525_v42 = vrot.slane %v13297_v31, 5  ;;  %v5249_v18 = vshll.u32 %v5116_v47, 16 }
 0x2d5   : > { %v5248_v10 = vrot.slane %v5246_v7, 7  ;;  %v5053_v48 = vadd.f32 %v13593_v26, %v5017_v56  ;;  %v3874_v2 = vadd.f32 %v3816_v0, %v3559_v61  ;;  %v5782_v25 = vrot.slane %v5781_v1, 4  ;;  %v6468_v56 = vld [vmem:[#allocation2 + $0x24] sm:$0xe] }
 0x2d6   : > { %v5791_v62 = vor.u32 %v5790_v15, %v5786_v46  ;;  %v6523_v51 = vsel %vm12239_vm13, %v10784_v32, %v6522_v63  ;;  %v6524_v55 = vrot.slane %v6522_v63, 4  ;;  %v5796_v38 = vrot.slane %v5794_v54, 5  ;;  %v13680_v17 = vpop.f32.mrf.mxu3  ;;  %v5503_v15 = vld [vmem:[#allocation2 + $0x60] sm:$0xf] }
 0x2d7   : > { %v5251_v13 = vor.u32 %v5249_v18, %v5248_v10  ;;  %v5253_v35 = vrot.slane %v5248_v10, 4  ;;  %v5085_v16 = vmax.f32 %v5053_v48, 0.0  ;;  %v4556_v31 = vadd.f32 %v13627_v40, %v3874_v2  ;;  %7076 = vmatmul.bf16.vlgmr.msrb.gmra.mxu0 %v11459_v60  ;;  %v13703_v2 = vld [vmem:[#allocation2 + $0x30] sm:$0xe] }
 0x2d8   : > { %v5787_v28 = vsel %vm11724_vm2, %v5782_v25, %v5786_v46  ;;  %v5792_v61 = vrot.slane %v5791_v62, 4  ;;  %v6526_v6 = vsel %vm12239_vm13, %v6524_v55, %v6525_v42  ;;  %v3561_v63 = vadd.f32 %v12881_v9, %v12936_v21 }
 0x2d9   : > { %v5252_v8 = vsel %vm11827_vm8, %v5244_v27, %v5251_v13  ;;  %v5501_v53 = vsel %vm11843_vm10, %v5253_v35, %v5500_v41  ;;  %v5117_v47 = vpack.c.bf16 %v5085_v16, %v5085_v16  ;;  %v4982_v40 = vadd.f32 %v13618_v57, %v4556_v31  ;;  %6384 = vmatmul.bf16.vlgmr.msrb.gmra.mxu2 %v11419_v45  ;;  %v13694_v27 = vpop.f32.mrf.mxu0 }
 0x2da   : > { %5499 = vst [vmem:[#allocation2 + $0x58] sm:$0xf] %v5252_v8  ;;  %v5797_v52 = vsel %vm11724_vm2, %v5792_v61, %v5796_v38  ;;  %v6529_v7 = vrot.slane %v13360_v11, 5  ;;  %v6043_v50 = vunpack.c.l.b16 %v5787_v28  ;;  %v6644_v32 = vunpack.c.l.b16 %v6523_v51  ;;  %v5580_v28 = vld [vmem:[#allocation2 + $0x54] sm:$0xf] }
 0x2db   : > { %5502 = vst [vmem:[#allocation2 + $0x5c] sm:$0x1] %v5501_v53  ;;  %v5255_v1 = vshrl.u32 %v5117_v47, 16  ;;  %v5018_v39 = vmul.f32 %v13578_v33, %v4982_v40  ;;  %v6044_v24 = vunpack.c.l.b16 %v5797_v52  ;;  %v6645_v0 = vunpack.c.l.b16 %v6526_v6 }
 0x2dc   : > { %v3819_v57 = vpop.f32.mrf.mxu2  ;;  %v10785_v46 = vrot.slane %v6467_v58, 9  ;;  %v5258_v21 = vshll.u32 %v5117_v47, 16  ;;  %v6532_v18 = vrot.slane %v13376_v37, 5  ;;  %v10786_v48 = vrot.slane %v6468_v56, 9 }
 0x2dd   : > { %v13697_v9 = vrot.slane %v5255_v1, 7  ;;  %v5054_v54 = vadd.f32 %v13593_v26, %v5018_v39  ;;  %v3875_v42 = vadd.f32 %v3819_v57, %v12926_v22  ;;  %v6069_v10 = vpack.c.b16 %v6044_v24, %v6043_v50  ;;  %v11460_v50 = vld [vmem:[#allocation2 + $0x18] sm:$0xff] }
 0x2de   : > { %v6536_v11 = vrot.slane %v13433_v3, 5  ;;  %v13707_v25 = vrot.slane %v6529_v7, 4  ;;  %v13710_v51 = vpop.f32.mrf.mxu3  ;;  %v6539_v13 = vrot.slane %v13435_v36, 5  ;;  %v6675_v31 = vpack.c.b16 %v6645_v0, %v6644_v32  ;;  %v5507_v0 = vld [vmem:[#allocation2 + $0x68] sm:$0x1] }
 0x2df   : > { %v5260_v60 = vor.u32 %v5258_v21, %v13697_v9  ;;  %v5086_v45 = vmax.f32 %v5054_v54, 0.0  ;;  %v4557_v41 = vadd.f32 %v13653_v44, %v3875_v42  ;;  %v5261_v62 = vrot.slane %v13697_v9, 4 }
 0x2e0   : > { %v6537_v22 = vsel %vm12239_vm13, %v10786_v48, %v6536_v11  ;;  %v6538_v55 = vrot.slane %v6536_v11, 4  ;;  %v10787_v44 = vrot.slane %v13703_v2, 9  ;;  %v13723_v38 = vsel %vm12239_vm13, %v10785_v46, %v6529_v7  ;;  %v11420_v11 = vld [vmem:[#allocation2 + $0xc] sm:$0xff] }
 0x2e1   : > { %v5504_v3 = vsel %vm11836_vm9, %v5260_v60, %v5503_v15  ;;  %v5118_v35 = vpack.c.bf16 %v5086_v45, %v5086_v45  ;;  %v4983_v16 = vadd.f32 %v13637_v29, %v4557_v41  ;;  %v13719_v61 = vld [vmem:[#allocation2 + $0x58] sm:$0xf]  ;;  %v13728_v53 = vpop.f32.mrf.mxu0  ;;  %v5799_v47 = vshrl.u32 %v5580_v28, 16 }
 0x2e2   : > { %5505 = vst [vmem:[#allocation2 + $0x60] sm:$0xf] %v5504_v3  ;;  %6181 = vmatmul.bf16.gmra.mxu1 %v6069_v10  ;;  %v6540_v36 = vsel %vm12239_vm13, %v6538_v55, %v6539_v13  ;;  %v13730_v29 = vld [vmem:[#allocation2 + $0x5c] sm:$0x1]  ;;  %v6648_v40 = vunpack.c.l.b16 %v6537_v22  ;;  %v5802_v1 = vshll.u32 %v5580_v28, 16  ;;  %v5808_v39 = vshll.u32 %v13719_v61, 16 }
 0x2e3   : > { %v5263_v6 = vshrl.u32 %v5118_v35, 16  ;;  %v5019_v8 = vmul.f32 %v13578_v33, %v4983_v16  ;;  %v5266_v58 = vshll.u32 %v5118_v35, 16  ;;  %v5812_v24 = vshrl.u32 %v13719_v61, 16 }
 0x2e4   : > { %v3821_v52 = vpop.f32.mrf.mxu2  ;;  %6767 = vmatmul.bf16.gmra.mxu3 %v6675_v31  ;;  %v5801_v32 = vrot.slane %v5799_v47, 4  ;;  %v5804_v46 = vrot.slane %v5802_v1, 5  ;;  %v5810_v9 = vrot.slane %v5808_v39, 5  ;;  %v5818_v15 = vshll.u32 %v13730_v29, 16  ;;  %v15832_v39 = vld [vmem:[#allocation18_spill] sm:$0xff] }
 0x2e5   : > { %v5265_v7 = vrot.slane %v5263_v6, 7  ;;  %v5055_v56 = vadd.f32 %v13593_v26, %v5019_v8  ;;  %v3876_v57 = vadd.f32 %v3821_v52, %v3561_v63  ;;  %v5814_v21 = vrot.slane %v5812_v24, 4 }
 0x2e6   : > { %v5805_v2 = vor.u32 %v5804_v46, %v5801_v32  ;;  %v13737_v45 = vpop.f32.mrf.mxu3  ;;  %v6649_v63 = vunpack.c.l.b16 %v6540_v36  ;;  %v6543_v41 = vrot.slane %v13525_v43, 5  ;;  %v5820_v16 = vrot.slane %v5818_v15, 5 }
 0x2e7   : > { %v5268_v54 = vor.u32 %v5266_v58, %v5265_v7  ;;  %v5270_v42 = vrot.slane %v5265_v7, 4  ;;  %v5087_v10 = vmax.f32 %v5055_v56, 0.0  ;;  %v4558_v48 = vadd.f32 %v13680_v17, %v3876_v57  ;;  %7081 = vmatmul.bf16.gmra.mxu0 %v11460_v50 }
 0x2e8   : > { %v5815_v60 = vor.u32 %v5814_v21, %v5810_v9  ;;  %v5806_v17 = vrot.slane %v5805_v2, 4  ;;  %v13745_v31 = vpack.c.b16 %v6649_v63, %v6648_v40  ;;  %v6544_v40 = vsel %vm12239_vm13, %v10787_v44, %v6543_v41  ;;  %v13778_v2 = vpop.f32.mrf.mxu1 }
 0x2e9   : > { %v5269_v22 = vsel %vm11827_vm8, %v5261_v62, %v5268_v54  ;;  %v5508_v55 = vsel %vm11843_vm10, %v5270_v42, %v5507_v0  ;;  %v5119_v13 = vpack.c.bf16 %v5087_v10, %v5087_v10  ;;  %v4984_v3 = vadd.f32 %v13667_v34, %v4558_v48  ;;  %6389 = vmatmul.bf16.gmra.mxu2 %v11420_v11  ;;  %v13748_v36 = vpop.f32.mrf.mxu0  ;;  %v15833_v10 = vld [vmem:[#allocation20_spill] sm:$0xff]  ;;  %v15834_v48 = vld [vmem:[#allocation17_spill] sm:$0xff] }
 0x2ea   : > { %5506 = vst [vmem:[#allocation2 + $0x64] sm:$0xf] %v5269_v22  ;;  %v5816_v35 = vrot.slane %v5815_v60, 4  ;;  %v6533_v62 = vsel %vm12239_vm13, %v13707_v25, %v6532_v18  ;;  %v6545_v34 = vrot.slane %v6543_v41, 4  ;;  %v5811_v8 = vsel %vm11724_vm2, %v5806_v17, %v5810_v9  ;;  %v5510_v25 = vld [vmem:[#allocation2 + $0x6c] sm:$0xf] }
 0x2eb   : > { %5509 = vst [vmem:[#allocation2 + $0x68] sm:$0x1] %v5508_v55  ;;  %v5272_v28 = vshrl.u32 %v5119_v13, 16  ;;  %v5020_v43 = vmul.f32 %v13578_v33, %v4984_v3  ;;  %v6546_v58 = vrot.slane %v13530_v49, 5  ;;  %v5275_v37 = vshll.u32 %v5119_v13, 16  ;;  %v11486_v17 = vld [vmem:[%s15767_s4 + $0x118] sm:$0xff] }
 0x2ec   : > { %v3824_v6 = vpop.f32.mrf.mxu2  ;;  %v5821_v47 = vsel %vm11724_vm2, %v5816_v35, %v5820_v16  ;;  %v6045_v24 = vunpack.c.l.b16 %v5811_v8  ;;  %v6647_v56 = vunpack.c.l.b16 %v6533_v62  ;;  %v6646_v0 = vunpack.c.l.b16 %v13723_v38  ;;  %v5582_v60 = vld [vmem:[#allocation2 + $0x60] sm:$0xf]  ;;  %7754 = vmatpush.bf16.msrb.mxu1 %v11486_v17 }
 0x2ed   : > { %v13762_v52 = vrot.slane %v5272_v28, 7  ;;  %v5056_v1 = vadd.f32 %v13593_v26, %v5020_v43  ;;  %v3877_v18 = vadd.f32 %v3824_v6, %v15832_v39  ;;  %v6046_v7 = vunpack.c.l.b16 %v5821_v47  ;;  %v11461_v47 = vld [vmem:[#allocation2 + $0x24] sm:$0xff] }
 0x2ee   : > { %v6547_v57 = vsel %vm12239_vm13, %v6545_v34, %v6546_v58  ;;  %v6650_v46 = vunpack.c.l.b16 %v6544_v40  ;;  %v13774_v42 = vpop.f32.mrf.mxu3  ;;  %v3563_v11 = vadd.f32 %v15834_v48, %v15833_v10  ;;  %v5823_v3 = vshrl.u32 %v5582_v60, 16  ;;  %v5514_v58 = vld [vmem:[#allocation2 + $0x74] sm:$0x1] }
 0x2ef   : > { %v5277_v50 = vor.u32 %v5275_v37, %v13762_v52  ;;  %v5088_v32 = vmax.f32 %v5056_v1, 0.0  ;;  %v4559_v44 = vadd.f32 %v13710_v51, %v3877_v18  ;;  %v6070_v49 = vpack.c.b16 %v6046_v7, %v6045_v24 }
 0x2f0   : > { %v6651_v9 = vunpack.c.l.b16 %v6547_v57  ;;  %v6676_v51 = vpack.c.b16 %v6647_v56, %v6646_v0  ;;  %v5278_v41 = vrot.slane %v13762_v52, 4  ;;  %v5826_v28 = vshll.u32 %v5582_v60, 16  ;;  %v11421_v56 = vld [vmem:[#allocation2 + $0x18] sm:$0xff] }
 0x2f1   : > { %v5511_v21 = vsel %vm11836_vm9, %v5277_v50, %v5510_v25  ;;  %v5120_v15 = vpack.c.bf16 %v5088_v32, %v5088_v32  ;;  %v4985_v54 = vadd.f32 %v13694_v27, %v4559_v44  ;;  %v13780_v38 = vld [vmem:[#allocation2 + $0x64] sm:$0xf]  ;;  %v13786_v55 = vpop.f32.mrf.mxu0  ;;  %v5825_v40 = vrot.slane %v5823_v3, 4  ;;  %v6470_v57 = vld [vmem:[#allocation2 + $0x3c] sm:$0xe] }
 0x2f2   : > { %5512 = vst [vmem:[#allocation2 + $0x6c] sm:$0xf] %v5511_v21  ;;  %6186 = vmatmul.bf16.gmra.mxu1 %v6070_v49  ;;  %v13782_v63 = vpack.c.b16 %v6651_v9, %v6650_v46  ;;  %v13788_v13 = vld [vmem:[#allocation2 + $0x68] sm:$0x1]  ;;  %v5832_v43 = vshll.u32 %v13780_v38, 16  ;;  %v5836_v62 = vshrl.u32 %v13780_v38, 16 }
 0x2f3   : > { %v5280_v22 = vshrl.u32 %v5120_v15, 16  ;;  %v5021_v27 = vmul.f32 %v13578_v33, %v4985_v54  ;;  %v5283_v35 = vshll.u32 %v5120_v15, 16  ;;  %v5828_v52 = vrot.slane %v5826_v28, 5  ;;  %v15835_v28 = vld [vmem:[#allocation21_spill] sm:$0xff] }
 0x2f4   : > { %v3826_v16 = vpop.f32.mrf.mxu2  ;;  %6772 = vmatmul.bf16.gmra.mxu3 %v6676_v51  ;;  %v5834_v37 = vrot.slane %v5832_v43, 5  ;;  %v5838_v1 = vrot.slane %v5836_v62, 4  ;;  %v5842_v39 = vshll.u32 %v13788_v13, 16  ;;  %v6550_v44 = vrot.slane %v13612_v5, 5  ;;  %v5517_v62 = vld [vmem:[#allocation2 + $0x78] sm:$0xf] }
 0x2f5   : > { %v5282_v34 = vrot.slane %v5280_v22, 7  ;;  %v5057_v6 = vadd.f32 %v13593_v26, %v5021_v27  ;;  %v3878_v8 = vadd.f32 %v3826_v16, %v3563_v11  ;;  %v5829_v50 = vor.u32 %v5828_v52, %v5825_v40 }
 0x2f6   : > { %v5839_v32 = vor.u32 %v5838_v1, %v5834_v37  ;;  %v13804_v21 = vpop.f32.mrf.mxu3  ;;  %v5844_v10 = vrot.slane %v5842_v39, 5  ;;  %v10788_v48 = vrot.slane %v6470_v57, 9  ;;  %v6552_v60 = vrot.slane %v6550_v44, 4 }
 0x2f7   : > { %v5285_v18 = vor.u32 %v5283_v35, %v5282_v34  ;;  %v5287_v25 = vrot.slane %v5282_v34, 4  ;;  %v5089_v24 = vmax.f32 %v5057_v6, 0.0  ;;  %v4560_v7 = vadd.f32 %v13737_v45, %v3878_v8  ;;  %7086 = vmatmul.bf16.gmra.mxu0 %v11461_v47  ;;  %v13806_v45 = vpop.f32.mrf.mxu1 }
 0x2f8   : > { %v5830_v15 = vrot.slane %v5829_v50, 4  ;;  %v5840_v54 = vrot.slane %v5839_v32, 4  ;;  %v6551_v27 = vsel %vm12239_vm13, %v10788_v48, %v6550_v44  ;;  %v6553_v3 = vrot.slane %v13620_v59, 5 }
 0x2f9   : > { %v5286_v49 = vsel %vm11827_vm8, %v5278_v41, %v5285_v18  ;;  %v5515_v0 = vsel %vm11843_vm10, %v5287_v25, %v5514_v58  ;;  %v5121_v46 = vpack.c.bf16 %v5089_v24, %v5089_v24  ;;  %v4986_v9 = vadd.f32 %v13728_v53, %v4560_v7  ;;  %6394 = vmatmul.bf16.gmra.mxu2 %v11421_v56  ;;  %v13809_v51 = vpop.f32.mrf.mxu0  ;;  %v15836_v24 = vld [vmem:[#allocation22_spill] sm:$0xff]  ;;  %v15837_v7 = vld [vmem:[#allocation19_spill] sm:$0xff]  ;;  %v5584_v57 = vld [vmem:[#allocation2 + $0x6c] sm:$0xf] }
 0x2fa   : > { %5513 = vst [vmem:[#allocation2 + $0x70] sm:$0xf] %v5286_v49  ;;  %v5835_v53 = vsel %vm11724_vm2, %v5830_v15, %v5834_v37  ;;  %v5845_v22 = vsel %vm11724_vm2, %v5840_v54, %v5844_v10  ;;  %v6554_v8 = vsel %vm12239_vm13, %v6552_v60, %v6553_v3  ;;  %v6652_v37 = vunpack.c.l.b16 %v6551_v27  ;;  %v5521_v27 = vld [vmem:[#allocation2 + $0x80] sm:$0x1] }
 0x2fb   : > { %5516 = vst [vmem:[#allocation2 + $0x74] sm:$0x1] %v5515_v0  ;;  %v5289_v5 = vshrl.u32 %v5121_v46, 16  ;;  %v5022_v11 = vmul.f32 %v13578_v33, %v4986_v9  ;;  %v5292_v35 = vshll.u32 %v5121_v46, 16  ;;  %v6047_v34 = vunpack.c.l.b16 %v5835_v53  ;;  %v11462_v53 = vld [vmem:[#allocation2 + $0x30] sm:$0xff] }
 0x2fc   : > { %v3829_v41 = vpop.f32.mrf.mxu2  ;;  %v6048_v6 = vunpack.c.l.b16 %v5845_v22  ;;  %v6653_v1 = vunpack.c.l.b16 %v6554_v8  ;;  %v3565_v56 = vadd.f32 %v15837_v7, %v15836_v24  ;;  %v5850_v10 = vshll.u32 %v5584_v57, 16 }
 0x2fd   : > { %v5291_v17 = vrot.slane %v5289_v5, 7  ;;  %v5058_v16 = vadd.f32 %v13593_v26, %v5022_v11  ;;  %v3879_v43 = vadd.f32 %v3829_v41, %v15835_v28 }
 0x2fe   : > { %v6071_v52 = vpack.c.b16 %v6048_v6, %v6047_v34  ;;  %v13826_v25 = vpop.f32.mrf.mxu3  ;;  %v5852_v3 = vrot.slane %v5850_v10, 5  ;;  %v11422_v34 = vld [vmem:[#allocation2 + $0x24] sm:$0xff] }
 0x2ff   : > { %v5294_v47 = vor.u32 %v5292_v35, %v5291_v17  ;;  %v5090_v40 = vmax.f32 %v5058_v16, 0.0  ;;  %v4561_v58 = vadd.f32 %v13774_v42, %v3879_v43  ;;  %v13832_v42 = vpack.c.b16 %v6653_v1, %v6652_v37  ;;  %v13839_v15 = vpop.f32.mrf.mxu1  ;;  %v6471_v6 = vld [vmem:[#allocation2 + $0x48] sm:$0xe] }
 0x300   : > { %v5295_v32 = vrot.slane %v5291_v17, 4  ;;  %v10789_v24 = vrot.slane %v6471_v6, 9  ;;  %v15840_v6 = vld [vmem:[#allocation23_spill] sm:$0xff] }
 0x301   : > { %v5518_v59 = vsel %vm11836_vm9, %v5294_v47, %v5517_v62  ;;  %v5122_v39 = vpack.c.bf16 %v5090_v40, %v5090_v40  ;;  %v4987_v18 = vadd.f32 %v13748_v36, %v4561_v58  ;;  %v13830_v50 = vld [vmem:[#allocation2 + $0x70] sm:$0xf]  ;;  %v13835_v0 = vpop.f32.mrf.mxu0  ;;  %v5847_v36 = vshrl.u32 %v5584_v57, 16 }
 0x302   : > { %5519 = vst [vmem:[#allocation2 + $0x78] sm:$0xf] %v5518_v59  ;;  %6191 = vmatmul.bf16.gmra.mxu1 %v6071_v52  ;;  %v13837_v46 = vld [vmem:[#allocation2 + $0x74] sm:$0x1]  ;;  %v5856_v48 = vshll.u32 %v13830_v50, 16  ;;  %v5860_v5 = vshrl.u32 %v13830_v50, 16 }
 0x303   : > { %v5297_v44 = vshrl.u32 %v5122_v39, 16  ;;  %v5023_v49 = vmul.f32 %v13578_v33, %v4987_v18  ;;  %v5300_v9 = vshll.u32 %v5122_v39, 16  ;;  %v5849_v22 = vrot.slane %v5847_v36, 4 }
 0x304   : > { %v3831_v54 = vpop.f32.mrf.mxu2  ;;  %6777 = vmatmul.bf16.gmra.mxu3 %v13745_v31  ;;  %v5858_v17 = vrot.slane %v5856_v48, 5  ;;  %v5862_v35 = vrot.slane %v5860_v5, 4  ;;  %v5866_v16 = vshll.u32 %v13837_v46, 16  ;;  %v6557_v40 = vrot.slane %v13658_v20, 5  ;;  %v15838_v5 = vld [vmem:[#allocation3_spill] sm:$0xff] }
 0x305   : > { %v5299_v11 = vrot.slane %v5297_v44, 7  ;;  %v5059_v60 = vadd.f32 %v13593_v26, %v5023_v49  ;;  %v3880_v41 = vadd.f32 %v3831_v54, %v3565_v56  ;;  %v5853_v8 = vor.u32 %v5852_v3, %v5849_v22 }
 0x306   : > { %v5863_v47 = vor.u32 %v5862_v35, %v5858_v17  ;;  %v13853_v59 = vpop.f32.mrf.mxu3  ;;  %v5868_v18 = vrot.slane %v5866_v16, 5  ;;  %v6559_v57 = vrot.slane %v6557_v40, 4  ;;  %v6558_v36 = vsel %vm12239_vm13, %v10789_v24, %v6557_v40 }
 0x307   : > { %v5302_v28 = vor.u32 %v5300_v9, %v5299_v11  ;;  %v5304_v43 = vrot.slane %v5299_v11, 4  ;;  %v5091_v31 = vmax.f32 %v5059_v60, 0.0  ;;  %v4562_v62 = vadd.f32 %v13804_v21, %v3880_v41  ;;  %7091 = vmatmul.bf16.gmra.mxu0 %v11462_v53  ;;  %v5524_v60 = vld [vmem:[#allocation2 + $0x84] sm:$0xf] }
 0x308   : > { %v5854_v21 = vrot.slane %v5853_v8, 4  ;;  %v5864_v39 = vrot.slane %v5863_v47, 4  ;;  %v6560_v9 = vrot.slane %v13661_v4, 5  ;;  %v6654_v16 = vunpack.c.l.b16 %v6558_v36 }
 0x309   : > { %v5303_v58 = vsel %vm11827_vm8, %v5295_v32, %v5302_v28  ;;  %v5522_v52 = vsel %vm11843_vm10, %v5304_v43, %v5521_v27  ;;  %v5123_v37 = vpack.c.bf16 %v5091_v31, %v5091_v31  ;;  %v4988_v1 = vadd.f32 %v13786_v55, %v4562_v62  ;;  %6399 = vmatmul.bf16.gmra.mxu2 %v11422_v34  ;;  %v13856_v56 = vpop.f32.mrf.mxu0  ;;  %v15839_v34 = vld [vmem:[#allocation4_spill] sm:$0xff]  ;;  %v5586_v47 = vld [vmem:[#allocation2 + $0x78] sm:$0xf] }
 0x30a   : > { %5520 = vst [vmem:[#allocation2 + $0x7c] sm:$0xf] %v5303_v58  ;;  %v5859_v55 = vsel %vm11724_vm2, %v5854_v21, %v5858_v17  ;;  %v5869_v49 = vsel %vm11724_vm2, %v5864_v39, %v5868_v18  ;;  %v6561_v22 = vsel %vm12239_vm13, %v6559_v57, %v6560_v9  ;;  %v3567_v8 = vadd.f32 %v15840_v6, %v15839_v34  ;;  %v11485_v39 = vld [vmem:[%s15767_s4 + $0x110] sm:$0xff]  ;;  %v11463_v9 = vld [vmem:[#allocation2 + $0x3c] sm:$0xff] }
 0x30b   : > { %5523 = vst [vmem:[#allocation2 + $0x80] sm:$0x1] %v5522_v52  ;;  %v5306_v7 = vshrl.u32 %v5123_v37, 16  ;;  %v5024_v20 = vmul.f32 %v13578_v33, %v4988_v1  ;;  %v5309_v10 = vshll.u32 %v5123_v37, 16  ;;  %v6049_v41 = vunpack.c.l.b16 %v5859_v55  ;;  %7755 = vmatpush.bf16.msrb.mxu1 %v11485_v39 }
 0x30c   : > { %v3834_v32 = vpop.f32.mrf.mxu2  ;;  %v13858_v44 = vpop.f32.mrf.mxu1  ;;  %v6050_v53 = vunpack.c.l.b16 %v5869_v49  ;;  %v6655_v28 = vunpack.c.l.b16 %v6561_v22 }
 0x30d   : > { %v5308_v54 = vrot.slane %v5306_v7, 7  ;;  %v5060_v48 = vadd.f32 %v13593_v26, %v5024_v20  ;;  %v3881_v11 = vadd.f32 %v3834_v32, %v15838_v5  ;;  %v5874_v7 = vshll.u32 %v5586_v47, 16 }
 0x30e   : > { %v6072_v35 = vpack.c.b16 %v6050_v53, %v6049_v41 }
 0x30f   : > { %v5311_v27 = vor.u32 %v5309_v10, %v5308_v54  ;;  %v5092_v3 = vmax.f32 %v5060_v48, 0.0  ;;  %v4563_v17 = vadd.f32 %v13826_v25, %v3881_v11  ;;  %v13881_v25 = vpack.c.b16 %v6655_v28, %v6654_v16  ;;  %v5528_v10 = vld [vmem:[#allocation2 + $0x8c] sm:$0x1] }
 0x310   : > { %v5312_v58 = vrot.slane %v5308_v54, 4  ;;  %v5876_v48 = vrot.slane %v5874_v7, 5  ;;  %v6564_v16 = vrot.slane %v13719_v61, 5 }
 0x311   : > { %v5525_v4 = vsel %vm11836_vm9, %v5311_v27, %v5524_v60  ;;  %v5124_v43 = vpack.c.bf16 %v5092_v3, %v5092_v3  ;;  %v4989_v31 = vadd.f32 %v13809_v51, %v4563_v17  ;;  %v13875_v62 = vpop.f32.mrf.mxu3  ;;  %v13879_v40 = vld [vmem:[#allocation2 + $0x7c] sm:$0xf]  ;;  %v13884_v1 = vpop.f32.mrf.mxu0  ;;  %v5871_v51 = vshrl.u32 %v5586_v47, 16  ;;  %v11423_v27 = vld [vmem:[#allocation2 + $0x30] sm:$0xff] }
 0x312   : > { %5526 = vst [vmem:[#allocation2 + $0x84] sm:$0xf] %v5525_v4  ;;  %6196 = vmatmul.bf16.gmra.mxu1 %v6072_v35  ;;  %v13886_v21 = vld [vmem:[#allocation2 + $0x80] sm:$0x1]  ;;  %v5880_v20 = vshll.u32 %v13879_v40, 16  ;;  %v5884_v57 = vshrl.u32 %v13879_v40, 16 }
 0x313   : > { %v5314_v52 = vshrl.u32 %v5124_v43, 16  ;;  %v5025_v37 = vmul.f32 %v13578_v33, %v4989_v31  ;;  %v5317_v18 = vshll.u32 %v5124_v43, 16  ;;  %v5873_v54 = vrot.slane %v5871_v51, 4  ;;  %v6472_v3 = vld [vmem:[#allocation2 + $0x54] sm:$0xe] }
 0x314   : > { %v3836_v24 = vpop.f32.mrf.mxu2  ;;  %6782 = vmatmul.bf16.gmra.mxu3 %v13782_v63  ;;  %v13895_v36 = vpop.f32.mrf.mxu1  ;;  %v5882_v5 = vrot.slane %v5880_v20, 5  ;;  %v5886_v11 = vrot.slane %v5884_v57, 4  ;;  %v5890_v63 = vshll.u32 %v13886_v21, 16  ;;  %v10790_v47 = vrot.slane %v6472_v3, 9  ;;  %v15841_v57 = vld [vmem:[#allocation24_spill] sm:$0xff]  ;;  %v15843_v3 = vld [vmem:[#allocation5_spill] sm:$0xff] }
 0x315   : > { %v5316_v32 = vrot.slane %v5314_v52, 7  ;;  %v5061_v55 = vadd.f32 %v13593_v26, %v5025_v37  ;;  %v3882_v49 = vadd.f32 %v3836_v24, %v3567_v8  ;;  %v5877_v17 = vor.u32 %v5876_v48, %v5873_v54 }
 0x316   : > { %v5887_v35 = vor.u32 %v5886_v11, %v5882_v5  ;;  %v5892_v8 = vrot.slane %v5890_v63, 5  ;;  %v6566_v37 = vrot.slane %v6564_v16, 4  ;;  %v6565_v39 = vsel %vm12239_vm13, %v10790_v47, %v6564_v16 }
 0x317   : > { %v5319_v60 = vor.u32 %v5317_v18, %v5316_v32  ;;  %v5321_v41 = vrot.slane %v5316_v32, 4  ;;  %v5093_v53 = vmax.f32 %v5061_v55, 0.0  ;;  %v4564_v22 = vadd.f32 %v13853_v59, %v3882_v49  ;;  %7096 = vmatmul.bf16.gmra.mxu0 %v11463_v9  ;;  %v5531_v55 = vld [vmem:[#allocation2 + $0x90] sm:$0xf] }
 0x318   : > { %v5878_v59 = vrot.slane %v5877_v17, 4  ;;  %v5888_v6 = vrot.slane %v5887_v35, 4  ;;  %v6567_v18 = vrot.slane %v13730_v29, 5  ;;  %v6656_v63 = vunpack.c.l.b16 %v6565_v39  ;;  %v11464_v39 = vld [vmem:[#allocation2 + $0x48] sm:$0xff] }
 0x319   : > { %v5320_v28 = vsel %vm11827_vm8, %v5312_v58, %v5319_v60  ;;  %v5529_v4 = vsel %vm11843_vm10, %v5321_v41, %v5528_v10  ;;  %v5125_v43 = vpack.c.bf16 %v5093_v53, %v5093_v53  ;;  %v4990_v31 = vadd.f32 %v13835_v0, %v4564_v22  ;;  %6404 = vmatmul.bf16.gmra.mxu2 %v11423_v27  ;;  %v13905_v34 = vpop.f32.mrf.mxu3  ;;  %v13919_v32 = vpop.f32.mrf.mxu0  ;;  %v15842_v27 = vld [vmem:[#allocation6_spill] sm:$0xff]  ;;  %v5588_v35 = vld [vmem:[#allocation2 + $0x84] sm:$0xf] }
 0x31a   : > { %5527 = vst [vmem:[#allocation2 + $0x88] sm:$0xf] %v5320_v28  ;;  %v5883_v51 = vsel %vm11724_vm2, %v5878_v59, %v5882_v5  ;;  %v5893_v0 = vsel %vm11724_vm2, %v5888_v6, %v5892_v8  ;;  %v6568_v54 = vsel %vm12239_vm13, %v6566_v37, %v6567_v18  ;;  %v3569_v17 = vadd.f32 %v15843_v3, %v15842_v27 }
 0x31b   : > { %5530 = vst [vmem:[#allocation2 + $0x8c] sm:$0x1] %v5529_v4  ;;  %v5323_v52 = vshrl.u32 %v5125_v43, 16  ;;  %v5026_v61 = vmul.f32 %v13578_v33, %v4990_v31  ;;  %v5326_v7 = vshll.u32 %v5125_v43, 16  ;;  %v6051_v49 = vunpack.c.l.b16 %v5883_v51  ;;  %v13942_v43 = vld [vmem:[%s15765_s2] ss:$0 sm:$0xff] }
 0x31c   : > { %v3839_v58 = vpop.f32.mrf.mxu2  ;;  %v6052_v9 = vunpack.c.l.b16 %v5893_v0  ;;  %v5895_v59 = vshrl.u32 %v5588_v35, 16  ;;  %v5898_v47 = vshll.u32 %v5588_v35, 16 }
 0x31d   : > { %v13915_v24 = vrot.slane %v5323_v52, 7  ;;  %v5062_v20 = vadd.f32 %v13593_v26, %v5026_v61  ;;  %v3883_v33 = vadd.f32 %v3839_v58, %v15841_v57  ;;  %v13925_v5 = vpop.f32.mrf.mxu1  ;;  %v6657_v26 = vunpack.c.l.b16 %v6568_v54  ;;  %v13953_v58 = vld [vmem:[%s15766_s3] ss:$0 sm:$0xff] }
 0x31e   : > { %v6073_v11 = vpack.c.b16 %v6052_v9, %v6051_v49  ;;  %v5897_v18 = vrot.slane %v5895_v59, 4 }
 0x31f   : > { %v5328_v10 = vor.u32 %v5326_v7, %v13915_v24  ;;  %v5094_v48 = vmax.f32 %v5062_v20, 0.0  ;;  %v4565_v29 = vadd.f32 %v13875_v62, %v3883_v33  ;;  %v13936_v16 = vpack.c.b16 %v6657_v26, %v6656_v63 }
 0x320   : > { %v5329_v28 = vrot.slane %v13915_v24, 4  ;;  %v5535_v24 = vld [vmem:[#allocation2 + $0x98] sm:$0x1]  ;;  %v5900_v7 = vrot.slane %v5898_v47, 5  ;;  %v6571_v26 = vrot.slane %v13780_v38, 5  ;;  %v6574_v47 = vrot.slane %v13788_v13, 5 }
 0x321   : > { %v5532_v60 = vsel %vm11836_vm9, %v5328_v10, %v5531_v55  ;;  %v5126_v41 = vpack.c.bf16 %v5094_v48, %v5094_v48  ;;  %v4991_v53 = vadd.f32 %v13856_v56, %v4565_v29  ;;  %v13930_v22 = vpop.f32.mrf.mxu3  ;;  %v13934_v62 = vld [vmem:[#allocation2 + $0x88] sm:$0xf]  ;;  %v11424_v10 = vld [vmem:[#allocation2 + $0x3c] sm:$0xff]  ;;  %v13960_v48 = vpop.f32.mrf.mxu0 }
 0x322   : > { %5533 = vst [vmem:[#allocation2 + $0x90] sm:$0xf] %v5532_v60  ;;  %6201 = vmatmul.bf16.gmra.mxu1 %v6073_v11  ;;  %v13945_v31 = vld [vmem:[#allocation2 + $0x8c] sm:$0x1]  ;;  %v5904_v52 = vshll.u32 %v13934_v62, 16  ;;  %v5908_v61 = vshrl.u32 %v13934_v62, 16  ;;  %v5901_v11 = vor.u32 %v5900_v7, %v5897_v18 }
 0x323   : > { %v5331_v4 = vshrl.u32 %v5126_v41, 16  ;;  %v5027_v56 = vmul.f32 %v13942_v43, %v4991_v53  ;;  %v5334_v6 = vshll.u32 %v5126_v41, 16  ;;  %v5914_v57 = vshll.u32 %v13945_v31, 16  ;;  %v6473_v29 = vld [vmem:[#allocation2 + $0x60] sm:$0xe] }
 0x324   : > { %v3841_v8 = vpop.f32.mrf.mxu2  ;;  %6787 = vmatmul.bf16.gmra.mxu3 %v13832_v42  ;;  %v5906_v20 = vrot.slane %v5904_v52, 5  ;;  %v5910_v42 = vrot.slane %v5908_v61, 4  ;;  %v5902_v3 = vrot.slane %v5901_v11, 4  ;;  %v6573_v59 = vrot.slane %v6571_v26, 4 }
 0x325   : > { %v5333_v37 = vrot.slane %v5331_v4, 7  ;;  %v5063_v51 = vadd.f32 %v13953_v58, %v5027_v56  ;;  %v3884_v0 = vadd.f32 %v3841_v8, %v3569_v17  ;;  %v13958_v54 = vpop.f32.mrf.mxu1  ;;  %v5916_v35 = vrot.slane %v5914_v57, 5 }
 0x326   : > { %v5911_v63 = vor.u32 %v5910_v42, %v5906_v20  ;;  %v10791_v4 = vrot.slane %v6473_v29, 9  ;;  %v6575_v7 = vsel %vm12239_vm13, %v6573_v59, %v6574_v47 }
 0x327   : > { %v5336_v33 = vor.u32 %v5334_v6, %v5333_v37  ;;  %v5338_v55 = vrot.slane %v5333_v37, 4  ;;  %v5095_v49 = vmax.f32 %v5063_v51, 0.0  ;;  %v4566_v9 = vadd.f32 %v13905_v34, %v3884_v0  ;;  %7101 = vmatmul.bf16.gmra.mxu0 %v11464_v39  ;;  %v15844_v51 = vld [vmem:[#allocation25_spill] sm:$0xff]  ;;  %v5538_v39 = vld [vmem:[#allocation2 + $0x9c] sm:$0xf] }
 0x328   : > { %v5912_v17 = vrot.slane %v5911_v63, 4  ;;  %v5907_v6 = vsel %vm11724_vm2, %v5902_v3, %v5906_v20  ;;  %v6572_v8 = vsel %vm12239_vm13, %v10791_v4, %v6571_v26  ;;  %v15845_v63 = vld [vmem:[#allocation8_spill] sm:$0xff]  ;;  %v15846_v26 = vld [vmem:[#allocation7_spill] sm:$0xff] }
 0x329   : > { %v5337_v60 = vsel %vm11827_vm8, %v5329_v28, %v5336_v33  ;;  %v5536_v41 = vsel %vm11843_vm10, %v5338_v55, %v5535_v24  ;;  %v5127_v53 = vpack.c.bf16 %v5095_v49, %v5095_v49  ;;  %v4992_v34 = vadd.f32 %v13884_v1, %v4566_v9  ;;  %6409 = vmatmul.bf16.gmra.mxu2 %v11424_v10  ;;  %v13968_v27 = vpop.f32.mrf.mxu3 }
 0x32a   : > { %5534 = vst [vmem:[#allocation2 + $0x94] sm:$0xf] %v5337_v60  ;;  %v5917_v1 = vsel %vm11724_vm2, %v5912_v17, %v5916_v35  ;;  %v6053_v18 = vunpack.c.l.b16 %v5907_v6  ;;  %v6658_v13 = vunpack.c.l.b16 %v6572_v8  ;;  %v6659_v49 = vunpack.c.l.b16 %v6575_v7 }
 0x32b   : > { %5537 = vst [vmem:[#allocation2 + $0x98] sm:$0x1] %v5536_v41  ;;  %v5340_v56 = vshrl.u32 %v5127_v53, 16  ;;  %v5028_v38 = vmul.f32 %v13942_v43, %v4992_v34  ;;  %v5343_v61 = vshll.u32 %v5127_v53, 16  ;;  %v6054_v24 = vunpack.c.l.b16 %v5917_v1  ;;  %v5590_v41 = vld [vmem:[#allocation2 + $0x90] sm:$0xf] }
 0x32c   : > { %v3844_v28 = vpop.f32.mrf.mxu2  ;;  %v3571_v60 = vadd.f32 %v15846_v26, %v15845_v63  ;;  %v13994_v53 = vpack.c.b16 %v6659_v49, %v6658_v13  ;;  %v6474_v13 = vld [vmem:[#allocation2 + $0x6c] sm:$0xe] }
 0x32d   : > { %v5342_v52 = vrot.slane %v5340_v56, 7  ;;  %v5064_v37 = vadd.f32 %v13953_v58, %v5028_v38  ;;  %v3885_v0 = vadd.f32 %v3844_v28, %v15844_v51  ;;  %v6074_v55 = vpack.c.b16 %v6054_v24, %v6053_v18  ;;  %v11484_v56 = vld [vmem:[%s15767_s4 + $0x108] sm:$0xff]  ;;  %v5542_v51 = vld [vmem:[#allocation2 + $0xa4] sm:$0x1] }
 0x32e   : > { %v5922_v28 = vshll.u32 %v5590_v41, 16  ;;  %7756 = vmatpush.bf16.msrb.mxu1 %v11484_v56 }
 0x32f   : > { %v5345_v20 = vor.u32 %v5343_v61, %v5342_v52  ;;  %v5096_v42 = vmax.f32 %v5064_v37, 0.0  ;;  %v4567_v57 = vadd.f32 %v13930_v22, %v3885_v0  ;;  %v13983_v33 = vpop.f32.mrf.mxu1  ;;  %v5346_v34 = vrot.slane %v5342_v52, 4  ;;  %v11465_v61 = vld [vmem:[#allocation2 + $0x54] sm:$0xff] }
 0x330   : > { %v5924_v0 = vrot.slane %v5922_v28, 5 }
 0x331   : > { %v5539_v9 = vsel %vm11836_vm9, %v5345_v20, %v5538_v39  ;;  %v5128_v10 = vpack.c.bf16 %v5096_v42, %v5096_v42  ;;  %v4993_v29 = vadd.f32 %v13919_v32, %v4567_v57  ;;  %v13988_v11 = vpop.f32.mrf.mxu0  ;;  %v13992_v22 = vld [vmem:[#allocation2 + $0x94] sm:$0xf]  ;;  %v13997_v35 = vpop.f32.mrf.mxu3  ;;  %v5919_v32 = vshrl.u32 %v5590_v41, 16 }
 0x332   : > { %5540 = vst [vmem:[#allocation2 + $0x9c] sm:$0xf] %v5539_v9  ;;  %6206 = vmatmul.bf16.gmra.mxu1 %v6074_v55  ;;  %v13999_v4 = vld [vmem:[#allocation2 + $0x98] sm:$0x1]  ;;  %v5928_v6 = vshll.u32 %v13992_v22, 16  ;;  %v5932_v1 = vshrl.u32 %v13992_v22, 16 }
 0x333   : > { %v5348_v3 = vshrl.u32 %v5128_v10, 16  ;;  %v5029_v17 = vmul.f32 %v13942_v43, %v4993_v29  ;;  %v5351_v38 = vshll.u32 %v5128_v10, 16  ;;  %v5921_v37 = vrot.slane %v5919_v32, 4  ;;  %v11425_v55 = vld [vmem:[#allocation2 + $0x48] sm:$0xff] }
 0x334   : > { %v3846_v59 = vpop.f32.mrf.mxu2  ;;  %6792 = vmatmul.bf16.gmra.mxu3 %v13881_v25  ;;  %v5930_v39 = vrot.slane %v5928_v6, 5  ;;  %v5934_v18 = vrot.slane %v5932_v1, 4  ;;  %v5938_v24 = vshll.u32 %v13999_v4, 16  ;;  %v6578_v10 = vrot.slane %v13830_v50, 5 }
 0x335   : > { %v5350_v8 = vrot.slane %v5348_v3, 7  ;;  %v5065_v47 = vadd.f32 %v13953_v58, %v5029_v17  ;;  %v3886_v52 = vadd.f32 %v3846_v59, %v3571_v60  ;;  %v5925_v49 = vor.u32 %v5924_v0, %v5921_v37 }
 0x336   : > { %v5935_v9 = vor.u32 %v5934_v18, %v5930_v39  ;;  %v5940_v17 = vrot.slane %v5938_v24, 5  ;;  %v10792_v32 = vrot.slane %v6474_v13, 9  ;;  %v6581_v6 = vrot.slane %v13837_v46, 5 }
 0x337   : > { %v5353_v7 = vor.u32 %v5351_v38, %v5350_v8  ;;  %v5355_v25 = vrot.slane %v5350_v8, 4  ;;  %v5097_v20 = vmax.f32 %v5065_v47, 0.0  ;;  %v4568_v42 = vadd.f32 %v13968_v27, %v3886_v52  ;;  %v14010_v57 = vpop.f32.mrf.mxu1  ;;  %7106 = vmatmul.bf16.gmra.mxu0 %v11465_v61  ;;  %v15847_v52 = vld [vmem:[#allocation9_spill] sm:$0xff] }
 0x338   : > { %v5926_v41 = vrot.slane %v5925_v49, 4  ;;  %v5936_v3 = vrot.slane %v5935_v9, 4  ;;  %v6580_v38 = vrot.slane %v6578_v10, 4  ;;  %v6579_v28 = vsel %vm12239_vm13, %v10792_v32, %v6578_v10  ;;  %v15848_v10 = vld [vmem:[#allocation26_spill] sm:$0xff] }
 0x339   : > { %v5354_v29 = vsel %vm11827_vm8, %v5346_v34, %v5353_v7  ;;  %v5543_v63 = vsel %vm11843_vm10, %v5355_v25, %v5542_v51  ;;  %v5129_v26 = vpack.c.bf16 %v5097_v20, %v5097_v20  ;;  %v4994_v60 = vadd.f32 %v13960_v48, %v4568_v42  ;;  %6414 = vmatmul.bf16.gmra.mxu2 %v11425_v55  ;;  %v14018_v27 = vpop.f32.mrf.mxu0  ;;  %v4533_v37 = vpop.f32.mrf.mxu3  ;;  %v5545_v51 = vld [vmem:[#allocation2 + $0xa8] sm:$0xf] }
 0x33a   : > { %5541 = vst [vmem:[#allocation2 + $0xa0] sm:$0xf] %v5354_v29  ;;  %v5931_v59 = vsel %vm11724_vm2, %v5926_v41, %v5930_v39  ;;  %v5941_v48 = vsel %vm11724_vm2, %v5936_v3, %v5940_v17  ;;  %v6582_v39 = vsel %vm12239_vm13, %v6580_v38, %v6581_v6  ;;  %v6660_v42 = vunpack.c.l.b16 %v6579_v28  ;;  %v15849_v29 = vld [vmem:[#allocation10_spill] sm:$0xff] }
 0x33b   : > { %5544 = vst [vmem:[#allocation2 + $0xa4] sm:$0x1] %v5543_v63  ;;  %v5357_v56 = vshrl.u32 %v5129_v26, 16  ;;  %v5030_v50 = vmul.f32 %v13942_v43, %v4994_v60  ;;  %v5360_v8 = vshll.u32 %v5129_v26, 16  ;;  %v6055_v0 = vunpack.c.l.b16 %v5931_v59  ;;  %v5592_v26 = vld [vmem:[#allocation2 + $0x9c] sm:$0xf] }
 0x33c   : > { %v3849_v34 = vpop.f32.mrf.mxu2  ;;  %v6056_v18 = vunpack.c.l.b16 %v5941_v48  ;;  %v6661_v55 = vunpack.c.l.b16 %v6582_v39  ;;  %v3573_v63 = vadd.f32 %v15849_v29, %v15848_v10 }
 0x33d   : > { %v5359_v1 = vrot.slane %v5357_v56, 7  ;;  %v5066_v47 = vadd.f32 %v13953_v58, %v5030_v50  ;;  %v3887_v61 = vadd.f32 %v3849_v34, %v15847_v52  ;;  %v5943_v56 = vshrl.u32 %v5592_v26, 16  ;;  %v5549_v52 = vld [vmem:[#allocation2 + $0xb0] sm:$0x1] }
 0x33e   : > { %v6075_v46 = vpack.c.b16 %v6056_v18, %v6055_v0  ;;  %v5946_v34 = vshll.u32 %v5592_v26, 16 }
 0x33f   : > { %v5362_v24 = vor.u32 %v5360_v8, %v5359_v1  ;;  %v5098_v7 = vmax.f32 %v5066_v47, 0.0  ;;  %v4569_v25 = vadd.f32 %v13997_v35, %v3887_v61  ;;  %v14033_v20 = vpop.f32.mrf.mxu1  ;;  %v14042_v35 = vpack.c.b16 %v6661_v55, %v6660_v42  ;;  %v11466_v8 = vld [vmem:[#allocation2 + $0x60] sm:$0xff]  ;;  %v11426_v42 = vld [vmem:[#allocation2 + $0x54] sm:$0xff] }
 0x340   : > { %v5363_v41 = vrot.slane %v5359_v1, 4  ;;  %v5945_v47 = vrot.slane %v5943_v56, 4  ;;  %v5948_v61 = vrot.slane %v5946_v34, 5 }
 0x341   : > { %v5546_v13 = vsel %vm11836_vm9, %v5362_v24, %v5545_v51  ;;  %v5130_v49 = vpack.c.bf16 %v5098_v7, %v5098_v7  ;;  %v4995_v9 = vadd.f32 %v13988_v11, %v4569_v25  ;;  %v14040_v60 = vld [vmem:[#allocation2 + $0xa0] sm:$0xf] }
 0x342   : > { %5547 = vst [vmem:[#allocation2 + $0xa8] sm:$0xf] %v5546_v13  ;;  %6211 = vmatmul.bf16.gmra.mxu1 %v6075_v46  ;;  %v14045_v32 = vld [vmem:[#allocation2 + $0xa4] sm:$0x1]  ;;  %v5952_v59 = vshll.u32 %v14040_v60, 16  ;;  %v5956_v48 = vshrl.u32 %v14040_v60, 16  ;;  %v5949_v55 = vor.u32 %v5948_v61, %v5945_v47 }
 0x343   : > { %v5365_v3 = vshrl.u32 %v5130_v49, 16  ;;  %v5031_v17 = vmul.f32 %v13942_v43, %v4995_v9  ;;  %v5368_v50 = vshll.u32 %v5130_v49, 16  ;;  %v5962_v18 = vshll.u32 %v14045_v32, 16  ;;  %v6475_v49 = vld [vmem:[#allocation2 + $0x78] sm:$0xe] }
 0x344   : > { %v14047_v38 = vpop.f32.mrf.mxu0  ;;  %v3851_v11 = vpop.f32.mrf.mxu2  ;;  %6797 = vmatmul.bf16.gmra.mxu3 %v13936_v16  ;;  %v5954_v51 = vrot.slane %v5952_v59, 5  ;;  %v5958_v0 = vrot.slane %v5956_v48, 4  ;;  %v10793_v34 = vrot.slane %v6475_v49, 9 }
 0x345   : > { %v5367_v28 = vrot.slane %v5365_v3, 7  ;;  %v5067_v6 = vadd.f32 %v13953_v58, %v5031_v17  ;;  %v3888_v1 = vadd.f32 %v3851_v11, %v3573_v63  ;;  %v5964_v3 = vrot.slane %v5962_v18, 5 }
 0x346   : > { %v5959_v13 = vor.u32 %v5958_v0, %v5954_v51  ;;  %v6585_v17 = vrot.slane %v13879_v40, 5  ;;  %v11483_v40 = vld [vmem:[%s15767_s4 + $0x100] sm:$0xff]  ;;  %v5552_v0 = vld [vmem:[#allocation2 + $0xb4] sm:$0xf] }
 0x347   : > { %v5370_v39 = vor.u32 %v5368_v50, %v5367_v28  ;;  %v5372_v24 = vrot.slane %v5367_v28, 4  ;;  %v5099_v16 = vmax.f32 %v5067_v6, 0.0  ;;  %v4570_v7 = vadd.f32 %v4533_v37, %v3888_v1  ;;  %v14054_v25 = vpop.f32.mrf.mxu1  ;;  %7111 = vmatmul.bf16.gmra.mxu0 %v11466_v8  ;;  %v4536_v46 = vpop.f32.mrf.mxu3  ;;  %7757 = vmatpush.bf16.msrb.mxu1 %v11483_v40 }
 0x348   : > { %v5950_v37 = vrot.slane %v5949_v55, 4  ;;  %v5960_v26 = vrot.slane %v5959_v13, 4  ;;  %v6586_v49 = vsel %vm12239_vm13, %v10793_v34, %v6585_v17 }
 0x349   : > { %v5371_v9 = vsel %vm11827_vm8, %v5363_v41, %v5370_v39  ;;  %v5550_v10 = vsel %vm11843_vm10, %v5372_v24, %v5549_v52  ;;  %v5131_v29 = vpack.c.bf16 %v5099_v16, %v5099_v16  ;;  %v4996_v63 = vadd.f32 %v14018_v27, %v4570_v7  ;;  %6419 = vmatmul.bf16.gmra.mxu2 %v11426_v42  ;;  %v5594_v11 = vld [vmem:[#allocation2 + $0xa8] sm:$0xf]  ;;  %v15850_v52 = vld [vmem:[#allocation11_spill] sm:$0xff] }
 0x34a   : > { %5548 = vst [vmem:[#allocation2 + $0xac] sm:$0xf] %v5371_v9  ;;  %v5955_v48 = vsel %vm11724_vm2, %v5950_v37, %v5954_v51  ;;  %v5965_v27 = vsel %vm11724_vm2, %v5960_v26, %v5964_v3  ;;  %v5967_v28 = vshrl.u32 %v5594_v11, 16  ;;  %v5970_v6 = vshll.u32 %v5594_v11, 16 }
 0x34b   : > { %5551 = vst [vmem:[#allocation2 + $0xb0] sm:$0x1] %v5550_v10  ;;  %v5374_v56 = vshrl.u32 %v5131_v29, 16  ;;  %v5032_v50 = vmul.f32 %v13942_v43, %v4996_v63  ;;  %v5377_v8 = vshll.u32 %v5131_v29, 16  ;;  %v6057_v18 = vunpack.c.l.b16 %v5955_v48 }
 0x34c   : > { %v14063_v41 = vpop.f32.mrf.mxu0  ;;  %v3854_v59 = vpop.f32.mrf.mxu2  ;;  %v6058_v39 = vunpack.c.l.b16 %v5965_v27  ;;  %v6587_v51 = vrot.slane %v6585_v17, 4  ;;  %v6588_v24 = vrot.slane %v13886_v21, 5  ;;  %v5969_v10 = vrot.slane %v5967_v28, 4 }
 0x34d   : > { %v14072_v1 = vrot.slane %v5374_v56, 7  ;;  %v5068_v47 = vadd.f32 %v13953_v58, %v5032_v50  ;;  %v3889_v61 = vadd.f32 %v3854_v59, %v15850_v52  ;;  %v5972_v29 = vrot.slane %v5970_v6, 5  ;;  %v15851_v50 = vld [vmem:[#allocation12_spill] sm:$0xff] }
 0x34e   : > { %v6076_v9 = vpack.c.b16 %v6058_v39, %v6057_v18  ;;  %v6589_v63 = vsel %vm12239_vm13, %v6587_v51, %v6588_v24  ;;  %v6662_v17 = vunpack.c.l.b16 %v6586_v49  ;;  %v3575_v11 = vadd.f32 %v13778_v2, %v15851_v50  ;;  %v11467_v18 = vld [vmem:[#allocation2 + $0x6c] sm:$0xff]  ;;  %v5556_v24 = vld [vmem:[#allocation2 + $0xbc] sm:$0x1] }
 0x34f   : > { %v5379_v16 = vor.u32 %v5377_v8, %v14072_v1  ;;  %v5100_v7 = vmax.f32 %v5068_v47, 0.0  ;;  %v4571_v42 = vadd.f32 %v4536_v46, %v3889_v61  ;;  %v14078_v55 = vpop.f32.mrf.mxu1  ;;  %v4538_v13 = vpop.f32.mrf.mxu3  ;;  %v6663_v46 = vunpack.c.l.b16 %v6589_v63  ;;  %v11498_v47 = vld [vmem:[%s15767_s4 + $0x178] sm:$0xff] }
 0x350   : > { %v5973_v40 = vor.u32 %v5972_v29, %v5969_v10  ;;  %v5380_v51 = vrot.slane %v14072_v1, 4  ;;  %8176 = vmatpush.bf16.msra.mxu2 %v11498_v47  ;;  %v11427_v10 = vld [vmem:[#allocation2 + $0x60] sm:$0xff]  ;;  %v11522_v63 = vld [vmem:[%s15767_s4 + $0x1b8] sm:$0xff] }
 0x351   : > { %v5553_v37 = vsel %vm11836_vm9, %v5379_v16, %v5552_v0  ;;  %v5132_v21 = vpack.c.bf16 %v5100_v7, %v5100_v7  ;;  %v4997_v26 = vadd.f32 %v14047_v38, %v4571_v42  ;;  %v14087_v3 = vld [vmem:[#allocation2 + $0xac] sm:$0xf]  ;;  %v14102_v2 = vpack.c.b16 %v6663_v46, %v6662_v17  ;;  %8490 = vmatpush.bf16.msra.mxu3 %v11522_v63 }
 0x352   : > { %5554 = vst [vmem:[#allocation2 + $0xb4] sm:$0xf] %v5553_v37  ;;  %6216 = vmatmul.bf16.gmra.mxu1 %v6076_v9  ;;  %v5976_v56 = vshll.u32 %v14087_v3, 16  ;;  %v14093_v48 = vld [vmem:[#allocation2 + $0xb0] sm:$0x1]  ;;  %v5980_v27 = vshrl.u32 %v14087_v3, 16 }
 0x353   : > { %v5382_v34 = vshrl.u32 %v5132_v21, 16  ;;  %v5033_v59 = vmul.f32 %v13942_v43, %v4997_v26  ;;  %v5385_v28 = vshll.u32 %v5132_v21, 16  ;;  %v5986_v16 = vshll.u32 %v14093_v48, 16 }
 0x354   : > { %v14096_v38 = vpop.f32.mrf.mxu0  ;;  %v3856_v6 = vpop.f32.mrf.mxu2  ;;  %6802 = vmatmul.bf16.gmra.mxu3 %v13994_v53  ;;  %v5978_v8 = vrot.slane %v5976_v56, 5  ;;  %v5982_v39 = vrot.slane %v5980_v27, 4  ;;  %v5974_v37 = vrot.slane %v5973_v40, 4 }
 0x355   : > { %v5384_v52 = vrot.slane %v5382_v34, 7  ;;  %v5069_v61 = vadd.f32 %v13953_v58, %v5033_v59  ;;  %v3890_v0 = vadd.f32 %v3856_v6, %v3575_v11  ;;  %v5988_v50 = vrot.slane %v5986_v16, 5 }
 0x356   : > { %v5983_v21 = vor.u32 %v5982_v39, %v5978_v8  ;;  %v5979_v27 = vsel %vm11724_vm2, %v5974_v37, %v5978_v8  ;;  %v5559_v39 = vld [vmem:[#allocation2 + $0xc0] sm:$0xf] }
 0x357   : > { %v5387_v53 = vor.u32 %v5385_v28, %v5384_v52  ;;  %v5389_v7 = vrot.slane %v5384_v52, 4  ;;  %v5101_v42 = vmax.f32 %v5069_v61, 0.0  ;;  %v4572_v49 = vadd.f32 %v4538_v13, %v3890_v0  ;;  %v14107_v9 = vpop.f32.mrf.mxu1  ;;  %7116 = vmatmul.bf16.gmra.mxu0 %v11467_v18  ;;  %v6763_v29 = vpop.f32.mrf.mxu3 }
 0x358   : > { %v5984_v17 = vrot.slane %v5983_v21, 4 }
 0x359   : > { %v5388_v1 = vsel %vm11827_vm8, %v5380_v51, %v5387_v53  ;;  %v5557_v26 = vsel %vm11843_vm10, %v5389_v7, %v5556_v24  ;;  %v5133_v46 = vpack.c.bf16 %v5101_v42, %v5101_v42  ;;  %v4998_v13 = vadd.f32 %v14063_v41, %v4572_v49  ;;  %6424 = vmatmul.bf16.gmra.mxu2 %v11427_v10  ;;  %v5596_v56 = vld [vmem:[#allocation2 + $0xb4] sm:$0xf]  ;;  %v11530_v49 = vld [vmem:[%s15767_s4 + $0x1f8] sm:$0xff] }
 0x35a   : > { %5555 = vst [vmem:[#allocation2 + $0xb8] sm:$0xf] %v5388_v1  ;;  %v5991_v11 = vshrl.u32 %v5596_v56, 16  ;;  %v5994_v28 = vshll.u32 %v5596_v56, 16  ;;  %v5989_v41 = vsel %vm11724_vm2, %v5984_v17, %v5988_v50  ;;  %v6059_v51 = vunpack.c.l.b16 %v5979_v27  ;;  %9172 = vmatpush.bf16.msra.mxu0 %v11530_v49  ;;  %v11468_v27 = vld [vmem:[#allocation2 + $0x78] sm:$0xff] }
 0x35b   : > { %5558 = vst [vmem:[#allocation2 + $0xbc] sm:$0x1] %v5557_v26  ;;  %v5391_v34 = vshrl.u32 %v5133_v46, 16  ;;  %v5034_v59 = vmul.f32 %v13942_v43, %v4998_v13  ;;  %v5394_v6 = vshll.u32 %v5133_v46, 16  ;;  %v6060_v18 = vunpack.c.l.b16 %v5989_v41  ;;  %v11538_v46 = vld [vmem:[%s15767_s4 + $0x238] sm:$0xff] }
 0x35c   : > { %v14120_v40 = vpop.f32.mrf.mxu0  ;;  %v6385_v47 = vpop.f32.mrf.mxu2  ;;  %v5993_v43 = vrot.slane %v5991_v11, 4  ;;  %v5996_v42 = vrot.slane %v5994_v28, 5  ;;  %v14149_v28 = vld [vmem:[#allocation2 + $0x10] sm:$0xf]  ;;  %9598 = vmatpush.bf16.msra.mxu1 %v11538_v46 }
 0x35d   : > { %15852 = vst [vmem:[#allocation13_spill] sm:$0xff] %v14120_v40  ;;  %v5393_v52 = vrot.slane %v5391_v34, 7  ;;  %v5070_v61 = vadd.f32 %v13953_v58, %v5034_v59  ;;  %v6386_v0 = vadd.f32 %v6385_v47, %v13806_v45  ;;  %v6077_v10 = vpack.c.b16 %v6060_v18, %v6059_v51  ;;  %v5563_v47 = vld [vmem:[#allocation2 + $0xc8] sm:$0x1] }
 0x35e   : > { %v5997_v26 = vor.u32 %v5996_v42, %v5993_v43 }
 0x35f   : > { %v5396_v24 = vor.u32 %v5394_v6, %v5393_v52  ;;  %v5102_v16 = vmax.f32 %v5070_v61, 0.0  ;;  %v14126_v8 = vpop.f32.mrf.mxu1  ;;  %v14128_v53 = vadd.f32 %v6763_v29, %v6386_v0  ;;  %v6765_v7 = vpop.f32.mrf.mxu3  ;;  %v5397_v6 = vrot.slane %v5393_v52, 4 }
 0x360   : > { %v5998_v43 = vrot.slane %v5997_v26, 4 }
 0x361   : > { %v5560_v45 = vsel %vm11836_vm9, %v5396_v24, %v5559_v39  ;;  %v5134_v58 = vpack.c.bf16 %v5102_v16, %v5102_v16  ;;  %v14135_v63 = vld [vmem:[#allocation2 + $0xb8] sm:$0xf]  ;;  %v11428_v39 = vld [vmem:[#allocation2 + $0x6c] sm:$0xff] }
 0x362   : > { %5561 = vst [vmem:[#allocation2 + $0xc0] sm:$0xf] %v5560_v45  ;;  %6221 = vmatmul.bf16.gmra.mxu1 %v6077_v10  ;;  %v14137_v37 = vld [vmem:[#allocation2 + $0xbc] sm:$0x1]  ;;  %v6000_v29 = vshll.u32 %v14135_v63, 16  ;;  %v6004_v21 = vshrl.u32 %v14135_v63, 16 }
 0x363   : > { %v5399_v1 = vshrl.u32 %v5134_v58, 16  ;;  %v6010_v50 = vshll.u32 %v14137_v37, 16  ;;  %v5402_v34 = vshll.u32 %v5134_v58, 16  ;;  %v7251_v10 = vshrl.u32 %v14149_v28, 16 }
 0x364   : > { %v14144_v19 = vpop.f32.mrf.mxu0  ;;  %v6387_v13 = vpop.f32.mrf.mxu2  ;;  %6807 = vmatmul.bf16.gmra.mxu3 %v14042_v35  ;;  %v6002_v56 = vrot.slane %v6000_v29, 5  ;;  %v6006_v17 = vrot.slane %v6004_v21, 4 }
 0x365   : > { %15853 = vst [vmem:[#allocation14_spill] sm:$0xff] %v14144_v19  ;;  %v5401_v11 = vrot.slane %v5399_v1, 7  ;;  %v6388_v59 = vadd.f32 %v6387_v13, %v13839_v15  ;;  %v6012_v16 = vrot.slane %v6010_v50, 5  ;;  %v7247_v15 = vshll.u32 %v14149_v28, 16 }
 0x366   : > { %v6007_v41 = vor.u32 %v6006_v17, %v6002_v56  ;;  %v6003_v49 = vsel %vm11724_vm2, %v5998_v43, %v6002_v56  ;;  %v7253_v13 = vrot.slane %v7251_v10, 4  ;;  %v6476_v10 = vld [vmem:[#allocation2 + $0x84] sm:$0xe] }
 0x367   : > { %v5404_v61 = vor.u32 %v5402_v34, %v5401_v11  ;;  %v5406_v0 = vrot.slane %v5401_v11, 4  ;;  %v14151_v18 = vpop.f32.mrf.mxu1  ;;  %v14153_v35 = vadd.f32 %v6765_v7, %v6388_v59  ;;  %7121 = vmatmul.bf16.gmra.mxu0 %v11468_v27  ;;  %v6768_v51 = vpop.f32.mrf.mxu3  ;;  %v7189_v7 = vld [vmem:[#allocation2 + $0xc] sm:$0xf]  ;;  %v6061_v21 = vunpack.c.l.b16 %v6003_v49  ;;  %v14172_v34 = vld [vmem:[#allocation2 + $0x14] sm:$0x1] }
 0x368   : > { %v6008_v24 = vrot.slane %v6007_v41, 4  ;;  %v7238_v1 = vshrl.u32 %v7189_v7, 16  ;;  %v7241_v26 = vshll.u32 %v7189_v7, 16  ;;  %v7249_v46 = vrot.slane %v7247_v15, 5  ;;  %v7192_v7 = vld [vmem:[#allocation2 + $0x18] sm:$0xf] }
 0x369   : > { %15854 = vst [vmem:[#allocation15_spill] sm:$0xff] %v14153_v35  ;;  %v5405_v42 = vsel %vm11827_vm8, %v5397_v6, %v5404_v61  ;;  %v5564_v52 = vsel %vm11843_vm10, %v5406_v0, %v5563_v47  ;;  %6429 = vmatmul.bf16.gmra.mxu2 %v11428_v39  ;;  %v7257_v47 = vshll.u32 %v14172_v34, 16  ;;  %v6592_v41 = vrot.slane %v13934_v62, 5  ;;  %v11497_v0 = vld [vmem:[%s15767_s4 + $0x170] sm:$0xff] }
 0x36a   : > { %5562 = vst [vmem:[#allocation2 + $0xc4] sm:$0xf] %v5405_v42  ;;  %v6013_v45 = vsel %vm11724_vm2, %v6008_v24, %v6012_v16  ;;  %v7240_v59 = vrot.slane %v7238_v1, 4  ;;  %v7243_v27 = vrot.slane %v7241_v26, 5  ;;  %v7254_v6 = vor.u32 %v7253_v13, %v7249_v46  ;;  %v14183_v16 = vld [vmem:[#allocation2 + $0x1c] sm:$0xf]  ;;  %8177 = vmatpush.bf16.msra.mxu2 %v11497_v0 }
 0x36b   : > { %5565 = vst [vmem:[#allocation2 + $0xc8] sm:$0x1] %v5564_v52  ;;  %v6062_v58 = vunpack.c.l.b16 %v6013_v45  ;;  %v11429_v42 = vld [vmem:[#allocation2 + $0x78] sm:$0xff]  ;;  %v6594_v49 = vrot.slane %v6592_v41, 4  ;;  %v7271_v45 = vshll.u32 %v14183_v16, 16  ;;  %v6595_v1 = vrot.slane %v13945_v31, 5 }
 0x36c   : > { %v14165_v29 = vpop.f32.mrf.mxu0  ;;  %v6390_v14 = vpop.f32.mrf.mxu2  ;;  %v7244_v43 = vor.u32 %v7243_v27, %v7240_v59  ;;  %v7255_v24 = vrot.slane %v7254_v6, 4  ;;  %v7265_v26 = vshll.u32 %v7192_v7, 16 }
 0x36d   : > { %15855 = vst [vmem:[#allocation16_spill] sm:$0xff] %v14165_v29  ;;  %v6391_v23 = vadd.f32 %v6390_v14, %v13858_v44  ;;  %v6078_v56 = vpack.c.b16 %v6062_v58, %v6061_v21  ;;  %v7275_v58 = vshrl.u32 %v14183_v16, 16 }
 0x36e   : > { %v7245_v14 = vrot.slane %v7244_v43, 4 }
 0x36f   : > { %v14168_v17 = vpop.f32.mrf.mxu1  ;;  %v14170_v50 = vadd.f32 %v6768_v51, %v6391_v23  ;;  %v6770_v11 = vpop.f32.mrf.mxu3  ;;  %v11469_v51 = vld [vmem:[#allocation2 + $0x84] sm:$0xff]  ;;  %v7262_v23 = vshrl.u32 %v7192_v7, 16  ;;  %v11529_v7 = vld [vmem:[%s15767_s4 + $0x1f0] sm:$0xff] }
 0x370   : > { %v7250_v13 = vsel %vm11724_vm2, %v7245_v14, %v7249_v46  ;;  %9173 = vmatpush.bf16.msra.mxu0 %v11529_v7 }
 0x371   : > { %15856 = vst [vmem:[#allocation18_spill] sm:$0xff] %v14170_v50  ;;  %v7264_v43 = vrot.slane %v7262_v23, 4  ;;  %v11494_v50 = vld [vmem:[%s15767_s4 + $0x158] sm:$0xff] }
 0x372   : > { %6226 = vmatmul.bf16.gmra.mxu1 %v6078_v56  ;;  %v10794_v56 = vrot.slane %v6476_v10, 9 }
 0x374   : > { %v14176_v44 = vpop.f32.mrf.mxu0  ;;  %v6392_v61 = vpop.f32.mrf.mxu2  ;;  %6812 = vmatmul.bf16.gmra.mxu3 %v14102_v2  ;;  %v7259_v2 = vrot.slane %v7257_v47, 5  ;;  %v7273_v47 = vrot.slane %v7271_v45, 5  ;;  %v6593_v31 = vsel %vm12239_vm13, %v10794_v56, %v6592_v41  ;;  %v14215_v45 = vld [vmem:[#allocation2 + $0x28] sm:$0xf] }
 0x375   : > { %15857 = vst [vmem:[#allocation20_spill] sm:$0xff] %v14176_v44  ;;  %v6393_v39 = vadd.f32 %v6392_v61, %v13895_v36  ;;  %v11521_v36 = vld [vmem:[%s15767_s4 + $0x1b0] sm:$0xff]  ;;  %v7277_v61 = vrot.slane %v7275_v58, 4  ;;  %v7295_v23 = vshll.u32 %v14215_v45, 16 }
 0x376   : > { %v7260_v21 = vsel %vm11724_vm2, %v7255_v24, %v7259_v2  ;;  %8491 = vmatpush.bf16.msra.mxu3 %v11521_v36  ;;  %v7267_v24 = vrot.slane %v7265_v26, 5  ;;  %v7299_v26 = vshrl.u32 %v14215_v45, 16 }
 0x377   : > { %v14185_v15 = vpop.f32.mrf.mxu1  ;;  %v14187_v62 = vadd.f32 %v6770_v11, %v6393_v39  ;;  %7126 = vmatmul.bf16.gmra.mxu0 %v11469_v51  ;;  %v6773_v52 = vpop.f32.mrf.mxu3  ;;  %v6596_v11 = vsel %vm12239_vm13, %v6594_v49, %v6595_v1  ;;  %v7639_v6 = vunpack.c.l.b16 %v7260_v21  ;;  %v7638_v39 = vunpack.c.l.b16 %v7250_v13  ;;  %v14210_v49 = vld [vmem:[#allocation2 + $0x20] sm:$0x1]  ;;  %v11537_v21 = vld [vmem:[%s15767_s4 + $0x230] sm:$0xff] }
 0x378   : > { %v6665_v51 = vunpack.c.l.b16 %v6596_v11  ;;  %v7278_v10 = vor.u32 %v7277_v61, %v7273_v47  ;;  %v7268_v58 = vor.u32 %v7267_v24, %v7264_v43  ;;  %v7281_v14 = vshll.u32 %v14210_v49, 16  ;;  %9599 = vmatpush.bf16.msra.mxu1 %v11537_v21  ;;  %v11430_v43 = vld [vmem:[#allocation2 + $0x84] sm:$0xff] }
 0x379   : > { %15858 = vst [vmem:[#allocation17_spill] sm:$0xff] %v14187_v62  ;;  %6434 = vmatmul.bf16.gmra.mxu2 %v11429_v42  ;;  %v7670_v36 = vpack.c.b16 %v7639_v6, %v7638_v39  ;;  %v6599_v1 = vrot.slane %v13992_v22, 5  ;;  %v11470_v6 = vld [vmem:[#allocation2 + $0x90] sm:$0xff] }
 0x37a   : > { %v7279_v11 = vrot.slane %v7278_v10, 4  ;;  %v7283_v39 = vrot.slane %v7281_v14, 5 }
 0x37b   : > { %v6601_v7 = vrot.slane %v6599_v1, 4 }
 0x37c   : > { %v14201_v59 = vpop.f32.mrf.mxu0  ;;  %v6395_v27 = vpop.f32.mrf.mxu2  ;;  %v7284_v10 = vsel %vm11724_vm2, %v7279_v11, %v7283_v39 }
 0x37d   : > { %15859 = vst [vmem:[#allocation21_spill] sm:$0xff] %v14201_v59  ;;  %v6396_v0 = vadd.f32 %v6395_v27, %v13925_v5  ;;  %v6664_v5 = vunpack.c.l.b16 %v6593_v31  ;;  %v7269_v31 = vrot.slane %v7268_v58, 4  ;;  %v6602_v58 = vrot.slane %v13999_v4, 5 }
 0x37e   : > { %v7641_v21 = vunpack.c.l.b16 %v7284_v10 }
 0x37f   : > { %v14206_v46 = vpop.f32.mrf.mxu1  ;;  %v14208_v42 = vadd.f32 %v6773_v52, %v6396_v0  ;;  %v6775_v2 = vpop.f32.mrf.mxu3  ;;  %v6685_v41 = vpack.c.b16 %v6665_v51, %v6664_v5  ;;  %v7195_v52 = vld [vmem:[#allocation2 + $0x24] sm:$0xf]  ;;  %v7301_v5 = vrot.slane %v7299_v26, 4 }
 0x380   : > { %v7286_v61 = vshrl.u32 %v7195_v52, 16  ;;  %v7289_v0 = vshll.u32 %v7195_v52, 16  ;;  %v7197_v52 = vld [vmem:[#allocation2 + $0x2c] sm:$0x1] }
 0x381   : > { %15860 = vst [vmem:[#allocation22_spill] sm:$0xff] %v14208_v42 }
 0x382   : > { %7758 = vmatmul.bf16.vlgmr.msrb.gmra.mxu1 %v7670_v36  ;;  %v14231_v36 = vrot.slane %v7295_v23, 5  ;;  %v7288_v14 = vrot.slane %v7286_v61, 4  ;;  %v6603_v23 = vsel %vm12239_vm13, %v6601_v7, %v6602_v58  ;;  %v7305_v61 = vshll.u32 %v7197_v52, 16 }
 0x384   : > { %v14224_v13 = vpop.f32.mrf.mxu0  ;;  %v6397_v56 = vpop.f32.mrf.mxu2  ;;  %6817 = vmatmul.bf16.gmra.mxu3 %v6685_v41  ;;  %v7274_v41 = vsel %vm11724_vm2, %v7269_v31, %v7273_v47  ;;  %v7302_v26 = vor.u32 %v7301_v5, %v14231_v36  ;;  %v7198_v31 = vld [vmem:[#allocation2 + $0x30] sm:$0xf] }
 0x385   : > { %15861 = vst [vmem:[#allocation19_spill] sm:$0xff] %v14224_v13  ;;  %v6398_v27 = vadd.f32 %v6397_v56, %v13958_v54  ;;  %v6477_v54 = vld [vmem:[#allocation2 + $0x90] sm:$0xe]  ;;  %v7640_v39 = vunpack.c.l.b16 %v7274_v41  ;;  %v14251_v41 = vld [vmem:[#allocation2 + $0x1c] sm:$0xf]  ;;  %v7313_v59 = vshll.u32 %v7198_v31, 16 }
 0x386   : > { %v10795_v56 = vrot.slane %v6477_v54, 9  ;;  %v7951_v54 = vrot.slane %v14215_v45, 5  ;;  %v7303_v13 = vrot.slane %v7302_v26, 4  ;;  %v9359_v26 = vrot.slane %v14251_v41, 5 }
 0x387   : > { %v14227_v51 = vpop.f32.mrf.mxu1  ;;  %v14229_v22 = vadd.f32 %v6775_v2, %v6398_v27  ;;  %7131 = vmatmul.bf16.gmra.mxu0 %v11470_v6  ;;  %v6778_v24 = vpop.f32.mrf.mxu3  ;;  %v7291_v2 = vrot.slane %v7289_v0, 5  ;;  %v7873_v27 = vld [vmem:[#allocation2 + $0x24] sm:$0xe]  ;;  %v6667_v0 = vunpack.c.l.b16 %v6603_v23  ;;  %v7671_v58 = vpack.c.b16 %v7641_v21, %v7640_v39 }
 0x388   : > { %v6600_v4 = vsel %vm12239_vm13, %v10795_v56, %v6599_v1  ;;  %v11009_v10 = vrot.slane %v7873_v27, 9  ;;  %v7307_v23 = vrot.slane %v7305_v61, 5  ;;  %v7199_v27 = vld [vmem:[#allocation2 + $0x34] sm:$0xf] }
 0x389   : > { %15862 = vst [vmem:[#allocation3_spill] sm:$0xff] %v14229_v22  ;;  %6439 = vmatmul.bf16.gmra.mxu2 %v11430_v43  ;;  %v7292_v47 = vor.u32 %v7291_v2, %v7288_v14  ;;  %v7953_v14 = vrot.slane %v7951_v54, 4  ;;  %v7954_v2 = vrot.slane %v7197_v52, 5 }
 0x38a   : > { %v7952_v1 = vsel %vm12239_vm13, %v11009_v10, %v7951_v54  ;;  %v7308_v39 = vsel %vm11724_vm2, %v7303_v13, %v7307_v23  ;;  %v7319_v10 = vshll.u32 %v7199_v27, 16  ;;  %v7323_v54 = vshrl.u32 %v7199_v27, 16  ;;  %v11496_v13 = vld [vmem:[%s15767_s4 + $0x168] sm:$0xff]  ;;  %v7874_v23 = vld [vmem:[#allocation2 + $0x30] sm:$0xe] }
 0x38b   : > { %v7293_v56 = vrot.slane %v7292_v47, 4  ;;  %v7955_v21 = vsel %vm12239_vm13, %v7953_v14, %v7954_v2  ;;  %v8068_v52 = vunpack.c.l.b16 %v7952_v1  ;;  %v11471_v1 = vld [vmem:[#allocation2 + $0x9c] sm:$0xff]  ;;  %8178 = vmatpush.bf16.msra.mxu2 %v11496_v13  ;;  %v6609_v13 = vrot.slane %v14045_v32, 5 }
 0x38c   : > { %v14241_v6 = vpop.f32.mrf.mxu0  ;;  %v6400_v11 = vpop.f32.mrf.mxu2  ;;  %v14297_v44 = vrot.slane %v7319_v10, 5 }
 0x38d   : > { %15863 = vst [vmem:[#allocation4_spill] sm:$0xff] %v14241_v6  ;;  %v6401_v43 = vadd.f32 %v6400_v11, %v13983_v33  ;;  %v6666_v33 = vunpack.c.l.b16 %v6600_v4  ;;  %v7310_v11 = vshrl.u32 %v7198_v31, 16  ;;  %v8069_v4 = vunpack.c.l.b16 %v7955_v21  ;;  %v14268_v31 = vld [vmem:[#allocation2 + $0x38] sm:$0x1]  ;;  %v14283_v21 = vld [vmem:[#allocation2 + $0x28] sm:$0xf] }
 0x38e   : > { %v9366_v42 = vrot.slane %v14283_v21, 5  ;;  %v7329_v32 = vshll.u32 %v14268_v31, 16 }
 0x38f   : > { %v14247_v7 = vpop.f32.mrf.mxu1  ;;  %v14249_v5 = vadd.f32 %v6778_v24, %v6401_v43  ;;  %v6780_v6 = vpop.f32.mrf.mxu3  ;;  %v6686_v45 = vpack.c.b16 %v6667_v0, %v6666_v33  ;;  %v14255_v24 = vld [vmem:[#allocation2 + $0x20] sm:$0x1]  ;;  %v7298_v0 = vsel %vm11724_vm2, %v7293_v56, %v14231_v36  ;;  %v14274_v14 = vrot.slane %v7310_v11, 4  ;;  %v11431_v11 = vld [vmem:[#allocation2 + $0x90] sm:$0xff] }
 0x390   : > { %v14276_v2 = vpack.c.b16 %v8069_v4, %v8068_v52  ;;  %v14279_v36 = vunpack.c.l.b16 %v7308_v39  ;;  %v14281_v56 = vrot.slane %v7313_v59, 5  ;;  %v7958_v43 = vrot.slane %v7199_v27, 5  ;;  %v11520_v59 = vld [vmem:[%s15767_s4 + $0x1a8] sm:$0xff]  ;;  %v6478_v27 = vld [vmem:[#allocation2 + $0x9c] sm:$0xe] }
 0x391   : > { %15864 = vst [vmem:[#allocation23_spill] sm:$0xff] %v14249_v5  ;;  %v7642_v4 = vunpack.c.l.b16 %v7298_v0  ;;  %8492 = vmatpush.bf16.msra.mxu3 %v11520_v59 }
 0x392   : > { %7763 = vmatmul.bf16.gmra.mxu1 %v7671_v58  ;;  %v9361_v58 = vrot.slane %v9359_v26, 4  ;;  %v7960_v0 = vrot.slane %v7958_v43, 4 }
 0x393   : > { %v7672_v29 = vpack.c.b16 %v14279_v36, %v7642_v4 }
 0x394   : > { %v14263_v47 = vpop.f32.mrf.mxu0  ;;  %v6402_v61 = vpop.f32.mrf.mxu2  ;;  %6822 = vmatmul.bf16.gmra.mxu3 %v6686_v45  ;;  %v9362_v45 = vrot.slane %v14255_v24, 5 }
 0x395   : > { %15865 = vst [vmem:[#allocation24_spill] sm:$0xff] %v14263_v47  ;;  %v6403_v33 = vadd.f32 %v6402_v61, %v14010_v57  ;;  %v9293_v47 = vld [vmem:[#allocation2 + $0x18] sm:$0xe]  ;;  %v15867_v61 = vrot.slane %v14040_v60, 5 }
 0x396   : > { %v9363_v39 = vsel %vm12239_vm13, %v9361_v58, %v9362_v45  ;;  %v7316_v58 = vor.u32 %v14281_v56, %v14274_v14  ;;  %v14309_v45 = vld [vmem:[#allocation2 + $0x2c] sm:$0x1]  ;;  %v7201_v56 = vld [vmem:[#allocation2 + $0x3c] sm:$0xf] }
 0x397   : > { %v14285_v5 = vpop.f32.mrf.mxu1  ;;  %v14287_v57 = vadd.f32 %v6780_v6, %v6403_v33  ;;  %7136 = vmatmul.bf16.gmra.mxu0 %v11471_v1  ;;  %v6783_v52 = vpop.f32.mrf.mxu3  ;;  %v6608_v22 = vrot.slane %v15867_v61, 4  ;;  %v7325_v6 = vrot.slane %v7323_v54, 4  ;;  %v11010_v33 = vrot.slane %v7874_v23, 9 }
 0x398   : > { %v7961_v1 = vrot.slane %v14268_v31, 5  ;;  %v11231_v61 = vrot.slane %v9293_v47, 9  ;;  %v10796_v54 = vrot.slane %v6478_v27, 9 }
 0x399   : > { %15866 = vst [vmem:[#allocation6_spill] sm:$0xff] %v14287_v57  ;;  %6444 = vmatmul.bf16.gmra.mxu2 %v11431_v11  ;;  %v9294_v57 = vld [vmem:[#allocation2 + $0x24] sm:$0xe]  ;;  %v7959_v10 = vsel %vm12239_vm13, %v11010_v33, %v7958_v43  ;;  %v6610_v23 = vsel %vm12239_vm13, %v6608_v22, %v6609_v13  ;;  %v7326_v31 = vor.u32 %v7325_v6, %v14297_v44  ;;  %v9487_v43 = vunpack.c.l.b16 %v9363_v39  ;;  %v14323_v33 = vld [vmem:[#allocation2 + $0x40] sm:$0xf] }
 0x39a   : > { %v7962_v47 = vsel %vm12239_vm13, %v7960_v0, %v7961_v1  ;;  %v9360_v36 = vsel %vm12239_vm13, %v11231_v61, %v9359_v26  ;;  %v11232_v59 = vrot.slane %v9294_v57, 9  ;;  %v15869_v22 = vrot.slane %v14040_v60, 5  ;;  %v14325_v61 = vld [vmem:[#allocation2 + $0x34] sm:$0xf] }
 0x39b   : > { %v8071_v4 = vunpack.c.l.b16 %v7962_v47  ;;  %v8070_v0 = vunpack.c.l.b16 %v7959_v10  ;;  %v9368_v26 = vrot.slane %v9366_v42, 4  ;;  %v6669_v1 = vunpack.c.l.b16 %v6610_v23 }
 0x39c   : > { %v14315_v11 = vpop.f32.mrf.mxu0  ;;  %v6405_v14 = vpop.f32.mrf.mxu2  ;;  %v6607_v13 = vsel %vm12239_vm13, %v10796_v54, %v15869_v22  ;;  %v9367_v6 = vsel %vm12239_vm13, %v11232_v59, %v9366_v42  ;;  %v9369_v57 = vrot.slane %v14309_v45, 5  ;;  %v11528_v54 = vld [vmem:[%s15767_s4 + $0x1e8] sm:$0xff]  ;;  %v7334_v10 = vshrl.u32 %v7201_v56, 16  ;;  %v14340_v22 = vld [vmem:[#allocation2 + $0x38] sm:$0x1] }
 0x39d   : > { %15868 = vst [vmem:[#allocation5_spill] sm:$0xff] %v14315_v11  ;;  %v6406_v27 = vadd.f32 %v6405_v14, %v14033_v20  ;;  %v9486_v11 = vunpack.c.l.b16 %v9360_v36  ;;  %v7337_v47 = vshll.u32 %v7201_v56, 16  ;;  %v14337_v23 = vpack.c.b16 %v8071_v4, %v8070_v0  ;;  %9174 = vmatpush.bf16.msra.mxu0 %v11528_v54  ;;  %v14346_v59 = vld [vmem:[#allocation2 + $0x44] sm:$0x1] }
 0x39e   : > { %v6668_v14 = vunpack.c.l.b16 %v6607_v13  ;;  %v7343_v36 = vshll.u32 %v14323_v33, 16  ;;  %v9373_v62 = vrot.slane %v14325_v61, 5  ;;  %v7317_v4 = vrot.slane %v7316_v58, 4 }
 0x39f   : > { %v14330_v39 = vpop.f32.mrf.mxu1  ;;  %v14332_v20 = vadd.f32 %v6783_v52, %v6406_v27  ;;  %v6785_v60 = vpop.f32.mrf.mxu3  ;;  %15871 = vst [vmem:[#allocation8_spill] sm:$0xff] %v14337_v23  ;;  %v14342_v42 = vpack.c.b16 %v9487_v43, %v9486_v11  ;;  %v9370_v52 = vsel %vm12239_vm13, %v9368_v26, %v9369_v57  ;;  %v9488_v27 = vunpack.c.l.b16 %v9367_v6  ;;  %v11536_v11 = vld [vmem:[%s15767_s4 + $0x228] sm:$0xff]  ;;  %v9295_v43 = vld [vmem:[#allocation2 + $0x30] sm:$0xe] }
 0x3a0   : > { %v6687_v56 = vpack.c.b16 %v6669_v1, %v6668_v14  ;;  %v7327_v13 = vrot.slane %v7326_v31, 4  ;;  %v7347_v0 = vshrl.u32 %v14323_v33, 16  ;;  %v14354_v57 = vld [vmem:[#allocation2 + $0x48] sm:$0xf]  ;;  %v9375_v6 = vrot.slane %v9373_v62, 4  ;;  %9600 = vmatpush.bf16.msra.mxu1 %v11536_v11 }
 0x3a1   : > { %15870 = vst [vmem:[#allocation25_spill] sm:$0xff] %v14332_v20  ;;  %v9489_v20 = vunpack.c.l.b16 %v9370_v52  ;;  %v9376_v52 = vrot.slane %v14340_v22, 5  ;;  %v7331_v31 = vrot.slane %v7329_v32, 5  ;;  %v14361_v1 = vrot.slane %v7334_v10, 4  ;;  %v7875_v10 = vld [vmem:[#allocation2 + $0x3c] sm:$0xe] }
 0x3a2   : > { %15872 = vst [vmem:[#allocation7_spill] sm:$0xff] %v14342_v42  ;;  %7768 = vmatmul.bf16.gmra.mxu1 %v7672_v29  ;;  %v14363_v14 = vrot.slane %v7337_v47, 5  ;;  %v14365_v42 = vrot.slane %v7343_v36, 5  ;;  %v7322_v32 = vsel %vm11724_vm2, %v7317_v4, %v14297_v44  ;;  %v11233_v47 = vrot.slane %v9295_v43, 9  ;;  %v11432_v44 = vld [vmem:[#allocation2 + $0x9c] sm:$0xff] }
 0x3a3   : > { %v14356_v54 = vpack.c.b16 %v9489_v20, %v9488_v27  ;;  %v11519_v20 = vld [vmem:[%s15767_s4 + $0x1a0] sm:$0xff]  ;;  %v9377_v36 = vsel %vm12239_vm13, %v9375_v6, %v9376_v52  ;;  %v7332_v43 = vsel %vm11724_vm2, %v7327_v13, %v7331_v31  ;;  %v11526_v13 = vld [vmem:[%s15767_s4 + $0x1d8] sm:$0xff]  ;;  %v7361_v31 = vshll.u32 %v14354_v57, 16 }
 0x3a4   : > { %v14359_v29 = vpop.f32.mrf.mxu0  ;;  %v6407_v58 = vpop.f32.mrf.mxu2  ;;  %6827 = vmatmul.bf16.gmra.mxu3 %v6687_v56  ;;  %v11527_v27 = vld [vmem:[%s15767_s4 + $0x1e0] sm:$0xff]  ;;  %v14379_v56 = vrot.slane %v7347_v0, 4  ;;  %v15877_v0 = vrot.slane %v14087_v3, 5  ;;  %v6616_v11 = vrot.slane %v14093_v48, 5 }
 0x3a5   : > { %15873 = vst [vmem:[#allocation9_spill] sm:$0xff] %v14356_v54  ;;  %v6408_v26 = vadd.f32 %v6407_v58, %v14054_v25  ;;  %v11472_v54 = vld [vmem:[#allocation2 + $0xa8] sm:$0xff]  ;;  %8493 = vmatpush.bf16.msra.mxu3 %v11519_v20  ;;  %9175 = vmatpush.bf16.msra.mxu0 %v11527_v27  ;;  %v7965_v25 = vrot.slane %v14323_v33, 5  ;;  %v11495_v52 = vld [vmem:[%s15767_s4 + $0x160] sm:$0xff]  ;;  %v9374_v33 = vsel %vm12239_vm13, %v11233_v47, %v9373_v62  ;;  %v11011_v27 = vrot.slane %v7875_v10, 9 }
 0x3a6   : > { %15874 = vst [vmem:[#allocation26_spill] sm:$0xff] %v14359_v29  ;;  %v7358_v29 = vshrl.u32 %v14354_v57, 16  ;;  %v6615_v6 = vrot.slane %v15877_v0, 4  ;;  %v14395_v20 = vld [vmem:[#allocation2 + $0x4c] sm:$0xf]  ;;  %v9491_v0 = vunpack.c.l.b16 %v9377_v36  ;;  %v7340_v62 = vor.u32 %v14363_v14, %v14361_v1  ;;  %8179 = vmatpush.bf16.msra.mxu2 %v11495_v52 }
 0x3a7   : > { %v14384_v58 = vpop.f32.mrf.mxu1  ;;  %v14386_v19 = vadd.f32 %v6785_v60, %v6408_v26  ;;  %7141 = vmatmul.bf16.gmra.mxu0 %v11472_v54  ;;  %v6788_v4 = vpop.f32.mrf.mxu3  ;;  %v7644_v60 = vunpack.c.l.b16 %v7322_v32  ;;  %v6479_v26 = vld [vmem:[#allocation2 + $0xa8] sm:$0xe]  ;;  %v11518_v54 = vld [vmem:[%s15767_s4 + $0x198] sm:$0xff]  ;;  %v7967_v32 = vrot.slane %v7965_v25, 4  ;;  %v7968_v47 = vrot.slane %v14346_v59, 5 }
 0x3a8   : > { %15875 = vst [vmem:[#allocation10_spill] sm:$0xff] %v14384_v58  ;;  %v7367_v57 = vshll.u32 %v14395_v20, 16  ;;  %v14414_v10 = vld [vmem:[#allocation2 + $0x40] sm:$0xf]  ;;  %v7966_v48 = vsel %vm12239_vm13, %v11011_v27, %v7965_v25  ;;  %v9490_v36 = vunpack.c.l.b16 %v9374_v33  ;;  %v6617_v1 = vsel %vm12239_vm13, %v6615_v6, %v6616_v11  ;;  %v9296_v52 = vld [vmem:[#allocation2 + $0x3c] sm:$0xe] }
 0x3a9   : > { %15876 = vst [vmem:[#allocation11_spill] sm:$0xff] %v14386_v19  ;;  %6449 = vmatmul.bf16.gmra.mxu2 %v11432_v44  ;;  %v7645_v19 = vunpack.c.l.b16 %v7332_v43  ;;  %8494 = vmatpush.bf16.msra.mxu3 %v11518_v54  ;;  %v10797_v44 = vrot.slane %v6479_v26, 9  ;;  %v7371_v14 = vshrl.u32 %v14395_v20, 16  ;;  %v7969_v43 = vsel %vm12239_vm13, %v7967_v32, %v7968_v47  ;;  %v11517_v25 = vld [vmem:[%s15767_s4 + $0x190] sm:$0xff]  ;;  %v14440_v32 = vld [vmem:[#allocation2 + $0x44] sm:$0x1] }
 0x3aa   : > { %9176 = vmatpush.bf16.msra.mxu0 %v11526_v13  ;;  %v7350_v23 = vor.u32 %v14379_v56, %v14365_v42  ;;  %v11525_v33 = vld [vmem:[%s15767_s4 + $0x1d0] sm:$0xff]  ;;  %v14431_v11 = vrot.slane %v7358_v29, 4  ;;  %v8073_v6 = vunpack.c.l.b16 %v7969_v43  ;;  %v14433_v26 = vpack.c.b16 %v9491_v0, %v9490_v36  ;;  %8180 = vmatpush.bf16.msra.mxu2 %v11494_v50 }
 0x3ab   : > { %v15879_v27 = vrot.slane %v14087_v3, 5  ;;  %v8072_v47 = vunpack.c.l.b16 %v7966_v48  ;;  %v9380_v40 = vrot.slane %v14414_v10, 5  ;;  %v7673_v58 = vpack.c.b16 %v7645_v19, %v7644_v60  ;;  %v11493_v48 = vld [vmem:[%s15767_s4 + $0x150] sm:$0xff] }
 0x3ac   : > { %v6410_v54 = vpop.f32.mrf.mxu2  ;;  %15878 = vst [vmem:[#allocation12_spill] sm:$0xff] %v14433_v26  ;;  %v14443_v35 = vpop.f32.mrf.mxu0  ;;  %v6671_v29 = vunpack.c.l.b16 %v6617_v1  ;;  %v7363_v0 = vrot.slane %v7361_v31, 5  ;;  %v11234_v36 = vrot.slane %v9296_v52, 9  ;;  %v9383_v31 = vrot.slane %v14440_v32, 5 }
 0x3ad   : > { %v6411_v13 = vadd.f32 %v6410_v54, %v14078_v55  ;;  %v6614_v56 = vsel %vm12239_vm13, %v10797_v44, %v15879_v27  ;;  %15880 = vst [vmem:[#allocation27_spill] sm:$0xff] %v14443_v35  ;;  %8495 = vmatpush.bf16.msra.mxu3 %v11517_v25  ;;  %v14452_v44 = vrot.slane %v7367_v57, 5  ;;  %v7373_v54 = vrot.slane %v7371_v14, 4  ;;  %v11516_v57 = vld [vmem:[%s15767_s4 + $0x188] sm:$0xff] }
 0x3ae   : > { %9177 = vmatpush.bf16.msra.mxu0 %v11525_v33  ;;  %v14454_v27 = vpack.c.b16 %v8073_v6, %v8072_v47  ;;  %v6670_v19 = vunpack.c.l.b16 %v6614_v56  ;;  %v9381_v50 = vsel %vm12239_vm13, %v11234_v36, %v9380_v40  ;;  %v9382_v60 = vrot.slane %v9380_v40, 4  ;;  %8181 = vmatpush.bf16.msra.mxu2 %v11493_v48  ;;  %v11524_v14 = vld [vmem:[%s15767_s4 + $0x1c8] sm:$0xff]  ;;  %v11523_v48 = vld [vmem:[%s15767_s4 + $0x1c0] sm:$0xff] }
 0x3af   : > { %v14445_v43 = vpop.f32.mrf.mxu1  ;;  %v14447_v55 = vadd.f32 %v6788_v4, %v6411_v13  ;;  %v6790_v3 = vpop.f32.mrf.mxu3  ;;  %v14459_v4 = vld [vmem:[#allocation2 + $0x50] sm:$0x1]  ;;  %v7351_v52 = vrot.slane %v7350_v23, 4  ;;  %v11492_v40 = vld [vmem:[%s15767_s4 + $0x148] sm:$0xff]  ;;  %v7364_v23 = vor.u32 %v7363_v0, %v14431_v11  ;;  %v9492_v33 = vunpack.c.l.b16 %v9381_v50 }
 0x3b0   : > { %v6688_v1 = vpack.c.b16 %v6671_v29, %v6670_v19  ;;  %v9384_v25 = vsel %vm12239_vm13, %v9382_v60, %v9383_v31  ;;  %v7341_v56 = vrot.slane %v7340_v62, 4  ;;  %v15882_v47 = vshll.u32 %v14346_v59, 16  ;;  %v8611_v19 = vld [vmem:[#allocation2 + $0x18] sm:$0xf]  ;;  %v11515_v62 = vld [vmem:[%s15767_s4 + $0x180] sm:$0xff] }
 0x3b1   : > { %15881 = vst [vmem:[#allocation28_spill] sm:$0xff] %v14447_v55  ;;  %v9493_v6 = vunpack.c.l.b16 %v9384_v25  ;;  %v7374_v36 = vor.u32 %v7373_v54, %v14452_v44  ;;  %v11473_v60 = vld [vmem:[#allocation2 + $0xb4] sm:$0xff]  ;;  %v7377_v11 = vshll.u32 %v14459_v4, 16  ;;  %8496 = vmatpush.bf16.msra.mxu3 %v11516_v57  ;;  %v8673_v50 = vshrl.u32 %v14251_v41, 16  ;;  %v14494_v31 = vld [vmem:[#allocation2 + $0x4c] sm:$0xf] }
 0x3b2   : > { %7773 = vmatmul.bf16.gmra.mxu1 %v7673_v58  ;;  %v6620_v58 = vrot.slane %v14135_v63, 5  ;;  %v7355_v29 = vrot.slane %v15882_v47, 5  ;;  %9178 = vmatpush.bf16.msra.mxu0 %v11524_v14  ;;  %v7346_v0 = vsel %vm11724_vm2, %v7341_v56, %v14365_v42  ;;  %v11433_v14 = vld [vmem:[#allocation2 + $0xa8] sm:$0xff]  ;;  %v11491_v42 = vld [vmem:[%s15767_s4 + $0x140] sm:$0xff]  ;;  %v8663_v56 = vshll.u32 %v8611_v19, 16 }
 0x3b3   : > { %v14485_v59 = vpack.c.b16 %v9493_v6, %v9492_v33  ;;  %8182 = vmatpush.bf16.msra.mxu2 %v11492_v40  ;;  %v7365_v6 = vrot.slane %v7364_v23, 4  ;;  %v14505_v47 = vld [vmem:[#allocation2 + $0x50] sm:$0x1]  ;;  %v9387_v23 = vrot.slane %v14494_v31, 5 }
 0x3b4   : > { %v6412_v13 = vpop.f32.mrf.mxu2  ;;  %6832 = vmatmul.bf16.gmra.mxu3 %v6688_v1  ;;  %v7356_v54 = vsel %vm11724_vm2, %v7351_v52, %v7355_v29  ;;  %v6622_v33 = vrot.slane %v6620_v58, 4  ;;  %v8660_v52 = vshrl.u32 %v8611_v19, 16  ;;  %v14503_v40 = vpop.f32.mrf.mxu0  ;;  %v8665_v35 = vrot.slane %v8663_v56, 5 }
 0x3b5   : > { %v6413_v63 = vadd.f32 %v6412_v13, %v14107_v9  ;;  %15883 = vst [vmem:[#allocation29_spill] sm:$0xff] %v14485_v59  ;;  %v8669_v9 = vshll.u32 %v14251_v41, 16  ;;  %v6480_v13 = vld [vmem:[#allocation2 + $0xb4] sm:$0xe]  ;;  %v7375_v41 = vrot.slane %v7374_v36, 4  ;;  %v7647_v29 = vunpack.c.l.b16 %v7356_v54  ;;  %8497 = vmatpush.bf16.msra.mxu3 %v11515_v62 }
 0x3b6   : > { %15885 = vst [vmem:[#allocation31_spill] sm:$0xff] %v14503_v40  ;;  %9179 = vmatpush.bf16.msra.mxu0 %v11523_v48  ;;  %v7379_v59 = vrot.slane %v7377_v11, 5  ;;  %v8675_v36 = vrot.slane %v8673_v50, 4  ;;  %v10798_v48 = vrot.slane %v6480_v13, 9  ;;  %v9389_v54 = vrot.slane %v9387_v23, 4 }
 0x3b7   : > { %v14496_v1 = vpop.f32.mrf.mxu1  ;;  %v14498_v57 = vadd.f32 %v6790_v3, %v6413_v63  ;;  %7146 = vmatmul.bf16.gmra.mxu0 %v11473_v60  ;;  %v6793_v25 = vpop.f32.mrf.mxu3  ;;  %v7646_v3 = vunpack.c.l.b16 %v7346_v0  ;;  %v6623_v63 = vrot.slane %v14137_v37, 5  ;;  %v7370_v60 = vsel %vm11724_vm2, %v7365_v6, %v14452_v44  ;;  %8183 = vmatpush.bf16.msra.mxu2 %v11491_v42  ;;  %v9297_v0 = vld [vmem:[#allocation2 + $0x48] sm:$0xe]  ;;  %v7871_v13 = vld [vmem:[#allocation2 + $0xc] sm:$0xe] }
 0x3b8   : > { %v14512_v26 = vrot.slane %v8669_v9, 5  ;;  %v9390_v37 = vrot.slane %v14505_v47, 5  ;;  %v8662_v40 = vrot.slane %v8660_v52, 4  ;;  %v7937_v44 = vrot.slane %v14149_v28, 5 }
 0x3b9   : > { %15884 = vst [vmem:[#allocation30_spill] sm:$0xff] %v14498_v57  ;;  %6454 = vmatmul.bf16.gmra.mxu2 %v11433_v14  ;;  %v6624_v19 = vsel %vm12239_vm13, %v6622_v33, %v6623_v63  ;;  %v7380_v14 = vsel %vm11724_vm2, %v7375_v41, %v7379_v59  ;;  %v6621_v9 = vsel %vm12239_vm13, %v10798_v48, %v6620_v58  ;;  %v8679_v50 = vshll.u32 %v14255_v24, 16  ;;  %v8614_v63 = vld [vmem:[#allocation2 + $0x24] sm:$0xf] }
 0x3ba   : > { %v9391_v33 = vsel %vm12239_vm13, %v9389_v54, %v9390_v37  ;;  %v7674_v6 = vpack.c.b16 %v7647_v29, %v7646_v3  ;;  %v6673_v42 = vunpack.c.l.b16 %v6624_v19  ;;  %v11235_v57 = vrot.slane %v9297_v0, 9 }
 0x3bb   : > { %v14530_v41 = vunpack.c.l.b16 %v7370_v60  ;;  %v8676_v58 = vor.u32 %v8675_v36, %v14512_v26  ;;  %v6672_v24 = vunpack.c.l.b16 %v6621_v9  ;;  %v8666_v56 = vor.u32 %v8665_v35, %v8662_v40  ;;  %v11535_v35 = vld [vmem:[%s15767_s4 + $0x220] sm:$0xff] }
 0x3bc   : > { %v6415_v62 = vpop.f32.mrf.mxu2  ;;  %v7939_v48 = vrot.slane %v7937_v44, 4  ;;  %v9388_v3 = vsel %vm12239_vm13, %v11235_v57, %v9387_v23  ;;  %v14537_v29 = vrot.slane %v8679_v50, 5  ;;  %v11007_v19 = vrot.slane %v7871_v13, 9  ;;  %v14541_v37 = vpop.f32.mrf.mxu0  ;;  %9601 = vmatpush.bf16.msra.mxu1 %v11535_v35  ;;  %v7207_v35 = vld [vmem:[#allocation2 + $0x54] sm:$0xf] }
 0x3bd   : > { %v6416_v11 = vadd.f32 %v6415_v62, %v14126_v8  ;;  %v14532_v8 = vunpack.c.l.b16 %v7380_v14  ;;  %v8684_v0 = vshrl.u32 %v8614_v63, 16  ;;  %v8687_v54 = vshll.u32 %v8614_v63, 16  ;;  %15887 = vst [vmem:[#allocation33_spill] sm:$0xff] %v14541_v37 }
 0x3be   : > { %v6689_v60 = vpack.c.b16 %v6673_v42, %v6672_v24  ;;  %v7940_v62 = vrot.slane %v14172_v34, 5  ;;  %v8693_v40 = vshll.u32 %v14283_v21, 16  ;;  %v8697_v57 = vshrl.u32 %v14283_v21, 16  ;;  %v7208_v42 = vld [vmem:[#allocation2 + $0x58] sm:$0xf] }
 0x3bf   : > { %v14526_v59 = vpop.f32.mrf.mxu1  ;;  %v14528_v52 = vadd.f32 %v6793_v25, %v6416_v11  ;;  %v6795_v28 = vpop.f32.mrf.mxu3  ;;  %v14539_v25 = vld [vmem:[#allocation2 + $0x18] sm:$0xe]  ;;  %v8677_v23 = vrot.slane %v8676_v58, 4  ;;  %v14551_v36 = vsel %vm12239_vm13, %v11007_v19, %v7937_v44  ;;  %v9494_v14 = vunpack.c.l.b16 %v9388_v3  ;;  %v11474_v44 = vld [vmem:[#allocation2 + $0xc0] sm:$0xff]  ;;  %v14566_v3 = vld [vmem:[#allocation2 + $0x5c] sm:$0x1] }
 0x3c0   : > { %v9495_v11 = vunpack.c.l.b16 %v9391_v33  ;;  %v8667_v50 = vrot.slane %v8666_v56, 4  ;;  %v11008_v21 = vrot.slane %v14539_v25, 9  ;;  %v8686_v63 = vrot.slane %v8684_v0, 4  ;;  %v7877_v33 = vld [vmem:[#allocation2 + $0x54] sm:$0xe] }
 0x3c1   : > { %15886 = vst [vmem:[#allocation32_spill] sm:$0xff] %v14528_v52  ;;  %v8689_v58 = vrot.slane %v8687_v54, 5  ;;  %v8699_v19 = vrot.slane %v8697_v57, 4  ;;  %v11434_v0 = vld [vmem:[#allocation2 + $0xb4] sm:$0xff]  ;;  %v7391_v57 = vshll.u32 %v7208_v42, 16  ;;  %v7382_v34 = vshrl.u32 %v7207_v35, 16 }
 0x3c2   : > { %7778 = vmatmul.bf16.gmra.mxu1 %v7674_v6  ;;  %v14557_v6 = vsel %vm12239_vm13, %v7939_v48, %v7940_v62  ;;  %v14561_v24 = vpack.c.b16 %v9495_v11, %v9494_v14  ;;  %v8672_v56 = vsel %vm11724_vm2, %v8667_v50, %v14512_v26  ;;  %v14568_v48 = vrot.slane %v8693_v40, 5 }
 0x3c3   : > { %v8682_v62 = vsel %vm11724_vm2, %v8677_v23, %v14537_v29  ;;  %v7979_v14 = vrot.slane %v7208_v42, 5  ;;  %v8065_v40 = vunpack.c.l.b16 %v14557_v6  ;;  %v7395_v11 = vshrl.u32 %v7208_v42, 16 }
 0x3c4   : > { %v6417_v9 = vpop.f32.mrf.mxu2  ;;  %6837 = vmatmul.bf16.gmra.mxu3 %v6689_v60  ;;  %15888 = vst [vmem:[#allocation34_spill] sm:$0xff] %v14561_v24  ;;  %v7944_v60 = vrot.slane %v14183_v16, 5  ;;  %v14580_v16 = vld [vmem:[#allocation2 + $0x58] sm:$0xf]  ;;  %v8690_v50 = vor.u32 %v8689_v58, %v8686_v63  ;;  %v8700_v29 = vor.u32 %v8699_v19, %v14568_v48  ;;  %v8703_v23 = vshll.u32 %v14309_v45, 16  ;;  %v14593_v58 = vpop.f32.mrf.mxu0 }
 0x3c5   : > { %v6418_v13 = vadd.f32 %v6417_v9, %v14151_v18  ;;  %v11013_v9 = vrot.slane %v7877_v33, 9  ;;  %v7947_v42 = vrot.slane %v14210_v49, 5  ;;  %v8617_v24 = vld [vmem:[#allocation2 + $0x30] sm:$0xf]  ;;  %v9394_v63 = vrot.slane %v14580_v16, 5  ;;  %15890 = vst [vmem:[#allocation36_spill] sm:$0xff] %v14593_v58 }
 0x3c6   : > { %v7946_v26 = vrot.slane %v7944_v60, 4  ;;  %v14595_v19 = vrot.slane %v7391_v57, 5  ;;  %v7397_v45 = vrot.slane %v7395_v11, 4  ;;  %v7945_v49 = vsel %vm12239_vm13, %v11008_v21, %v7944_v60  ;;  %v14602_v58 = vld [vmem:[#allocation2 + $0x5c] sm:$0x1] }
 0x3c7   : > { %v14571_v25 = vpop.f32.mrf.mxu1  ;;  %v14573_v18 = vadd.f32 %v6795_v28, %v6418_v13  ;;  %7151 = vmatmul.bf16.gmra.mxu0 %v11474_v44  ;;  %v6798_v54 = vpop.f32.mrf.mxu3  ;;  %v14582_v28 = vunpack.c.l.b16 %v8672_v56  ;;  %v7981_v13 = vrot.slane %v7979_v14, 4  ;;  %v7982_v44 = vrot.slane %v14566_v3, 5 }
 0x3c8   : > { %v7980_v6 = vsel %vm12239_vm13, %v11013_v9, %v7979_v14  ;;  %v9061_v14 = vunpack.c.l.b16 %v8682_v62  ;;  %v8701_v52 = vrot.slane %v8700_v29, 4  ;;  %v8711_v55 = vshll.u32 %v8617_v24, 16 }
 0x3c9   : > { %15889 = vst [vmem:[#allocation35_spill] sm:$0xff] %v14573_v18  ;;  %6459 = vmatmul.bf16.gmra.mxu2 %v11434_v0  ;;  %v7983_v33 = vsel %vm12239_vm13, %v7981_v13, %v7982_v44  ;;  %v7385_v0 = vshll.u32 %v7207_v35, 16  ;;  %v8076_v9 = vunpack.c.l.b16 %v7980_v6  ;;  %v7948_v13 = vsel %vm12239_vm13, %v7946_v26, %v7947_v42  ;;  %v9298_v6 = vld [vmem:[#allocation2 + $0x54] sm:$0xe] }
 0x3ca   : > { %v8077_v37 = vunpack.c.l.b16 %v7983_v33  ;;  %v8708_v44 = vshrl.u32 %v8617_v24, 16  ;;  %v8691_v33 = vrot.slane %v8690_v50, 4  ;;  %v9396_v62 = vrot.slane %v9394_v63, 4 }
 0x3cb   : > { %v7387_v21 = vrot.slane %v7385_v0, 5  ;;  %v7398_v60 = vor.u32 %v7397_v45, %v14595_v19  ;;  %v8705_v29 = vrot.slane %v8703_v23, 5  ;;  %v8066_v26 = vunpack.c.l.b16 %v7945_v49 }
 0x3cc   : > { %v6420_v56 = vpop.f32.mrf.mxu2  ;;  %v8696_v24 = vsel %vm11724_vm2, %v8691_v33, %v14568_v48  ;;  %v8067_v42 = vunpack.c.l.b16 %v7948_v13  ;;  %v8710_v23 = vrot.slane %v8708_v44, 4  ;;  %v8713_v0 = vrot.slane %v8711_v55, 5 }
 0x3cd   : > { %v6421_v18 = vadd.f32 %v6420_v56, %v14168_v17  ;;  %v14608_v17 = vpack.c.b16 %v8077_v37, %v8076_v9  ;;  %v7384_v56 = vrot.slane %v7382_v34, 4  ;;  %v11499_v37 = vld [vmem:[#allocation2 + $0x18] sm:$0xff]  ;;  %v7401_v34 = vshll.u32 %v14566_v3, 16 }
 0x3ce   : > { %v8706_v50 = vsel %vm11724_vm2, %v8701_v52, %v8705_v29  ;;  %v8717_v45 = vshll.u32 %v14325_v61, 16  ;;  %v8721_v48 = vshrl.u32 %v14325_v61, 16  ;;  %v11236_v49 = vrot.slane %v9298_v6, 9  ;;  %v7211_v52 = vld [vmem:[#allocation2 + $0x64] sm:$0xf] }
 0x3cf   : > { %v14604_v35 = vpop.f32.mrf.mxu1  ;;  %v14606_v57 = vadd.f32 %v6798_v54, %v6421_v18  ;;  %v6800_v11 = vpop.f32.mrf.mxu3  ;;  %v9397_v18 = vrot.slane %v14602_v58, 5  ;;  %v15892_v54 = vpack.c.b16 %v14532_v8, %v14530_v41  ;;  %v9092_v41 = vpack.c.b16 %v9061_v14, %v14582_v28  ;;  %v14639_v28 = vld [vmem:[#allocation2 + $0x68] sm:$0x1] }
 0x3d0   : > { %v15893_v8 = vunpack.c.l.b16 %v14551_v36  ;;  %v7388_v33 = vor.u32 %v7387_v21, %v7384_v56  ;;  %v14629_v44 = vunpack.c.l.b16 %v8696_v24  ;;  %v14631_v29 = vpack.c.b16 %v8067_v42, %v8066_v26 }
 0x3d1   : > { %15891 = vst [vmem:[#allocation37_spill] sm:$0xff] %v14606_v57  ;;  %v9398_v9 = vsel %vm12239_vm13, %v9396_v62, %v9397_v18  ;;  %v9395_v61 = vsel %vm12239_vm13, %v11236_v49, %v9394_v63  ;;  %v14635_v62 = vpop.f32.mrf.mxu0  ;;  %v7403_v6 = vrot.slane %v7401_v34, 5  ;;  %v14637_v18 = vunpack.c.l.b16 %v8706_v50  ;;  %v8620_v63 = vld [vmem:[#allocation2 + $0x3c] sm:$0xf]  ;;  %v7210_v34 = vld [vmem:[#allocation2 + $0x60] sm:$0xf] }
 0x3d2   : > { %7783 = vmatmul.bf16.gmra.mxu1 %v15892_v54  ;;  %v8096_v3 = vpack.c.b16 %v8065_v40, %v15893_v8  ;;  %v7399_v54 = vrot.slane %v7398_v60, 4  ;;  %15894 = vst [vmem:[#allocation38_spill] sm:$0xff] %v14635_v62  ;;  %v8714_v36 = vor.u32 %v8713_v0, %v8710_v23  ;;  %v7878_v40 = vld [vmem:[#allocation2 + $0x60] sm:$0xe]  ;;  %v9497_v14 = vunpack.c.l.b16 %v9398_v9  ;;  %v14670_v62 = vld [vmem:[#allocation2 + $0x48] sm:$0xf] }
 0x3d3   : > { %v14645_v60 = vrot.slane %v8717_v45, 5  ;;  %v8723_v24 = vrot.slane %v8721_v48, 4  ;;  %v7986_v26 = vrot.slane %v7211_v52, 5  ;;  %v7389_v42 = vrot.slane %v7388_v33, 4 }
 0x3d4   : > { %v6422_v13 = vpop.f32.mrf.mxu2  ;;  %8498 = vmatmul.bf16.vlgmr.msra.gmra.mxu3 %v11499_v37  ;;  %v7404_v37 = vsel %vm11724_vm2, %v7399_v54, %v7403_v6  ;;  %v7415_v50 = vshll.u32 %v7211_v52, 16  ;;  %v9496_v23 = vunpack.c.l.b16 %v9395_v61  ;;  %v7419_v0 = vshrl.u32 %v7211_v52, 16 }
 0x3d5   : > { %v6423_v55 = vadd.f32 %v6422_v13, %v14185_v15  ;;  %v11014_v49 = vrot.slane %v7878_v40, 9  ;;  %v7988_v9 = vrot.slane %v7986_v26, 4  ;;  %v7394_v45 = vsel %vm11724_vm2, %v7389_v42, %v14595_v19  ;;  %v14660_v40 = vld [vmem:[#allocation2 + $0x64] sm:$0xf] }
 0x3d6   : > { %v8732_v48 = vshrl.u32 %v8620_v63, 16  ;;  %v8735_v13 = vshll.u32 %v8620_v63, 16  ;;  %v7406_v8 = vshrl.u32 %v7210_v34, 16  ;;  %v7409_v33 = vshll.u32 %v7210_v34, 16 }
 0x3d7   : > { %v14641_v56 = vpop.f32.mrf.mxu1  ;;  %v14643_v15 = vadd.f32 %v6800_v11, %v6423_v55  ;;  %9180 = vmatmul.bf16.vlgmr.msra.gmra.mxu0 %v9092_v41  ;;  %v6803_v21 = vpop.f32.mrf.mxu3  ;;  %v7989_v11 = vrot.slane %v14639_v28, 5  ;;  %v14653_v41 = vpack.c.b16 %v9497_v14, %v9496_v23  ;;  %v7987_v54 = vsel %vm12239_vm13, %v11014_v49, %v7986_v26 }
 0x3d8   : > { %v7651_v55 = vunpack.c.l.b16 %v7404_v37  ;;  %v8715_v61 = vrot.slane %v8714_v36, 4  ;;  %v8727_v6 = vshll.u32 %v14340_v22, 16  ;;  %v14663_v14 = vrot.slane %v7415_v50, 5 }
 0x3d9   : > { %15895 = vst [vmem:[#allocation39_spill] sm:$0xff] %v14643_v15  ;;  %8184 = vmatmul.bf16.vlgmr.msra.gmra.mxu2 %v8096_v3  ;;  %v7990_v3 = vsel %vm12239_vm13, %v7988_v9, %v7989_v11  ;;  %v7421_v42 = vrot.slane %v7419_v0, 4  ;;  %v8724_v34 = vor.u32 %v8723_v24, %v14645_v60  ;;  %v7650_v23 = vunpack.c.l.b16 %v7394_v45  ;;  %v14673_v50 = vpop.f32.mrf.mxu0 }
 0x3da   : > { %15896 = vst [vmem:[#allocation40_spill] sm:$0xff] %v14653_v41  ;;  %v8079_v19 = vunpack.c.l.b16 %v7990_v3  ;;  %v8734_v26 = vrot.slane %v8732_v48, 4  ;;  %v8737_v49 = vrot.slane %v8735_v13, 5  ;;  %v8078_v41 = vunpack.c.l.b16 %v7987_v54  ;;  %v14677_v48 = vld [vmem:[#allocation2 + $0x68] sm:$0x1] }
 0x3db   : > { %v7408_v22 = vrot.slane %v7406_v8, 4  ;;  %v7411_v11 = vrot.slane %v7409_v33, 5  ;;  %15898 = vst [vmem:[#allocation42_spill] sm:$0xff] %v14673_v50  ;;  %v7676_v0 = vpack.c.b16 %v7651_v55, %v7650_v23  ;;  %v8741_v24 = vshll.u32 %v14414_v10, 16  ;;  %v9299_v3 = vld [vmem:[#allocation2 + $0x60] sm:$0xe] }
 0x3dc   : > { %v6425_v52 = vpop.f32.mrf.mxu2  ;;  %v8745_v45 = vshrl.u32 %v14414_v10, 16  ;;  %v14679_v13 = vpack.c.b16 %v8079_v19, %v8078_v41  ;;  %v7422_v8 = vor.u32 %v7421_v42, %v14663_v14  ;;  %v8720_v33 = vsel %vm11724_vm2, %v8715_v61, %v14645_v60  ;;  %v11534_v10 = vld [vmem:[%s15767_s4 + $0x218] sm:$0xff] }
 0x3dd   : > { %v6426_v63 = vadd.f32 %v6425_v52, %v14206_v46  ;;  %v9401_v46 = vrot.slane %v14660_v40, 5  ;;  %v8725_v54 = vrot.slane %v8724_v34, 4  ;;  %v11500_v52 = vld [vmem:[#allocation2 + $0x24] sm:$0xff]  ;;  %v8729_v55 = vrot.slane %v8727_v6, 5  ;;  %9602 = vmatpush.bf16.msra.mxu1 %v11534_v10 }
 0x3de   : > { %v8738_v41 = vor.u32 %v8737_v49, %v8734_v26  ;;  %v8751_v19 = vshll.u32 %v14440_v32, 16  ;;  %v9404_v60 = vrot.slane %v14677_v48, 5  ;;  %v14694_v34 = vunpack.c.l.b16 %v8720_v33 }
 0x3df   : > { %v14666_v9 = vpop.f32.mrf.mxu1  ;;  %v14668_v37 = vadd.f32 %v6803_v21, %v6426_v63  ;;  %v6805_v36 = vpop.f32.mrf.mxu3  ;;  %v9093_v21 = vpack.c.b16 %v14637_v18, %v14629_v44  ;;  %v8756_v44 = vshrl.u32 %v14670_v62, 16  ;;  %v7412_v18 = vor.u32 %v7411_v11, %v7408_v22  ;;  %v7214_v22 = vld [vmem:[#allocation2 + $0x70] sm:$0xf] }
 0x3e0   : > { %v7425_v63 = vshll.u32 %v14639_v28, 16  ;;  %v9403_v42 = vrot.slane %v9401_v46, 4  ;;  %v14696_v6 = vrot.slane %v8741_v24, 5  ;;  %v8747_v23 = vrot.slane %v8745_v45, 4 }
 0x3e1   : > { %15897 = vst [vmem:[#allocation41_spill] sm:$0xff] %v14668_v37  ;;  %v7423_v32 = vrot.slane %v7422_v8, 4  ;;  %v8730_v49 = vsel %vm11724_vm2, %v8725_v54, %v8729_v55  ;;  %v14703_v11 = vrot.slane %v8738_v41, 4  ;;  %v8759_v33 = vshll.u32 %v14670_v62, 16  ;;  %v7213_v55 = vld [vmem:[#allocation2 + $0x6c] sm:$0xf] }
 0x3e2   : > { %7788 = vmatmul.bf16.gmra.mxu1 %v7676_v0  ;;  %v11237_v0 = vrot.slane %v9299_v3, 9  ;;  %v9405_v28 = vsel %vm12239_vm13, %v9403_v42, %v9404_v60  ;;  %v7413_v54 = vrot.slane %v7412_v18, 4  ;;  %v7427_v3 = vrot.slane %v7425_v63, 5  ;;  %v14716_v41 = vld [vmem:[#allocation2 + $0x74] sm:$0x1]  ;;  %v14722_v63 = vpop.f32.mrf.mxu0 }
 0x3e3   : > { %v8758_v10 = vrot.slane %v8756_v44, 4  ;;  %v14714_v42 = vunpack.c.l.b16 %v8730_v49  ;;  %v8748_v62 = vor.u32 %v8747_v23, %v14696_v6  ;;  %v7879_v60 = vld [vmem:[#allocation2 + $0x6c] sm:$0xe]  ;;  %v9499_v18 = vunpack.c.l.b16 %v9405_v28  ;;  %15900 = vst [vmem:[#allocation44_spill] sm:$0xff] %v14722_v63 }
 0x3e4   : > { %v6427_v61 = vpop.f32.mrf.mxu2  ;;  %8503 = vmatmul.bf16.gmra.mxu3 %v11500_v52  ;;  %v14705_v52 = vrot.slane %v8751_v19, 5  ;;  %v9402_v24 = vsel %vm12239_vm13, %v11237_v0, %v9401_v46  ;;  %v7439_v19 = vshll.u32 %v7214_v22, 16  ;;  %v7443_v46 = vshrl.u32 %v7214_v22, 16 }
 0x3e5   : > { %v6428_v26 = vadd.f32 %v6427_v61, %v14227_v51  ;;  %v7993_v61 = vrot.slane %v7214_v22, 5  ;;  %v7418_v44 = vsel %vm11724_vm2, %v7413_v54, %v14663_v14  ;;  %v7430_v0 = vshrl.u32 %v7213_v55, 16 }
 0x3e6   : > { %v8761_v49 = vrot.slane %v8759_v33, 5  ;;  %v11015_v23 = vrot.slane %v7879_v60, 9  ;;  %v7996_v50 = vrot.slane %v14716_v41, 5  ;;  %v14730_v22 = vrot.slane %v7439_v19, 5  ;;  %v8626_v33 = vld [vmem:[#allocation2 + $0x54] sm:$0xf] }
 0x3e7   : > { %v14710_v45 = vpop.f32.mrf.mxu1  ;;  %v14712_v51 = vadd.f32 %v6805_v36, %v6428_v26  ;;  %9185 = vmatmul.bf16.gmra.mxu0 %v9093_v21  ;;  %v6808_v8 = vpop.f32.mrf.mxu3  ;;  %v7428_v36 = vsel %vm11724_vm2, %v7423_v32, %v7427_v3  ;;  %v9498_v21 = vunpack.c.l.b16 %v9402_v24  ;;  %v7433_v26 = vshll.u32 %v7213_v55, 16 }
 0x3e8   : > { %v7653_v32 = vunpack.c.l.b16 %v7428_v36  ;;  %v8744_v28 = vsel %vm11724_vm2, %v14703_v11, %v14696_v6  ;;  %v8749_v24 = vrot.slane %v8748_v62, 4  ;;  %v7445_v54 = vrot.slane %v7443_v46, 4 }
 0x3e9   : > { %15899 = vst [vmem:[#allocation43_spill] sm:$0xff] %v14712_v51  ;;  %8189 = vmatmul.bf16.gmra.mxu2 %v14631_v29  ;;  %v7995_v51 = vrot.slane %v7993_v61, 4  ;;  %v14728_v29 = vpack.c.b16 %v9499_v18, %v9498_v21  ;;  %v7994_v3 = vsel %vm12239_vm13, %v11015_v23, %v7993_v61  ;;  %v7652_v60 = vunpack.c.l.b16 %v7418_v44  ;;  %v14743_v18 = vld [vmem:[#allocation2 + $0x70] sm:$0xf] }
 0x3ea   : > { %v8762_v36 = vor.u32 %v8761_v49, %v8758_v10  ;;  %v8765_v19 = vshll.u32 %v14494_v31, 16  ;;  %v8769_v21 = vshrl.u32 %v14494_v31, 16  ;;  %v7435_v62 = vrot.slane %v7433_v26, 5  ;;  %v9300_v49 = vld [vmem:[#allocation2 + $0x6c] sm:$0xe] }
 0x3eb   : > { %15901 = vst [vmem:[#allocation45_spill] sm:$0xff] %v14728_v29  ;;  %v7997_v55 = vsel %vm12239_vm13, %v7995_v51, %v7996_v50  ;;  %v15771_v61 = vrot.slane %v14395_v20, 5  ;;  %v7677_v46 = vpack.c.b16 %v7653_v32, %v7652_v60  ;;  %v8780_v23 = vshrl.u32 %v8626_v33, 16 }
 0x3ec   : > { %v6430_v37 = vpop.f32.mrf.mxu2  ;;  %v8080_v50 = vunpack.c.l.b16 %v7994_v3  ;;  %v8081_v51 = vunpack.c.l.b16 %v7997_v55  ;;  %v9094_v10 = vpack.c.b16 %v14714_v42, %v14694_v34  ;;  %v7446_v31 = vor.u32 %v7445_v54, %v14730_v22  ;;  %v7217_v42 = vld [vmem:[#allocation2 + $0x7c] sm:$0xf]  ;;  %v14767_v55 = vpop.f32.mrf.mxu0 }
 0x3ed   : > { %v6431_v14 = vadd.f32 %v6430_v37, %v14247_v7  ;;  %v7432_v37 = vrot.slane %v7430_v0, 4  ;;  %v8783_v44 = vshll.u32 %v8626_v33, 16  ;;  %v9408_v29 = vrot.slane %v14743_v18, 5  ;;  %15904 = vst [vmem:[#allocation48_spill] sm:$0xff] %v14767_v55 }
 0x3ee   : > { %v8754_v0 = vsel %vm11724_vm2, %v8749_v24, %v14705_v52  ;;  %v14757_v26 = vunpack.c.l.b16 %v8744_v28  ;;  %v14759_v32 = vrot.slane %v8762_v36, 4  ;;  %v7449_v34 = vshll.u32 %v14716_v41, 16  ;;  %v14775_v24 = vld [vmem:[#allocation2 + $0x74] sm:$0x1] }
 0x3ef   : > { %v14745_v6 = vpop.f32.mrf.mxu1  ;;  %v14747_v11 = vadd.f32 %v6808_v8, %v6431_v14  ;;  %v6810_v7 = vpop.f32.mrf.mxu3  ;;  %v11501_v8 = vld [vmem:[#allocation2 + $0x30] sm:$0xff]  ;;  %v14761_v14 = vpack.c.b16 %v8081_v51, %v8080_v50  ;;  %v7436_v3 = vor.u32 %v7435_v62, %v7432_v37  ;;  %v14764_v54 = vrot.slane %v8765_v19, 5 }
 0x3f0   : > { %v14769_v52 = vrot.slane %v8780_v23, 4  ;;  %v14773_v28 = vrot.slane %v15771_v61, 4  ;;  %v11238_v36 = vrot.slane %v9300_v49, 9  ;;  %v7447_v19 = vrot.slane %v7446_v31, 4 }
 0x3f1   : > { %15902 = vst [vmem:[#allocation46_spill] sm:$0xff] %v14747_v11  ;;  %v14778_v37 = vrot.slane %v8783_v44, 5  ;;  %v9410_v62 = vrot.slane %v9408_v29, 4  ;;  %v7463_v50 = vshll.u32 %v7217_v42, 16  ;;  %v7467_v51 = vshrl.u32 %v7217_v42, 16 }
 0x3f2   : > { %7793 = vmatmul.bf16.gmra.mxu1 %v7677_v46  ;;  %15903 = vst [vmem:[#allocation47_spill] sm:$0xff] %v14761_v14  ;;  %v8771_v46 = vrot.slane %v8769_v21, 4  ;;  %v9409_v21 = vsel %vm12239_vm13, %v11238_v36, %v9408_v29  ;;  %v7437_v49 = vrot.slane %v7436_v3, 4  ;;  %v7451_v55 = vrot.slane %v7449_v34, 5  ;;  %v7880_v29 = vld [vmem:[#allocation2 + $0x78] sm:$0xe] }
 0x3f3   : > { %v9411_v31 = vrot.slane %v14775_v24, 5  ;;  %v14788_v44 = vunpack.c.l.b16 %v8754_v0  ;;  %v8793_v63 = vshrl.u32 %v14580_v16, 16  ;;  %v8000_v36 = vrot.slane %v7217_v42, 5 }
 0x3f4   : > { %v6432_v60 = vpop.f32.mrf.mxu2  ;;  %8508 = vmatmul.bf16.gmra.mxu3 %v11501_v8  ;;  %v8789_v8 = vshll.u32 %v14580_v16, 16  ;;  %v8772_v11 = vor.u32 %v8771_v46, %v14764_v54  ;;  %v9500_v3 = vunpack.c.l.b16 %v9409_v21  ;;  %v14802_v46 = vrot.slane %v7463_v50, 5 }
 0x3f5   : > { %v6433_v41 = vadd.f32 %v6432_v60, %v14285_v5  ;;  %v7216_v5 = vld [vmem:[#allocation2 + $0x78] sm:$0xf]  ;;  %v14790_v60 = vld [vmem:[#allocation2 + $0x80] sm:$0x1]  ;;  %v9412_v0 = vsel %vm12239_vm13, %v9410_v62, %v9411_v31  ;;  %v7469_v16 = vrot.slane %v7467_v51, 4  ;;  %v8002_v42 = vrot.slane %v8000_v36, 4 }
 0x3f6   : > { %v7454_v34 = vshrl.u32 %v7216_v5, 16  ;;  %v9501_v15 = vunpack.c.l.b16 %v9412_v0 }
 0x3f7   : > { %v14783_v23 = vpop.f32.mrf.mxu1  ;;  %v14785_v61 = vadd.f32 %v6810_v7, %v6433_v41  ;;  %9190 = vmatmul.bf16.gmra.mxu0 %v9094_v10  ;;  %v6813_v33 = vpop.f32.mrf.mxu3  ;;  %v7442_v7 = vsel %vm11724_vm2, %v7437_v49, %v14730_v22  ;;  %v7452_v10 = vsel %vm11724_vm2, %v7447_v19, %v7451_v55  ;;  %v7457_v41 = vshll.u32 %v7216_v5, 16 }
 0x3f8   : > { %v7655_v14 = vunpack.c.l.b16 %v7452_v10  ;;  %v8768_v22 = vsel %vm11724_vm2, %v14759_v32, %v14764_v54  ;;  %v14809_v55 = vrot.slane %v8789_v8, 5  ;;  %v8795_v19 = vrot.slane %v8793_v63, 4  ;;  %v14818_v49 = vpop.f32.mrf.mxu0  ;;  %v7876_v8 = vld [vmem:[#allocation2 + $0x48] sm:$0xe]  ;;  %v14822_v63 = vld [vmem:[#allocation2 + $0x7c] sm:$0xf] }
 0x3f9   : > { %15905 = vst [vmem:[#allocation49_spill] sm:$0xff] %v14785_v61  ;;  %8194 = vmatmul.bf16.gmra.mxu2 %v14276_v2  ;;  %v11016_v61 = vrot.slane %v7880_v29, 9  ;;  %v8003_v2 = vrot.slane %v14790_v60, 5  ;;  %v14816_v21 = vpack.c.b16 %v9501_v15, %v9500_v3  ;;  %v7157_v5 = vadd.f32 %v14096_v38, %v14128_v53 }
 0x3fa   : > { %15907 = vst [vmem:[#allocation51_spill] sm:$0xff] %v14818_v49  ;;  %v7654_v31 = vunpack.c.l.b16 %v7442_v7  ;;  %v7456_v32 = vrot.slane %v7454_v34, 4  ;;  %v7459_v54 = vrot.slane %v7457_v41, 5  ;;  %v7470_v29 = vor.u32 %v7469_v16, %v14802_v46  ;;  %v11502_v41 = vld [vmem:[#allocation2 + $0x3c] sm:$0xff]  ;;  %v14981_v49 = vld [vmem:[#allocation2 + $0x98] sm:$0x1] }
 0x3fb   : > { %v8001_v50 = vsel %vm12239_vm13, %v11016_v61, %v8000_v36  ;;  %v8004_v51 = vsel %vm12239_vm13, %v8002_v42, %v8003_v2  ;;  %15906 = vst [vmem:[#allocation50_spill] sm:$0xff] %v14816_v21  ;;  %v8773_v36 = vrot.slane %v8772_v11, 4  ;;  %v8786_v15 = vor.u32 %v14778_v37, %v14769_v52  ;;  %v11533_v52 = vld [vmem:[%s15767_s4 + $0x210] sm:$0xff] }
 0x3fc   : > { %v6435_v57 = vpop.f32.mrf.mxu2  ;;  %v7678_v0 = vpack.c.b16 %v7655_v14, %v7654_v31  ;;  %v8082_v38 = vunpack.c.l.b16 %v8001_v50  ;;  %v8083_v53 = vunpack.c.l.b16 %v8004_v51  ;;  %v7473_v7 = vshll.u32 %v14790_v60, 16  ;;  %v9301_v60 = vld [vmem:[#allocation2 + $0x78] sm:$0xe]  ;;  %v8629_v51 = vld [vmem:[#allocation2 + $0x60] sm:$0xf]  ;;  %9603 = vmatpush.bf16.msra.mxu1 %v11533_v52 }
 0x3fd   : > { %v6436_v62 = vadd.f32 %v6435_v57, %v14330_v39  ;;  %v11012_v3 = vrot.slane %v7876_v8, 9  ;;  %v7975_v34 = vrot.slane %v14459_v4, 5  ;;  %v7460_v42 = vor.u32 %v7459_v54, %v7456_v32  ;;  %v7220_v8 = vld [vmem:[#allocation2 + $0x88] sm:$0xf] }
 0x3fe   : > { %v15909_v11 = vshll.u32 %v14505_v47, 16  ;;  %v8796_v14 = vor.u32 %v8795_v19, %v14809_v55  ;;  %v14840_v37 = vpack.c.b16 %v8083_v53, %v8082_v38  ;;  %v9095_v4 = vpack.c.b16 %v14788_v44, %v14757_v26 }
 0x3ff   : > { %v14824_v39 = vadd.f32 %v6813_v33, %v6436_v62  ;;  %v7759_v57 = vpop.f32.mrf.mxu1  ;;  %v6815_v61 = vpop.f32.mrf.mxu3  ;;  %v9415_v33 = vrot.slane %v14822_v63, 5  ;;  %v7471_v2 = vrot.slane %v7470_v29, 4  ;;  %v14844_v62 = vunpack.c.l.b16 %v8768_v22  ;;  %v15911_v22 = vld [vmem:[#allocation10_spill] sm:$0xff] }
 0x400   : > { %v14829_v10 = vadd.f32 %v7759_v57, %v7157_v5  ;;  %v8777_v16 = vrot.slane %v15909_v11, 5  ;;  %v15910_v50 = vrot.slane %v14395_v20, 5  ;;  %v14854_v31 = vrot.slane %v8786_v15, 4  ;;  %v14862_v20 = vld [vmem:[#allocation2 + $0x80] sm:$0x1]  ;;  %v14876_v52 = vpop.f32.mrf.mxu0 }
 0x401   : > { %15908 = vst [vmem:[#allocation52_spill] sm:$0xff] %v14824_v39  ;;  %v8799_v26 = vshll.u32 %v14602_v58, 16  ;;  %v14860_v44 = vsel %vm12239_vm13, %v14773_v28, %v7975_v34  ;;  %v7475_v54 = vrot.slane %v7473_v7, 5  ;;  %v11239_v57 = vrot.slane %v9301_v60, 9  ;;  %v7219_v11 = vld [vmem:[#allocation2 + $0x84] sm:$0xf] }
 0x402   : > { %7798 = vmatmul.bf16.gmra.mxu1 %v7678_v0  ;;  %v14850_v47 = vsel %vm12239_vm13, %v11012_v3, %v15910_v50  ;;  %v8778_v19 = vsel %vm11724_vm2, %v8773_v36, %v8777_v16  ;;  %v9417_v29 = vrot.slane %v9415_v33, 4  ;;  %v15912_v0 = vld [vmem:[#allocation15_spill] sm:$0xff]  ;;  %v15913_v36 = vld [vmem:[#allocation13_spill] sm:$0xff]  ;;  %v7461_v15 = vrot.slane %v7460_v42, 4  ;;  %v7881_v50 = vld [vmem:[#allocation2 + $0x84] sm:$0xe] }
 0x403   : > { %v7158_v38 = vadd.f32 %v15913_v36, %v15912_v0  ;;  %v14867_v53 = vrot.slane %v8796_v14, 4  ;;  %v8804_v58 = vshrl.u32 %v8629_v51, 16  ;;  %v7476_v34 = vsel %vm11724_vm2, %v7471_v2, %v7475_v54  ;;  %15915 = vst [vmem:[#allocation15_spill] sm:$0xff] %v14876_v52 }
 0x404   : > { %v6437_v5 = vpop.f32.mrf.mxu2  ;;  %8513 = vmatmul.bf16.gmra.mxu3 %v11502_v41  ;;  %v9416_v7 = vsel %vm12239_vm13, %v11239_v57, %v9415_v33  ;;  %v9418_v16 = vrot.slane %v14862_v20, 5  ;;  %v14880_v14 = vunpack.c.l.b16 %v8778_v19  ;;  %v7487_v60 = vshll.u32 %v7220_v8, 16 }
 0x405   : > { %v6438_v32 = vadd.f32 %v6437_v5, %v15911_v22  ;;  %v15916_v5 = vld [vmem:[#allocation8_spill] sm:$0xff]  ;;  %v7466_v2 = vsel %vm11724_vm2, %v7461_v15, %v14802_v46  ;;  %v8807_v33 = vshll.u32 %v8629_v51, 16  ;;  %v8007_v22 = vrot.slane %v7220_v8, 5 }
 0x406   : > { %v7657_v54 = vunpack.c.l.b16 %v7476_v34  ;;  %v7478_v57 = vshrl.u32 %v7219_v11, 16  ;;  %v8806_v19 = vrot.slane %v8804_v58, 4  ;;  %v9502_v0 = vunpack.c.l.b16 %v9416_v7  ;;  %v15918_v58 = vld [vmem:[#allocation18_spill] sm:$0xff] }
 0x407   : > { %v14869_v3 = vadd.f32 %v6815_v61, %v6438_v32  ;;  %v7761_v41 = vpop.f32.mrf.mxu1  ;;  %9195 = vmatmul.bf16.gmra.mxu0 %v9095_v4  ;;  %v6818_v28 = vpop.f32.mrf.mxu3  ;;  %v14882_v61 = vld [vmem:[#allocation2 + $0x8c] sm:$0x1]  ;;  %v7491_v4 = vshrl.u32 %v7220_v8, 16  ;;  %v9419_v32 = vsel %vm12239_vm13, %v9417_v29, %v9418_v16  ;;  %v11017_v36 = vrot.slane %v7881_v50, 9  ;;  %v15919_v34 = vld [vmem:[#allocation14_spill] sm:$0xff] }
 0x408   : > { %v14878_v42 = vadd.f32 %v7761_v41, %v7158_v38  ;;  %v8009_v38 = vrot.slane %v8007_v22, 4  ;;  %v8010_v41 = vrot.slane %v14882_v61, 5  ;;  %v9503_v21 = vunpack.c.l.b16 %v9419_v32 }
 0x409   : > { %15914 = vst [vmem:[#allocation10_spill] sm:$0xff] %v14869_v3  ;;  %8199 = vmatmul.bf16.gmra.mxu2 %v15916_v5  ;;  %v7656_v5 = vunpack.c.l.b16 %v7466_v2  ;;  %v7481_v52 = vshll.u32 %v7219_v11, 16  ;;  %v14891_v39 = vrot.slane %v7487_v60, 5  ;;  %v7493_v46 = vrot.slane %v7491_v4, 4  ;;  %v14904_v60 = vld [vmem:[#allocation2 + $0x88] sm:$0xf] }
 0x40a   : > { %v8008_v8 = vsel %vm12239_vm13, %v11017_v36, %v8007_v22  ;;  %v8011_v29 = vsel %vm12239_vm13, %v8009_v38, %v8010_v41  ;;  %v14898_v15 = vpack.c.b16 %v9503_v21, %v9502_v0  ;;  %v7159_v7 = vadd.f32 %v15919_v34, %v15918_v58 }
 0x40b   : > { %v8809_v16 = vrot.slane %v8807_v33, 5  ;;  %v8813_v50 = vshll.u32 %v14660_v40, 16  ;;  %v8817_v11 = vshrl.u32 %v14660_v40, 16  ;;  %v7480_v22 = vrot.slane %v7478_v57, 4  ;;  %v14919_v57 = vpop.f32.mrf.mxu0 }
 0x40c   : > { %v6440_v3 = vpop.f32.mrf.mxu2  ;;  %15917 = vst [vmem:[#allocation13_spill] sm:$0xff] %v14898_v15  ;;  %v8801_v32 = vrot.slane %v8799_v26, 5  ;;  %v7483_v21 = vrot.slane %v7481_v52, 5  ;;  %v8084_v0 = vunpack.c.l.b16 %v8008_v8  ;;  %v8085_v38 = vunpack.c.l.b16 %v8011_v29  ;;  %v11503_v26 = vld [vmem:[#allocation2 + $0x48] sm:$0xff] }
 0x40d   : > { %v6441_v51 = vadd.f32 %v6440_v3, %v14445_v43  ;;  %v7679_v3 = vpack.c.b16 %v7657_v54, %v7656_v5  ;;  %v7494_v33 = vor.u32 %v7493_v46, %v14891_v39  ;;  %v8792_v40 = vsel %vm11724_vm2, %v14854_v31, %v14809_v55  ;;  %15921 = vst [vmem:[#allocation18_spill] sm:$0xff] %v14919_v57  ;;  %v15927_v55 = vld [vmem:[#allocation20_spill] sm:$0xff] }
 0x40e   : > { %v9422_v54 = vrot.slane %v14904_v60, 5  ;;  %v8810_v52 = vor.u32 %v8809_v16, %v8806_v19  ;;  %v14921_v41 = vrot.slane %v8813_v50, 5  ;;  %v8819_v5 = vrot.slane %v8817_v11, 4 }
 0x40f   : > { %v14906_v4 = vadd.f32 %v6818_v28, %v6441_v51  ;;  %v7764_v43 = vpop.f32.mrf.mxu1  ;;  %v6820_v2 = vpop.f32.mrf.mxu3  ;;  %v8802_v28 = vsel %vm11724_vm2, %v14867_v53, %v8801_v32  ;;  %v14923_v46 = vpack.c.b16 %v8085_v38, %v8084_v0  ;;  %v9302_v51 = vld [vmem:[#allocation2 + $0x84] sm:$0xe]  ;;  %v7497_v8 = vshll.u32 %v14882_v61, 16  ;;  %v7223_v61 = vld [vmem:[#allocation2 + $0x94] sm:$0xf] }
 0x410   : > { %v14908_v36 = vadd.f32 %v7764_v43, %v7159_v7  ;;  %v9096_v29 = vpack.c.b16 %v14880_v14, %v14844_v62  ;;  %v7484_v58 = vor.u32 %v7483_v21, %v7480_v22  ;;  %v14930_v34 = vunpack.c.l.b16 %v8792_v40  ;;  %v14934_v7 = vld [vmem:[#allocation2 + $0x8c] sm:$0x1]  ;;  %v15923_v32 = vld [vmem:[#allocation16_spill] sm:$0xff]  ;;  %v7882_v22 = vld [vmem:[#allocation2 + $0x90] sm:$0xe] }
 0x411   : > { %15920 = vst [vmem:[#allocation8_spill] sm:$0xff] %v14906_v4  ;;  %v14932_v19 = vunpack.c.l.b16 %v8802_v28  ;;  %v7495_v50 = vrot.slane %v7494_v33, 4  ;;  %v11240_v11 = vrot.slane %v9302_v51, 9  ;;  %v9424_v43 = vrot.slane %v9422_v54, 4  ;;  %v7222_v33 = vld [vmem:[#allocation2 + $0x90] sm:$0xf] }
 0x412   : > { %7803 = vmatmul.bf16.gmra.mxu1 %v7679_v3  ;;  %v15922_v3 = vld [vmem:[#allocation17_spill] sm:$0xff]  ;;  %v14939_v38 = vrot.slane %v8810_v52, 4  ;;  %v8820_v62 = vor.u32 %v8819_v5, %v14921_v41  ;;  %v8823_v14 = vshll.u32 %v14677_v48, 16  ;;  %v9425_v51 = vrot.slane %v14934_v7, 5 }
 0x413   : > { %v7160_v0 = vadd.f32 %v15923_v32, %v15922_v3  ;;  %v7485_v52 = vrot.slane %v7484_v58, 4  ;;  %v14950_v3 = vld [vmem:[#allocation2 + $0x98] sm:$0x1]  ;;  %v7511_v5 = vshll.u32 %v7223_v61, 16  ;;  %v7515_v48 = vshrl.u32 %v7223_v61, 16 }
 0x414   : > { %v6442_v53 = vpop.f32.mrf.mxu2  ;;  %8518 = vmatmul.bf16.gmra.mxu3 %v11503_v26  ;;  %v9423_v26 = vsel %vm12239_vm13, %v11240_v11, %v9422_v54  ;;  %v7502_v11 = vshrl.u32 %v7222_v33, 16  ;;  %v7505_v58 = vshll.u32 %v7222_v33, 16  ;;  %v8632_v33 = vld [vmem:[#allocation2 + $0x6c] sm:$0xf] }
 0x415   : > { %v6443_v16 = vadd.f32 %v6442_v53, %v14496_v1  ;;  %v7499_v1 = vrot.slane %v7497_v8, 5  ;;  %v8014_v8 = vrot.slane %v7223_v61, 5  ;;  %v7490_v54 = vsel %vm11724_vm2, %v7485_v52, %v14891_v39  ;;  %v14965_v61 = vpop.f32.mrf.mxu0  ;;  %v15926_v52 = vld [vmem:[#allocation22_spill] sm:$0xff] }
 0x416   : > { %v9504_v32 = vunpack.c.l.b16 %v9423_v26  ;;  %15925 = vst [vmem:[#allocation17_spill] sm:$0xff] %v14965_v61  ;;  %v7517_v31 = vrot.slane %v7515_v48, 4  ;;  %v14969_v39 = vrot.slane %v8820_v62, 4  ;;  %v7161_v15 = vadd.f32 %v15927_v55, %v15926_v52 }
 0x417   : > { %v14943_v21 = vadd.f32 %v6820_v2, %v6443_v16  ;;  %v7766_v40 = vpop.f32.mrf.mxu1  ;;  %9200 = vmatmul.bf16.gmra.mxu0 %v9096_v29  ;;  %v6823_v28 = vpop.f32.mrf.mxu3  ;;  %v7500_v2 = vsel %vm11724_vm2, %v7495_v50, %v7499_v1  ;;  %v11018_v29 = vrot.slane %v7882_v22, 9  ;;  %v9426_v16 = vsel %vm12239_vm13, %v9424_v43, %v9425_v51 }
 0x418   : > { %v14948_v53 = vadd.f32 %v7766_v40, %v7160_v0  ;;  %v14960_v0 = vld [vmem:[#allocation2 + $0x94] sm:$0xf]  ;;  %v8016_v40 = vrot.slane %v8014_v8, 4  ;;  %v8017_v50 = vrot.slane %v14950_v3, 5  ;;  %v9505_v22 = vunpack.c.l.b16 %v9426_v16 }
 0x419   : > { %15924 = vst [vmem:[#allocation14_spill] sm:$0xff] %v14943_v21  ;;  %8204 = vmatmul.bf16.gmra.mxu2 %v14454_v27  ;;  %v8015_v27 = vsel %vm12239_vm13, %v11018_v29, %v8014_v8  ;;  %v7659_v43 = vunpack.c.l.b16 %v7500_v2  ;;  %v14967_v51 = vrot.slane %v7511_v5, 5  ;;  %v7658_v16 = vunpack.c.l.b16 %v7490_v54  ;;  %v9303_v2 = vld [vmem:[#allocation2 + $0x90] sm:$0xe] }
 0x41a   : > { %v8018_v29 = vsel %vm12239_vm13, %v8016_v40, %v8017_v50  ;;  %v14976_v8 = vpack.c.b16 %v9505_v22, %v9504_v32  ;;  %v8086_v21 = vunpack.c.l.b16 %v8015_v27  ;;  %v9429_v5 = vrot.slane %v14960_v0, 5 }
 0x41b   : > { %v8087_v61 = vunpack.c.l.b16 %v8018_v29  ;;  %v7504_v57 = vrot.slane %v7502_v11, 4  ;;  %v7680_v40 = vpack.c.b16 %v7659_v43, %v7658_v16  ;;  %v7518_v32 = vor.u32 %v7517_v31, %v14967_v51  ;;  %v7226_v29 = vld [vmem:[#allocation2 + $0xa0] sm:$0xf] }
 0x41c   : > { %v6445_v1 = vpop.f32.mrf.mxu2  ;;  %15928 = vst [vmem:[#allocation16_spill] sm:$0xff] %v14976_v8  ;;  %v8825_v27 = vrot.slane %v8823_v14, 5  ;;  %v8837_v50 = vshll.u32 %v14743_v18, 16  ;;  %v11241_v22 = vrot.slane %v9303_v2, 9  ;;  %v7521_v11 = vshll.u32 %v14950_v3, 16 }
 0x41d   : > { %v6446_v26 = vadd.f32 %v6445_v1, %v14526_v59  ;;  %v7507_v59 = vrot.slane %v7505_v58, 5  ;;  %v8828_v1 = vshrl.u32 %v8632_v33, 16  ;;  %v14986_v54 = vpack.c.b16 %v8087_v61, %v8086_v21  ;;  %v15013_v2 = vpop.f32.mrf.mxu0 }
 0x41e   : > { %v8831_v58 = vshll.u32 %v8632_v33, 16  ;;  %v9431_v43 = vrot.slane %v9429_v5, 4  ;;  %v9432_v31 = vrot.slane %v14981_v49, 5  ;;  %v9097_v14 = vpack.c.b16 %v14932_v19, %v14930_v34 }
 0x41f   : > { %v14979_v48 = vadd.f32 %v6823_v28, %v6446_v26  ;;  %v7769_v62 = vpop.f32.mrf.mxu1  ;;  %v6825_v4 = vpop.f32.mrf.mxu3  ;;  %v8841_v28 = vshrl.u32 %v14743_v18, 16  ;;  %v11504_v26 = vld [vmem:[#allocation2 + $0x54] sm:$0xff]  ;;  %v7508_v21 = vor.u32 %v7507_v59, %v7504_v57  ;;  %v8816_v18 = vsel %vm11724_vm2, %v14939_v38, %v14921_v41 }
 0x420   : > { %v14983_v55 = vadd.f32 %v7769_v62, %v7161_v15  ;;  %v11532_v15 = vld [vmem:[%s15767_s4 + $0x208] sm:$0xff]  ;;  %v9430_v3 = vsel %vm12239_vm13, %v11241_v22, %v9429_v5  ;;  %v7519_v52 = vrot.slane %v7518_v32, 4  ;;  %v8826_v33 = vsel %vm11724_vm2, %v14969_v39, %v8825_v27  ;;  %v15929_v5 = vld [vmem:[#allocation3_spill] sm:$0xff] }
 0x421   : > { %9604 = vmatpush.bf16.msra.mxu1 %v11532_v15  ;;  %v15006_v16 = vrot.slane %v8828_v1, 4  ;;  %v9433_v57 = vsel %vm12239_vm13, %v9431_v43, %v9432_v31  ;;  %v15011_v41 = vrot.slane %v8837_v50, 5  ;;  %v8843_v19 = vrot.slane %v8841_v28, 4  ;;  %v15930_v62 = vld [vmem:[#allocation21_spill] sm:$0xff] }
 0x422   : > { %7808 = vmatmul.bf16.gmra.mxu1 %v7680_v40  ;;  %v9507_v38 = vunpack.c.l.b16 %v9433_v57  ;;  %v7162_v59 = vadd.f32 %v15930_v62, %v15929_v5  ;;  %v7523_v40 = vrot.slane %v7521_v11, 5  ;;  %v8833_v39 = vrot.slane %v8831_v58, 5  ;;  %v7225_v11 = vld [vmem:[#allocation2 + $0x9c] sm:$0xf] }
 0x423   : > { %v9506_v32 = vunpack.c.l.b16 %v9430_v3  ;;  %v7509_v28 = vrot.slane %v7508_v21, 4  ;;  %v7535_v15 = vshll.u32 %v7226_v29, 16  ;;  %v7539_v58 = vshrl.u32 %v7226_v29, 16  ;;  %v7883_v21 = vld [vmem:[#allocation2 + $0x9c] sm:$0xe] }
 0x424   : > { %v6447_v61 = vpop.f32.mrf.mxu2  ;;  %8523 = vmatmul.bf16.gmra.mxu3 %v11504_v26  ;;  %v15932_v26 = vunpack.c.l.b16 %v14850_v47  ;;  %v7524_v31 = vsel %vm11724_vm2, %v7519_v52, %v7523_v40  ;;  %v15033_v47 = vld [vmem:[#allocation2 + $0xa4] sm:$0x1]  ;;  %v8834_v52 = vor.u32 %v8833_v39, %v15006_v16  ;;  %v8847_v57 = vshll.u32 %v14775_v24, 16  ;;  %v15936_v39 = vld [vmem:[#allocation19_spill] sm:$0xff] }
 0x425   : > { %v6448_v34 = vadd.f32 %v6447_v61, %v14571_v25  ;;  %v15933_v25 = vunpack.c.l.b16 %v14860_v44  ;;  %v15027_v3 = vpack.c.b16 %v9507_v38, %v9506_v32  ;;  %v8844_v44 = vor.u32 %v8843_v19, %v15011_v41 }
 0x426   : > { %v7514_v61 = vsel %vm11724_vm2, %v7509_v28, %v14967_v51  ;;  %v7661_v38 = vunpack.c.l.b16 %v7524_v31  ;;  %v7526_v5 = vshrl.u32 %v7225_v11, 16  ;;  %v15041_v62 = vrot.slane %v7535_v15, 5  ;;  %v8635_v51 = vld [vmem:[#allocation2 + $0x78] sm:$0xf]  ;;  %v15049_v28 = vld [vmem:[#allocation2 + $0xa0] sm:$0xf] }
 0x427   : > { %v15017_v27 = vadd.f32 %v6825_v4, %v6448_v34  ;;  %v7771_v1 = vpop.f32.mrf.mxu1  ;;  %9205 = vmatmul.bf16.gmra.mxu0 %v9097_v14  ;;  %v6828_v22 = vpop.f32.mrf.mxu3  ;;  %v8101_v50 = vpack.c.b16 %v15933_v25, %v15932_v26  ;;  %15934 = vst [vmem:[#allocation20_spill] sm:$0xff] %v15027_v3  ;;  %v15029_v4 = vunpack.c.l.b16 %v8816_v18  ;;  %v15031_v14 = vunpack.c.l.b16 %v8826_v33 }
 0x428   : > { %v15023_v43 = vadd.f32 %v7771_v1, %v7162_v59  ;;  %v8021_v34 = vrot.slane %v7226_v29, 5  ;;  %v7529_v18 = vshll.u32 %v7225_v11, 16  ;;  %v7541_v59 = vrot.slane %v7539_v58, 4  ;;  %v15935_v29 = vld [vmem:[#allocation23_spill] sm:$0xff] }
 0x429   : > { %15931 = vst [vmem:[#allocation22_spill] sm:$0xff] %v15017_v27  ;;  %8209 = vmatmul.bf16.gmra.mxu2 %v8101_v50  ;;  %v11019_v40 = vrot.slane %v7883_v21, 9  ;;  %v8024_v19 = vrot.slane %v15033_v47, 5  ;;  %v8845_v26 = vrot.slane %v8844_v44, 4  ;;  %v8861_v16 = vshll.u32 %v14822_v63, 16 }
 0x42a   : > { %v8023_v32 = vrot.slane %v8021_v34, 4  ;;  %v8865_v24 = vshrl.u32 %v14822_v63, 16  ;;  %v7163_v25 = vadd.f32 %v15936_v39, %v15935_v29  ;;  %v7660_v50 = vunpack.c.l.b16 %v7514_v61  ;;  %v15057_v63 = vpop.f32.mrf.mxu0 }
 0x42b   : > { %v8022_v15 = vsel %vm12239_vm13, %v11019_v40, %v8021_v34  ;;  %v7528_v44 = vrot.slane %v7526_v5, 4  ;;  %v7531_v21 = vrot.slane %v7529_v18, 5  ;;  %15938 = vst [vmem:[#allocation21_spill] sm:$0xff] %v15057_v63  ;;  %v7542_v29 = vor.u32 %v7541_v59, %v15041_v62 }
 0x42c   : > { %v6450_v33 = vpop.f32.mrf.mxu2  ;;  %v8025_v31 = vsel %vm12239_vm13, %v8023_v32, %v8024_v19  ;;  %v7681_v61 = vpack.c.b16 %v7661_v38, %v7660_v50  ;;  %v8852_v39 = vshrl.u32 %v8635_v51, 16  ;;  %v8835_v8 = vrot.slane %v8834_v52, 4  ;;  %v15068_v50 = vld [vmem:[#allocation2 + $0xa4] sm:$0x1] }
 0x42d   : > { %v6451_v1 = vadd.f32 %v6450_v33, %v14604_v35  ;;  %v8089_v33 = vunpack.c.l.b16 %v8025_v31  ;;  %v8855_v34 = vshll.u32 %v8635_v51, 16  ;;  %v8088_v40 = vunpack.c.l.b16 %v8022_v15 }
 0x42e   : > { %v9436_v32 = vrot.slane %v15049_v28, 5  ;;  %v7545_v19 = vshll.u32 %v15033_v47, 16  ;;  %v8849_v5 = vrot.slane %v8847_v57, 5  ;;  %v15064_v18 = vrot.slane %v8861_v16, 5 }
 0x42f   : > { %v15055_v11 = vadd.f32 %v6828_v22, %v6451_v1  ;;  %v7774_v35 = vpop.f32.mrf.mxu1  ;;  %v6830_v58 = vpop.f32.mrf.mxu3  ;;  %v11505_v22 = vld [vmem:[#allocation2 + $0x60] sm:$0xff]  ;;  %v8867_v1 = vrot.slane %v8865_v24, 4  ;;  %v7532_v38 = vor.u32 %v7531_v21, %v7528_v44  ;;  %v15070_v59 = vpack.c.b16 %v8089_v33, %v8088_v40  ;;  %v9304_v24 = vld [vmem:[#allocation2 + $0x9c] sm:$0xe] }
 0x430   : > { %v15059_v3 = vadd.f32 %v7774_v35, %v7163_v25  ;;  %v9098_v25 = vpack.c.b16 %v15031_v14, %v15029_v4  ;;  %v7543_v51 = vrot.slane %v7542_v29, 4  ;;  %v8840_v15 = vsel %vm11724_vm2, %v8835_v8, %v15011_v41  ;;  %v15939_v35 = vld [vmem:[#allocation6_spill] sm:$0xff]  ;;  %v15940_v44 = vld [vmem:[#allocation4_spill] sm:$0xff] }
 0x431   : > { %15937 = vst [vmem:[#allocation3_spill] sm:$0xff] %v15055_v11  ;;  %v8850_v47 = vsel %vm11724_vm2, %v8845_v26, %v8849_v5  ;;  %v15077_v57 = vrot.slane %v8852_v39, 4  ;;  %v15080_v4 = vrot.slane %v8855_v34, 5  ;;  %v8871_v14 = vshll.u32 %v14862_v20, 16  ;;  %v15944_v11 = vld [vmem:[#allocation24_spill] sm:$0xff] }
 0x432   : > { %7813 = vmatmul.bf16.gmra.mxu1 %v7681_v61  ;;  %v9438_v31 = vrot.slane %v9436_v32, 4  ;;  %v7164_v21 = vadd.f32 %v15940_v44, %v15939_v35  ;;  %v7547_v33 = vrot.slane %v7545_v19, 5  ;;  %v7229_v61 = vld [vmem:[#allocation2 + $0xac] sm:$0xf]  ;;  %v8868_v8 = vor.u32 %v8867_v1, %v15064_v18  ;;  %v15100_v1 = vld [vmem:[#allocation2 + $0xb0] sm:$0x1] }
 0x433   : > { %v9439_v41 = vrot.slane %v15068_v50, 5  ;;  %v7533_v39 = vrot.slane %v7532_v38, 4  ;;  %v15089_v34 = vunpack.c.l.b16 %v8840_v15  ;;  %v11242_v19 = vrot.slane %v9304_v24, 9  ;;  %v7884_v15 = vld [vmem:[#allocation2 + $0xa8] sm:$0xe] }
 0x434   : > { %v6452_v52 = vpop.f32.mrf.mxu2  ;;  %8528 = vmatmul.bf16.gmra.mxu3 %v11505_v22  ;;  %v7548_v40 = vsel %vm11724_vm2, %v7543_v51, %v7547_v33  ;;  %v7228_v22 = vld [vmem:[#allocation2 + $0xa8] sm:$0xf]  ;;  %v7563_v38 = vshrl.u32 %v7229_v61, 16  ;;  %v8869_v51 = vrot.slane %v8868_v8, 4  ;;  %v8873_v35 = vrot.slane %v8871_v14, 5 }
 0x435   : > { %v6453_v16 = vadd.f32 %v6452_v52, %v14641_v56  ;;  %v9440_v5 = vsel %vm12239_vm13, %v9438_v31, %v9439_v41  ;;  %v8858_v52 = vor.u32 %v15080_v4, %v15077_v57  ;;  %v8028_v24 = vrot.slane %v7229_v61, 5 }
 0x436   : > { %v9437_v31 = vsel %vm12239_vm13, %v11242_v19, %v9436_v32  ;;  %v7550_v44 = vshrl.u32 %v7228_v22, 16  ;;  %v7553_v41 = vshll.u32 %v7228_v22, 16  ;;  %v8031_v4 = vrot.slane %v15100_v1, 5  ;;  %v15943_v19 = vld [vmem:[#allocation25_spill] sm:$0xff] }
 0x437   : > { %v15087_v26 = vadd.f32 %v6830_v58, %v6453_v16  ;;  %v7776_v29 = vpop.f32.mrf.mxu1  ;;  %9210 = vmatmul.bf16.gmra.mxu0 %v9098_v25  ;;  %v6833_v56 = vpop.f32.mrf.mxu3  ;;  %v15098_v58 = vunpack.c.l.b16 %v8850_v47  ;;  %v7559_v25 = vshll.u32 %v7229_v61, 16  ;;  %v7663_v47 = vunpack.c.l.b16 %v7548_v40 }
 0x438   : > { %v15091_v20 = vadd.f32 %v7776_v29, %v7164_v21  ;;  %v15104_v16 = vpop.f32.mrf.mxu0  ;;  %v9509_v21 = vunpack.c.l.b16 %v9440_v5  ;;  %v11020_v29 = vrot.slane %v7884_v15, 9  ;;  %v8030_v57 = vrot.slane %v8028_v24, 4  ;;  %v15999_v30 = vld [vmem:[#allocation3_spill] sm:$0xff] }
 0x439   : > { %15941 = vst [vmem:[#allocation23_spill] sm:$0xff] %v15087_v26  ;;  %8214 = vmatmul.bf16.gmra.mxu2 %v14608_v17  ;;  %v7538_v17 = vsel %vm11724_vm2, %v7533_v39, %v15041_v62  ;;  %v15113_v14 = vrot.slane %v7559_v25, 5  ;;  %v7565_v61 = vrot.slane %v7563_v38, 4  ;;  %v8638_v26 = vld [vmem:[#allocation2 + $0x84] sm:$0xf]  ;;  %v9508_v32 = vunpack.c.l.b16 %v9437_v31 }
 0x43a   : > { %15942 = vst [vmem:[#allocation19_spill] sm:$0xff] %v15104_v16  ;;  %v7165_v16 = vadd.f32 %v15944_v11, %v15943_v19  ;;  %v7662_v62 = vunpack.c.l.b16 %v7538_v17  ;;  %v8029_v39 = vsel %vm12239_vm13, %v11020_v29, %v8028_v24  ;;  %v8032_v40 = vsel %vm12239_vm13, %v8030_v57, %v8031_v4  ;;  %v15125_v25 = vld [vmem:[#allocation2 + $0xac] sm:$0xf] }
 0x43b   : > { %v8091_v38 = vunpack.c.l.b16 %v8032_v40  ;;  %v15127_v31 = vpack.c.b16 %v9509_v21, %v9508_v32  ;;  %v8879_v24 = vshll.u32 %v8638_v26, 16  ;;  %v7552_v29 = vrot.slane %v7550_v44, 4  ;;  %v11506_v4 = vld [vmem:[#allocation2 + $0x6c] sm:$0xff] }
 0x43c   : > { %v6455_v33 = vpop.f32.mrf.mxu2  ;;  %v7682_v17 = vpack.c.b16 %v7663_v47, %v7662_v62  ;;  %v7555_v19 = vrot.slane %v7553_v41, 5  ;;  %v8090_v57 = vunpack.c.l.b16 %v8029_v39  ;;  %v7569_v47 = vshll.u32 %v15100_v1, 16  ;;  %v15142_v44 = vld [vmem:[#allocation2 + $0xb0] sm:$0x1]  ;;  %v7232_v62 = vld [vmem:[#allocation2 + $0xb8] sm:$0xf] }
 0x43d   : > { %v6456_v8 = vadd.f32 %v6455_v33, %v14666_v9  ;;  %v8874_v9 = vsel %vm11724_vm2, %v8869_v51, %v8873_v35  ;;  %15946 = vst [vmem:[#allocation4_spill] sm:$0xff] %v15127_v31  ;;  %v8876_v33 = vshrl.u32 %v8638_v26, 16  ;;  %v11531_v51 = vld [vmem:[%s15767_s4 + $0x200] sm:$0xff]  ;;  %v8885_v35 = vshll.u32 %v14904_v60, 16 }
 0x43e   : > { %v9099_v26 = vpack.c.b16 %v15098_v58, %v15089_v34  ;;  %v15144_v21 = vpack.c.b16 %v8091_v38, %v8090_v57  ;;  %v15152_v32 = vunpack.c.l.b16 %v8874_v9  ;;  %9605 = vmatpush.bf16.msra.mxu1 %v11531_v51  ;;  %v8889_v58 = vshrl.u32 %v14904_v60, 16  ;;  %v9305_v38 = vld [vmem:[#allocation2 + $0xa8] sm:$0xe] }
 0x43f   : > { %v15121_v22 = vadd.f32 %v6833_v56, %v6456_v8  ;;  %v7779_v5 = vpop.f32.mrf.mxu1  ;;  %v6835_v15 = vpop.f32.mrf.mxu3  ;;  %v7566_v56 = vor.u32 %v7565_v61, %v15113_v14  ;;  %v15132_v8 = vrot.slane %v8858_v52, 4  ;;  %v15154_v34 = vrot.slane %v8876_v33, 4  ;;  %v15950_v57 = vld [vmem:[#allocation5_spill] sm:$0xff] }
 0x440   : > { %v15129_v11 = vadd.f32 %v7779_v5, %v7165_v16  ;;  %v9443_v16 = vrot.slane %v15125_v25, 5  ;;  %v15146_v41 = vpop.f32.mrf.mxu0  ;;  %v7556_v39 = vor.u32 %v7555_v19, %v7552_v29  ;;  %v15158_v5 = vrot.slane %v8879_v24, 5 }
 0x441   : > { %15945 = vst [vmem:[#allocation6_spill] sm:$0xff] %v15121_v22  ;;  %v7567_v40 = vrot.slane %v7566_v56, 4  ;;  %v9446_v61 = vrot.slane %v15142_v44, 5  ;;  %v7571_v31 = vrot.slane %v7569_v47, 5  ;;  %v7583_v29 = vshll.u32 %v7232_v62, 16 }
 0x442   : > { %15947 = vst [vmem:[#allocation25_spill] sm:$0xff] %v15129_v11  ;;  %7818 = vmatmul.bf16.gmra.mxu1 %v7682_v17  ;;  %v15949_v17 = vld [vmem:[#allocation11_spill] sm:$0xff]  ;;  %v15162_v11 = vrot.slane %v8885_v35, 5  ;;  %v9445_v9 = vrot.slane %v9443_v16, 4  ;;  %v7587_v19 = vshrl.u32 %v7232_v62, 16  ;;  %v8891_v56 = vrot.slane %v8889_v58, 4 }
 0x443   : > { %15948 = vst [vmem:[#allocation24_spill] sm:$0xff] %v15146_v41  ;;  %v8895_v47 = vshll.u32 %v14934_v7, 16  ;;  %v8035_v58 = vrot.slane %v7232_v62, 5 }
 0x444   : > { %v6457_v52 = vpop.f32.mrf.mxu2  ;;  %8533 = vmatmul.bf16.gmra.mxu3 %v11506_v4  ;;  %v7166_v4 = vadd.f32 %v15950_v57, %v15949_v17  ;;  %v9447_v35 = vsel %vm12239_vm13, %v9445_v9, %v9446_v61  ;;  %v7557_v17 = vrot.slane %v7556_v39, 4  ;;  %v7233_v57 = vld [vmem:[#allocation2 + $0xbc] sm:$0x1]  ;;  %v15182_v61 = vrot.slane %v7583_v29, 5 }
 0x445   : > { %v6458_v1 = vadd.f32 %v6457_v52, %v14710_v45  ;;  %v7231_v45 = vld [vmem:[#allocation2 + $0xb4] sm:$0xf]  ;;  %v11243_v52 = vrot.slane %v9305_v38, 9  ;;  %v9511_v39 = vunpack.c.l.b16 %v9447_v35 }
 0x447   : > { %v15165_v51 = vadd.f32 %v6835_v15, %v6458_v1  ;;  %v7781_v33 = vpop.f32.mrf.mxu1  ;;  %9215 = vmatmul.bf16.gmra.mxu0 %v9099_v26  ;;  %v6838_v60 = vpop.f32.mrf.mxu3  ;;  %v7572_v15 = vsel %vm11724_vm2, %v7567_v40, %v7571_v31  ;;  %v8882_v26 = vor.u32 %v15158_v5, %v15154_v34  ;;  %v7885_v1 = vld [vmem:[#allocation2 + $0xb4] sm:$0xe]  ;;  %v9444_v38 = vsel %vm12239_vm13, %v11243_v52, %v9443_v16  ;;  %v15953_v34 = vld [vmem:[#allocation28_spill] sm:$0xff] }
 0x448   : > { %v15167_v24 = vadd.f32 %v7781_v33, %v7166_v4  ;;  %v7574_v4 = vshrl.u32 %v7231_v45, 16  ;;  %v7577_v33 = vshll.u32 %v7231_v45, 16  ;;  %v7589_v31 = vrot.slane %v7587_v19, 4  ;;  %v15954_v5 = vld [vmem:[#allocation26_spill] sm:$0xff]  ;;  %v15188_v22 = vpop.f32.mrf.mxu0 }
 0x449   : > { %15951 = vst [vmem:[#allocation11_spill] sm:$0xff] %v15165_v51  ;;  %8219 = vmatmul.bf16.gmra.mxu2 %v14679_v13  ;;  %v7562_v13 = vsel %vm11724_vm2, %v7557_v17, %v15113_v14  ;;  %v7167_v7 = vadd.f32 %v15954_v5, %v15953_v34  ;;  %v7665_v9 = vunpack.c.l.b16 %v7572_v15  ;;  %v11021_v45 = vrot.slane %v7885_v1, 9  ;;  %v15195_v1 = vld [vmem:[#allocation2 + $0xb8] sm:$0xf] }
 0x44a   : > { %15952 = vst [vmem:[#allocation5_spill] sm:$0xff] %v15167_v24  ;;  %v8892_v24 = vor.u32 %v8891_v56, %v15162_v11  ;;  %v8037_v51 = vrot.slane %v8035_v58, 4  ;;  %v8038_v16 = vrot.slane %v7233_v57, 5  ;;  %v9510_v52 = vunpack.c.l.b16 %v9444_v38 }
 0x44b   : > { %15955 = vst [vmem:[#allocation28_spill] sm:$0xff] %v15188_v22  ;;  %v7664_v14 = vunpack.c.l.b16 %v7562_v13  ;;  %v7576_v29 = vrot.slane %v7574_v4, 4  ;;  %v7579_v17 = vrot.slane %v7577_v33, 5  ;;  %v8036_v19 = vsel %vm12239_vm13, %v11021_v45, %v8035_v58 }
 0x44c   : > { %v6460_v40 = vpop.f32.mrf.mxu2  ;;  %v7590_v56 = vor.u32 %v7589_v31, %v15182_v61  ;;  %v15199_v38 = vpack.c.b16 %v9511_v39, %v9510_v52  ;;  %v8893_v33 = vrot.slane %v8892_v24, 4  ;;  %v7593_v5 = vshll.u32 %v7233_v57, 16  ;;  %v15208_v31 = vld [vmem:[#allocation2 + $0x90] sm:$0xf]  ;;  %v9306_v57 = vld [vmem:[#allocation2 + $0xb4] sm:$0xe] }
 0x44d   : > { %v6461_v62 = vadd.f32 %v6460_v40, %v14745_v6  ;;  %v8039_v6 = vsel %vm12239_vm13, %v8037_v51, %v8038_v16  ;;  %v7683_v4 = vpack.c.b16 %v7665_v9, %v7664_v14  ;;  %v8092_v45 = vunpack.c.l.b16 %v8036_v19  ;;  %v15213_v16 = vld [vmem:[#allocation2 + $0xbc] sm:$0x1]  ;;  %v7235_v19 = vld [vmem:[#allocation2 + $0xc4] sm:$0xf] }
 0x44e   : > { %15957 = vst [vmem:[#allocation53_spill] sm:$0xff] %v15199_v38  ;;  %v8093_v13 = vunpack.c.l.b16 %v8039_v6  ;;  %v7580_v51 = vor.u32 %v7579_v17, %v7576_v29  ;;  %v15210_v39 = vrot.slane %v8882_v26, 4  ;;  %v9450_v9 = vrot.slane %v15195_v1, 5  ;;  %v15961_v6 = vld [vmem:[#allocation27_spill] sm:$0xff] }
 0x44f   : > { %v15192_v35 = vadd.f32 %v6838_v60, %v6461_v62  ;;  %v7784_v34 = vpop.f32.mrf.mxu1  ;;  %v6840_v15 = vpop.f32.mrf.mxu3  ;;  %v15959_v60 = vsel %vm11724_vm2, %v15132_v8, %v15064_v18  ;;  %v11507_v62 = vld [vmem:[#allocation2 + $0x78] sm:$0xff]  ;;  %v7591_v24 = vrot.slane %v7590_v56, 4  ;;  %v7595_v17 = vrot.slane %v7593_v5, 5 }
 0x450   : > { %v15201_v40 = vadd.f32 %v7784_v34, %v7167_v7  ;;  %v9076_v58 = vunpack.c.l.b16 %v15959_v60  ;;  %v8897_v7 = vrot.slane %v8895_v47, 5  ;;  %v15215_v52 = vpack.c.b16 %v8093_v13, %v8092_v45 }
 0x451   : > { %15956 = vst [vmem:[#allocation26_spill] sm:$0xff] %v15192_v35  ;;  %v8909_v34 = vshll.u32 %v14960_v0, 16  ;;  %v8913_v56 = vshrl.u32 %v14960_v0, 16  ;;  %v7581_v13 = vrot.slane %v7580_v51, 4  ;;  %v9452_v60 = vrot.slane %v9450_v9, 4 }
 0x452   : > { %15958 = vst [vmem:[#allocation54_spill] sm:$0xff] %v15201_v40  ;;  %7823 = vmatmul.bf16.gmra.mxu1 %v7683_v4  ;;  %v9100_v18 = vpack.c.b16 %v15152_v32, %v9076_v58  ;;  %v8898_v26 = vsel %vm11724_vm2, %v8893_v33, %v8897_v7  ;;  %v15960_v32 = vld [vmem:[#allocation30_spill] sm:$0xff]  ;;  %v9453_v58 = vrot.slane %v15213_v16, 5  ;;  %v7886_v7 = vld [vmem:[#allocation2 + $0xc0] sm:$0xe]  ;;  %v8042_v8 = vrot.slane %v7235_v19, 5 }
 0x453   : > { %v7168_v4 = vadd.f32 %v15961_v6, %v15960_v32  ;;  %v15235_v5 = vunpack.c.l.b16 %v8898_v26  ;;  %v7586_v51 = vsel %vm11724_vm2, %v7581_v13, %v15182_v61  ;;  %v7234_v32 = vld [vmem:[#allocation2 + $0xc0] sm:$0xf]  ;;  %v7607_v6 = vshll.u32 %v7235_v19, 16  ;;  %v7236_v13 = vld [vmem:[#allocation2 + $0xc8] sm:$0x1] }
 0x454   : > { %v6462_v14 = vpop.f32.mrf.mxu2  ;;  %8538 = vmatmul.bf16.gmra.mxu3 %v11507_v62  ;;  %v7611_v26 = vshrl.u32 %v7235_v19, 16  ;;  %v11022_v47 = vrot.slane %v7886_v7, 9  ;;  %v9307_v40 = vld [vmem:[#allocation2 + $0xc0] sm:$0xe]  ;;  %v8044_v19 = vrot.slane %v8042_v8, 4  ;;  %v8045_v7 = vrot.slane %v7236_v13, 5 }
 0x455   : > { %v6463_v29 = vadd.f32 %v6462_v14, %v14783_v23  ;;  %v7596_v23 = vsel %vm11724_vm2, %v7591_v24, %v7595_v17  ;;  %v11244_v14 = vrot.slane %v9306_v57, 9  ;;  %v15965_v24 = vld [vmem:[#allocation47_spill] sm:$0xff]  ;;  %v8903_v57 = vshll.u32 %v15208_v31, 16 }
 0x456   : > { %v15250_v17 = vrot.slane %v8909_v34, 5  ;;  %v7667_v61 = vunpack.c.l.b16 %v7596_v23  ;;  %v15257_v35 = vrot.slane %v7607_v6, 5  ;;  %v8043_v34 = vsel %vm12239_vm13, %v11022_v47, %v8042_v8 }
 0x457   : > { %v15231_v45 = vadd.f32 %v6840_v15, %v6463_v29  ;;  %v7786_v33 = vpop.f32.mrf.mxu1  ;;  %9220 = vmatmul.bf16.gmra.mxu0 %v9100_v18  ;;  %v8499_v62 = vpop.f32.mrf.mxu3  ;;  %v15242_v15 = vld [vmem:[#allocation2 + $0xc4] sm:$0xf]  ;;  %v9454_v18 = vsel %vm12239_vm13, %v9452_v60, %v9453_v58  ;;  %v7598_v60 = vshrl.u32 %v7234_v32, 16  ;;  %v8046_v47 = vsel %vm12239_vm13, %v8044_v19, %v8045_v7 }
 0x458   : > { %v15237_v0 = vadd.f32 %v7786_v33, %v7168_v4  ;;  %v15246_v29 = vpop.f32.mrf.mxu0  ;;  %v9451_v4 = vsel %vm12239_vm13, %v11244_v14, %v9450_v9  ;;  %v15254_v33 = vrot.slane %v8913_v56, 4  ;;  %v9513_v58 = vunpack.c.l.b16 %v9454_v18  ;;  %v15262_v14 = vld [vmem:[#allocation2 + $0xc8] sm:$0x1]  ;;  %v15967_v18 = vld [vmem:[#allocation31_spill] sm:$0xff] }
 0x459   : > { %15962 = vst [vmem:[#allocation30_spill] sm:$0xff] %v15231_v45  ;;  %8224 = vmatmul.bf16.gmra.mxu2 %v15965_v24  ;;  %v9457_v24 = vrot.slane %v15242_v15, 5  ;;  %v7601_v45 = vshll.u32 %v7234_v32, 16  ;;  %v9512_v9 = vunpack.c.l.b16 %v9451_v4  ;;  %v7613_v56 = vrot.slane %v7611_v26, 4 }
 0x45a   : > { %15963 = vst [vmem:[#allocation27_spill] sm:$0xff] %v15237_v0  ;;  %v7666_v0 = vunpack.c.l.b16 %v7586_v51  ;;  %v15966_v51 = vld [vmem:[#allocation32_spill] sm:$0xff]  ;;  %v11245_v32 = vrot.slane %v9307_v40, 9  ;;  %v8095_v8 = vunpack.c.l.b16 %v8046_v47  ;;  %v7617_v19 = vshll.u32 %v7236_v13, 16  ;;  %v15970_v13 = vld [vmem:[#allocation35_spill] sm:$0xff] }
 0x45b   : > { %15964 = vst [vmem:[#allocation55_spill] sm:$0xff] %v15246_v29  ;;  %v7169_v29 = vadd.f32 %v15967_v18, %v15966_v51  ;;  %v15266_v41 = vpack.c.b16 %v9513_v58, %v9512_v9  ;;  %v7603_v58 = vrot.slane %v7601_v45, 5  ;;  %v7614_v40 = vor.u32 %v7613_v56, %v15257_v35 }
 0x45c   : > { %v8185_v38 = vpop.f32.mrf.mxu2  ;;  %v7684_v22 = vpack.c.b16 %v7667_v61, %v7666_v0  ;;  %v9458_v4 = vsel %vm12239_vm13, %v11245_v32, %v9457_v24  ;;  %v9460_v0 = vrot.slane %v15262_v14, 5  ;;  %v7600_v61 = vrot.slane %v7598_v60, 4 }
 0x45d   : > { %v8265_v23 = vadd.f32 %v8185_v38, %v14829_v10  ;;  %v8094_v10 = vunpack.c.l.b16 %v8043_v34  ;;  %v9459_v38 = vrot.slane %v9457_v24, 4  ;;  %v15968_v34 = vsel %vm11724_vm2, %v15210_v39, %v15162_v11 }
 0x45e   : > { %v9078_v9 = vunpack.c.l.b16 %v15968_v34  ;;  %v9514_v60 = vunpack.c.l.b16 %v9458_v4  ;;  %v15969_v56 = vshrl.u32 %v15208_v31, 16  ;;  %v8905_v18 = vrot.slane %v8903_v57, 5 }
 0x45f   : > { %v7789_v6 = vpop.f32.mrf.mxu1  ;;  %v15268_v27 = vadd.f32 %v8499_v62, %v8265_v23  ;;  %v8501_v63 = vpop.f32.mrf.mxu3  ;;  %v11508_v62 = vld [vmem:[#allocation2 + $0x84] sm:$0xff]  ;;  %v9461_v23 = vsel %vm12239_vm13, %v9459_v38, %v9460_v0  ;;  %v8916_v11 = vor.u32 %v15254_v33, %v15250_v17  ;;  %v7604_v32 = vor.u32 %v7603_v58, %v7600_v61 }
 0x460   : > { %v15272_v26 = vadd.f32 %v7789_v6, %v7169_v29  ;;  %v15283_v29 = vpack.c.b16 %v8095_v8, %v8094_v10  ;;  %v15287_v24 = vpop.f32.mrf.mxu0  ;;  %v9515_v45 = vunpack.c.l.b16 %v9461_v23  ;;  %v8902_v51 = vrot.slane %v15969_v56, 4  ;;  %v15971_v10 = vld [vmem:[#allocation33_spill] sm:$0xff] }
 0x461   : > { %v7615_v6 = vrot.slane %v7614_v40, 4  ;;  %v7170_v38 = vadd.f32 %v15971_v10, %v15970_v13  ;;  %v7619_v31 = vrot.slane %v7617_v19, 5  ;;  %v8919_v57 = vshll.u32 %v14981_v49, 16  ;;  %v15972_v19 = vld [vmem:[#allocation37_spill] sm:$0xff] }
 0x462   : > { %7828 = vmatmul.bf16.gmra.mxu1 %v7684_v22  ;;  %v9101_v22 = vpack.c.b16 %v15235_v5, %v9078_v9  ;;  %v15295_v47 = vpack.c.b16 %v9515_v45, %v9514_v60  ;;  %v8906_v61 = vor.u32 %v8905_v18, %v8902_v51  ;;  %v8917_v58 = vrot.slane %v8916_v11, 4  ;;  %v15973_v60 = vld [vmem:[#allocation36_spill] sm:$0xff] }
 0x463   : > { %v7620_v33 = vsel %vm11724_vm2, %v7615_v6, %v7619_v31  ;;  %v8921_v40 = vrot.slane %v8919_v57, 5  ;;  %v7171_v45 = vadd.f32 %v15973_v60, %v15972_v19  ;;  %v8933_v56 = vshll.u32 %v15049_v28, 16 }
 0x464   : > { %v8187_v7 = vpop.f32.mrf.mxu2  ;;  %8543 = vmatmul.bf16.gmra.mxu3 %v11508_v62  ;;  %v7669_v34 = vunpack.c.l.b16 %v7620_v33  ;;  %v8907_v23 = vrot.slane %v8906_v61, 4  ;;  %v8943_v19 = vshll.u32 %v15068_v50, 16  ;;  %v8961_v50 = vshrl.u32 %v15125_v25, 16 }
 0x465   : > { %v8266_v39 = vadd.f32 %v8187_v7, %v14878_v42  ;;  %v7605_v42 = vrot.slane %v7604_v32, 4 }
 0x466   : > { %v8912_v32 = vsel %vm11724_vm2, %v8907_v23, %v15250_v17 }
 0x467   : > { %v7791_v8 = vpop.f32.mrf.mxu1  ;;  %v15299_v4 = vadd.f32 %v8501_v63, %v8266_v39  ;;  %9225 = vmatmul.bf16.gmra.mxu0 %v9101_v22  ;;  %v8504_v5 = vpop.f32.mrf.mxu3  ;;  %v7610_v63 = vsel %vm11724_vm2, %v7605_v42, %v15257_v35  ;;  %v8644_v22 = vld [vmem:[#allocation2 + $0x9c] sm:$0xf]  ;;  %v8937_v35 = vshrl.u32 %v15049_v28, 16  ;;  %v9080_v57 = vunpack.c.l.b16 %v8912_v32  ;;  %v8647_v32 = vld [vmem:[#allocation2 + $0xa8] sm:$0xf] }
 0x468   : > { %v15302_v0 = vadd.f32 %v7791_v8, %v7170_v38  ;;  %v15310_v9 = vpop.f32.mrf.mxu0  ;;  %v7668_v7 = vunpack.c.l.b16 %v7610_v63  ;;  %v8924_v13 = vshrl.u32 %v8644_v22, 16  ;;  %v8927_v10 = vshll.u32 %v8644_v22, 16  ;;  %v11509_v38 = vld [vmem:[#allocation2 + $0x90] sm:$0xff] }
 0x469   : > { %8229 = vmatmul.bf16.gmra.mxu2 %v14840_v37  ;;  %v8922_v37 = vsel %vm11724_vm2, %v8917_v58, %v8921_v40  ;;  %v8935_v8 = vrot.slane %v8933_v56, 5  ;;  %v8939_v31 = vrot.slane %v8937_v35, 4  ;;  %v15974_v58 = vld [vmem:[#allocation39_spill] sm:$0xff]  ;;  %v15975_v63 = vld [vmem:[#allocation38_spill] sm:$0xff]  ;;  %v15976_v35 = vld [vmem:[#allocation41_spill] sm:$0xff] }
 0x46a   : > { %v9081_v6 = vunpack.c.l.b16 %v8922_v37  ;;  %v8926_v33 = vrot.slane %v8924_v13, 4  ;;  %v8929_v61 = vrot.slane %v8927_v10, 5  ;;  %v7172_v40 = vadd.f32 %v15975_v63, %v15974_v58 }
 0x46b   : > { %v8963_v58 = vrot.slane %v8961_v50, 4 }
 0x46c   : > { %v8190_v62 = vpop.f32.mrf.mxu2  ;;  %v9102_v42 = vpack.c.b16 %v9081_v6, %v9080_v57  ;;  %v8957_v6 = vshll.u32 %v15125_v25, 16  ;;  %v8948_v57 = vshrl.u32 %v8647_v32, 16 }
 0x46d   : > { %v8267_v49 = vadd.f32 %v8190_v62, %v14908_v36  ;;  %v7685_v36 = vpack.c.b16 %v7669_v34, %v7668_v7  ;;  %v8940_v62 = vor.u32 %v8939_v31, %v8935_v8  ;;  %v8945_v7 = vrot.slane %v8943_v19, 5  ;;  %v15980_v19 = vld [vmem:[#allocation44_spill] sm:$0xff] }
 0x46f   : > { %v7794_v51 = vpop.f32.mrf.mxu1  ;;  %v15319_v18 = vadd.f32 %v8504_v5, %v8267_v49  ;;  %v8506_v11 = vpop.f32.mrf.mxu3  ;;  %v8941_v60 = vrot.slane %v8940_v62, 4 }
 0x470   : > { %v15321_v39 = vadd.f32 %v7794_v51, %v7171_v45  ;;  %v15329_v17 = vpop.f32.mrf.mxu0  ;;  %v15977_v51 = vld [vmem:[#allocation42_spill] sm:$0xff] }
 0x472   : > { %7833 = vmatmul.bf16.gmra.mxu1 %v7685_v36  ;;  %v7173_v36 = vadd.f32 %v15977_v51, %v15976_v35 }
 0x474   : > { %v8192_v28 = vpop.f32.mrf.mxu2  ;;  %8548 = vmatmul.bf16.gmra.mxu3 %v11509_v38 }
 0x475   : > { %v8268_v5 = vadd.f32 %v8192_v28, %v14948_v53  ;;  %v8930_v53 = vor.u32 %v8929_v61, %v8926_v33  ;;  %v8951_v28 = vshll.u32 %v8647_v32, 16  ;;  %v11510_v33 = vld [vmem:[#allocation2 + $0x9c] sm:$0xff]  ;;  %v8959_v61 = vrot.slane %v8957_v6, 5 }
 0x477   : > { %v7796_v34 = vpop.f32.mrf.mxu1  ;;  %v15331_v49 = vadd.f32 %v8506_v11, %v8268_v5  ;;  %9230 = vmatmul.bf16.gmra.mxu0 %v9102_v42  ;;  %v8509_v37 = vpop.f32.mrf.mxu3  ;;  %v8931_v56 = vrot.slane %v8930_v53, 4  ;;  %v8946_v11 = vsel %vm11724_vm2, %v8941_v60, %v8945_v7  ;;  %v15978_v5 = vld [vmem:[#allocation7_spill] sm:$0xff]  ;;  %v8964_v60 = vor.u32 %v8963_v58, %v8959_v61 }
 0x478   : > { %v15333_v23 = vadd.f32 %v7796_v34, %v7172_v40  ;;  %v15350_v38 = vpop.f32.mrf.mxu0  ;;  %v9083_v31 = vunpack.c.l.b16 %v8946_v11  ;;  %v8950_v34 = vrot.slane %v8948_v57, 4 }
 0x479   : > { %8234 = vmatmul.bf16.gmra.mxu2 %v14923_v46  ;;  %v8965_v51 = vrot.slane %v8964_v60, 4 }
 0x47c   : > { %v8195_v45 = vpop.f32.mrf.mxu2 }
 0x47d   : > { %v8269_v22 = vadd.f32 %v8195_v45, %v14983_v55  ;;  %v8936_v55 = vsel %vm11724_vm2, %v8931_v56, %v8935_v8  ;;  %v15979_v8 = vld [vmem:[#allocation43_spill] sm:$0xff]  ;;  %v8967_v56 = vshll.u32 %v15142_v44, 16  ;;  %v8981_v44 = vshll.u32 %v15195_v1, 16 }
 0x47e   : > { %v9082_v25 = vunpack.c.l.b16 %v8936_v55  ;;  %v7174_v53 = vadd.f32 %v15980_v19, %v15979_v8  ;;  %v15982_v55 = vld [vmem:[#allocation48_spill] sm:$0xff] }
 0x47f   : > { %v7799_v13 = vpop.f32.mrf.mxu1  ;;  %v15344_v46 = vadd.f32 %v8509_v37, %v8269_v22  ;;  %v8511_v42 = vpop.f32.mrf.mxu3  ;;  %v8953_v37 = vrot.slane %v8951_v28, 5  ;;  %v8969_v32 = vrot.slane %v8967_v56, 5  ;;  %v8650_v28 = vld [vmem:[#allocation2 + $0xb4] sm:$0xf] }
 0x480   : > { %v15346_v10 = vadd.f32 %v7799_v13, %v7173_v36  ;;  %v9103_v62 = vpack.c.b16 %v9083_v31, %v9082_v25  ;;  %v15981_v13 = vld [vmem:[#allocation46_spill] sm:$0xff]  ;;  %v8972_v25 = vshrl.u32 %v8650_v28, 16 }
 0x481   : > { %v8954_v35 = vor.u32 %v8953_v37, %v8950_v34  ;;  %v7175_v31 = vadd.f32 %v15982_v55, %v15981_v13  ;;  %v8970_v57 = vsel %vm11724_vm2, %v8965_v51, %v8969_v32  ;;  %v8983_v34 = vrot.slane %v8981_v44, 5  ;;  %v15985_v51 = vld [vmem:[#allocation51_spill] sm:$0xff] }
 0x482   : > { %9606 = vmatmul.bf16.vlgmr.msra.gmra.mxu1 %v15978_v5  ;;  %v9085_v58 = vunpack.c.l.b16 %v8970_v57  ;;  %v8991_v13 = vshll.u32 %v15213_v16, 16  ;;  %v15987_v44 = vld [vmem:[#allocation15_spill] sm:$0xff]  ;;  %v8653_v16 = vld [vmem:[#allocation2 + $0xc0] sm:$0xf] }
 0x483   : > { %v8955_v50 = vrot.slane %v8954_v35, 4 }
 0x484   : > { %v8197_v63 = vpop.f32.mrf.mxu2  ;;  %8553 = vmatmul.bf16.gmra.mxu3 %v11510_v33 }
 0x485   : > { %v8270_v40 = vadd.f32 %v8197_v63, %v15023_v43  ;;  %v15362_v43 = vpop.f32.mrf.mxu0  ;;  %v8975_v63 = vshll.u32 %v8650_v28, 16  ;;  %v15986_v28 = vld [vmem:[#allocation52_spill] sm:$0xff] }
 0x487   : > { %v7801_v45 = vpop.f32.mrf.mxu1  ;;  %v15356_v7 = vadd.f32 %v8511_v42, %v8270_v40  ;;  %9235 = vmatmul.bf16.gmra.mxu0 %v9103_v62  ;;  %v8514_v36 = vpop.f32.mrf.mxu3  ;;  %v15983_v40 = vld [vmem:[#allocation9_spill] sm:$0xff]  ;;  %v8977_v56 = vrot.slane %v8975_v63, 5 }
 0x488   : > { %v15358_v22 = vadd.f32 %v7801_v45, %v7174_v53  ;;  %v11511_v62 = vld [vmem:[#allocation2 + $0xa8] sm:$0xff]  ;;  %v8974_v45 = vrot.slane %v8972_v25, 4 }
 0x489   : > { %8239 = vmatmul.bf16.gmra.mxu2 %v14986_v54  ;;  %v8985_v54 = vshrl.u32 %v15195_v1, 16 }
 0x48a   : > { %v8978_v55 = vor.u32 %v8977_v56, %v8974_v45 }
 0x48b   : > { %v8987_v37 = vrot.slane %v8985_v54, 4  ;;  %v7177_v54 = vadd.f32 %v15987_v44, %v15986_v28  ;;  %v15991_v44 = vld [vmem:[#allocation8_spill] sm:$0xff] }
 0x48c   : > { %v8200_v11 = vpop.f32.mrf.mxu2  ;;  %v8979_v57 = vrot.slane %v8978_v55, 4  ;;  %v9015_v55 = vshll.u32 %v15262_v14, 16 }
 0x48d   : > { %v8271_v6 = vadd.f32 %v8200_v11, %v15059_v3  ;;  %v8960_v3 = vsel %vm11724_vm2, %v8955_v50, %v8959_v61  ;;  %v15378_v1 = vpop.f32.mrf.mxu0  ;;  %v15984_v61 = vld [vmem:[#allocation49_spill] sm:$0xff]  ;;  %v8988_v11 = vor.u32 %v8987_v37, %v8983_v34  ;;  %v15988_v37 = vld [vmem:[#allocation12_spill] sm:$0xff] }
 0x48e   : > { %v9084_v8 = vunpack.c.l.b16 %v8960_v3  ;;  %v9005_v3 = vshll.u32 %v15242_v15, 16  ;;  %v9017_v28 = vrot.slane %v9015_v55, 5 }
 0x48f   : > { %v7804_v5 = vpop.f32.mrf.mxu1  ;;  %v15371_v42 = vadd.f32 %v8514_v36, %v8271_v6  ;;  %v8516_v35 = vpop.f32.mrf.mxu3  ;;  %v7176_v36 = vadd.f32 %v15985_v51, %v15984_v61  ;;  %v15990_v61 = vld [vmem:[#allocation18_spill] sm:$0xff] }
 0x490   : > { %v15373_v33 = vadd.f32 %v7804_v5, %v7175_v31  ;;  %v9104_v60 = vpack.c.b16 %v9085_v58, %v9084_v8  ;;  %v8993_v31 = vrot.slane %v8991_v13, 5  ;;  %v9009_v58 = vshrl.u32 %v15242_v15, 16  ;;  %v11512_v8 = vld [vmem:[#allocation2 + $0xb4] sm:$0xff] }
 0x492   : > { %9611 = vmatmul.bf16.gmra.mxu1 %v15983_v40  ;;  %v9011_v45 = vrot.slane %v9009_v58, 4 }
 0x494   : > { %v8202_v19 = vpop.f32.mrf.mxu2  ;;  %8558 = vmatmul.bf16.gmra.mxu3 %v11511_v62 }
 0x495   : > { %v8272_v53 = vadd.f32 %v8202_v19, %v15091_v20  ;;  %v8989_v20 = vrot.slane %v8988_v11, 4  ;;  %v15395_v25 = vpop.f32.mrf.mxu0  ;;  %v8996_v19 = vshrl.u32 %v8653_v16, 16 }
 0x497   : > { %v7806_v32 = vpop.f32.mrf.mxu1  ;;  %v15383_v6 = vadd.f32 %v8516_v35, %v8272_v53  ;;  %9240 = vmatmul.bf16.gmra.mxu0 %v9104_v60  ;;  %v8994_v5 = vsel %vm11724_vm2, %v8989_v20, %v8993_v31  ;;  %v8999_v53 = vshll.u32 %v8653_v16, 16  ;;  %v9007_v60 = vrot.slane %v9005_v3, 5  ;;  %v15989_v35 = vld [vmem:[#allocation10_spill] sm:$0xff] }
 0x498   : > { %v15385_v50 = vadd.f32 %v7806_v32, %v7176_v36  ;;  %v9087_v62 = vunpack.c.l.b16 %v8994_v5  ;;  %v7178_v51 = vadd.f32 %v15990_v61, %v15989_v35  ;;  %v8998_v36 = vrot.slane %v8996_v19, 4  ;;  %v8656_v19 = vld [vmem:[#allocation2 + $0xcc] sm:$0xf] }
 0x499   : > { %8244 = vmatmul.bf16.gmra.mxu2 %v15070_v59  ;;  %v8984_v59 = vsel %vm11724_vm2, %v8979_v57, %v8983_v34  ;;  %v9001_v11 = vrot.slane %v8999_v53, 5  ;;  %v9012_v32 = vor.u32 %v9011_v45, %v9007_v60  ;;  %v15421_v53 = vld [vmem:[#allocation2 + $0xd0] sm:$0xf]  ;;  %v15423_v45 = vld [vmem:[#allocation2 + $0xd4] sm:$0x1]  ;;  %v9023_v35 = vshll.u32 %v8656_v19, 16 }
 0x49a   : > { %v9086_v56 = vunpack.c.l.b16 %v8984_v59  ;;  %v9029_v61 = vshll.u32 %v15421_v53, 16 }
 0x49b   : > { %v9002_v31 = vor.u32 %v9001_v11, %v8998_v36  ;;  %v9013_v57 = vrot.slane %v9012_v32, 4  ;;  %v9033_v36 = vshrl.u32 %v15421_v53, 16  ;;  %v9039_v11 = vshll.u32 %v15423_v45, 16 }
 0x49c   : > { %v9105_v15 = vpack.c.b16 %v9087_v62, %v9086_v56  ;;  %v15993_v62 = vld [vmem:[#allocation29_spill] sm:$0xff]  ;;  %v9025_v55 = vrot.slane %v9023_v35, 5 }
 0x49d   : > { %v15407_v20 = vpop.f32.mrf.mxu0  ;;  %v9003_v3 = vrot.slane %v9002_v31, 4  ;;  %v9018_v58 = vsel %vm11724_vm2, %v9013_v57, %v9017_v28  ;;  %v9031_v31 = vrot.slane %v9029_v61, 5  ;;  %v9035_v28 = vrot.slane %v9033_v36, 4  ;;  %v15997_v61 = vld [vmem:[#allocation22_spill] sm:$0xff] }
 0x49e   : > { %v9089_v59 = vunpack.c.l.b16 %v9018_v58 }
 0x49f   : > { %v7809_v63 = vpop.f32.mrf.mxu1  ;;  %v9008_v14 = vsel %vm11724_vm2, %v9003_v3, %v9007_v60 }
 0x4a0   : > { %v15397_v40 = vadd.f32 %v7809_v63, %v7177_v54  ;;  %v15992_v54 = vld [vmem:[#allocation17_spill] sm:$0xff] }
 0x4a1   : > { %v7179_v5 = vadd.f32 %v15992_v54, %v15991_v44  ;;  %v9036_v54 = vor.u32 %v9035_v28, %v9031_v31  ;;  %v16001_v28 = vld [vmem:[#allocation40_spill] sm:$0xff] }
 0x4a2   : > { %9616 = vmatmul.bf16.gmra.mxu1 %v15988_v37 }
 0x4a3   : > { %v9037_v58 = vrot.slane %v9036_v54, 4  ;;  %v16003_v54 = vld [vmem:[#allocation28_spill] sm:$0xff] }
 0x4a4   : > { %8563 = vmatmul.bf16.gmra.mxu3 %v11512_v8  ;;  %v9088_v8 = vunpack.c.l.b16 %v9008_v14  ;;  %v15995_v14 = vld [vmem:[#allocation21_spill] sm:$0xff] }
 0x4a5   : > { %v15419_v37 = vpop.f32.mrf.mxu0 }
 0x4a6   : > { %v9106_v56 = vpack.c.b16 %v9089_v59, %v9088_v8  ;;  %v7181_v59 = vadd.f32 %v15995_v14, %v14979_v48  ;;  %v16005_v14 = vld [vmem:[#allocation55_spill] sm:$0xff] }
 0x4a7   : > { %v7811_v13 = vpop.f32.mrf.mxu1  ;;  %9245 = vmatmul.bf16.gmra.mxu0 %v9105_v15  ;;  %v9020_v15 = vshrl.u32 %v8656_v19, 16 }
 0x4a8   : > { %v15404_v34 = vadd.f32 %v7811_v13, %v7178_v51  ;;  %v15994_v51 = vld [vmem:[#allocation14_spill] sm:$0xff] }
 0x4a9   : > { %8249 = vmatmul.bf16.gmra.mxu2 %v15144_v21  ;;  %v11513_v21 = vld [vmem:[#allocation2 + $0xc0] sm:$0xff]  ;;  %v7180_v60 = vadd.f32 %v15013_v2, %v15994_v51  ;;  %v9022_v13 = vrot.slane %v9020_v15, 4  ;;  %v15996_v15 = vld [vmem:[#allocation34_spill] sm:$0xff]  ;;  %v15998_v51 = vld [vmem:[#allocation19_spill] sm:$0xff] }
 0x4ab   : > { %v9026_v44 = vor.u32 %v9025_v55, %v9022_v13 }
 0x4ad   : > { %v9027_v3 = vrot.slane %v9026_v44, 4  ;;  %v15433_v2 = vpop.f32.mrf.mxu0  ;;  %v16002_v44 = vld [vmem:[#allocation23_spill] sm:$0xff] }
 0x4af   : > { %v7814_v63 = vpop.f32.mrf.mxu1 }
 0x4b0   : > { %v15414_v16 = vadd.f32 %v7814_v63, %v7179_v5  ;;  %v9041_v5 = vrot.slane %v9039_v11, 5  ;;  %v9032_v63 = vsel %vm11724_vm2, %v9027_v3, %v9031_v31 }
 0x4b1   : > { %v9090_v8 = vunpack.c.l.b16 %v9032_v63  ;;  %v16004_v63 = vld [vmem:[#allocation6_spill] sm:$0xff] }
 0x4b2   : > { %9621 = vmatmul.bf16.gmra.mxu1 %v15993_v62  ;;  %v9042_v62 = vsel %vm11724_vm2, %v9037_v58, %v9041_v5  ;;  %v7184_v5 = vadd.f32 %v16003_v54, %v16002_v44  ;;  %v15488_v54 = vld [vmem:[%s15769_s6] ss:$0 sm:$0xff] }
 0x4b3   : > { %v9091_v19 = vunpack.c.l.b16 %v9042_v62 }
 0x4b4   : > { %8568 = vmatmul.bf16.gmra.mxu3 %v11513_v21 }
 0x4b5   : > { %v9107_v35 = vpack.c.b16 %v9091_v19, %v9090_v8  ;;  %v15446_v36 = vpop.f32.mrf.mxu0  ;;  %v16007_v8 = vld [vmem:[#allocation11_spill] sm:$0xff] }
 0x4b6   : > { %v7186_v19 = vadd.f32 %v15287_v24, %v16007_v8  ;;  %v9261_v24 = vadd.f32 %v15350_v38, %v15268_v27  ;;  %v15494_v38 = vpop.f32.mrf.mxu2 }
 0x4b7   : > { %v7816_v32 = vpop.f32.mrf.mxu1  ;;  %9250 = vmatmul.bf16.gmra.mxu0 %v9106_v56  ;;  %v11514_v56 = vld [vmem:[#allocation2 + $0xcc] sm:$0xff] }
 0x4b8   : > { %v15430_v57 = vadd.f32 %v7816_v32, %v7180_v60  ;;  %v7182_v60 = vadd.f32 %v15998_v51, %v15997_v61  ;;  %v16000_v32 = vld [vmem:[#allocation24_spill] sm:$0xff] }
 0x4b9   : > { %8254 = vmatmul.bf16.gmra.mxu2 %v15215_v52  ;;  %v7183_v13 = vadd.f32 %v16000_v32, %v15999_v30  ;;  %v16010_v30 = vld [vmem:[#allocation30_spill] sm:$0xff] }
 0x4ba   : > { %v7188_v32 = vadd.f32 %v15329_v17, %v16010_v30 }
 0x4bf   : > { %v7819_v21 = vpop.f32.mrf.mxu1 }
 0x4c0   : > { %v15441_v52 = vadd.f32 %v7819_v21, %v7181_v59  ;;  %v7185_v59 = vadd.f32 %v16005_v14, %v16004_v63  ;;  %v9262_v14 = vadd.f32 %v15362_v43, %v15299_v4  ;;  %v15511_v43 = vpop.f32.mrf.mxu0 }
 0x4c2   : > { %9626 = vmatmul.bf16.gmra.mxu1 %v15996_v15 }
 0x4c4   : > { %8573 = vmatmul.bf16.gmra.mxu3 %v11514_v56 }
 0x4c7   : > { %v7821_v11 = vpop.f32.mrf.mxu1  ;;  %9255 = vmatmul.bf16.gmra.mxu0 %v9107_v35  ;;  %v16008_v35 = vld [vmem:[#allocation26_spill] sm:$0xff] }
 0x4c8   : > { %v15448_v48 = vadd.f32 %v7821_v11, %v7182_v60  ;;  %v7187_v61 = vadd.f32 %v15310_v9, %v16008_v35  ;;  %v16009_v11 = vld [vmem:[#allocation50_spill] sm:$0xff] }
 0x4c9   : > { %8259 = vmatmul.bf16.gmra.mxu2 %v15283_v29  ;;  %v16006_v29 = vld [vmem:[#allocation45_spill] sm:$0xff] }
 0x4cf   : > { %v7824_v55 = vpop.f32.mrf.mxu1 }
 0x4d0   : > { %v15453_v31 = vadd.f32 %v7824_v55, %v7183_v13 }
 0x4d2   : > { %9631 = vmatmul.bf16.gmra.mxu1 %v16001_v28  ;;  %v15483_v28 = vld [vmem:[%s15768_s5] ss:$0 sm:$0xff] }
 0x4d7   : > { %v7826_v3 = vpop.f32.mrf.mxu1 }
 0x4d8   : > { %v15458_v58 = vadd.f32 %v7826_v3, %v7184_v5  ;;  %v16011_v5 = vld [vmem:[#allocation13_spill] sm:$0xff]  ;;  %v9791_v3 = vld [vmem:[%s11765_s18] sm:$0xff] }
 0x4df   : > { %v7829_v62 = vpop.f32.mrf.mxu1 }
 0x4e0   : > { %v15462_v21 = vadd.f32 %v7829_v62, %v7185_v59 }
 0x4e2   : > { %9636 = vmatmul.bf16.gmra.mxu1 %v16006_v29 }
 0x4e7   : > { %v7831_v56 = vpop.f32.mrf.mxu1 }
 0x4e8   : > { %v15467_v15 = vadd.f32 %v7831_v56, %v7186_v19  ;;  %v15507_v19 = vpop.f32.mrf.mxu3  ;;  %v9792_v56 = vld [vmem:[%s11765_s18 + $0x8] sm:$0xff] }
 0x4ef   : > { %v7834_v51 = vpop.f32.mrf.mxu1 }
 0x4f0   : > { %v15471_v60 = vadd.f32 %v7834_v51, %v7187_v61  ;;  %v9263_v61 = vadd.f32 %v15378_v1, %v15319_v18  ;;  %v15515_v51 = vpop.f32.mrf.mxu2  ;;  %v9264_v18 = vadd.f32 %v15395_v25, %v15331_v49 }
 0x4f2   : > { %9641 = vmatmul.bf16.gmra.mxu1 %v16009_v11 }
 0x4f7   : > { %v7836_v13 = vpop.f32.mrf.mxu1 }
 0x4f8   : > { %v15476_v55 = vadd.f32 %v7836_v13, %v7188_v32 }
 0x4ff   : > { %v9607_v9 = vpop.f32.mrf.mxu1 }
 0x500   : > { %v9687_v44 = vadd.f32 %v9607_v9, %v9261_v24  ;;  %v16012_v24 = vld [vmem:[#allocation16_spill] sm:$0xff]  ;;  %v9793_v9 = vld [vmem:[%s11765_s18 + $0x10] sm:$0xff] }
 0x502   : > { %v9723_v17 = vmul.f32 %v15483_v28, %v9687_v44  ;;  %9646 = vmatmul.bf16.gmra.mxu1 %v16011_v5 }
 0x504   : > { %v9759_v27 = vadd.f32 %v15488_v54, %v9723_v17  ;;  %v15522_v17 = vpop.f32.mrf.mxu3 }
 0x506   : > { %v9823_v63 = vadd.f32 %v9791_v3, %v9759_v27  ;;  %v15526_v3 = vpop.f32.mrf.mxu0 }
 0x507   : > { %v9609_v59 = vpop.f32.mrf.mxu1 }
 0x508   : > { %v9855_v62 = vmax.f32 %v9823_v63, 0.0  ;;  %v9688_v29 = vadd.f32 %v9609_v59, %v9262_v14  ;;  %v15528_v14 = vpop.f32.mrf.mxu2 }
 0x50a   : > { %9887 = vst [vmem:[%s15503_s29] sm:$0xff] %v9855_v62  ;;  %v9724_v8 = vmul.f32 %v15483_v28, %v9688_v29  ;;  %v9794_v62 = vld [vmem:[%s11765_s18 + $0x18] sm:$0xff] }
 0x50c   : > { %v9760_v4 = vadd.f32 %v15488_v54, %v9724_v8  ;;  %v15536_v49 = vpop.f32.mrf.mxu3 }
 0x50e   : > { %v9824_v35 = vadd.f32 %v9792_v56, %v9760_v4  ;;  %v9265_v56 = vadd.f32 %v15407_v20, %v15344_v46  ;;  %v9266_v20 = vadd.f32 %v15419_v37, %v15356_v7  ;;  %v9267_v7 = vadd.f32 %v15433_v2, %v15371_v42 }
 0x50f   : > { %v9612_v11 = vpop.f32.mrf.mxu1  ;;  %v9268_v2 = vadd.f32 %v15446_v36, %v15383_v6 }
 0x510   : > { %v9856_v30 = vmax.f32 %v9824_v35, 0.0  ;;  %v9689_v32 = vadd.f32 %v9612_v11, %v9263_v61  ;;  %v15538_v61 = vpop.f32.mrf.mxu0 }
 0x512   : > { %9888 = vst [vmem:[%s15503_s29 + $0x8] sm:$0xff] %v9856_v30  ;;  %v9725_v13 = vmul.f32 %v15483_v28, %v9689_v32  ;;  %9651 = vmatmul.bf16.gmra.mxu1 %v16012_v24  ;;  %v16013_v30 = vld [vmem:[#allocation20_spill] sm:$0xff]  ;;  %v15543_v32 = vpop.f32.mrf.mxu2 }
 0x514   : > { %v9761_v44 = vadd.f32 %v15488_v54, %v9725_v13  ;;  %v9795_v13 = vld [vmem:[%s11765_s18 + $0x20] sm:$0xff] }
 0x516   : > { %v9825_v5 = vadd.f32 %v9793_v9, %v9761_v44 }
 0x517   : > { %v9614_v1 = vpop.f32.mrf.mxu1 }
 0x518   : > { %v9857_v27 = vmax.f32 %v9825_v5, 0.0  ;;  %v9690_v63 = vadd.f32 %v9614_v1, %v9264_v18  ;;  %v15549_v18 = vpop.f32.mrf.mxu3 }
 0x51a   : > { %9889 = vst [vmem:[%s15503_s29 + $0x10] sm:$0xff] %v9857_v27  ;;  %v9726_v59 = vmul.f32 %v15483_v28, %v9690_v63  ;;  %v9796_v27 = vld [vmem:[%s11765_s18 + $0x28] sm:$0xff]  ;;  %v15554_v63 = vpop.f32.mrf.mxu0 }
 0x51c   : > { %v9762_v29 = vadd.f32 %v15488_v54, %v9726_v59 }
 0x51e   : > { %v9826_v8 = vadd.f32 %v9794_v62, %v9762_v29  ;;  %v15557_v62 = vpop.f32.mrf.mxu2 }
 0x51f   : > { %v9617_v25 = vpop.f32.mrf.mxu1 }
 0x520   : > { %v9858_v4 = vmax.f32 %v9826_v8, 0.0  ;;  %v9691_v35 = vadd.f32 %v9617_v25, %v9265_v56 }
 0x522   : > { %9890 = vst [vmem:[%s15503_s29 + $0x18] sm:$0xff] %v9858_v4  ;;  %v9727_v11 = vmul.f32 %v15483_v28, %v9691_v35  ;;  %9656 = vmatmul.bf16.gmra.mxu1 %v16013_v30  ;;  %v16014_v4 = vld [vmem:[#allocation4_spill] sm:$0xff]  ;;  %v15564_v35 = vpop.f32.mrf.mxu3 }
 0x524   : > { %v9763_v24 = vadd.f32 %v15488_v54, %v9727_v11  ;;  %v9797_v11 = vld [vmem:[%s11765_s18 + $0x30] sm:$0xff] }
 0x526   : > { %v9827_v46 = vadd.f32 %v9795_v13, %v9763_v24  ;;  %v16015_v13 = vld [vmem:[#allocation25_spill] sm:$0xff] }
 0x527   : > { %v9619_v9 = vpop.f32.mrf.mxu1  ;;  %v8273_v24 = vadd.f32 %v15494_v38, %v16015_v13  ;;  %v16017_v13 = vld [vmem:[#allocation53_spill] sm:$0xff] }
 0x528   : > { %v9859_v44 = vmax.f32 %v9827_v46, 0.0  ;;  %v9692_v5 = vadd.f32 %v9619_v9, %v9266_v20  ;;  %v15570_v46 = vpop.f32.mrf.mxu0  ;;  %v15574_v20 = vpop.f32.mrf.mxu2 }
 0x52a   : > { %9891 = vst [vmem:[%s15503_s29 + $0x20] sm:$0xff] %v9859_v44  ;;  %v9728_v1 = vmul.f32 %v15483_v28, %v9692_v5 }
 0x52c   : > { %v9764_v59 = vadd.f32 %v15488_v54, %v9728_v1  ;;  %v8587_v1 = vadd.f32 %v15507_v19, %v8273_v24 }
 0x52e   : > { %v9828_v29 = vadd.f32 %v9796_v27, %v9764_v59  ;;  %v9798_v59 = vld [vmem:[%s11765_s18 + $0x38] sm:$0xff] }
 0x52f   : > { %v9622_v37 = vpop.f32.mrf.mxu1 }
 0x530   : > { %v9860_v8 = vmax.f32 %v9828_v29, 0.0  ;;  %v9693_v56 = vadd.f32 %v9622_v37, %v9267_v7  ;;  %v15581_v29 = vpop.f32.mrf.mxu3  ;;  %v16016_v7 = vld [vmem:[#allocation5_spill] sm:$0xff]  ;;  %v9269_v37 = vadd.f32 %v15511_v43, %v8587_v1  ;;  %v16018_v43 = vld [vmem:[#allocation54_spill] sm:$0xff] }
 0x531   : > { %v8274_v6 = vadd.f32 %v15515_v51, %v16016_v7  ;;  %v9799_v51 = vld [vmem:[%s11765_s18 + $0x40] sm:$0xff] }
 0x532   : > { %9892 = vst [vmem:[%s15503_s29 + $0x28] sm:$0xff] %v9860_v8  ;;  %v9729_v25 = vmul.f32 %v15483_v28, %v9693_v56  ;;  %9661 = vmatmul.bf16.gmra.mxu1 %v16014_v4  ;;  %v15586_v56 = vpop.f32.mrf.mxu0  ;;  %v15588_v4 = vpop.f32.mrf.mxu2 }
 0x534   : > { %v9765_v30 = vadd.f32 %v15488_v54, %v9729_v25 }
 0x536   : > { %v9829_v42 = vadd.f32 %v9797_v11, %v9765_v30  ;;  %v8588_v11 = vadd.f32 %v15522_v17, %v8274_v6 }
 0x537   : > { %v9624_v9 = vpop.f32.mrf.mxu1 }
 0x538   : > { %v9861_v44 = vmax.f32 %v9829_v42, 0.0  ;;  %v9694_v5 = vadd.f32 %v9624_v9, %v9268_v2  ;;  %v8275_v42 = vadd.f32 %v15528_v14, %v16018_v43  ;;  %v9270_v9 = vadd.f32 %v15526_v3, %v8588_v11  ;;  %v9800_v14 = vld [vmem:[%s11765_s18 + $0x48] sm:$0xff]  ;;  %v16019_v3 = vld [vmem:[#allocation27_spill] sm:$0xff] }
 0x539   : > { %v8277_v43 = vadd.f32 %v15557_v62, %v15272_v26  ;;  %v8278_v26 = vadd.f32 %v15574_v20, %v15302_v0  ;;  %v9803_v0 = vld [vmem:[%s11765_s18 + $0x60] sm:$0xff] }
 0x53a   : > { %9893 = vst [vmem:[%s15503_s29 + $0x30] sm:$0xff] %v9861_v44  ;;  %v9730_v27 = vmul.f32 %v15483_v28, %v9694_v5  ;;  %v15599_v44 = vpop.f32.mrf.mxu3  ;;  %v15606_v7 = vpop.f32.mrf.mxu2 }
 0x53b   : > { %v8280_v12 = vadd.f32 %v15606_v7, %v15333_v23 }
 0x53c   : > { %v9766_v38 = vadd.f32 %v15488_v54, %v9730_v27  ;;  %v8589_v27 = vadd.f32 %v15536_v49, %v8275_v42 }
 0x53e   : > { %v9830_v36 = vadd.f32 %v9798_v59, %v9766_v38  ;;  %v15602_v59 = vpop.f32.mrf.mxu0 }
 0x53f   : > { %v9627_v8 = vpop.f32.mrf.mxu1 }
 0x540   : > { %v9862_v25 = vmax.f32 %v9830_v36, 0.0  ;;  %v9695_v19 = vadd.f32 %v9627_v8, %v9269_v37  ;;  %v8276_v36 = vadd.f32 %v15543_v32, %v16019_v3  ;;  %v9271_v8 = vadd.f32 %v15538_v61, %v8589_v27  ;;  %v9802_v27 = vld [vmem:[%s11765_s18 + $0x58] sm:$0xff] }
 0x541   : > { %v9464_v3 = vrot.slane %v15421_v53, 5  ;;  %v8279_v53 = vadd.f32 %v15588_v4, %v15321_v39 }
 0x542   : > { %9894 = vst [vmem:[%s15503_s29 + $0x38] sm:$0xff] %v9862_v25  ;;  %v9731_v30 = vmul.f32 %v15483_v28, %v9695_v19  ;;  %9666 = vmatmul.bf16.gmra.mxu1 %v16017_v13  ;;  %v15613_v11 = vpop.f32.mrf.mxu3  ;;  %v15623_v61 = vpop.f32.mrf.mxu2 }
 0x544   : > { %v9767_v24 = vadd.f32 %v15488_v54, %v9731_v30  ;;  %v8590_v30 = vadd.f32 %v15549_v18, %v8276_v36 }
 0x546   : > { %v9831_v2 = vadd.f32 %v9799_v51, %v9767_v24  ;;  %v9801_v51 = vld [vmem:[%s11765_s18 + $0x50] sm:$0xff]  ;;  %v15620_v24 = vpop.f32.mrf.mxu0 }
 0x547   : > { %v9629_v5 = vpop.f32.mrf.mxu1 }
 0x548   : > { %v9863_v1 = vmax.f32 %v9831_v2, 0.0  ;;  %v9696_v17 = vadd.f32 %v9629_v5, %v9270_v9  ;;  %v9272_v2 = vadd.f32 %v15554_v63, %v8590_v30 }
 0x54a   : > { %9895 = vst [vmem:[%s15503_s29 + $0x40] sm:$0xff] %v9863_v1  ;;  %v9732_v38 = vmul.f32 %v15483_v28, %v9696_v17  ;;  %v8591_v1 = vadd.f32 %v15564_v35, %v8277_v43  ;;  %v15631_v17 = vpop.f32.mrf.mxu3 }
 0x54c   : > { %v9768_v6 = vadd.f32 %v15488_v54, %v9732_v38 }
 0x54e   : > { %v9832_v37 = vadd.f32 %v9800_v14, %v9768_v6  ;;  %v15637_v62 = vpop.f32.mrf.mxu0  ;;  %v9273_v14 = vadd.f32 %v15570_v46, %v8591_v1  ;;  %v15640_v6 = vpop.f32.mrf.mxu2  ;;  %v9467_v46 = vrot.slane %v15423_v45, 5 }
 0x54f   : > { %v9632_v25 = vpop.f32.mrf.mxu1 }
 0x550   : > { %v9864_v19 = vmax.f32 %v9832_v37, 0.0  ;;  %v9697_v49 = vadd.f32 %v9632_v25, %v9271_v8  ;;  %v9308_v8 = vld [vmem:[#allocation2 + $0xcc] sm:$0xe]  ;;  %v8592_v25 = vadd.f32 %v15581_v29, %v8278_v26 }
 0x551   : > { %v11246_v20 = vrot.slane %v9308_v8, 9  ;;  %v9805_v8 = vld [vmem:[%s11765_s18 + $0x70] sm:$0xff] }
 0x552   : > { %9896 = vst [vmem:[%s15503_s29 + $0x48] sm:$0xff] %v9864_v19  ;;  %v9733_v13 = vmul.f32 %v15483_v28, %v9697_v49  ;;  %9671 = vmatmul.bf16.gmra.mxu1 %v15266_v41  ;;  %v9466_v49 = vrot.slane %v9464_v3, 4  ;;  %v9274_v29 = vadd.f32 %v15586_v56, %v8592_v25  ;;  %v9804_v56 = vld [vmem:[%s11765_s18 + $0x68] sm:$0xff] }
 0x554   : > { %v9769_v32 = vadd.f32 %v15488_v54, %v9733_v13  ;;  %v8541_v13 = vpop.f32.mrf.mxu3  ;;  %v9468_v43 = vsel %vm12239_vm13, %v9466_v49, %v9467_v46 }
 0x556   : > { %v9833_v42 = vadd.f32 %v9801_v51, %v9769_v32 }
 0x557   : > { %v9634_v18 = vpop.f32.mrf.mxu1 }
 0x558   : > { %v9865_v9 = vmax.f32 %v9833_v42, 0.0  ;;  %v9698_v5 = vadd.f32 %v9634_v18, %v9272_v2  ;;  %v9223_v42 = vpop.f32.mrf.mxu0  ;;  %v8230_v18 = vpop.f32.mrf.mxu2 }
 0x55a   : > { %9897 = vst [vmem:[%s15503_s29 + $0x50] sm:$0xff] %v9865_v9  ;;  %v9734_v41 = vmul.f32 %v15483_v28, %v9698_v5  ;;  %v8593_v9 = vadd.f32 %v15599_v44, %v8279_v53  ;;  %v9517_v5 = vunpack.c.l.b16 %v9468_v43 }
 0x55c   : > { %v9770_v38 = vadd.f32 %v15488_v54, %v9734_v41  ;;  %v8544_v26 = vpop.f32.mrf.mxu3 }
 0x55e   : > { %v9834_v63 = vadd.f32 %v9802_v27, %v9770_v38  ;;  %v9275_v27 = vadd.f32 %v15602_v59, %v8593_v9  ;;  %v8281_v59 = vadd.f32 %v15623_v61, %v15346_v10  ;;  %v8282_v10 = vadd.f32 %v15640_v6, %v15358_v22  ;;  %v9807_v9 = vld [vmem:[%s11765_s18 + $0x80] sm:$0xff] }
 0x55f   : > { %v9637_v35 = vpop.f32.mrf.mxu1 }
 0x560   : > { %v9866_v36 = vmax.f32 %v9834_v63, 0.0  ;;  %v9699_v37 = vadd.f32 %v9637_v35, %v9273_v14  ;;  %v8594_v35 = vadd.f32 %v15613_v11, %v8280_v12  ;;  %v8595_v49 = vadd.f32 %v15631_v17, %v8281_v59  ;;  %v9809_v59 = vld [vmem:[%s11765_s18 + $0x90] sm:$0xff] }
 0x561   : > { %v8596_v17 = vadd.f32 %v8541_v13, %v8282_v10 }
 0x562   : > { %9898 = vst [vmem:[%s15503_s29 + $0x58] sm:$0xff] %v9866_v36  ;;  %v9735_v19 = vmul.f32 %v15483_v28, %v9699_v37  ;;  %9676 = vmatmul.bf16.gmra.mxu1 %v15295_v47  ;;  %v9465_v47 = vsel %vm12239_vm13, %v11246_v20, %v9464_v3  ;;  %v9226_v3 = vpop.f32.mrf.mxu0  ;;  %v8232_v37 = vpop.f32.mrf.mxu2  ;;  %v9276_v25 = vadd.f32 %v15620_v24, %v8594_v35 }
 0x563   : > { %v9516_v4 = vunpack.c.l.b16 %v9465_v47  ;;  %v9277_v61 = vadd.f32 %v15637_v62, %v8595_v49  ;;  %v9278_v6 = vadd.f32 %v9223_v42, %v8596_v17 }
 0x564   : > { %v9771_v30 = vadd.f32 %v15488_v54, %v9735_v19  ;;  %v8546_v20 = vpop.f32.mrf.mxu3 }
 0x565   : > { %v9533_v38 = vpack.c.b16 %v9517_v5, %v9516_v4  ;;  %v8283_v4 = vadd.f32 %v8230_v18, %v15373_v33 }
 0x566   : > { %v9835_v51 = vadd.f32 %v9803_v0, %v9771_v30  ;;  %v9806_v30 = vld [vmem:[%s11765_s18 + $0x78] sm:$0xff] }
 0x567   : > { %v9639_v32 = vpop.f32.mrf.mxu1 }
 0x568   : > { %v9867_v2 = vmax.f32 %v9835_v51, 0.0  ;;  %v9700_v45 = vadd.f32 %v9639_v32, %v9274_v29 }
 0x56a   : > { %9899 = vst [vmem:[%s15503_s29 + $0x60] sm:$0xff] %v9867_v2  ;;  %v9736_v39 = vmul.f32 %v15483_v28, %v9700_v45  ;;  %v9228_v53 = vpop.f32.mrf.mxu0  ;;  %v8235_v29 = vpop.f32.mrf.mxu2 }
 0x56c   : > { %v9772_v1 = vadd.f32 %v15488_v54, %v9736_v39  ;;  %v8549_v45 = vpop.f32.mrf.mxu3 }
 0x56e   : > { %v9836_v41 = vadd.f32 %v9804_v56, %v9772_v1 }
 0x56f   : > { %v9642_v63 = vpop.f32.mrf.mxu1 }
 0x570   : > { %v9868_v44 = vmax.f32 %v9836_v41, 0.0  ;;  %v9701_v14 = vadd.f32 %v9642_v63, %v9275_v27  ;;  %v8597_v41 = vadd.f32 %v8544_v26, %v8283_v4  ;;  %v9808_v27 = vld [vmem:[%s11765_s18 + $0x88] sm:$0xff] }
 0x572   : > { %9900 = vst [vmem:[%s15503_s29 + $0x68] sm:$0xff] %v9868_v44  ;;  %v9737_v36 = vmul.f32 %v15483_v28, %v9701_v14  ;;  %9681 = vmatmul.bf16.gmra.mxu1 %v9533_v38  ;;  %v9231_v5 = vpop.f32.mrf.mxu0  ;;  %v8237_v56 = vpop.f32.mrf.mxu2  ;;  %v8284_v44 = vadd.f32 %v8232_v37, %v15385_v50  ;;  %v9279_v18 = vadd.f32 %v9226_v3, %v8597_v41  ;;  %v9812_v41 = vld [vmem:[%s11765_s18 + $0xa8] sm:$0xff] }
 0x574   : > { %v9773_v23 = vadd.f32 %v15488_v54, %v9737_v36  ;;  %v8551_v63 = vpop.f32.mrf.mxu3 }
 0x576   : > { %v9837_v7 = vadd.f32 %v9805_v8, %v9773_v23  ;;  %v8598_v23 = vadd.f32 %v8546_v20, %v8284_v44 }
 0x577   : > { %v9644_v19 = vpop.f32.mrf.mxu1 }
 0x578   : > { %v9869_v0 = vmax.f32 %v9837_v7, 0.0  ;;  %v9702_v11 = vadd.f32 %v9644_v19, %v9276_v25  ;;  %v8285_v25 = vadd.f32 %v8235_v29, %v15397_v40  ;;  %v9280_v50 = vadd.f32 %v9228_v53, %v8598_v23 }
 0x57a   : > { %9901 = vst [vmem:[%s15503_s29 + $0x70] sm:$0xff] %v9869_v0  ;;  %v9738_v46 = vmul.f32 %v15483_v28, %v9702_v11  ;;  %v9233_v42 = vpop.f32.mrf.mxu0  ;;  %v8240_v8 = vpop.f32.mrf.mxu2  ;;  %v8599_v49 = vadd.f32 %v8549_v45, %v8285_v25 }
 0x57b   : > { %v8287_v4 = vadd.f32 %v8240_v8, %v15414_v16 }
 0x57c   : > { %v9774_v51 = vadd.f32 %v15488_v54, %v9738_v46  ;;  %v8554_v37 = vpop.f32.mrf.mxu3  ;;  %v9281_v29 = vadd.f32 %v9231_v5, %v8599_v49 }
 0x57e   : > { %v9838_v24 = vadd.f32 %v9806_v30, %v9774_v51  ;;  %v9810_v51 = vld [vmem:[%s11765_s18 + $0x98] sm:$0xff] }
 0x57f   : > { %v9647_v32 = vpop.f32.mrf.mxu1 }
 0x580   : > { %v9870_v47 = vmax.f32 %v9838_v24, 0.0  ;;  %v9703_v43 = vadd.f32 %v9647_v32, %v9277_v61  ;;  %v8286_v24 = vadd.f32 %v8237_v56, %v15404_v34 }
 0x582   : > { %9902 = vst [vmem:[%s15503_s29 + $0x78] sm:$0xff] %v9870_v47  ;;  %v9739_v2 = vmul.f32 %v15483_v28, %v9703_v43  ;;  %v9236_v46 = vpop.f32.mrf.mxu0  ;;  %v8242_v30 = vpop.f32.mrf.mxu2  ;;  %v8600_v43 = vadd.f32 %v8551_v63, %v8286_v24 }
 0x584   : > { %v9775_v39 = vadd.f32 %v15488_v54, %v9739_v2  ;;  %v8556_v47 = vpop.f32.mrf.mxu3  ;;  %v9811_v2 = vld [vmem:[%s11765_s18 + $0xa0] sm:$0xff] }
 0x586   : > { %v9839_v22 = vadd.f32 %v9807_v9, %v9775_v39 }
 0x587   : > { %v9649_v62 = vpop.f32.mrf.mxu1 }
 0x588   : > { %v9871_v1 = vmax.f32 %v9839_v22, 0.0  ;;  %v9704_v12 = vadd.f32 %v9649_v62, %v9278_v6  ;;  %v9282_v22 = vadd.f32 %v9233_v42, %v8600_v43  ;;  %v8601_v62 = vadd.f32 %v8554_v37, %v8287_v4 }
 0x58a   : > { %9903 = vst [vmem:[%s15503_s29 + $0x80] sm:$0xff] %v9871_v1  ;;  %v9740_v13 = vmul.f32 %v15483_v28, %v9704_v12  ;;  %v9238_v45 = vpop.f32.mrf.mxu0  ;;  %v8245_v39 = vpop.f32.mrf.mxu2  ;;  %v9283_v16 = vadd.f32 %v9236_v46, %v8601_v62 }
 0x58c   : > { %v9776_v38 = vadd.f32 %v15488_v54, %v9740_v13  ;;  %v8559_v12 = vpop.f32.mrf.mxu3 }
 0x58e   : > { %v9840_v33 = vadd.f32 %v9808_v27, %v9776_v38  ;;  %v8288_v38 = vadd.f32 %v8242_v30, %v15430_v57 }
 0x58f   : > { %v9652_v14 = vpop.f32.mrf.mxu1 }
 0x590   : > { %v9872_v35 = vmax.f32 %v9840_v33, 0.0  ;;  %v9705_v36 = vadd.f32 %v9652_v14, %v9279_v18  ;;  %v8602_v42 = vadd.f32 %v8556_v47, %v8288_v38 }
 0x592   : > { %9904 = vst [vmem:[%s15503_s29 + $0x88] sm:$0xff] %v9872_v35  ;;  %v9741_v26 = vmul.f32 %v15483_v28, %v9705_v36  ;;  %v9241_v27 = vpop.f32.mrf.mxu0  ;;  %v8247_v44 = vpop.f32.mrf.mxu2  ;;  %v9813_v36 = vld [vmem:[%s11765_s18 + $0xb0] sm:$0xff]  ;;  %v9284_v57 = vadd.f32 %v9238_v45, %v8602_v42 }
 0x593   : > { %v8290_v46 = vadd.f32 %v8247_v44, %v15448_v48 }
 0x594   : > { %v9777_v7 = vadd.f32 %v15488_v54, %v9741_v26  ;;  %v8561_v23 = vpop.f32.mrf.mxu3  ;;  %v8289_v26 = vadd.f32 %v8245_v39, %v15441_v52 }
 0x596   : > { %v9841_v19 = vadd.f32 %v9809_v59, %v9777_v7 }
 0x597   : > { %v9654_v3 = vpop.f32.mrf.mxu1 }
 0x598   : > { %v9873_v0 = vmax.f32 %v9841_v19, 0.0  ;;  %v9706_v11 = vadd.f32 %v9654_v3, %v9280_v50  ;;  %v8603_v3 = vadd.f32 %v8559_v12, %v8289_v26 }
 0x59a   : > { %9905 = vst [vmem:[%s15503_s29 + $0x90] sm:$0xff] %v9873_v0  ;;  %v9742_v20 = vmul.f32 %v15483_v28, %v9706_v11  ;;  %v9243_v25 = vpop.f32.mrf.mxu0  ;;  %v8250_v37 = vpop.f32.mrf.mxu2  ;;  %v9814_v11 = vld [vmem:[%s11765_s18 + $0xb8] sm:$0xff]  ;;  %v9285_v52 = vadd.f32 %v9241_v27, %v8603_v3 }
 0x59b   : > { %v8291_v43 = vadd.f32 %v8250_v37, %v15453_v31 }
 0x59c   : > { %v9778_v10 = vadd.f32 %v15488_v54, %v9742_v20  ;;  %v8564_v30 = vpop.f32.mrf.mxu3 }
 0x59d   : > { %v8605_v4 = vadd.f32 %v8564_v30, %v8291_v43  ;;  %v9820_v43 = vld [vmem:[%s11765_s18 + $0xe8] sm:$0xff] }
 0x59e   : > { %v9842_v40 = vadd.f32 %v9810_v51, %v9778_v10 }
 0x59f   : > { %v9657_v53 = vpop.f32.mrf.mxu1 }
 0x5a0   : > { %v9874_v61 = vmax.f32 %v9842_v40, 0.0  ;;  %v9707_v32 = vadd.f32 %v9657_v53, %v9281_v29  ;;  %v8604_v29 = vadd.f32 %v8561_v23, %v8290_v46 }
 0x5a2   : > { %9906 = vst [vmem:[%s15503_s29 + $0x98] sm:$0xff] %v9874_v61  ;;  %v9743_v17 = vmul.f32 %v15483_v28, %v9707_v32  ;;  %v9246_v40 = vpop.f32.mrf.mxu0  ;;  %v8252_v61 = vpop.f32.mrf.mxu2  ;;  %v9815_v32 = vld [vmem:[%s11765_s18 + $0xc0] sm:$0xff] }
 0x5a3   : > { %v8292_v62 = vadd.f32 %v8252_v61, %v15458_v58 }
 0x5a4   : > { %v9779_v9 = vadd.f32 %v15488_v54, %v9743_v17  ;;  %v9286_v17 = vadd.f32 %v9243_v25, %v8604_v29  ;;  %v8566_v39 = vpop.f32.mrf.mxu3 }
 0x5a5   : > { %v8606_v27 = vadd.f32 %v8566_v39, %v8292_v62 }
 0x5a6   : > { %v9843_v34 = vadd.f32 %v9811_v2, %v9779_v9 }
 0x5a7   : > { %v9659_v5 = vpop.f32.mrf.mxu1 }
 0x5a8   : > { %v9875_v6 = vmax.f32 %v9843_v34, 0.0  ;;  %v9708_v56 = vadd.f32 %v9659_v5, %v9282_v22  ;;  %v9816_v22 = vld [vmem:[%s11765_s18 + $0xc8] sm:$0xff] }
 0x5aa   : > { %9907 = vst [vmem:[%s15503_s29 + $0xa0] sm:$0xff] %v9875_v6  ;;  %v9744_v1 = vmul.f32 %v15483_v28, %v9708_v56  ;;  %v9248_v5 = vpop.f32.mrf.mxu0  ;;  %v8255_v56 = vpop.f32.mrf.mxu2 }
 0x5ab   : > { %v9288_v58 = vadd.f32 %v9248_v5, %v8606_v27 }
 0x5ac   : > { %v9780_v13 = vadd.f32 %v15488_v54, %v9744_v1  ;;  %v9287_v1 = vadd.f32 %v9246_v40, %v8605_v4 }
 0x5ae   : > { %v9844_v63 = vadd.f32 %v9812_v41, %v9780_v13 }
 0x5af   : > { %v9662_v33 = vpop.f32.mrf.mxu1 }
 0x5b0   : > { %v9876_v18 = vmax.f32 %v9844_v63, 0.0  ;;  %v9709_v14 = vadd.f32 %v9662_v33, %v9283_v16  ;;  %v8569_v63 = vpop.f32.mrf.mxu3  ;;  %v9817_v16 = vld [vmem:[%s11765_s18 + $0xd0] sm:$0xff] }
 0x5b2   : > { %9908 = vst [vmem:[%s15503_s29 + $0xa8] sm:$0xff] %v9876_v18  ;;  %v9745_v35 = vmul.f32 %v15483_v28, %v9709_v14  ;;  %v9251_v33 = vpop.f32.mrf.mxu0  ;;  %v8293_v18 = vadd.f32 %v8255_v56, %v15462_v21  ;;  %v8257_v42 = vpop.f32.mrf.mxu2 }
 0x5b3   : > { %v8294_v25 = vadd.f32 %v8257_v42, %v15467_v15 }
 0x5b4   : > { %v9781_v8 = vadd.f32 %v15488_v54, %v9745_v35  ;;  %v8607_v23 = vadd.f32 %v8569_v63, %v8293_v18 }
 0x5b6   : > { %v9845_v59 = vadd.f32 %v9813_v36, %v9781_v8  ;;  %v9289_v21 = vadd.f32 %v9251_v33, %v8607_v23 }
 0x5b7   : > { %v9664_v7 = vpop.f32.mrf.mxu1 }
 0x5b8   : > { %v9877_v19 = vmax.f32 %v9845_v59, 0.0  ;;  %v9710_v50 = vadd.f32 %v9664_v7, %v9284_v57  ;;  %v9818_v59 = vld [vmem:[%s11765_s18 + $0xd8] sm:$0xff]  ;;  %v8571_v7 = vpop.f32.mrf.mxu3 }
 0x5ba   : > { %9909 = vst [vmem:[%s15503_s29 + $0xb0] sm:$0xff] %v9877_v19  ;;  %v9746_v0 = vmul.f32 %v15483_v28, %v9710_v50 }
 0x5bc   : > { %v9782_v49 = vadd.f32 %v15488_v54, %v9746_v0  ;;  %v9253_v0 = vpop.f32.mrf.mxu0 }
 0x5be   : > { %v9846_v20 = vadd.f32 %v9814_v11, %v9782_v49  ;;  %v8260_v11 = vpop.f32.mrf.mxu2  ;;  %v8608_v49 = vadd.f32 %v8571_v7, %v8294_v25 }
 0x5bf   : > { %v9667_v51 = vpop.f32.mrf.mxu1 }
 0x5c0   : > { %v9878_v10 = vmax.f32 %v9846_v20, 0.0  ;;  %v9711_v24 = vadd.f32 %v9667_v51, %v9285_v52  ;;  %v9819_v20 = vld [vmem:[%s11765_s18 + $0xe0] sm:$0xff]  ;;  %v8574_v30 = vpop.f32.mrf.mxu3  ;;  %v8295_v51 = vadd.f32 %v8260_v11, %v15471_v60 }
 0x5c2   : > { %9910 = vst [vmem:[%s15503_s29 + $0xb8] sm:$0xff] %v9878_v10  ;;  %v9747_v53 = vmul.f32 %v15483_v28, %v9711_v24  ;;  %v9290_v10 = vadd.f32 %v9253_v0, %v8608_v49  ;;  %v8609_v61 = vadd.f32 %v8574_v30, %v8295_v51 }
 0x5c4   : > { %v9783_v47 = vadd.f32 %v15488_v54, %v9747_v53  ;;  %v9256_v53 = vpop.f32.mrf.mxu0 }
 0x5c6   : > { %v9847_v48 = vadd.f32 %v9815_v32, %v9783_v47  ;;  %v8262_v47 = vpop.f32.mrf.mxu2 }
 0x5c7   : > { %v9669_v2 = vpop.f32.mrf.mxu1 }
 0x5c8   : > { %v9879_v45 = vmax.f32 %v9847_v48, 0.0  ;;  %v9712_v9 = vadd.f32 %v9669_v2, %v9286_v17  ;;  %v9291_v17 = vadd.f32 %v9256_v53, %v8609_v61  ;;  %v8296_v2 = vadd.f32 %v8262_v47, %v15476_v55 }
 0x5ca   : > { %9911 = vst [vmem:[%s15503_s29 + $0xc0] sm:$0xff] %v9879_v45  ;;  %v9748_v34 = vmul.f32 %v15483_v28, %v9712_v9  ;;  %v8576_v45 = vpop.f32.mrf.mxu3 }
 0x5cc   : > { %v9784_v6 = vadd.f32 %v15488_v54, %v9748_v34  ;;  %v8610_v34 = vadd.f32 %v8576_v45, %v8296_v2  ;;  %v9258_v5 = vpop.f32.mrf.mxu0 }
 0x5ce   : > { %v9848_v31 = vadd.f32 %v9816_v22, %v9784_v6  ;;  %v9821_v6 = vld [vmem:[%s11765_s18 + $0xf0] sm:$0xff]  ;;  %v9292_v62 = vadd.f32 %v9258_v5, %v8610_v34 }
 0x5cf   : > { %v9672_v12 = vpop.f32.mrf.mxu1 }
 0x5d0   : > { %v9880_v41 = vmax.f32 %v9848_v31, 0.0  ;;  %v9713_v13 = vadd.f32 %v9672_v12, %v9287_v1 }
 0x5d2   : > { %9912 = vst [vmem:[%s15503_s29 + $0xc8] sm:$0xff] %v9880_v41  ;;  %v9749_v38 = vmul.f32 %v15483_v28, %v9713_v13  ;;  %v9822_v13 = vld [vmem:[%s11765_s18 + $0xf8] sm:$0xff] }
 0x5d4   : > { %v9785_v44 = vadd.f32 %v15488_v54, %v9749_v38 }
 0x5d6   : > { %v9849_v14 = vadd.f32 %v9817_v16, %v9785_v44 }
 0x5d7   : > { %v9674_v35 = vpop.f32.mrf.mxu1 }
 0x5d8   : > { %v9881_v36 = vmax.f32 %v9849_v14, 0.0  ;;  %v9714_v8 = vadd.f32 %v9674_v35, %v9288_v58 }
 0x5da   : > { %9913 = vst [vmem:[%s15503_s29 + $0xd0] sm:$0xff] %v9881_v36  ;;  %v9750_v26 = vmul.f32 %v15483_v28, %v9714_v8 }
 0x5dc   : > { %v9786_v57 = vadd.f32 %v15488_v54, %v9750_v26 }
 0x5de   : > { %v9850_v19 = vadd.f32 %v9818_v59, %v9786_v57 }
 0x5df   : > { %v9677_v50 = vpop.f32.mrf.mxu1 }
 0x5e0   : > { %v9882_v37 = vmax.f32 %v9850_v19, 0.0  ;;  %v9715_v3 = vadd.f32 %v9677_v50, %v9289_v21 }
 0x5e2   : > { %9914 = vst [vmem:[%s15503_s29 + $0xd8] sm:$0xff] %v9882_v37  ;;  %v9751_v46 = vmul.f32 %v15483_v28, %v9715_v3 }
 0x5e4   : > { %v9787_v52 = vadd.f32 %v15488_v54, %v9751_v46 }
 0x5e6   : > { %v9851_v15 = vadd.f32 %v9819_v20, %v9787_v52 }
 0x5e7   : > { %v9679_v24 = vpop.f32.mrf.mxu1 }
 0x5e8   : > { %v9883_v40 = vmax.f32 %v9851_v15, 0.0  ;;  %v9716_v29 = vadd.f32 %v9679_v24, %v9290_v10 }
 0x5ea   : > { %9915 = vst [vmem:[%s15503_s29 + $0xe0] sm:$0xff] %v9883_v40  ;;  %v9752_v32 = vmul.f32 %v15483_v28, %v9716_v29 }
 0x5ec   : > { %v9788_v48 = vadd.f32 %v15488_v54, %v9752_v32 }
 0x5ee   : > { %v9852_v60 = vadd.f32 %v9820_v43, %v9788_v48 }
 0x5ef   : > { %v9682_v9 = vpop.f32.mrf.mxu1 }
 0x5f0   : > { %v9884_v39 = vmax.f32 %v9852_v60, 0.0  ;;  %v9717_v4 = vadd.f32 %v9682_v9, %v9291_v17 }
 0x5f2   : > { %9916 = vst [vmem:[%s15503_s29 + $0xe8] sm:$0xff] %v9884_v39  ;;  %v9753_v22 = vmul.f32 %v15483_v28, %v9717_v4 }
 0x5f4   : > { %v9789_v56 = vadd.f32 %v15488_v54, %v9753_v22 }
 0x5f6   : > { %v9853_v31 = vadd.f32 %v9821_v6, %v9789_v56 }
 0x5f7   : > { %v9684_v1 = vpop.f32.mrf.mxu1 }
 0x5f8   : > { %v9885_v55 = vmax.f32 %v9853_v31, 0.0  ;;  %v9718_v12 = vadd.f32 %v9684_v1, %v9292_v62 }
 0x5fa   : > { %9917 = vst [vmem:[%s15503_s29 + $0xf0] sm:$0xff] %v9885_v55  ;;  %v9754_v41 = vmul.f32 %v15483_v28, %v9718_v12 }
 0x5fc   : > { %v9790_v27 = vadd.f32 %v15488_v54, %v9754_v41 }
 0x5fe   : > { %v9854_v38 = vadd.f32 %v9822_v13, %v9790_v27 }
 0x600   : > { %v9886_v63 = vmax.f32 %v9854_v38, 0.0 }
 0x602   : > { %9918 = vst [vmem:[%s15503_s29 + $0xf8] sm:$0xff] %v9886_v63 }
 0x603 PF: > { %s17_s24 = sadd.s32 1, %s11613_s24  }
 0x604   : > { %p14_p4 = scmp.ge.s32.totalorder %s17_s24, 4  }
 0x606   :  { %16 = sbr.rel (!%p14_p4) target bundleno = 1 (0x1), region = 96 }

</bundles_post_ra>
